<compile_context>
chip_gen: v7x
topology: tpu7x:2x2x1
jax: 0.10.0
libtpu: 0.0.40
codegen_flags: <defaults>
</compile_context>

<pallas_src>
import jax
import jax.numpy as jnp
from jax.experimental import pallas as pl
from jax.experimental.pallas import tpu as pltpu

IN_DIM = 2048
HID_DIM = 1024
OUT_DIM = 1


def _sunny_kernel(x_ref, w1_ref, b1_ref, w2_ref, b2_ref, o_ref):
    # fc1: full-K MXU matmul, bf16 operands, f32 accumulation.
    h = jnp.dot(
        x_ref[...].astype(jnp.bfloat16),
        w1_ref[...],
        preferred_element_type=jnp.float32,
    )
    h = jnp.maximum(h + b1_ref[...], 0.0)            # bias + relu (f32, VPU)
    # dropout1: eval-mode identity (no-op)
    # fc2 (N=1): VPU multiply + lane reduction (XLU), then tanh (EUP).
    y = jnp.sum(h * w2_ref[...], axis=-1, keepdims=True) + b2_ref[0, 0]
    o_ref[...] = jnp.tanh(y).astype(o_ref.dtype)


def _pick_batch_tile(batch):
    """256-row tiles when that still leaves >=2 tiles (v7x megacore), else 128;
    a single full-extent tile for tiny batches."""
    if batch <= 128:
        return batch
    if batch >= 512:
        return 256
    return 128


def sunny_resection_forward(x, w1_bf16, b1, w2_row, b2):
    """x: [B, 2048] f32 -> [B, 1] f32."""
    B = x.shape[0]
    tb = _pick_batch_tile(B)
    grid = (pl.cdiv(B, tb),)

    out = pl.pallas_call(
        _sunny_kernel,
        out_shape=jax.ShapeDtypeStruct((B, OUT_DIM), jnp.float32),
        grid_spec=pltpu.PrefetchScalarGridSpec(
            num_scalar_prefetch=0,
            grid=grid,
            in_specs=[
                pl.BlockSpec((tb, IN_DIM), lambda i: (i, 0)),        # x tile
                pl.BlockSpec((IN_DIM, HID_DIM), lambda i: (0, 0)),   # w1 (VMEM-resident, bf16)
                pl.BlockSpec((1, HID_DIM), lambda i: (0, 0)),        # b1 (resident)
                pl.BlockSpec((1, HID_DIM), lambda i: (0, 0)),        # w2 row (resident)
                pl.BlockSpec((1, 1), lambda i: (0, 0),
                             memory_space=pltpu.MemorySpace.SMEM),   # b2 scalar
            ],
            out_specs=pl.BlockSpec((tb, OUT_DIM), lambda i: (i, 0)),
        ),
        compiler_params=pltpu.CompilerParams(
            dimension_semantics=("parallel",),
            vmem_limit_bytes=32 * 1024 * 1024,
        ),
    )(x, w1_bf16, b1, w2_row, b2)
    return out


def init_params(key):
    """PyTorch Linear default init: U(-1/sqrt(fan_in), +1/sqrt(fan_in))."""
    k1, k2, k3, k4 = jax.random.split(key, 4)
    bound1 = 1.0 / jnp.sqrt(IN_DIM)
    bound2 = 1.0 / jnp.sqrt(HID_DIM)
    # Stored as [in, out] (transposed relative to torch's [out, in]); w1 in bf16.
    w1 = jax.random.uniform(k1, (IN_DIM, HID_DIM), jnp.float32, -bound1, bound1)
    b1 = jax.random.uniform(k2, (1, HID_DIM), jnp.float32, -bound1, bound1)
    w2_row = jax.random.uniform(k3, (1, HID_DIM), jnp.float32, -bound2, bound2)
    b2 = jax.random.uniform(k4, (1, 1), jnp.float32, -bound2, bound2)
    return w1.astype(jnp.bfloat16), b1, w2_row, b2


def reference_forward(x, w1_bf16, b1, w2_row, b2):
    h = jnp.dot(x.astype(jnp.bfloat16), w1_bf16,
                preferred_element_type=jnp.float32) + b1
    h = jnp.maximum(h, 0.0)
    return jnp.tanh(jnp.sum(h * w2_row, axis=-1, keepdims=True) + b2)


if __name__ == "__main__":
    key = jax.random.PRNGKey(0)
    kx, kp = jax.random.split(key)

    # batch=160: two 128-row tiles (a full one and a partial 32-row one), so
    # the "parallel" batch axis, partial-block masking and the un-padded grid
    # are all exercised while staying small.
    batch = 160
    x = jax.random.normal(kx, (batch, IN_DIM), jnp.float32)
    w1_bf16, b1, w2_row, b2 = init_params(kp)

    out = sunny_resection_forward(x, w1_bf16, b1, w2_row, b2)
    out = jax.block_until_ready(out)

    ref = reference_forward(x, w1_bf16, b1, w2_row, b2)
    assert out.shape == (batch, OUT_DIM), out.shape
    assert jnp.allclose(out, ref, atol=2e-3, rtol=2e-3), (
        float(jnp.max(jnp.abs(out - ref))))

    print("KERNEL_OK")
</pallas_src>

<mosaic_0001>
module attributes {stable_mosaic.version = 11 : i64} {
  func.func @_sunny_kernel(%arg0: i32, %arg1: memref<128x2048xf32, #tpu.memory_space<vmem>>, %arg2: memref<2048x1024xbf16, #tpu.memory_space<vmem>>, %arg3: memref<1x1024xf32, #tpu.memory_space<vmem>>, %arg4: memref<1x1024xf32, #tpu.memory_space<vmem>>, %arg5: memref<1x1xf32, #tpu.memory_space<smem>>, %arg6: memref<128x1xf32, #tpu.memory_space<vmem>>) attributes {dimension_semantics = [#tpu.dimension_semantics<parallel>], iteration_bounds = array<i64: 2>, scalar_prefetch = 0 : i64, scratch_operands = 0 : i64, tpu.core_type = #tpu.core_type<tc>, window_params = [{transform_indices = @transform_0, window_bounds = array<i64: 128, 2048>}, {pipeline_mode = #tpu.pipeline_mode<synchronous>, transform_indices = @transform_1, window_bounds = array<i64: 2048, 1024>}, {pipeline_mode = #tpu.pipeline_mode<synchronous>, transform_indices = @transform_2, window_bounds = array<i64: 1, 1024>}, {pipeline_mode = #tpu.pipeline_mode<synchronous>, transform_indices = @transform_3, window_bounds = array<i64: 1, 1024>}, {transform_indices = @transform_4, window_bounds = array<i64: 1, 1>}, {transform_indices = @transform_5, window_bounds = array<i64: 128, 1>}]} {
    %c0 = arith.constant 0 : index
    %c0_0 = arith.constant 0 : index
    %0 = vector.load %arg1[%c0, %c0_0] : memref<128x2048xf32, #tpu.memory_space<vmem>>, vector<128x2048xf32>
    %1 = arith.truncf %0 : vector<128x2048xf32> to vector<128x2048xbf16>
    %c0_1 = arith.constant 0 : index
    %c0_2 = arith.constant 0 : index
    %2 = vector.load %arg2[%c0_1, %c0_2] : memref<2048x1024xbf16, #tpu.memory_space<vmem>>, vector<2048x1024xbf16>
    %cst = arith.constant dense<0.000000e+00> : vector<128x1024xf32>
    %3 = tpu.matmul %1, %2, %cst {dimension_numbers = #tpu.dot_dimension_numbers<[1], [0], [0], [1], [0, 0, 1, 1], [], []>} : vector<128x2048xbf16>, vector<2048x1024xbf16>, vector<128x1024xf32> -> vector<128x1024xf32>
    %c0_3 = arith.constant 0 : index
    %c0_4 = arith.constant 0 : index
    %4 = vector.load %arg3[%c0_3, %c0_4] : memref<1x1024xf32, #tpu.memory_space<vmem>>, vector<1x1024xf32>
    %5 = vector.broadcast %4 : vector<1x1024xf32> to vector<128x1024xf32>
    %6 = arith.addf %3, %5 : vector<128x1024xf32>
    %cst_5 = arith.constant 0.000000e+00 : f32
    %7 = vector.broadcast %cst_5 : f32 to vector<128x1024xf32>
    %8 = arith.maximumf %6, %7 : vector<128x1024xf32>
    %c0_6 = arith.constant 0 : index
    %c0_7 = arith.constant 0 : index
    %9 = vector.load %arg4[%c0_6, %c0_7] : memref<1x1024xf32, #tpu.memory_space<vmem>>, vector<1x1024xf32>
    %10 = vector.broadcast %9 : vector<1x1024xf32> to vector<128x1024xf32>
    %11 = arith.mulf %8, %10 : vector<128x1024xf32>
    %cst_8 = arith.constant dense<0.000000e+00> : vector<128xf32>
    %12 = vector.multi_reduction <add>, %11, %cst_8 [1] : vector<128x1024xf32> to vector<128xf32>
    %13 = vector.shape_cast %12 : vector<128xf32> to vector<128x1xf32>
    %c0_9 = arith.constant 0 : index
    %c0_10 = arith.constant 0 : index
    %14 = memref.load %arg5[%c0_9, %c0_10] : memref<1x1xf32, #tpu.memory_space<smem>>
    %15 = vector.broadcast %14 : f32 to vector<128x1xf32>
    %16 = arith.addf %13, %15 : vector<128x1xf32>
    %17 = math.tanh %16 : vector<128x1xf32>
    %c0_11 = arith.constant 0 : index
    %c0_12 = arith.constant 0 : index
    %18 = vector.load %arg6[%c0_11, %c0_12] : memref<128x1xf32, #tpu.memory_space<vmem>>, vector<128x1xf32>
    tpu.vector_store %arg6[%c0_11, %c0_12], %17 {strides = array<i32>} : memref<128x1xf32, #tpu.memory_space<vmem>>, vector<128x1xf32>,
    return
  }
  func.func @transform_0(%arg0: i32) -> (i32, i32) {
    %c0_i32 = arith.constant 0 : i32
    %c0_i32_0 = arith.constant 0 : i32
    return %arg0, %c0_i32 : i32, i32
  }
  func.func @transform_1(%arg0: i32) -> (i32, i32) {
    %c0_i32 = arith.constant 0 : i32
    %c0_i32_0 = arith.constant 0 : i32
    %c0_i32_1 = arith.constant 0 : i32
    return %c0_i32, %c0_i32_0 : i32, i32
  }
  func.func @transform_2(%arg0: i32) -> (i32, i32) {
    %c0_i32 = arith.constant 0 : i32
    %c0_i32_0 = arith.constant 0 : i32
    %c0_i32_1 = arith.constant 0 : i32
    return %c0_i32, %c0_i32_0 : i32, i32
  }
  func.func @transform_3(%arg0: i32) -> (i32, i32) {
    %c0_i32 = arith.constant 0 : i32
    %c0_i32_0 = arith.constant 0 : i32
    %c0_i32_1 = arith.constant 0 : i32
    return %c0_i32, %c0_i32_0 : i32, i32
  }
  func.func @transform_4(%arg0: i32) -> (i32, i32) {
    %c0_i32 = arith.constant 0 : i32
    %c0_i32_0 = arith.constant 0 : i32
    %c0_i32_1 = arith.constant 0 : i32
    return %c0_i32, %c0_i32_0 : i32, i32
  }
  func.func @transform_5(%arg0: i32) -> (i32, i32) {
    %c0_i32 = arith.constant 0 : i32
    %c0_i32_0 = arith.constant 0 : i32
    return %arg0, %c0_i32 : i32, i32
  }
}

</mosaic_0001>

<bundles_post_ra>
// kernel: tpu_custom_call.1
= control target key start
LH: loop header
LB: loop body
LE: loop exit
PB: predicated region body
PF: predicated region fallthrough
CT: control target
= control target key end

     0   :  { %s16117_s0 = inlined_call_operand.hbm [shape: f32[160,2048], index: 0, kind: input, shape index: {}]   ;;  %s16118_s1 = inlined_call_operand.hbm [shape: bf16[2048,1024], index: 1, kind: input, shape index: {}]   ;;  %s16119_s2 = inlined_call_operand.hbm [shape: f32[1,1024], index: 2, kind: input, shape index: {}]   ;;  %s16120_s3 = inlined_call_operand.hbm [shape: f32[1,1024], index: 3, kind: input, shape index: {}]   ;;  %s16121_s4 = inlined_call_operand.<no memory space> [shape: f32[1,1], index: 4, kind: input, shape index: {}]   ;;  %s16122_s5 = inlined_call_operand.vmem [shape: f32[160,1], index: 5, kind: output, shape index: {}]  }
   0x1   :  { %10 = sst [smem:[#allocation2]] %s16121_s4 }
   0x2   :  { %11 = vsyncpa [#allocation4], 0 }
   0x3   :  { %13 = vsyncpa [#allocation4 + $0x1], 0 }
   0x4   :  { %14 = vsyncpa [#allocation6], 0 }
   0x5   :  { %15 = vsyncpa [#allocation9], 0  ;;  %s13812_s20 = smov 0   ;;  %s13814_s21 = smov 0  }
   0x6   :  { %s13816_s22 = smov 0   ;;  %s13818_s23 = smov 0  }
   0x7 LB: > { %s13831_s4 = sadd.s32 4294967295, %s13737_s23   ;;  %s13834_s24 = sadd.s32 1, %s13737_s23   ;;  %s13737_s23 = sphi %s13818_s23, %s16631_s23   ;;  %s13733_s22 = sphi %s13816_s22, %s16630_s22   ;;  %s13729_s21 = sphi %s13814_s21, %s16629_s21   ;;  %s13725_s20 = sphi %s13812_s20, %s16628_s20  }
   0x8   : > { %s25_s25 = ssub.s32 %s13737_s23, %s13834_s24  ;;  %s28_s26 = sadd.s32 1, %s13733_s22 }
   0x9   : > { %p26_p0 = scmp.eq.s32.totalorder %s25_s25, 0  ;;  %p35_p1 = scmp.ne.s32.totalorder %s13733_s22, %s13729_s21 }
   0xa   : > { %p36_p2 = scmp.eq.s32.totalorder %s13737_s23, 0  ;;  %p41_p3 = scmp.ne.s32.totalorder %s13729_s21, %s13725_s20 }
   0xb   : > { %s13844_s27 = scalar_select %p26_p0, %s13733_s22, %s28_s26  }
   0xc   : > { %p13846_p4 = por %p36_p2, %p35_p1  ;;  %p16123_p5 = scmp.eq.s32.totalorder %s13831_s4, 0 }
   0xd   : > { %p149_p6 = scmp.eq.s32.totalorder %s13831_s4, 1  ;;  %p11294_p7 = scmp.ge.s32.totalorder %s13737_s23, 1 }
   0xe   : > { %s16334_s28 = scalar_select %p13846_p4, 1, 0 }
   0xf   : > { %p13855_p8 = por %p16123_p5, %p41_p3  ;;  %p162_p9 = scmp.lt.s32.totalorder %s13737_s23, 3 }
  0x10   : > { %p13860_p10 = por %p149_p6, %p35_p1  ;;  %s13771_s7 = smov [#allocation5]  }
  0x11   : > { %s16335_s29 = scalar_select %p13855_p8, 1, 0 }
  0x12   : > { %s16336_s30 = scalar_select %p13860_p10, 1, 0 }
  0x13   : > { %p13864_p11 = pnand %p11294_p7, %p162_p9  ;;  %s174_s8 = sshll.u32 %s13771_s7, 4  ;;  %s13870_s8 = int_to_ptr.vmem [resolvable:$true] %s174_s8 }
  0x14   : > { %s13772_s10 = smov [#allocation7]   ;;  %s13773_s12 = smov [#allocation8]  }
  0x15   : > { %s16337_s6 = scalar_select %p13864_p11, 1, 0 }
  0x16   : > { %p13398_p12 = pneg %p13864_p11  ;;  %s188_s11 = sshll.u32 %s13772_s10, 4  ;;  %s13878_s11 = int_to_ptr.vmem [resolvable:$true] %s188_s11 }
  0x17   : > { %s13880_s13 = sshll.u32 %s13773_s12, 4  ;;  %s13551_s16 = scalar_lea.hbm %s16118_s1, 131072  ;;  %s200_s13 = int_to_ptr.vmem [resolvable:$true] %s13880_s13 }
  0x18   : > { %p13874_p13 = pnand %p13398_p12, %p16123_p5  ;;  %p13552_p0 = scmp.ne.s32.totalorder %s16118_s1, %s13551_s16 }
  0x19   : > { %p13558_p6 = scmp.lt.u32.totalorder %s13551_s16, %s16118_s1 }
  0x1a   : > { %p13890_p1 = pneg %p13874_p13 }
  0x1c   : > { %p13554_p2 = pnand %p13890_p1, %p13552_p0 }
  0x1e   : > { %p13555_p3 = pneg %p13554_p2 }
  0x20   : > { %p13560_p7 = pnand %p13558_p6, %p13555_p3 }
  0x22   : > { %13563 = shalt.err (!%p13560_p7)
}
  0x23   : > { %s13564_s26 = scalar_lea.vmem %s13870_s8, 131072  ;;  %p13572_p10 = scmp.lt.s32.totalorder %s13870_s8, %s13870_s8 }
  0x24   : > { %p13565_p9 = scmp.ne.s32.totalorder %s13870_s8, %s13564_s26  ;;  %p13573_p8 = scmp.lt.s32.totalorder %s13564_s26, %s13564_s26 }
  0x26   : > { %p13567_p12 = pnand %p13565_p9, %p13890_p1  ;;  %p13574_p0 = por %p13573_p8, %p13572_p10 }
  0x28   : > { %p13568_p5 = pneg %p13567_p12 }
  0x2a   : > { %p13575_p2 = pnand %p13574_p0, %p13568_p5 }
  0x2c   : > { %13578 = shalt.err (!%p13575_p2)
}
  0x2d   : > { %s13774_s7 = smov 512   ;;  %s13775_s10 = smov 32  }
  0x2e   : > { %13401 = dma.hbm_to_vmem [thread:$0]  (!%p13874_p13), %s16118_s1, 131072, %s13870_s8, [#allocation6], %s13774_s7, %s13774_s7, %s13775_s10  }
  0x2f   : > { %s13579_s17 = scalar_lea.hbm %s16119_s2, 128 }
  0x30   : > { %p13580_p8 = scmp.ne.s32.totalorder %s16119_s2, %s13579_s17  ;;  %p13586_p3 = scmp.lt.u32.totalorder %s13579_s17, %s16119_s2 }
  0x32   : > { %p13582_p5 = pnand %p13580_p8, %p13890_p1 }
  0x34   : > { %p13583_p10 = pneg %p13582_p5 }
  0x36   : > { %p13588_p6 = pnand %p13586_p3, %p13583_p10 }
  0x38   : > { %13591 = shalt.err (!%p13588_p6)
}
  0x39   : > { %s13592_s8 = scalar_lea.vmem %s13878_s11, 128  ;;  %p13600_p0 = scmp.lt.s32.totalorder %s13878_s11, %s13878_s11 }
  0x3a   : > { %p13593_p7 = scmp.ne.s32.totalorder %s13878_s11, %s13592_s8  ;;  %p13601_p2 = scmp.lt.s32.totalorder %s13592_s8, %s13592_s8 }
  0x3c   : > { %p13595_p9 = pnand %p13593_p7, %p13890_p1  ;;  %p13602_p8 = por %p13601_p2, %p13600_p0 }
  0x3e   : > { %p13596_p12 = pneg %p13595_p9 }
  0x40   : > { %p13603_p5 = pnand %p13602_p8, %p13596_p12 }
  0x42   : > { %13606 = shalt.err (!%p13603_p5)
}
  0x43   : > { %13404 = dma.hbm_to_vmem [thread:$0]  (!%p13874_p13), %s16119_s2, 128, %s13878_s11, [#allocation6]  }
  0x44   : > { %s13607_s15 = scalar_lea.hbm %s16120_s3, 128 }
  0x45   : > { %p13608_p10 = scmp.ne.s32.totalorder %s16120_s3, %s13607_s15  ;;  %p13614_p7 = scmp.lt.u32.totalorder %s13607_s15, %s16120_s3 }
  0x47   : > { %p13610_p3 = pnand %p13608_p10, %p13890_p1 }
  0x49   : > { %p13611_p6 = pneg %p13610_p3 }
  0x4b   : > { %p13616_p9 = pnand %p13614_p7, %p13611_p6 }
  0x4d   : > { %13619 = shalt.err (!%p13616_p9)
}
  0x4e   : > { %s13620_s25 = scalar_lea.vmem %s200_s13, 128  ;;  %p13628_p8 = scmp.lt.s32.totalorder %s200_s13, %s200_s13 }
  0x4f   : > { %p13621_p12 = scmp.ne.s32.totalorder %s200_s13, %s13620_s25  ;;  %p13629_p5 = scmp.lt.s32.totalorder %s13620_s25, %s13620_s25 }
  0x51   : > { %p13623_p0 = pnand %p13621_p12, %p13890_p1  ;;  %p13630_p11 = por %p13629_p5, %p13628_p8 }
  0x53   : > { %p13624_p2 = pneg %p13623_p0 }
  0x55   : > { %p13631_p4 = pnand %p13630_p11, %p13624_p2 }
  0x57   : > { %13634 = shalt.err (!%p13631_p4)
}
  0x58   : > { %13407 = dma.hbm_to_vmem [thread:$0]  (!%p13874_p13), %s16120_s3, 128, %s200_s13, [#allocation9]  }
  0x59   : > { %p11298_p10 = scmp.ge.s32.totalorder %s13737_s23, 2 }
  0x5a   : > { %p16340_p3 = scmp.ne.s32.totalorder (!%p11298_p10), %s16334_s28, 0 }
  0x5b   : > { %209 = sbr.rel (%p11298_p10) target bundleno = 133 (0x85), region = 32 }
  0x62   : > { %212 = sbr.rel (!%p16340_p3) target bundleno = 133 (0x85), region = 36  ;;  %s213_s19 = sand.u32 (%p16340_p3), 1, %s13733_s22  }
  0x63   : > { %s11300_s8 = sshll.u32 (%p16340_p3), %s13737_s23, 4  ;;  %s11299_s7 = sshll.u32 (%p16340_p3), %s213_s19, 11 }
  0x64   : > { %s219_s10 = ssub.s32 (%p16340_p3), 20, %s11300_s8  ;;  %s13961_s14 = scalar_lea.sflag (%p16340_p3), [#allocation4], %s213_s19 }
  0x65   : > { %p220_p11 = scmp.lt.s32.totalorder (%p16340_p3), %s219_s10, 16  ;;  %s217_s13 = scalar_lea.vmem (%p16340_p3), [#allocation3], %s11299_s7 }
  0x69   : > { %s16633_s10 = smov (!%p220_p11, %s219_s10), 16 }
  0x6a   : > { %s13958_s12 = sshll.u32 %s16633_s10, 11 }
  0x6b   : > { %s225_s9 = ssub.s32 32768, %s13958_s12 }
  0x6c   : > { %226 = vsyncadd %s13961_s14, %s225_s9  ;;  %p11303_p4 = scmp.ne.s32.totalorder %s13958_s12, 0  ;;  %s12357_s28 = sshll.u32 %s13737_s23, 15 }
  0x6d   : > { %s13969_s17 = scalar_lea.hbm %s16117_s0, %s12357_s28  ;;  %s232_s18 = sshll.u32 %s217_s13, 4  ;;  %s13971_s18 = int_to_ptr.vmem [resolvable:$true] %s232_s18 }
  0x6e   : > { %s13635_s20 = scalar_lea.hbm %s13969_s17, %s13958_s12  ;;  %s13639_s23 = scalar_lea.hbm %s16117_s0, 40960 }
  0x6f   : > { %p13636_p13 = scmp.ne.s32.totalorder %s13969_s17, %s13635_s20  ;;  %p13640_p7 = scmp.lt.u32.totalorder %s13969_s17, %s16117_s0 }
  0x70   : > { %p13641_p9 = scmp.lt.u32.totalorder %s13639_s23, %s13635_s20  ;;  %p13643_p0 = scmp.lt.u32.totalorder %s13635_s20, %s13969_s17 }
  0x71   : > { %p13637_p1 = pnand %p13636_p13, %p11303_p4 }
  0x72   : > { %p13642_p12 = por %p13641_p9, %p13640_p7 }
  0x73   : > { %p13638_p6 = pneg %p13637_p1 }
  0x74   : > { %p13644_p2 = por %p13643_p0, %p13642_p12 }
  0x76   : > { %p13645_p8 = pnand %p13644_p2, %p13638_p6 }
  0x78   : > { %13648 = shalt.err (!%p13645_p8)
}
  0x79   : > { %s13649_s8 = scalar_lea.vmem %s13971_s18, %s13958_s12  ;;  %s13776_s7 = smov [#allocation3]  }
  0x7a   : > { %p13650_p5 = scmp.ne.s32.totalorder %s13971_s18, %s13649_s8  ;;  %s13653_s10 = sshll.u32 %s13776_s7, 4  ;;  %s13654_s10 = int_to_ptr.vmem [resolvable:$false] %s13653_s10 }
  0x7b   : > { %s13655_s9 = scalar_lea.vmem %s13654_s10, 65536  ;;  %p13656_p11 = scmp.lt.s32.totalorder %s13971_s18, %s13654_s10 }
  0x7c   : > { %p13651_p10 = pnand %p13650_p5, %p11303_p4  ;;  %p13657_p13 = scmp.lt.s32.totalorder %s13655_s9, %s13649_s8 }
  0x7e   : > { %p13652_p3 = pneg %p13651_p10  ;;  %p13658_p1 = por %p13657_p13, %p13656_p11 }
  0x80   : > { %p13659_p7 = pnand %p13658_p1, %p13652_p3 }
  0x82   : > { %13662 = shalt.err (!%p13659_p7)
}
  0x83   : > { %s13777_s13 = smov 2048   ;;  %s13778_s28 = smov 128  }
  0x84   : > { %238 = dma.hbm_to_vmem [thread:$0]  (%p11303_p4), %s13969_s17, %s13958_s12, %s13971_s18, %s13961_s14, %s13777_s13, %s13777_s13, %s13778_s28  }
  0x85 PF: > { %p16341_p6 = scmp.ne.s32.totalorder %s16337_s6, 0 }
  0x87   : > { %244 = sbr.rel (%p16341_p6) target bundleno = 1686 (0x696), region = 40 }
  0x8e   : > { %s14001_s15 = sand.u32 1, %s13729_s21   ;;  %p16342_p9 = scmp.ne.s32.totalorder %s16335_s29, 0 }
  0x8f   : > { %s11309_s16 = sshll.u32 %s14001_s15, 11  ;;  %s247_s20 = scalar_lea.sflag [#allocation4], %s14001_s15 }
  0x90   : > { %s14005_s25 = scalar_lea.vmem [#allocation3], %s11309_s16 }
  0x91   : > { %13712 = dma.done.wait (%p16342_p9), %s247_s20, 32768  }
  0x92   : > { %13714 = vsyncadd (%p16342_p9), %s247_s20, 4294934528  ;;  %p16343_p4 = scmp.eq.s32.totalorder %s13831_s4, 0 }
  0x94   : > { %13716 = dma.done.wait (%p16343_p4), [#allocation6], 131200   ;;  %p16344_p12 = pmov %p16343_p4 }
  0x95   : > { %p16345_p0 = pmov %p16343_p4 }
  0x96   : > { %13718 = vsyncadd (%p16344_p12), [#allocation6], 4294836096 }
  0x97   : > { %13720 = dma.done.wait (%p16345_p0), [#allocation9], 128   ;;  %p16346_p2 = pmov %p16345_p0 }
  0x98   : > { %v683_v0 = vld [vmem:[#allocation5] sm:$0xff]  ;;  %v684_v2 = vld [vmem:[#allocation5 + $0x8] sm:$0xff]  ;;  %s10927_s29 = sld [smem:[#allocation2]]  ;;  %s11313_s6 = sshll.u32 %s14001_s15, 7  ;;  %vm10961_vm0 = vcmask 7168  }
  0x99   : > { %13722 = vsyncadd (%p16346_p2), [#allocation9], 4294967168  ;;  %v687_v1 = vld [vmem:[#allocation5 + $0x20] sm:$0xff]  ;;  %v688_v4 = vld [vmem:[#allocation5 + $0x28] sm:$0xff]  ;;  %s15967_s12 = scalar_lea.vmem [#allocation10], %s11313_s6   ;;  %p16624_p8 = scmp.ne.s32.totalorder %s16336_s30, 0 }
  0x9a   : > { %v11315_v3 = vcombine.high %v683_v0, %v687_v1  ;;  %v11314_v5 = vcombine.low %v683_v0, %v687_v1  ;;  %v691_v6 = vld [vmem:[#allocation5 + $0x40] sm:$0xff]  ;;  %v11317_v8 = vcombine.high %v684_v2, %v688_v4  ;;  %v11316_v9 = vcombine.low %v684_v2, %v688_v4  ;;  %v692_v11 = vld [vmem:[#allocation5 + $0x48] sm:$0xff]  ;;  %s12339_s14 = sshll.u32 (%p16624_p8), %s13831_s4, 4  ;;  %s12358_s17 = sshll.u32 (%p16624_p8), %s13831_s4, 7 }
  0x9b   : > { %v695_v7 = vld [vmem:[#allocation5 + $0x60] sm:$0xff]  ;;  %v696_v12 = vld [vmem:[#allocation5 + $0x68] sm:$0xff]  ;;  %s10986_s18 = ssub.s32 (%p16624_p8), 20, %s12339_s14  ;;  %s16021_s26 = scalar_lea.vmem (%p16624_p8), %s16122_s5, %s12358_s17  }
  0x9c   : > { %v11323_v10 = vcombine.high %v691_v6, %v695_v7  ;;  %v699_v13 = vld [vmem:[#allocation5 + $0x80] sm:$0xff]  ;;  %6869 = vmatprep.subr.bf16.mxu0 %v11315_v3  ;;  %v11325_v14 = vcombine.high %v692_v11, %v696_v12  ;;  %v700_v16 = vld [vmem:[#allocation5 + $0x88] sm:$0xff]  ;;  %7773 = vmatprep.subr.bf16.mxu1 %v11317_v8  ;;  %v11322_v18 = vcombine.low %v691_v6, %v695_v7  ;;  %p10987_p5 = scmp.lt.s32.totalorder (%p16624_p8), %s10986_s18, 16 }
  0x9d   : > { %v703_v15 = vld [vmem:[#allocation5 + $0xa0] sm:$0xff]  ;;  %v704_v17 = vld [vmem:[#allocation5 + $0xa8] sm:$0xff]  ;;  %6870 = vmatpush1.bf16.msra.mxu0 %v11314_v5  ;;  %7774 = vmatpush1.bf16.msra.mxu1 %v11316_v9  ;;  %v11324_v19 = vcombine.low %v692_v11, %v696_v12 }
  0x9e   : > { %6871 = vmatprep.subr.bf16.mxu0 %v11323_v10  ;;  %v11331_v20 = vcombine.high %v699_v13, %v703_v15  ;;  %7775 = vmatprep.subr.bf16.mxu1 %v11325_v14  ;;  %v11333_v21 = vcombine.high %v700_v16, %v704_v17  ;;  %v707_v22 = vld [vmem:[#allocation5 + $0xc0] sm:$0xff]  ;;  %v708_v24 = vld [vmem:[#allocation5 + $0xc8] sm:$0xff]  ;;  %v11330_v26 = vcombine.low %v699_v13, %v703_v15 }
  0x9f   : > { %v711_v23 = vld [vmem:[#allocation5 + $0xe0] sm:$0xff]  ;;  %v712_v25 = vld [vmem:[#allocation5 + $0xe8] sm:$0xff]  ;;  %v11332_v27 = vcombine.low %v700_v16, %v704_v17 }
  0xa0   : > { %v11339_v28 = vcombine.high %v707_v22, %v711_v23  ;;  %v11341_v29 = vcombine.high %v708_v24, %v712_v25  ;;  %v715_v30 = vld [vmem:[#allocation5 + $0x100] sm:$0xff]  ;;  %v716_v32 = vld [vmem:[#allocation5 + $0x108] sm:$0xff]  ;;  %v11338_v34 = vcombine.low %v707_v22, %v711_v23  ;;  %v11340_v35 = vcombine.low %v708_v24, %v712_v25 }
  0xa1   : > { %6872 = vmatpush1.bf16.msra.mxu0 %v11322_v18  ;;  %7776 = vmatpush1.bf16.msra.mxu1 %v11324_v19  ;;  %v719_v31 = vld [vmem:[#allocation5 + $0x120] sm:$0xff]  ;;  %v720_v33 = vld [vmem:[#allocation5 + $0x128] sm:$0xff] }
  0xa2   : > { %6873 = vmatprep.subr.bf16.mxu0 %v11331_v20  ;;  %7777 = vmatprep.subr.bf16.mxu1 %v11333_v21  ;;  %v11347_v36 = vcombine.high %v715_v30, %v719_v31  ;;  %v11349_v37 = vcombine.high %v716_v32, %v720_v33  ;;  %v723_v38 = vld [vmem:[#allocation5 + $0x140] sm:$0xff]  ;;  %v724_v40 = vld [vmem:[#allocation5 + $0x148] sm:$0xff]  ;;  %v11346_v42 = vcombine.low %v715_v30, %v719_v31 }
  0xa3   : > { %v727_v39 = vld [vmem:[#allocation5 + $0x160] sm:$0xff]  ;;  %v728_v41 = vld [vmem:[#allocation5 + $0x168] sm:$0xff]  ;;  %v11348_v43 = vcombine.low %v716_v32, %v720_v33 }
  0xa4   : > { %v11355_v44 = vcombine.high %v723_v38, %v727_v39  ;;  %v11357_v45 = vcombine.high %v724_v40, %v728_v41  ;;  %v731_v46 = vld [vmem:[#allocation5 + $0x180] sm:$0xff]  ;;  %v732_v48 = vld [vmem:[#allocation5 + $0x188] sm:$0xff]  ;;  %v11354_v50 = vcombine.low %v723_v38, %v727_v39  ;;  %v11356_v51 = vcombine.low %v724_v40, %v728_v41 }
  0xa5   : > { %6874 = vmatpush1.bf16.msra.mxu0 %v11330_v26  ;;  %7778 = vmatpush1.bf16.msra.mxu1 %v11332_v27  ;;  %v735_v47 = vld [vmem:[#allocation5 + $0x1a0] sm:$0xff]  ;;  %v736_v49 = vld [vmem:[#allocation5 + $0x1a8] sm:$0xff] }
  0xa6   : > { %6875 = vmatprep.subr.bf16.mxu0 %v11339_v28  ;;  %7779 = vmatprep.subr.bf16.mxu1 %v11341_v29  ;;  %v11363_v52 = vcombine.high %v731_v46, %v735_v47  ;;  %v300_v53 = vld [vmem:[%s14005_s25 + $0x8] sm:$0xff]  ;;  %v11365_v55 = vcombine.high %v732_v48, %v736_v49  ;;  %v739_v56 = vld [vmem:[#allocation5 + $0x1c0] sm:$0xff]  ;;  %v11362_v61 = vcombine.low %v731_v46, %v735_v47 }
  0xa7   : > { %v316_v54 = vld [vmem:[%s14005_s25 + $0x88] sm:$0xff]  ;;  %v743_v57 = vld [vmem:[#allocation5 + $0x1e0] sm:$0xff]  ;;  %v11364_v62 = vcombine.low %v732_v48, %v736_v49 }
  0xa8   : > { %v14021_v58 = vpack.c.bf16 %v316_v54, %v300_v53  ;;  %v740_v59 = vld [vmem:[#allocation5 + $0x1c8] sm:$0xff]  ;;  %v11371_v63 = vcombine.high %v739_v56, %v743_v57  ;;  %v747_v1 = vld [vmem:[#allocation5 + $0x200] sm:$0xff]  ;;  %v11370_v5 = vcombine.low %v739_v56, %v743_v57 }
  0xa9   : > { %6876 = vmatpush1.bf16.msra.mxu0 %v11338_v34  ;;  %7780 = vmatpush1.bf16.msra.mxu1 %v11340_v35  ;;  %v744_v60 = vld [vmem:[#allocation5 + $0x1e8] sm:$0xff]  ;;  %v751_v2 = vld [vmem:[#allocation5 + $0x220] sm:$0xff] }
  0xaa   : > { %6877 = vmatprep.subr.bf16.mxu0 %v11347_v36  ;;  %7781 = vmatprep.subr.bf16.mxu1 %v11349_v37  ;;  %v11373_v0 = vcombine.high %v740_v59, %v744_v60  ;;  %v748_v3 = vld [vmem:[#allocation5 + $0x208] sm:$0xff]  ;;  %v11372_v6 = vcombine.low %v740_v59, %v744_v60  ;;  %v11379_v7 = vcombine.high %v747_v1, %v751_v2  ;;  %v755_v9 = vld [vmem:[#allocation5 + $0x240] sm:$0xff] }
  0xab   : > { %6901 = vmatprep.mubr.bf16.mxu0 %v14021_v58  ;;  %7805 = vmatprep.mubr.bf16.mxu1 %v14021_v58  ;;  %v752_v4 = vld [vmem:[#allocation5 + $0x228] sm:$0xff]  ;;  %v759_v10 = vld [vmem:[#allocation5 + $0x260] sm:$0xff]  ;;  %v11378_v13 = vcombine.low %v747_v1, %v751_v2 }
  0xac   : > { %v11381_v8 = vcombine.high %v748_v3, %v752_v4  ;;  %v756_v11 = vld [vmem:[#allocation5 + $0x248] sm:$0xff]  ;;  %v11380_v14 = vcombine.low %v748_v3, %v752_v4  ;;  %v11387_v15 = vcombine.high %v755_v9, %v759_v10  ;;  %v763_v17 = vld [vmem:[#allocation5 + $0x280] sm:$0xff]  ;;  %v11386_v21 = vcombine.low %v755_v9, %v759_v10 }
  0xad   : > { %6878 = vmatpush1.bf16.msra.mxu0 %v11346_v42  ;;  %7782 = vmatpush1.bf16.msra.mxu1 %v11348_v43  ;;  %v760_v12 = vld [vmem:[#allocation5 + $0x268] sm:$0xff]  ;;  %v767_v18 = vld [vmem:[#allocation5 + $0x2a0] sm:$0xff] }
  0xae   : > { %6879 = vmatprep.subr.bf16.mxu0 %v11355_v44  ;;  %7783 = vmatprep.subr.bf16.mxu1 %v11357_v45  ;;  %v11389_v16 = vcombine.high %v756_v11, %v760_v12  ;;  %v764_v19 = vld [vmem:[#allocation5 + $0x288] sm:$0xff]  ;;  %v11388_v22 = vcombine.low %v756_v11, %v760_v12  ;;  %v11395_v23 = vcombine.high %v763_v17, %v767_v18  ;;  %v771_v25 = vld [vmem:[#allocation5 + $0x2c0] sm:$0xff] }
  0xaf   : > { %v768_v20 = vld [vmem:[#allocation5 + $0x2a8] sm:$0xff]  ;;  %v775_v26 = vld [vmem:[#allocation5 + $0x2e0] sm:$0xff]  ;;  %v11394_v29 = vcombine.low %v763_v17, %v767_v18 }
  0xb0   : > { %v11397_v24 = vcombine.high %v764_v19, %v768_v20  ;;  %v772_v27 = vld [vmem:[#allocation5 + $0x2c8] sm:$0xff]  ;;  %v11396_v30 = vcombine.low %v764_v19, %v768_v20  ;;  %v11403_v31 = vcombine.high %v771_v25, %v775_v26  ;;  %v779_v33 = vld [vmem:[#allocation5 + $0x300] sm:$0xff]  ;;  %v11402_v37 = vcombine.low %v771_v25, %v775_v26 }
  0xb1   : > { %6880 = vmatpush1.bf16.msra.mxu0 %v11354_v50  ;;  %7784 = vmatpush1.bf16.msra.mxu1 %v11356_v51  ;;  %v776_v28 = vld [vmem:[#allocation5 + $0x2e8] sm:$0xff]  ;;  %v783_v34 = vld [vmem:[#allocation5 + $0x320] sm:$0xff] }
  0xb2   : > { %6881 = vmatprep.subr.bf16.mxu0 %v11363_v52  ;;  %7785 = vmatprep.subr.bf16.mxu1 %v11365_v55  ;;  %v11405_v32 = vcombine.high %v772_v27, %v776_v28  ;;  %v780_v35 = vld [vmem:[#allocation5 + $0x308] sm:$0xff]  ;;  %v11404_v38 = vcombine.low %v772_v27, %v776_v28  ;;  %v11411_v39 = vcombine.high %v779_v33, %v783_v34  ;;  %v787_v41 = vld [vmem:[#allocation5 + $0x340] sm:$0xff] }
  0xb3   : > { %v784_v36 = vld [vmem:[#allocation5 + $0x328] sm:$0xff]  ;;  %v791_v42 = vld [vmem:[#allocation5 + $0x360] sm:$0xff]  ;;  %v11410_v45 = vcombine.low %v779_v33, %v783_v34 }
  0xb4   : > { %v11413_v40 = vcombine.high %v780_v35, %v784_v36  ;;  %v788_v43 = vld [vmem:[#allocation5 + $0x348] sm:$0xff]  ;;  %v11412_v46 = vcombine.low %v780_v35, %v784_v36  ;;  %v11419_v47 = vcombine.high %v787_v41, %v791_v42  ;;  %v795_v49 = vld [vmem:[#allocation5 + $0x380] sm:$0xff]  ;;  %v11418_v53 = vcombine.low %v787_v41, %v791_v42 }
  0xb5   : > { %6882 = vmatpush1.bf16.msra.mxu0 %v11362_v61  ;;  %7786 = vmatpush1.bf16.msra.mxu1 %v11364_v62  ;;  %v792_v44 = vld [vmem:[#allocation5 + $0x368] sm:$0xff]  ;;  %v799_v50 = vld [vmem:[#allocation5 + $0x3a0] sm:$0xff] }
  0xb6   : > { %6883 = vmatprep.subr.bf16.mxu0 %v11371_v63  ;;  %7787 = vmatprep.subr.bf16.mxu1 %v11373_v0  ;;  %v11421_v48 = vcombine.high %v788_v43, %v792_v44  ;;  %v796_v51 = vld [vmem:[#allocation5 + $0x388] sm:$0xff]  ;;  %v11420_v54 = vcombine.low %v788_v43, %v792_v44  ;;  %v11427_v55 = vcombine.high %v795_v49, %v799_v50  ;;  %v803_v57 = vld [vmem:[#allocation5 + $0x3c0] sm:$0xff] }
  0xb7   : > { %v800_v52 = vld [vmem:[#allocation5 + $0x3a8] sm:$0xff]  ;;  %v807_v59 = vld [vmem:[#allocation5 + $0x3e0] sm:$0xff]  ;;  %v11426_v62 = vcombine.low %v795_v49, %v799_v50 }
  0xb8   : > { %v11429_v56 = vcombine.high %v796_v51, %v800_v52  ;;  %v804_v60 = vld [vmem:[#allocation5 + $0x3c8] sm:$0xff]  ;;  %v11428_v63 = vcombine.low %v796_v51, %v800_v52  ;;  %v11435_v0 = vcombine.high %v803_v57, %v807_v59  ;;  %v811_v2 = vld [vmem:[#allocation5 + $0x400] sm:$0xff] }
  0xb9   : > { %6884 = vmatpush1.bf16.msra.mxu0 %v11370_v5  ;;  %7788 = vmatpush1.bf16.msra.mxu1 %v11372_v6  ;;  %v808_v61 = vld [vmem:[#allocation5 + $0x3e8] sm:$0xff]  ;;  %v815_v3 = vld [vmem:[#allocation5 + $0x420] sm:$0xff]  ;;  %v11434_v6 = vcombine.low %v803_v57, %v807_v59 }
  0xba   : > { %6885 = vmatprep.subr.bf16.mxu0 %v11379_v7  ;;  %7789 = vmatprep.subr.bf16.mxu1 %v11381_v8  ;;  %v11437_v1 = vcombine.high %v804_v60, %v808_v61  ;;  %v812_v4 = vld [vmem:[#allocation5 + $0x408] sm:$0xff]  ;;  %v299_v7 = vld [vmem:[%s14005_s25] sm:$0xff]  ;;  %v11436_v9 = vcombine.low %v804_v60, %v808_v61  ;;  %v11443_v10 = vcombine.high %v811_v2, %v815_v3 }
  0xbb   : > { %v816_v5 = vld [vmem:[#allocation5 + $0x428] sm:$0xff]  ;;  %v315_v8 = vld [vmem:[%s14005_s25 + $0x80] sm:$0xff]  ;;  %v11442_v19 = vcombine.low %v811_v2, %v815_v3 }
  0xbc   : > { %v11445_v11 = vcombine.high %v812_v4, %v816_v5  ;;  %v819_v12 = vld [vmem:[#allocation5 + $0x440] sm:$0xff]  ;;  %v332_v17 = vld [vmem:[%s14005_s25 + $0x108] sm:$0xff]  ;;  %v11444_v20 = vcombine.low %v812_v4, %v816_v5 }
  0xbd   : > { %6886 = vmatpush1.bf16.msra.mxu0 %v11378_v13  ;;  %7790 = vmatpush1.bf16.msra.mxu1 %v11380_v14  ;;  %v823_v13 = vld [vmem:[#allocation5 + $0x460] sm:$0xff]  ;;  %v820_v14 = vld [vmem:[#allocation5 + $0x448] sm:$0xff] }
  0xbe   : > { %6887 = vmatprep.subr.bf16.mxu0 %v11387_v15  ;;  %7791 = vmatprep.subr.bf16.mxu1 %v11389_v16  ;;  %v14027_v15 = vpack.c.bf16 %v315_v8, %v299_v7  ;;  %v824_v16 = vld [vmem:[#allocation5 + $0x468] sm:$0xff]  ;;  %v831_v25 = vld [vmem:[#allocation5 + $0x4a0] sm:$0xff]  ;;  %v11450_v28 = vcombine.low %v819_v12, %v823_v13 }
  0xbf   : > { %v348_v18 = vld [vmem:[%s14005_s25 + $0x188] sm:$0xff]  ;;  %v835_v34 = vld [vmem:[#allocation5 + $0x4c0] sm:$0xff] }
  0xc0   : > { %v828_v26 = vld [vmem:[#allocation5 + $0x488] sm:$0xff]  ;;  %v839_v35 = vld [vmem:[#allocation5 + $0x4e0] sm:$0xff] }
  0xc1   : > { %6888 = vmatpush1.bf16.msra.mxu0 %v11386_v21  ;;  %7792 = vmatpush1.bf16.msra.mxu1 %v11388_v22  ;;  %v11451_v21 = vcombine.high %v819_v12, %v823_v13  ;;  %v11453_v22 = vcombine.high %v820_v14, %v824_v16  ;;  %v832_v27 = vld [vmem:[#allocation5 + $0x4a8] sm:$0xff]  ;;  %v11467_v43 = vcombine.high %v835_v34, %v839_v35  ;;  %v363_v51 = vld [vmem:[%s14005_s25 + $0x200] sm:$0xff] }
  0xc2   : > { %6889 = vmatprep.subr.bf16.mxu0 %v11395_v23  ;;  %7793 = vmatprep.subr.bf16.mxu1 %v11397_v24  ;;  %v14031_v23 = vpack.c.bf16 %v348_v18, %v332_v17  ;;  %v827_v24 = vld [vmem:[#allocation5 + $0x480] sm:$0xff]  ;;  %v11461_v33 = vcombine.high %v828_v26, %v832_v27  ;;  %v836_v36 = vld [vmem:[#allocation5 + $0x4c8] sm:$0xff]  ;;  %v11460_v42 = vcombine.low %v828_v26, %v832_v27 }
  0xc3   : > { %v11458_v41 = vcombine.low %v827_v24, %v831_v25  ;;  %v848_v49 = vld [vmem:[#allocation5 + $0x528] sm:$0xff]  ;;  %v11466_v50 = vcombine.low %v835_v34, %v839_v35  ;;  %v379_v52 = vld [vmem:[%s14005_s25 + $0x280] sm:$0xff] }
  0xc4   : > { %v855_v57 = vld [vmem:[#allocation5 + $0x560] sm:$0xff]  ;;  %v852_v59 = vld [vmem:[#allocation5 + $0x548] sm:$0xff]  ;;  %v14051_v60 = vpack.c.bf16 %v379_v52, %v363_v51 }
  0xc5   : > { %6890 = vmatpush1.bf16.msra.mxu0 %v11394_v29  ;;  %7794 = vmatpush1.bf16.msra.mxu1 %v11396_v30  ;;  %v331_v29 = vld [vmem:[%s14005_s25 + $0x100] sm:$0xff]  ;;  %v856_v61 = vld [vmem:[#allocation5 + $0x568] sm:$0xff] }
  0xc6   : > { %6891 = vmatprep.subr.bf16.mxu0 %v11403_v31  ;;  %7795 = vmatprep.subr.bf16.mxu1 %v11405_v32  ;;  %v347_v30 = vld [vmem:[%s14005_s25 + $0x180] sm:$0xff]  ;;  %v11452_v31 = vcombine.low %v820_v14, %v824_v16  ;;  %v11459_v32 = vcombine.high %v827_v24, %v831_v25  ;;  %v11485_v3 = vcombine.high %v852_v59, %v856_v61  ;;  %v860_v7 = vld [vmem:[#allocation5 + $0x588] sm:$0xff] }
  0xc7   : > { %v859_v5 = vld [vmem:[#allocation5 + $0x580] sm:$0xff]  ;;  %v864_v8 = vld [vmem:[#allocation5 + $0x5a8] sm:$0xff]  ;;  %v11484_v12 = vcombine.low %v852_v59, %v856_v61 }
  0xc8   : > { %v11493_v14 = vcombine.high %v860_v7, %v864_v8  ;;  %v867_v16 = vld [vmem:[#allocation5 + $0x5c0] sm:$0xff]  ;;  %v868_v18 = vld [vmem:[#allocation5 + $0x5c8] sm:$0xff]  ;;  %v11492_v25 = vcombine.low %v860_v7, %v864_v8 }
  0xc9   : > { %6892 = vmatpush1.bf16.msra.mxu0 %v11402_v37  ;;  %7796 = vmatpush1.bf16.msra.mxu1 %v11404_v38  ;;  %v14039_v37 = vpack.c.bf16 %v347_v30, %v331_v29  ;;  %v840_v38 = vld [vmem:[#allocation5 + $0x4e8] sm:$0xff]  ;;  %v871_v17 = vld [vmem:[#allocation5 + $0x5e0] sm:$0xff] }
  0xca   : > { %6893 = vmatprep.subr.bf16.mxu0 %v11411_v39  ;;  %7797 = vmatprep.subr.bf16.mxu1 %v11413_v40  ;;  %v364_v39 = vld [vmem:[%s14005_s25 + $0x208] sm:$0xff]  ;;  %v11469_v44 = vcombine.high %v836_v36, %v840_v38  ;;  %v11499_v26 = vcombine.high %v867_v16, %v871_v17  ;;  %v875_v29 = vld [vmem:[#allocation5 + $0x600] sm:$0xff] }
  0xcb   : > { %v380_v40 = vld [vmem:[%s14005_s25 + $0x288] sm:$0xff]  ;;  %v879_v30 = vld [vmem:[#allocation5 + $0x620] sm:$0xff] }
  0xcc   : > { %v427_v34 = vld [vmem:[%s14005_s25 + $0x400] sm:$0xff]  ;;  %v492_v7 = vld [vmem:[%s14005_s25 + $0x608] sm:$0xff] }
  0xcd   : > { %6894 = vmatpush1.bf16.msra.mxu0 %v11410_v45  ;;  %7798 = vmatpush1.bf16.msra.mxu1 %v11412_v46  ;;  %v14043_v45 = vpack.c.bf16 %v380_v40, %v364_v39  ;;  %v843_v46 = vld [vmem:[#allocation5 + $0x500] sm:$0xff]  ;;  %v508_v8 = vld [vmem:[%s14005_s25 + $0x688] sm:$0xff] }
  0xce   : > { %6895 = vmatprep.subr.bf16.mxu0 %v11419_v47  ;;  %7799 = vmatprep.subr.bf16.mxu1 %v11421_v48  ;;  %v847_v47 = vld [vmem:[#allocation5 + $0x520] sm:$0xff]  ;;  %v844_v48 = vld [vmem:[#allocation5 + $0x508] sm:$0xff] }
  0xcf   : > { %v443_v35 = vld [vmem:[%s14005_s25 + $0x480] sm:$0xff] }
  0xd0   : > { %v883_v40 = vld [vmem:[#allocation5 + $0x640] sm:$0xff] }
  0xd1   : > { %6896 = vmatpush1.bf16.msra.mxu0 %v11418_v53  ;;  %7800 = vmatpush1.bf16.msra.mxu1 %v11420_v54  ;;  %v11468_v53 = vcombine.low %v836_v36, %v840_v38  ;;  %v11475_v54 = vcombine.high %v843_v46, %v847_v47  ;;  %v11507_v38 = vcombine.high %v875_v29, %v879_v30  ;;  %v459_v59 = vld [vmem:[%s14005_s25 + $0x500] sm:$0xff] }
  0xd2   : > { %6897 = vmatprep.subr.bf16.mxu0 %v11427_v55  ;;  %7801 = vmatprep.subr.bf16.mxu1 %v11429_v56  ;;  %v11477_v55 = vcombine.high %v844_v48, %v848_v49  ;;  %v851_v56 = vld [vmem:[#allocation5 + $0x540] sm:$0xff] }
  0xd3   : > { %v11483_v2 = vcombine.high %v851_v56, %v855_v57  ;;  %v475_v61 = vld [vmem:[%s14005_s25 + $0x580] sm:$0xff] }
  0xd5   : > { %6898 = vmatpush1.bf16.msra.mxu0 %v11426_v62  ;;  %7802 = vmatpush1.bf16.msra.mxu1 %v11428_v63  ;;  %v396_v62 = vld [vmem:[%s14005_s25 + $0x308] sm:$0xff] }
  0xd6   : > { %6899 = vmatprep.subr.bf16.mxu0 %v11435_v0  ;;  %7803 = vmatprep.subr.bf16.mxu1 %v11437_v1  ;;  %v412_v63 = vld [vmem:[%s14005_s25 + $0x388] sm:$0xff]  ;;  %v11474_v0 = vcombine.low %v843_v46, %v847_v47  ;;  %v11476_v1 = vcombine.low %v844_v48, %v848_v49  ;;  %v11506_v48 = vcombine.low %v875_v29, %v879_v30  ;;  %v919_v29 = vld [vmem:[#allocation5 + $0x760] sm:$0xff] }
  0xd7   : > { %v14055_v4 = vpack.c.bf16 %v412_v63, %v396_v62  ;;  %v460_v46 = vld [vmem:[%s14005_s25 + $0x508] sm:$0xff] }
  0xd8   : > { %v476_v47 = vld [vmem:[%s14005_s25 + $0x588] sm:$0xff] }
  0xd9   : > { %6900 = vmatpush1.bf16.msra.mxu0 %v11434_v6  ;;  %7804 = vmatpush1.bf16.msra.mxu1 %v11436_v9  ;;  %v863_v6 = vld [vmem:[#allocation5 + $0x5a0] sm:$0xff]  ;;  %v11482_v9 = vcombine.low %v851_v56, %v855_v57  ;;  %v14079_v52 = vpack.c.bf16 %v476_v47, %v460_v46  ;;  %v896_v56 = vld [vmem:[#allocation5 + $0x6a8] sm:$0xff] }
  0xda   : > { %6982 = vmatprep.subr.bf16.mxu0 %v11443_v10  ;;  %7886 = vmatprep.subr.bf16.mxu1 %v11445_v11  ;;  %v395_v10 = vld [vmem:[%s14005_s25 + $0x300] sm:$0xff]  ;;  %v11491_v13 = vcombine.high %v859_v5, %v863_v6  ;;  %v11490_v24 = vcombine.low %v859_v5, %v863_v6  ;;  %v14087_v5 = vpack.c.bf16 %v475_v61, %v459_v59  ;;  %v904_v6 = vld [vmem:[#allocation5 + $0x6e8] sm:$0xff]  ;;  %v302_v61 = vld [vmem:[%s14005_s25 + $0x18] sm:$0xff] }
  0xdb   : > { %v411_v11 = vld [vmem:[%s14005_s25 + $0x380] sm:$0xff]  ;;  %v916_v30 = vld [vmem:[#allocation5 + $0x748] sm:$0xff] }
  0xdc   : > { %6902 = vmatmul.mubr.bf16.vlgmr.msra.gmra.mrb[0].mxu0 %v14027_v15  ;;  %7806 = vmatmul.mubr.bf16.vlgmr.msra.gmra.mrb[0].mxu1 %v14027_v15  ;;  %v928_v46 = vld [vmem:[#allocation5 + $0x7a8] sm:$0xff] }
  0xdd   : > { %6983 = vmatpush1.bf16.msra.mxu0 %v11442_v19  ;;  %7887 = vmatpush1.bf16.msra.mxu1 %v11444_v20  ;;  %v14063_v19 = vpack.c.bf16 %v411_v11, %v395_v10  ;;  %v872_v20 = vld [vmem:[#allocation5 + $0x5e8] sm:$0xff] }
  0xde   : > { %6984 = vmatprep.subr.bf16.mxu0 %v11451_v21  ;;  %7888 = vmatprep.subr.bf16.mxu1 %v11453_v22  ;;  %v428_v21 = vld [vmem:[%s14005_s25 + $0x408] sm:$0xff]  ;;  %v11501_v27 = vcombine.high %v868_v18, %v872_v20  ;;  %v11500_v36 = vcombine.low %v868_v18, %v872_v20 }
  0xdf   : > { %6911 = vmatprep.mubr.bf16.mxu0 %v14031_v23  ;;  %7815 = vmatprep.mubr.bf16.mxu1 %v14031_v23  ;;  %v444_v22 = vld [vmem:[%s14005_s25 + $0x488] sm:$0xff] }
  0xe0   : > { %v912_v18 = vld [vmem:[#allocation5 + $0x728] sm:$0xff] }
  0xe1   : > { %6985 = vmatpush1.bf16.msra.mxu0 %v11450_v28  ;;  %7889 = vmatpush1.bf16.msra.mxu1 %v11452_v31  ;;  %v14067_v28 = vpack.c.bf16 %v444_v22, %v428_v21  ;;  %v876_v31 = vld [vmem:[#allocation5 + $0x608] sm:$0xff]  ;;  %v491_v21 = vld [vmem:[%s14005_s25 + $0x600] sm:$0xff] }
  0xe2   : > { %6986 = vmatprep.subr.bf16.mxu0 %v11459_v32  ;;  %7890 = vmatprep.subr.bf16.mxu1 %v11461_v33  ;;  %v880_v32 = vld [vmem:[#allocation5 + $0x628] sm:$0xff]  ;;  %v11498_v33 = vcombine.low %v867_v16, %v871_v17  ;;  %v911_v16 = vld [vmem:[#allocation5 + $0x720] sm:$0xff] }
  0xe3   : > { %v11509_v39 = vcombine.high %v876_v31, %v880_v32  ;;  %v11508_v49 = vcombine.low %v876_v31, %v880_v32  ;;  %v908_v17 = vld [vmem:[#allocation5 + $0x708] sm:$0xff]  ;;  %v507_v22 = vld [vmem:[%s14005_s25 + $0x680] sm:$0xff] }
  0xe4   : > { %6912 = vmatmul.mubr.bf16.gmra.mrb[4].mxu0 %v14039_v37  ;;  %7816 = vmatmul.mubr.bf16.gmra.mrb[4].mxu1 %v14039_v37  ;;  %v14099_v31 = vpack.c.bf16 %v507_v22, %v491_v21  ;;  %v920_v32 = vld [vmem:[#allocation5 + $0x768] sm:$0xff] }
  0xe5   : > { %6987 = vmatpush1.bf16.msra.mxu0 %v11458_v41  ;;  %7891 = vmatpush1.bf16.msra.mxu1 %v11460_v42  ;;  %v887_v41 = vld [vmem:[#allocation5 + $0x660] sm:$0xff]  ;;  %v884_v42 = vld [vmem:[#allocation5 + $0x648] sm:$0xff] }
  0xe6   : > { %6988 = vmatprep.subr.bf16.mxu0 %v11467_v43  ;;  %7892 = vmatprep.subr.bf16.mxu1 %v11469_v44  ;;  %v14075_v43 = vpack.c.bf16 %v443_v35, %v427_v34  ;;  %v888_v44 = vld [vmem:[#allocation5 + $0x668] sm:$0xff]  ;;  %v11514_v57 = vcombine.low %v883_v40, %v887_v41 }
  0xe7   : > { %6921 = vmatprep.mubr.bf16.mxu0 %v14043_v45  ;;  %7825 = vmatprep.mubr.bf16.mxu1 %v14043_v45  ;;  %v11517_v51 = vcombine.high %v884_v42, %v888_v44  ;;  %v11516_v62 = vcombine.low %v884_v42, %v888_v44  ;;  %v540_v34 = vld [vmem:[%s14005_s25 + $0x788] sm:$0xff]  ;;  %v927_v42 = vld [vmem:[#allocation5 + $0x7a0] sm:$0xff] }
  0xe8   : > { %v924_v44 = vld [vmem:[#allocation5 + $0x788] sm:$0xff] }
  0xe9   : > { %6989 = vmatpush1.bf16.msra.mxu0 %v11466_v50  ;;  %7893 = vmatpush1.bf16.msra.mxu1 %v11468_v53  ;;  %v11515_v50 = vcombine.high %v883_v40, %v887_v41  ;;  %v891_v53 = vld [vmem:[#allocation5 + $0x680] sm:$0xff]  ;;  %v936_v59 = vld [vmem:[#allocation5 + $0x7e8] sm:$0xff] }
  0xea   : > { %6990 = vmatprep.subr.bf16.mxu0 %v11475_v54  ;;  %7894 = vmatprep.subr.bf16.mxu1 %v11477_v55  ;;  %v895_v54 = vld [vmem:[#allocation5 + $0x6a0] sm:$0xff]  ;;  %v892_v55 = vld [vmem:[#allocation5 + $0x688] sm:$0xff] }
  0xeb   : > { %v11523_v63 = vcombine.high %v891_v53, %v895_v54  ;;  %v11524_v10 = vcombine.low %v892_v55, %v896_v56  ;;  %v923_v41 = vld [vmem:[#allocation5 + $0x780] sm:$0xff]  ;;  %v948_v21 = vld [vmem:[#allocation5 + $0x848] sm:$0xff] }
  0xec   : > { %6922 = vmatmul.mubr.bf16.gmra.mrb[8].mxu0 %v14051_v60  ;;  %7826 = vmatmul.mubr.bf16.gmra.mrb[8].mxu1 %v14051_v60 }
  0xed   : > { %6991 = vmatpush1.bf16.msra.mxu0 %v11474_v0  ;;  %7895 = vmatpush1.bf16.msra.mxu1 %v11476_v1  ;;  %v11525_v0 = vcombine.high %v892_v55, %v896_v56  ;;  %v899_v1 = vld [vmem:[#allocation5 + $0x6c0] sm:$0xff]  ;;  %v932_v56 = vld [vmem:[#allocation5 + $0x7c8] sm:$0xff] }
  0xee   : > { %6992 = vmatprep.subr.bf16.mxu0 %v11483_v2  ;;  %7896 = vmatprep.subr.bf16.mxu1 %v11485_v3  ;;  %v903_v2 = vld [vmem:[#allocation5 + $0x6e0] sm:$0xff]  ;;  %v900_v3 = vld [vmem:[#allocation5 + $0x6c8] sm:$0xff] }
  0xef   : > { %6931 = vmatprep.mubr.bf16.mxu0 %v14055_v4  ;;  %7835 = vmatprep.mubr.bf16.mxu1 %v14055_v4  ;;  %v11531_v11 = vcombine.high %v899_v1, %v903_v2  ;;  %v11530_v20 = vcombine.low %v899_v1, %v903_v2  ;;  %v935_v55 = vld [vmem:[#allocation5 + $0x7e0] sm:$0xff]  ;;  %v11565_v2 = vcombine.high %v932_v56, %v936_v59 }
  0xf1   : > { %6993 = vmatpush1.bf16.msra.mxu0 %v11482_v9  ;;  %7897 = vmatpush1.bf16.msra.mxu1 %v11484_v12  ;;  %v11522_v9 = vcombine.low %v891_v53, %v895_v54  ;;  %v11533_v12 = vcombine.high %v900_v3, %v904_v6  ;;  %v11557_v53 = vcombine.high %v924_v44, %v928_v46  ;;  %v931_v54 = vld [vmem:[#allocation5 + $0x7c0] sm:$0xff] }
  0xf2   : > { %6994 = vmatprep.subr.bf16.mxu0 %v11491_v13  ;;  %7898 = vmatprep.subr.bf16.mxu1 %v11493_v14  ;;  %v14091_v13 = vpack.c.bf16 %v508_v8, %v492_v7  ;;  %v907_v14 = vld [vmem:[#allocation5 + $0x700] sm:$0xff]  ;;  %v11563_v1 = vcombine.high %v931_v54, %v935_v55  ;;  %v940_v8 = vld [vmem:[#allocation5 + $0x808] sm:$0xff] }
  0xf3   : > { %v11538_v35 = vcombine.low %v907_v14, %v911_v16  ;;  %v943_v7 = vld [vmem:[#allocation5 + $0x820] sm:$0xff] }
  0xf4   : > { %6932 = vmatmul.mubr.bf16.gmra.mrb[12].mxu0 %v14063_v19  ;;  %7836 = vmatmul.mubr.bf16.gmra.mrb[12].mxu1 %v14063_v19 }
  0xf5   : > { %6995 = vmatpush1.bf16.msra.mxu0 %v11490_v24  ;;  %7899 = vmatpush1.bf16.msra.mxu1 %v11492_v25  ;;  %v11532_v24 = vcombine.low %v900_v3, %v904_v6  ;;  %v11539_v25 = vcombine.high %v907_v14, %v911_v16  ;;  %v939_v6 = vld [vmem:[#allocation5 + $0x800] sm:$0xff]  ;;  %v11564_v14 = vcombine.low %v932_v56, %v936_v59 }
  0xf6   : > { %6996 = vmatprep.subr.bf16.mxu0 %v11499_v26  ;;  %7900 = vmatprep.subr.bf16.mxu1 %v11501_v27  ;;  %v11541_v26 = vcombine.high %v908_v17, %v912_v18  ;;  %v915_v27 = vld [vmem:[#allocation5 + $0x740] sm:$0xff]  ;;  %v11571_v16 = vcombine.high %v939_v6, %v943_v7 }
  0xf7   : > { %6941 = vmatprep.mubr.bf16.mxu0 %v14067_v28  ;;  %7845 = vmatprep.mubr.bf16.mxu1 %v14067_v28  ;;  %v11546_v47 = vcombine.low %v915_v27, %v919_v29 }
  0xf9   : > { %6997 = vmatpush1.bf16.msra.mxu0 %v11498_v33  ;;  %7901 = vmatpush1.bf16.msra.mxu1 %v11500_v36  ;;  %v524_v33 = vld [vmem:[%s14005_s25 + $0x708] sm:$0xff]  ;;  %v11540_v36 = vcombine.low %v908_v17, %v912_v18  ;;  %v947_v18 = vld [vmem:[#allocation5 + $0x840] sm:$0xff] }
  0xfa   : > { %6998 = vmatprep.subr.bf16.mxu0 %v11507_v38  ;;  %7902 = vmatprep.subr.bf16.mxu1 %v11509_v39  ;;  %v11547_v38 = vcombine.high %v915_v27, %v919_v29  ;;  %v11549_v39 = vcombine.high %v916_v30, %v920_v32  ;;  %v14103_v40 = vpack.c.bf16 %v540_v34, %v524_v33  ;;  %v955_v34 = vld [vmem:[#allocation5 + $0x880] sm:$0xff] }
  0xfb   : > { %v11570_v27 = vcombine.low %v939_v6, %v943_v7  ;;  %v976_v6 = vld [vmem:[#allocation5 + $0x928] sm:$0xff] }
  0xfc   : > { %6942 = vmatmul.mubr.bf16.gmra.mrb[16].mxu0 %v14075_v43  ;;  %7846 = vmatmul.mubr.bf16.gmra.mrb[16].mxu1 %v14075_v43 }
  0xfd   : > { %6999 = vmatpush1.bf16.msra.mxu0 %v11506_v48  ;;  %7903 = vmatpush1.bf16.msra.mxu1 %v11508_v49  ;;  %v523_v48 = vld [vmem:[%s14005_s25 + $0x700] sm:$0xff] }
  0xfe   : > { %7000 = vmatprep.subr.bf16.mxu0 %v11515_v50  ;;  %7904 = vmatprep.subr.bf16.mxu1 %v11517_v51  ;;  %v539_v49 = vld [vmem:[%s14005_s25 + $0x780] sm:$0xff]  ;;  %v11548_v50 = vcombine.low %v916_v30, %v920_v32  ;;  %v11555_v51 = vcombine.high %v923_v41, %v927_v42 }
  0xff   : > { %6951 = vmatprep.mubr.bf16.mxu0 %v14079_v52  ;;  %7855 = vmatprep.mubr.bf16.mxu1 %v14079_v52 }
 0x101   : > { %7001 = vmatpush1.bf16.msra.mxu0 %v11514_v57  ;;  %7905 = vmatpush1.bf16.msra.mxu1 %v11516_v62  ;;  %v14111_v57 = vpack.c.bf16 %v539_v49, %v523_v48  ;;  %v318_v62 = vld [vmem:[%s14005_s25 + $0x98] sm:$0xff]  ;;  %v963_v48 = vld [vmem:[#allocation5 + $0x8c0] sm:$0xff] }
 0x102   : > { %7002 = vmatprep.subr.bf16.mxu0 %v11523_v63  ;;  %7906 = vmatprep.subr.bf16.mxu1 %v11525_v0  ;;  %v11554_v63 = vcombine.low %v923_v41, %v927_v42  ;;  %v11556_v0 = vcombine.low %v924_v44, %v928_v46  ;;  %v14115_v3 = vpack.c.bf16 %v318_v62, %v302_v61  ;;  %v333_v41 = vld [vmem:[%s14005_s25 + $0x110] sm:$0xff]  ;;  %v967_v49 = vld [vmem:[#allocation5 + $0x8e0] sm:$0xff] }
 0x103   : > { %v349_v42 = vld [vmem:[%s14005_s25 + $0x190] sm:$0xff]  ;;  %v11595_v61 = vcombine.high %v963_v48, %v967_v49  ;;  %v11594_v7 = vcombine.low %v963_v48, %v967_v49  ;;  %v999_v48 = vld [vmem:[#allocation5 + $0x9e0] sm:$0xff]  ;;  %v996_v49 = vld [vmem:[#allocation5 + $0x9c8] sm:$0xff] }
 0x104   : > { %6952 = vmatmul.mubr.bf16.gmra.mrb[20].mxu0 %v14087_v5  ;;  %7856 = vmatmul.mubr.bf16.gmra.mrb[20].mxu1 %v14087_v5 }
 0x105   : > { %7003 = vmatpush1.bf16.msra.mxu0 %v11522_v9  ;;  %7907 = vmatpush1.bf16.msra.mxu1 %v11524_v10  ;;  %v944_v9 = vld [vmem:[#allocation5 + $0x828] sm:$0xff]  ;;  %v11562_v10 = vcombine.low %v931_v54, %v935_v55  ;;  %v366_v54 = vld [vmem:[%s14005_s25 + $0x218] sm:$0xff] }
 0x106   : > { %7004 = vmatprep.subr.bf16.mxu0 %v11531_v11  ;;  %7908 = vmatprep.subr.bf16.mxu1 %v11533_v12  ;;  %v301_v11 = vld [vmem:[%s14005_s25 + $0x10] sm:$0xff]  ;;  %v11573_v17 = vcombine.high %v940_v8, %v944_v9  ;;  %v11572_v29 = vcombine.low %v940_v8, %v944_v9  ;;  %v382_v55 = vld [vmem:[%s14005_s25 + $0x298] sm:$0xff] }
 0x107   : > { %6961 = vmatprep.mubr.bf16.mxu0 %v14091_v13  ;;  %7865 = vmatprep.mubr.bf16.mxu1 %v14091_v13  ;;  %v317_v12 = vld [vmem:[%s14005_s25 + $0x90] sm:$0xff] }
 0x108   : > { %v14123_v22 = vpack.c.bf16 %v317_v12, %v301_v11  ;;  %v365_v8 = vld [vmem:[%s14005_s25 + $0x210] sm:$0xff] }
 0x109   : > { %7005 = vmatpush1.bf16.msra.mxu0 %v11530_v20  ;;  %7909 = vmatpush1.bf16.msra.mxu1 %v11532_v24  ;;  %v951_v20 = vld [vmem:[#allocation5 + $0x860] sm:$0xff]  ;;  %v952_v24 = vld [vmem:[#allocation5 + $0x868] sm:$0xff]  ;;  %v381_v9 = vld [vmem:[%s14005_s25 + $0x290] sm:$0xff] }
 0x10a   : > { %7006 = vmatprep.subr.bf16.mxu0 %v11539_v25  ;;  %7910 = vmatprep.subr.bf16.mxu1 %v11541_v26  ;;  %v334_v25 = vld [vmem:[%s14005_s25 + $0x118] sm:$0xff]  ;;  %v11579_v30 = vcombine.high %v947_v18, %v951_v20  ;;  %v11581_v32 = vcombine.high %v948_v21, %v952_v24  ;;  %v11580_v44 = vcombine.low %v948_v21, %v952_v24 }
 0x10b   : > { %v350_v26 = vld [vmem:[%s14005_s25 + $0x198] sm:$0xff] }
 0x10c   : > { %6962 = vmatmul.mubr.bf16.gmra.mrb[24].mxu0 %v14099_v31  ;;  %7866 = vmatmul.mubr.bf16.gmra.mrb[24].mxu1 %v14099_v31  ;;  %v14127_v33 = vpack.c.bf16 %v350_v26, %v334_v25  ;;  %v398_v21 = vld [vmem:[%s14005_s25 + $0x318] sm:$0xff] }
 0x10d   : > { %7007 = vmatpush1.bf16.msra.mxu0 %v11538_v35  ;;  %7911 = vmatpush1.bf16.msra.mxu1 %v11540_v36  ;;  %v959_v35 = vld [vmem:[#allocation5 + $0x8a0] sm:$0xff]  ;;  %v956_v36 = vld [vmem:[#allocation5 + $0x888] sm:$0xff]  ;;  %v414_v24 = vld [vmem:[%s14005_s25 + $0x398] sm:$0xff] }
 0x10e   : > { %7008 = vmatprep.subr.bf16.mxu0 %v11547_v38  ;;  %7912 = vmatprep.subr.bf16.mxu1 %v11549_v39  ;;  %v960_v38 = vld [vmem:[#allocation5 + $0x8a8] sm:$0xff]  ;;  %v11578_v39 = vcombine.low %v947_v18, %v951_v20  ;;  %v11587_v46 = vcombine.high %v955_v34, %v959_v35  ;;  %v11586_v56 = vcombine.low %v955_v34, %v959_v35  ;;  %v991_v34 = vld [vmem:[#allocation5 + $0x9a0] sm:$0xff] }
 0x10f   : > { %6971 = vmatprep.mubr.bf16.mxu0 %v14103_v40  ;;  %7875 = vmatprep.mubr.bf16.mxu1 %v14103_v40  ;;  %v11588_v59 = vcombine.low %v956_v36, %v960_v38  ;;  %v14147_v18 = vpack.c.bf16 %v381_v9, %v365_v8  ;;  %v984_v20 = vld [vmem:[#allocation5 + $0x968] sm:$0xff]  ;;  %v429_v9 = vld [vmem:[%s14005_s25 + $0x410] sm:$0xff] }
 0x110   : > { %v988_v35 = vld [vmem:[#allocation5 + $0x988] sm:$0xff] }
 0x111   : > { %7009 = vmatpush1.bf16.msra.mxu0 %v11546_v47  ;;  %7913 = vmatpush1.bf16.msra.mxu1 %v11548_v50  ;;  %v11589_v47 = vcombine.high %v956_v36, %v960_v38  ;;  %v964_v50 = vld [vmem:[#allocation5 + $0x8c8] sm:$0xff] }
 0x112   : > { %7010 = vmatprep.subr.bf16.mxu0 %v11555_v51  ;;  %7914 = vmatprep.subr.bf16.mxu1 %v11557_v53  ;;  %v14135_v51 = vpack.c.bf16 %v349_v42, %v333_v41  ;;  %v968_v53 = vld [vmem:[#allocation5 + $0x8e8] sm:$0xff]  ;;  %v413_v41 = vld [vmem:[%s14005_s25 + $0x390] sm:$0xff] }
 0x113   : > { %v11597_v62 = vcombine.high %v964_v50, %v968_v53  ;;  %v992_v36 = vld [vmem:[#allocation5 + $0x9a8] sm:$0xff] }
 0x114   : > { %6972 = vmatmul.mubr.bf16.gmra.mrb[28].mxu0 %v14111_v57  ;;  %7876 = vmatmul.mubr.bf16.gmra.mrb[28].mxu1 %v14111_v57 }
 0x115   : > { %7011 = vmatpush1.bf16.msra.mxu0 %v11554_v63  ;;  %7915 = vmatpush1.bf16.msra.mxu1 %v11556_v0  ;;  %v14139_v63 = vpack.c.bf16 %v382_v55, %v366_v54  ;;  %v971_v0 = vld [vmem:[#allocation5 + $0x900] sm:$0xff]  ;;  %v430_v54 = vld [vmem:[%s14005_s25 + $0x418] sm:$0xff] }
 0x116   : > { %7012 = vmatprep.subr.bf16.mxu0 %v11563_v1  ;;  %7916 = vmatprep.subr.bf16.mxu1 %v11565_v2  ;;  %v975_v1 = vld [vmem:[#allocation5 + $0x920] sm:$0xff]  ;;  %v972_v2 = vld [vmem:[#allocation5 + $0x908] sm:$0xff]  ;;  %v446_v55 = vld [vmem:[%s14005_s25 + $0x498] sm:$0xff] }
 0x117   : > { %7014 = vmatprep.mubr.bf16.mxu0 %v14115_v3  ;;  %7918 = vmatprep.mubr.bf16.mxu1 %v14115_v3  ;;  %v11603_v11 = vcombine.high %v971_v0, %v975_v1  ;;  %v11605_v12 = vcombine.high %v972_v2, %v976_v6  ;;  %v11602_v25 = vcombine.low %v971_v0, %v975_v1  ;;  %v1003_v1 = vld [vmem:[#allocation5 + $0xa00] sm:$0xff] }
 0x118   : > { %v11604_v26 = vcombine.low %v972_v2, %v976_v6  ;;  %v14163_v0 = vpack.c.bf16 %v446_v55, %v430_v54  ;;  %v1007_v2 = vld [vmem:[#allocation5 + $0xa20] sm:$0xff]  ;;  %v1004_v6 = vld [vmem:[#allocation5 + $0xa08] sm:$0xff] }
 0x119   : > { %7013 = vmatpush1.bf16.msra.mxu0 %v11562_v10  ;;  %7917 = vmatpush1.bf16.msra.mxu1 %v11564_v14  ;;  %v11596_v10 = vcombine.low %v964_v50, %v968_v53  ;;  %v979_v14 = vld [vmem:[#allocation5 + $0x940] sm:$0xff]  ;;  %v1000_v53 = vld [vmem:[#allocation5 + $0x9e8] sm:$0xff] }
 0x11a   : > { %7095 = vmatprep.subr.bf16.mxu0 %v11571_v16  ;;  %7999 = vmatprep.subr.bf16.mxu1 %v11573_v17  ;;  %v983_v16 = vld [vmem:[#allocation5 + $0x960] sm:$0xff]  ;;  %v980_v17 = vld [vmem:[#allocation5 + $0x948] sm:$0xff] }
 0x11b   : > { %v11610_v38 = vcombine.low %v979_v14, %v983_v16  ;;  %v11612_v42 = vcombine.low %v980_v17, %v984_v20  ;;  %v1031_v54 = vld [vmem:[#allocation5 + $0xae0] sm:$0xff]  ;;  %v1028_v55 = vld [vmem:[#allocation5 + $0xac8] sm:$0xff] }
 0x11c   : > { %7015 = vmatmul.mubr.bf16.vlgmr.msra.gmra.mrb[0].mxu0 %v14123_v22  ;;  %7919 = vmatmul.mubr.bf16.vlgmr.msra.gmra.mrb[0].mxu1 %v14123_v22 }
 0x11d   : > { %7096 = vmatpush1.bf16.msra.mxu0 %v11570_v27  ;;  %8000 = vmatpush1.bf16.msra.mxu1 %v11572_v29  ;;  %v11611_v27 = vcombine.high %v979_v14, %v983_v16  ;;  %v11613_v29 = vcombine.high %v980_v17, %v984_v20  ;;  %v1011_v16 = vld [vmem:[#allocation5 + $0xa40] sm:$0xff]  ;;  %v1012_v20 = vld [vmem:[#allocation5 + $0xa48] sm:$0xff] }
 0x11e   : > { %7097 = vmatprep.subr.bf16.mxu0 %v11579_v30  ;;  %8001 = vmatprep.subr.bf16.mxu1 %v11581_v32  ;;  %v14151_v30 = vpack.c.bf16 %v414_v24, %v398_v21  ;;  %v987_v32 = vld [vmem:[#allocation5 + $0x980] sm:$0xff]  ;;  %v1016_v24 = vld [vmem:[#allocation5 + $0xa68] sm:$0xff] }
 0x11f   : > { %7024 = vmatprep.mubr.bf16.mxu0 %v14127_v33  ;;  %7928 = vmatprep.mubr.bf16.mxu1 %v14127_v33  ;;  %v1015_v17 = vld [vmem:[#allocation5 + $0xa60] sm:$0xff] }
 0x121   : > { %7098 = vmatpush1.bf16.msra.mxu0 %v11578_v39  ;;  %8002 = vmatpush1.bf16.msra.mxu1 %v11580_v44  ;;  %v397_v39 = vld [vmem:[%s14005_s25 + $0x310] sm:$0xff]  ;;  %v11619_v44 = vcombine.high %v987_v32, %v991_v34 }
 0x122   : > { %7099 = vmatprep.subr.bf16.mxu0 %v11587_v46  ;;  %8003 = vmatprep.subr.bf16.mxu1 %v11589_v47  ;;  %v11621_v46 = vcombine.high %v988_v35, %v992_v36  ;;  %v995_v47 = vld [vmem:[#allocation5 + $0x9c0] sm:$0xff]  ;;  %v14159_v50 = vpack.c.bf16 %v413_v41, %v397_v39  ;;  %v1020_v39 = vld [vmem:[#allocation5 + $0xa88] sm:$0xff] }
 0x123   : > { %v11626_v8 = vcombine.low %v995_v47, %v999_v48  ;;  %v1024_v41 = vld [vmem:[#allocation5 + $0xaa8] sm:$0xff] }
 0x124   : > { %7025 = vmatmul.mubr.bf16.gmra.mrb[4].mxu0 %v14135_v51  ;;  %7929 = vmatmul.mubr.bf16.gmra.mrb[4].mxu1 %v14135_v51 }
 0x125   : > { %7100 = vmatpush1.bf16.msra.mxu0 %v11586_v56  ;;  %8004 = vmatpush1.bf16.msra.mxu1 %v11588_v59  ;;  %v11618_v56 = vcombine.low %v987_v32, %v991_v34  ;;  %v11620_v59 = vcombine.low %v988_v35, %v992_v36  ;;  %v11643_v32 = vcombine.high %v1011_v16, %v1015_v17  ;;  %v1019_v36 = vld [vmem:[#allocation5 + $0xa80] sm:$0xff] }
 0x126   : > { %7101 = vmatprep.subr.bf16.mxu0 %v11595_v61  ;;  %8005 = vmatprep.subr.bf16.mxu1 %v11597_v62  ;;  %v11627_v61 = vcombine.high %v995_v47, %v999_v48  ;;  %v11629_v62 = vcombine.high %v996_v49, %v1000_v53  ;;  %v11645_v34 = vcombine.high %v1012_v20, %v1016_v24 }
 0x127   : > { %7034 = vmatprep.mubr.bf16.mxu0 %v14139_v63  ;;  %7938 = vmatprep.mubr.bf16.mxu1 %v14139_v63  ;;  %v11644_v47 = vcombine.low %v1012_v20, %v1016_v24 }
 0x129   : > { %7102 = vmatpush1.bf16.msra.mxu0 %v11594_v7  ;;  %8006 = vmatpush1.bf16.msra.mxu1 %v11596_v10  ;;  %v1008_v7 = vld [vmem:[#allocation5 + $0xa28] sm:$0xff]  ;;  %v445_v10 = vld [vmem:[%s14005_s25 + $0x490] sm:$0xff] }
 0x12a   : > { %7103 = vmatprep.subr.bf16.mxu0 %v11603_v11  ;;  %8007 = vmatprep.subr.bf16.mxu1 %v11605_v12  ;;  %v11628_v11 = vcombine.low %v996_v49, %v1000_v53  ;;  %v11635_v12 = vcombine.high %v1003_v1, %v1007_v2  ;;  %v11637_v14 = vcombine.high %v1004_v6, %v1008_v7  ;;  %v1027_v53 = vld [vmem:[#allocation5 + $0xac0] sm:$0xff] }
 0x12b   : > { %v14171_v21 = vpack.c.bf16 %v445_v10, %v429_v9  ;;  %v11653_v49 = vcombine.high %v1020_v39, %v1024_v41  ;;  %v1035_v9 = vld [vmem:[#allocation5 + $0xb00] sm:$0xff] }
 0x12c   : > { %7035 = vmatmul.mubr.bf16.gmra.mrb[8].mxu0 %v14147_v18  ;;  %7939 = vmatmul.mubr.bf16.gmra.mrb[8].mxu1 %v14147_v18  ;;  %v1039_v10 = vld [vmem:[#allocation5 + $0xb20] sm:$0xff] }
 0x12d   : > { %7104 = vmatpush1.bf16.msra.mxu0 %v11602_v25  ;;  %8008 = vmatpush1.bf16.msra.mxu1 %v11604_v26  ;;  %v462_v25 = vld [vmem:[%s14005_s25 + $0x518] sm:$0xff]  ;;  %v11667_v24 = vcombine.high %v1035_v9, %v1039_v10 }
 0x12e   : > { %7105 = vmatprep.subr.bf16.mxu0 %v11611_v27  ;;  %8009 = vmatprep.subr.bf16.mxu1 %v11613_v29  ;;  %v478_v26 = vld [vmem:[%s14005_s25 + $0x598] sm:$0xff]  ;;  %v11634_v27 = vcombine.low %v1003_v1, %v1007_v2  ;;  %v11636_v29 = vcombine.low %v1004_v6, %v1008_v7  ;;  %v11652_v2 = vcombine.low %v1020_v39, %v1024_v41 }
 0x12f   : > { %7044 = vmatprep.mubr.bf16.mxu0 %v14151_v30  ;;  %7948 = vmatprep.mubr.bf16.mxu1 %v14151_v30  ;;  %v14175_v35 = vpack.c.bf16 %v478_v26, %v462_v25  ;;  %v11659_v6 = vcombine.high %v1027_v53, %v1031_v54  ;;  %v1043_v26 = vld [vmem:[#allocation5 + $0xb40] sm:$0xff]  ;;  %v11666_v39 = vcombine.low %v1035_v9, %v1039_v10  ;;  %v1064_v10 = vld [vmem:[#allocation5 + $0xbe8] sm:$0xff] }
 0x131   : > { %7106 = vmatpush1.bf16.msra.mxu0 %v11610_v38  ;;  %8010 = vmatpush1.bf16.msra.mxu1 %v11612_v42  ;;  %v1023_v38 = vld [vmem:[#allocation5 + $0xaa0] sm:$0xff]  ;;  %v11642_v42 = vcombine.low %v1011_v16, %v1015_v17  ;;  %v493_v16 = vld [vmem:[%s14005_s25 + $0x610] sm:$0xff] }
 0x132   : > { %7107 = vmatprep.subr.bf16.mxu0 %v11619_v44  ;;  %8011 = vmatprep.subr.bf16.mxu1 %v11621_v46  ;;  %v461_v44 = vld [vmem:[%s14005_s25 + $0x510] sm:$0xff]  ;;  %v11651_v48 = vcombine.high %v1019_v36, %v1023_v38  ;;  %v11650_v1 = vcombine.low %v1019_v36, %v1023_v38  ;;  %v526_v36 = vld [vmem:[%s14005_s25 + $0x718] sm:$0xff] }
 0x133   : > { %v477_v46 = vld [vmem:[%s14005_s25 + $0x590] sm:$0xff]  ;;  %v542_v38 = vld [vmem:[%s14005_s25 + $0x798] sm:$0xff] }
 0x134   : > { %7045 = vmatmul.mubr.bf16.gmra.mrb[12].mxu0 %v14159_v50  ;;  %7949 = vmatmul.mubr.bf16.gmra.mrb[12].mxu1 %v14159_v50  ;;  %v509_v17 = vld [vmem:[%s14005_s25 + $0x690] sm:$0xff] }
 0x135   : > { %7108 = vmatpush1.bf16.msra.mxu0 %v11618_v56  ;;  %8012 = vmatpush1.bf16.msra.mxu1 %v11620_v59  ;;  %v14183_v56 = vpack.c.bf16 %v477_v46, %v461_v44  ;;  %v1032_v59 = vld [vmem:[#allocation5 + $0xae8] sm:$0xff]  ;;  %v14199_v46 = vpack.c.bf16 %v542_v38, %v526_v36  ;;  %v303_v36 = vld [vmem:[%s14005_s25 + $0x20] sm:$0xff] }
 0x136   : > { %7109 = vmatprep.subr.bf16.mxu0 %v11627_v61  ;;  %8013 = vmatprep.subr.bf16.mxu1 %v11629_v62  ;;  %v494_v61 = vld [vmem:[%s14005_s25 + $0x618] sm:$0xff]  ;;  %v11661_v7 = vcombine.high %v1028_v55, %v1032_v59  ;;  %v11660_v20 = vcombine.low %v1028_v55, %v1032_v59  ;;  %v525_v55 = vld [vmem:[%s14005_s25 + $0x710] sm:$0xff]  ;;  %v319_v38 = vld [vmem:[%s14005_s25 + $0xa0] sm:$0xff] }
 0x137   : > { %7054 = vmatprep.mubr.bf16.mxu0 %v14163_v0  ;;  %7958 = vmatprep.mubr.bf16.mxu1 %v14163_v0  ;;  %v510_v62 = vld [vmem:[%s14005_s25 + $0x698] sm:$0xff]  ;;  %v541_v59 = vld [vmem:[%s14005_s25 + $0x790] sm:$0xff] }
 0x138   : > { %v14207_v9 = vpack.c.bf16 %v541_v59, %v525_v55  ;;  %v352_v55 = vld [vmem:[%s14005_s25 + $0x1a8] sm:$0xff] }
 0x139   : > { %7110 = vmatpush1.bf16.msra.mxu0 %v11626_v8  ;;  %8014 = vmatpush1.bf16.msra.mxu1 %v11628_v11  ;;  %v14187_v8 = vpack.c.bf16 %v510_v62, %v494_v61  ;;  %v1036_v11 = vld [vmem:[#allocation5 + $0xb08] sm:$0xff] }
 0x13a   : > { %7111 = vmatprep.subr.bf16.mxu0 %v11635_v12  ;;  %8015 = vmatprep.subr.bf16.mxu1 %v11637_v14  ;;  %v1040_v12 = vld [vmem:[#allocation5 + $0xb28] sm:$0xff]  ;;  %v11658_v14 = vcombine.low %v1027_v53, %v1031_v54 }
 0x13b   : > { %v11669_v25 = vcombine.high %v1036_v11, %v1040_v12  ;;  %v11668_v41 = vcombine.low %v1036_v11, %v1040_v12  ;;  %v1056_v53 = vld [vmem:[#allocation5 + $0xba8] sm:$0xff] }
 0x13c   : > { %7055 = vmatmul.mubr.bf16.gmra.mrb[16].mxu0 %v14171_v21  ;;  %7959 = vmatmul.mubr.bf16.gmra.mrb[16].mxu1 %v14171_v21  ;;  %v304_v11 = vld [vmem:[%s14005_s25 + $0x28] sm:$0xff] }
 0x13d   : > { %7112 = vmatpush1.bf16.msra.mxu0 %v11634_v27  ;;  %8016 = vmatpush1.bf16.msra.mxu1 %v11636_v29  ;;  %v1047_v27 = vld [vmem:[#allocation5 + $0xb60] sm:$0xff]  ;;  %v1044_v29 = vld [vmem:[#allocation5 + $0xb48] sm:$0xff] }
 0x13e   : > { %7113 = vmatprep.subr.bf16.mxu0 %v11643_v32  ;;  %8017 = vmatprep.subr.bf16.mxu1 %v11645_v34  ;;  %v14195_v32 = vpack.c.bf16 %v509_v17, %v493_v16  ;;  %v1048_v34 = vld [vmem:[#allocation5 + $0xb68] sm:$0xff]  ;;  %v11674_v54 = vcombine.low %v1043_v26, %v1047_v27 }
 0x13f   : > { %7064 = vmatprep.mubr.bf16.mxu0 %v14175_v35  ;;  %7968 = vmatprep.mubr.bf16.mxu1 %v14175_v35  ;;  %v11677_v44 = vcombine.high %v1044_v29, %v1048_v34  ;;  %v11676_v61 = vcombine.low %v1044_v29, %v1048_v34  ;;  %v320_v12 = vld [vmem:[%s14005_s25 + $0xa8] sm:$0xff] }
 0x140   : > { %v1072_v29 = vld [vmem:[#allocation5 + $0xc28] sm:$0xff] }
 0x141   : > { %7114 = vmatpush1.bf16.msra.mxu0 %v11642_v42  ;;  %8018 = vmatpush1.bf16.msra.mxu1 %v11644_v47  ;;  %v11675_v42 = vcombine.high %v1043_v26, %v1047_v27  ;;  %v1051_v47 = vld [vmem:[#allocation5 + $0xb80] sm:$0xff]  ;;  %v1068_v27 = vld [vmem:[#allocation5 + $0xc08] sm:$0xff] }
 0x142   : > { %7115 = vmatprep.subr.bf16.mxu0 %v11651_v48  ;;  %8019 = vmatprep.subr.bf16.mxu1 %v11653_v49  ;;  %v1055_v48 = vld [vmem:[#allocation5 + $0xba0] sm:$0xff]  ;;  %v1052_v49 = vld [vmem:[#allocation5 + $0xb88] sm:$0xff] }
 0x143   : > { %v11683_v62 = vcombine.high %v1051_v47, %v1055_v48  ;;  %v11684_v16 = vcombine.low %v1052_v49, %v1056_v53  ;;  %v1071_v26 = vld [vmem:[#allocation5 + $0xc20] sm:$0xff] }
 0x144   : > { %7065 = vmatmul.mubr.bf16.gmra.mrb[20].mxu0 %v14183_v56  ;;  %7969 = vmatmul.mubr.bf16.gmra.mrb[20].mxu1 %v14183_v56 }
 0x145   : > { %7116 = vmatpush1.bf16.msra.mxu0 %v11650_v1  ;;  %8020 = vmatpush1.bf16.msra.mxu1 %v11652_v2  ;;  %v11685_v1 = vcombine.high %v1052_v49, %v1056_v53  ;;  %v1059_v2 = vld [vmem:[#allocation5 + $0xbc0] sm:$0xff]  ;;  %v14219_v49 = vpack.c.bf16 %v319_v38, %v303_v36  ;;  %v1080_v53 = vld [vmem:[#allocation5 + $0xc68] sm:$0xff] }
 0x146   : > { %7117 = vmatprep.subr.bf16.mxu0 %v11659_v6  ;;  %8021 = vmatprep.subr.bf16.mxu1 %v11661_v7  ;;  %v1063_v6 = vld [vmem:[#allocation5 + $0xbe0] sm:$0xff]  ;;  %v1060_v7 = vld [vmem:[#allocation5 + $0xbc8] sm:$0xff] }
 0x147   : > { %7074 = vmatprep.mubr.bf16.mxu0 %v14187_v8  ;;  %7978 = vmatprep.mubr.bf16.mxu1 %v14187_v8  ;;  %v11691_v17 = vcombine.high %v1059_v2, %v1063_v6  ;;  %v11690_v34 = vcombine.low %v1059_v2, %v1063_v6  ;;  %v1083_v6 = vld [vmem:[#allocation5 + $0xc80] sm:$0xff]  ;;  %v1096_v36 = vld [vmem:[#allocation5 + $0xce8] sm:$0xff] }
 0x148   : > { %v368_v38 = vld [vmem:[%s14005_s25 + $0x228] sm:$0xff] }
 0x149   : > { %7118 = vmatpush1.bf16.msra.mxu0 %v11658_v14  ;;  %8022 = vmatpush1.bf16.msra.mxu1 %v11660_v20  ;;  %v11682_v14 = vcombine.low %v1051_v47, %v1055_v48  ;;  %v11693_v20 = vcombine.high %v1060_v7, %v1064_v10  ;;  %v1079_v47 = vld [vmem:[#allocation5 + $0xc60] sm:$0xff]  ;;  %v1076_v48 = vld [vmem:[#allocation5 + $0xc48] sm:$0xff] }
 0x14a   : > { %7119 = vmatprep.subr.bf16.mxu0 %v11667_v24  ;;  %8023 = vmatprep.subr.bf16.mxu1 %v11669_v25  ;;  %v14211_v24 = vpack.c.bf16 %v320_v12, %v304_v11  ;;  %v1067_v25 = vld [vmem:[#allocation5 + $0xc00] sm:$0xff]  ;;  %v1088_v11 = vld [vmem:[#allocation5 + $0xca8] sm:$0xff] }
 0x14b   : > { %v11698_v59 = vcombine.low %v1067_v25, %v1071_v26 }
 0x14c   : > { %7075 = vmatmul.mubr.bf16.gmra.mrb[24].mxu0 %v14195_v32  ;;  %7979 = vmatmul.mubr.bf16.gmra.mrb[24].mxu1 %v14195_v32 }
 0x14d   : > { %7120 = vmatpush1.bf16.msra.mxu0 %v11666_v39  ;;  %8024 = vmatpush1.bf16.msra.mxu1 %v11668_v41  ;;  %v11692_v39 = vcombine.low %v1060_v7, %v1064_v10  ;;  %v11699_v41 = vcombine.high %v1067_v25, %v1071_v26  ;;  %v1087_v7 = vld [vmem:[#allocation5 + $0xca0] sm:$0xff]  ;;  %v1084_v10 = vld [vmem:[#allocation5 + $0xc88] sm:$0xff] }
 0x14e   : > { %7121 = vmatprep.subr.bf16.mxu0 %v11675_v42  ;;  %8025 = vmatprep.subr.bf16.mxu1 %v11677_v44  ;;  %v11701_v42 = vcombine.high %v1068_v27, %v1072_v29  ;;  %v1075_v44 = vld [vmem:[#allocation5 + $0xc40] sm:$0xff]  ;;  %v11717_v25 = vcombine.high %v1084_v10, %v1088_v11 }
 0x14f   : > { %7084 = vmatprep.mubr.bf16.mxu0 %v14199_v46  ;;  %7988 = vmatprep.mubr.bf16.mxu1 %v14199_v46  ;;  %v11706_v12 = vcombine.low %v1075_v44, %v1079_v47  ;;  %v1091_v26 = vld [vmem:[#allocation5 + $0xcc0] sm:$0xff] }
 0x151   : > { %7122 = vmatpush1.bf16.msra.mxu0 %v11674_v54  ;;  %8026 = vmatpush1.bf16.msra.mxu1 %v11676_v61  ;;  %v336_v54 = vld [vmem:[%s14005_s25 + $0x128] sm:$0xff]  ;;  %v11700_v61 = vcombine.low %v1068_v27, %v1072_v29  ;;  %v1095_v27 = vld [vmem:[#allocation5 + $0xce0] sm:$0xff] }
 0x152   : > { %7123 = vmatprep.subr.bf16.mxu0 %v11683_v62  ;;  %8027 = vmatprep.subr.bf16.mxu1 %v11685_v1  ;;  %v11707_v62 = vcombine.high %v1075_v44, %v1079_v47  ;;  %v11709_v1 = vcombine.high %v1076_v48, %v1080_v53  ;;  %v14223_v2 = vpack.c.bf16 %v352_v55, %v336_v54  ;;  %v1092_v29 = vld [vmem:[#allocation5 + $0xcc8] sm:$0xff]  ;;  %v1103_v54 = vld [vmem:[#allocation5 + $0xd20] sm:$0xff] }
 0x153   : > { %v11723_v44 = vcombine.high %v1091_v26, %v1095_v27  ;;  %v11725_v47 = vcombine.high %v1092_v29, %v1096_v36  ;;  %v1100_v55 = vld [vmem:[#allocation5 + $0xd08] sm:$0xff] }
 0x154   : > { %7085 = vmatmul.mubr.bf16.gmra.mrb[28].mxu0 %v14207_v9  ;;  %7989 = vmatmul.mubr.bf16.gmra.mrb[28].mxu1 %v14207_v9 }
 0x155   : > { %7124 = vmatpush1.bf16.msra.mxu0 %v11682_v14  ;;  %8028 = vmatpush1.bf16.msra.mxu1 %v11684_v16  ;;  %v335_v14 = vld [vmem:[%s14005_s25 + $0x120] sm:$0xff] }
 0x156   : > { %7125 = vmatprep.subr.bf16.mxu0 %v11691_v17  ;;  %8029 = vmatprep.subr.bf16.mxu1 %v11693_v20  ;;  %v351_v16 = vld [vmem:[%s14005_s25 + $0x1a0] sm:$0xff]  ;;  %v11708_v17 = vcombine.low %v1076_v48, %v1080_v53  ;;  %v11715_v20 = vcombine.high %v1083_v6, %v1087_v7 }
 0x157   : > { %7127 = vmatprep.mubr.bf16.mxu0 %v14211_v24  ;;  %8031 = vmatprep.mubr.bf16.mxu1 %v14211_v24  ;;  %v1099_v53 = vld [vmem:[#allocation5 + $0xd00] sm:$0xff] }
 0x159   : > { %7126 = vmatpush1.bf16.msra.mxu0 %v11690_v34  ;;  %8030 = vmatpush1.bf16.msra.mxu1 %v11692_v39  ;;  %v14231_v34 = vpack.c.bf16 %v351_v16, %v335_v14  ;;  %v384_v39 = vld [vmem:[%s14005_s25 + $0x2a8] sm:$0xff] }
 0x15a   : > { %7208 = vmatprep.subr.bf16.mxu0 %v11699_v41  ;;  %8112 = vmatprep.subr.bf16.mxu1 %v11701_v42  ;;  %v11714_v41 = vcombine.low %v1083_v6, %v1087_v7  ;;  %v11716_v42 = vcombine.low %v1084_v10, %v1088_v11  ;;  %v14235_v48 = vpack.c.bf16 %v384_v39, %v368_v38  ;;  %v1107_v11 = vld [vmem:[#allocation5 + $0xd40] sm:$0xff]  ;;  %v1108_v14 = vld [vmem:[#allocation5 + $0xd48] sm:$0xff] }
 0x15b   : > { %v11724_v6 = vcombine.low %v1092_v29, %v1096_v36  ;;  %v11731_v7 = vcombine.high %v1099_v53, %v1103_v54  ;;  %v1115_v39 = vld [vmem:[#allocation5 + $0xd80] sm:$0xff] }
 0x15c   : > { %7128 = vmatmul.mubr.bf16.vlgmr.msra.gmra.mrb[0].mxu0 %v14219_v49  ;;  %8032 = vmatmul.mubr.bf16.vlgmr.msra.gmra.mrb[0].mxu1 %v14219_v49 }
 0x15d   : > { %7209 = vmatpush1.bf16.msra.mxu0 %v11698_v59  ;;  %8113 = vmatpush1.bf16.msra.mxu1 %v11700_v61  ;;  %v1104_v59 = vld [vmem:[#allocation5 + $0xd28] sm:$0xff]  ;;  %v11722_v61 = vcombine.low %v1091_v26, %v1095_v27  ;;  %v11730_v26 = vcombine.low %v1099_v53, %v1103_v54  ;;  %v399_v53 = vld [vmem:[%s14005_s25 + $0x320] sm:$0xff] }
 0x15e   : > { %7210 = vmatprep.subr.bf16.mxu0 %v11707_v62  ;;  %8114 = vmatprep.subr.bf16.mxu1 %v11709_v1  ;;  %v367_v62 = vld [vmem:[%s14005_s25 + $0x220] sm:$0xff]  ;;  %v11733_v10 = vcombine.high %v1100_v55, %v1104_v59  ;;  %v11732_v27 = vcombine.low %v1100_v55, %v1104_v59 }
 0x15f   : > { %7137 = vmatprep.mubr.bf16.mxu0 %v14223_v2  ;;  %8041 = vmatprep.mubr.bf16.mxu1 %v14223_v2  ;;  %v383_v1 = vld [vmem:[%s14005_s25 + $0x2a0] sm:$0xff] }
 0x160   : > { %v14243_v16 = vpack.c.bf16 %v383_v1, %v367_v62  ;;  %v415_v54 = vld [vmem:[%s14005_s25 + $0x3a0] sm:$0xff] }
 0x161   : > { %7211 = vmatpush1.bf16.msra.mxu0 %v11706_v12  ;;  %8115 = vmatpush1.bf16.msra.mxu1 %v11708_v17  ;;  %v1111_v12 = vld [vmem:[#allocation5 + $0xd60] sm:$0xff]  ;;  %v1112_v17 = vld [vmem:[#allocation5 + $0xd68] sm:$0xff] }
 0x162   : > { %7212 = vmatprep.subr.bf16.mxu0 %v11715_v20  ;;  %8116 = vmatprep.subr.bf16.mxu1 %v11717_v25  ;;  %v400_v20 = vld [vmem:[%s14005_s25 + $0x328] sm:$0xff]  ;;  %v11739_v29 = vcombine.high %v1107_v11, %v1111_v12  ;;  %v11741_v36 = vcombine.high %v1108_v14, %v1112_v17  ;;  %v11740_v55 = vcombine.low %v1108_v14, %v1112_v17  ;;  %v1123_v62 = vld [vmem:[#allocation5 + $0xdc0] sm:$0xff] }
 0x163   : > { %v416_v25 = vld [vmem:[%s14005_s25 + $0x3a8] sm:$0xff]  ;;  %v1127_v1 = vld [vmem:[#allocation5 + $0xde0] sm:$0xff] }
 0x164   : > { %7138 = vmatmul.mubr.bf16.gmra.mrb[4].mxu0 %v14231_v34  ;;  %8042 = vmatmul.mubr.bf16.gmra.mrb[4].mxu1 %v14231_v34  ;;  %v14247_v38 = vpack.c.bf16 %v416_v25, %v400_v20  ;;  %v11755_v17 = vcombine.high %v1123_v62, %v1127_v1 }
 0x165   : > { %7213 = vmatpush1.bf16.msra.mxu0 %v11714_v41  ;;  %8117 = vmatpush1.bf16.msra.mxu1 %v11716_v42  ;;  %v1119_v41 = vld [vmem:[#allocation5 + $0xda0] sm:$0xff]  ;;  %v1116_v42 = vld [vmem:[#allocation5 + $0xd88] sm:$0xff] }
 0x166   : > { %7214 = vmatprep.subr.bf16.mxu0 %v11723_v44  ;;  %8118 = vmatprep.subr.bf16.mxu1 %v11725_v47  ;;  %v1120_v44 = vld [vmem:[#allocation5 + $0xda8] sm:$0xff]  ;;  %v11738_v47 = vcombine.low %v1107_v11, %v1111_v12  ;;  %v11747_v59 = vcombine.high %v1115_v39, %v1119_v41  ;;  %v11746_v20 = vcombine.low %v1115_v39, %v1119_v41  ;;  %v431_v41 = vld [vmem:[%s14005_s25 + $0x420] sm:$0xff] }
 0x167   : > { %7147 = vmatprep.mubr.bf16.mxu0 %v14235_v48  ;;  %8051 = vmatprep.mubr.bf16.mxu1 %v14235_v48  ;;  %v432_v11 = vld [vmem:[%s14005_s25 + $0x428] sm:$0xff]  ;;  %v11748_v14 = vcombine.low %v1116_v42, %v1120_v44  ;;  %v11754_v39 = vcombine.low %v1123_v62, %v1127_v1 }
 0x168   : > { %v448_v12 = vld [vmem:[%s14005_s25 + $0x4a8] sm:$0xff] }
 0x169   : > { %7215 = vmatpush1.bf16.msra.mxu0 %v11722_v61  ;;  %8119 = vmatpush1.bf16.msra.mxu1 %v11724_v6  ;;  %v11749_v61 = vcombine.high %v1116_v42, %v1120_v44  ;;  %v1124_v6 = vld [vmem:[#allocation5 + $0xdc8] sm:$0xff] }
 0x16a   : > { %7216 = vmatprep.subr.bf16.mxu0 %v11731_v7  ;;  %8120 = vmatprep.subr.bf16.mxu1 %v11733_v10  ;;  %v14255_v7 = vpack.c.bf16 %v415_v54, %v399_v53  ;;  %v1128_v10 = vld [vmem:[#allocation5 + $0xde8] sm:$0xff] }
 0x16b   : > { %v11757_v25 = vcombine.high %v1124_v6, %v1128_v10  ;;  %v1136_v53 = vld [vmem:[#allocation5 + $0xe28] sm:$0xff]  ;;  %v11756_v42 = vcombine.low %v1124_v6, %v1128_v10 }
 0x16c   : > { %7148 = vmatmul.mubr.bf16.gmra.mrb[8].mxu0 %v14243_v16  ;;  %8052 = vmatmul.mubr.bf16.gmra.mrb[8].mxu1 %v14243_v16  ;;  %16347 = vst [vmem:[#allocation14_spill] sm:$0xff] %v14255_v7  ;;  %v1144_v62 = vld [vmem:[#allocation5 + $0xe68] sm:$0xff] }
 0x16d   : > { %7217 = vmatpush1.bf16.msra.mxu0 %v11730_v26  ;;  %8121 = vmatpush1.bf16.msra.mxu1 %v11732_v27  ;;  %v14259_v26 = vpack.c.bf16 %v448_v12, %v432_v11  ;;  %v1131_v27 = vld [vmem:[#allocation5 + $0xe00] sm:$0xff]  ;;  %v464_v1 = vld [vmem:[%s14005_s25 + $0x528] sm:$0xff] }
 0x16e   : > { %7218 = vmatprep.subr.bf16.mxu0 %v11739_v29  ;;  %8122 = vmatprep.subr.bf16.mxu1 %v11741_v36  ;;  %v1135_v29 = vld [vmem:[#allocation5 + $0xe20] sm:$0xff]  ;;  %v1132_v36 = vld [vmem:[#allocation5 + $0xe08] sm:$0xff] }
 0x16f   : > { %7157 = vmatprep.mubr.bf16.mxu0 %v14247_v38  ;;  %8061 = vmatprep.mubr.bf16.mxu1 %v14247_v38  ;;  %16348 = vst [vmem:[#allocation15_spill] sm:$0xff] %v14259_v26  ;;  %v11763_v44 = vcombine.high %v1131_v27, %v1135_v29  ;;  %v11765_v54 = vcombine.high %v1132_v36, %v1136_v53  ;;  %v480_v12 = vld [vmem:[%s14005_s25 + $0x5a8] sm:$0xff] }
 0x170   : > { %v11764_v6 = vcombine.low %v1132_v36, %v1136_v53 }
 0x171   : > { %7219 = vmatpush1.bf16.msra.mxu0 %v11738_v47  ;;  %8123 = vmatpush1.bf16.msra.mxu1 %v11740_v55  ;;  %v447_v47 = vld [vmem:[%s14005_s25 + $0x4a0] sm:$0xff] }
 0x172   : > { %7220 = vmatprep.subr.bf16.mxu0 %v11747_v59  ;;  %8124 = vmatprep.subr.bf16.mxu1 %v11749_v61  ;;  %v1139_v55 = vld [vmem:[#allocation5 + $0xe40] sm:$0xff]  ;;  %v1140_v61 = vld [vmem:[#allocation5 + $0xe48] sm:$0xff]  ;;  %v14267_v11 = vpack.c.bf16 %v447_v47, %v431_v41 }
 0x173   : > { %v1143_v59 = vld [vmem:[#allocation5 + $0xe60] sm:$0xff]  ;;  %v1148_v41 = vld [vmem:[#allocation5 + $0xe88] sm:$0xff]  ;;  %v11772_v36 = vcombine.low %v1140_v61, %v1144_v62 }
 0x174   : > { %7158 = vmatmul.mubr.bf16.gmra.mrb[12].mxu0 %v14255_v7  ;;  %8062 = vmatmul.mubr.bf16.gmra.mrb[12].mxu1 %v14255_v7  ;;  %16349 = vst [vmem:[#allocation16_spill] sm:$0xff] %v14267_v11  ;;  %v11771_v10 = vcombine.high %v1139_v55, %v1143_v59  ;;  %v1151_v7 = vld [vmem:[#allocation5 + $0xea0] sm:$0xff]  ;;  %v1152_v47 = vld [vmem:[#allocation5 + $0xea8] sm:$0xff] }
 0x175   : > { %7221 = vmatpush1.bf16.msra.mxu0 %v11746_v20  ;;  %8125 = vmatpush1.bf16.msra.mxu1 %v11748_v14  ;;  %v11762_v20 = vcombine.low %v1131_v27, %v1135_v29  ;;  %v11773_v14 = vcombine.high %v1140_v61, %v1144_v62  ;;  %v11770_v27 = vcombine.low %v1139_v55, %v1143_v59  ;;  %v463_v29 = vld [vmem:[%s14005_s25 + $0x520] sm:$0xff]  ;;  %v1160_v55 = vld [vmem:[#allocation5 + $0xee8] sm:$0xff] }
 0x176   : > { %7222 = vmatprep.subr.bf16.mxu0 %v11755_v17  ;;  %8126 = vmatprep.subr.bf16.mxu1 %v11757_v25  ;;  %v14271_v17 = vpack.c.bf16 %v480_v12, %v464_v1  ;;  %v1147_v25 = vld [vmem:[#allocation5 + $0xe80] sm:$0xff]  ;;  %v1156_v1 = vld [vmem:[#allocation5 + $0xec8] sm:$0xff]  ;;  %v11780_v61 = vcombine.low %v1148_v41, %v1152_v47 }
 0x177   : > { %7167 = vmatprep.mubr.bf16.mxu0 %v14259_v26  ;;  %8071 = vmatprep.mubr.bf16.mxu1 %v14259_v26  ;;  %v11779_v53 = vcombine.high %v1147_v25, %v1151_v7  ;;  %v496_v59 = vld [vmem:[%s14005_s25 + $0x628] sm:$0xff]  ;;  %v1167_v26 = vld [vmem:[#allocation5 + $0xf20] sm:$0xff] }
 0x178   : > { %16350 = vst [vmem:[#allocation17_spill] sm:$0xff] %v14271_v17 }
 0x179   : > { %7223 = vmatpush1.bf16.msra.mxu0 %v11754_v39  ;;  %8127 = vmatpush1.bf16.msra.mxu1 %v11756_v42  ;;  %v479_v39 = vld [vmem:[%s14005_s25 + $0x5a0] sm:$0xff]  ;;  %v11781_v42 = vcombine.high %v1148_v41, %v1152_v47  ;;  %v11788_v41 = vcombine.low %v1156_v1, %v1160_v55 }
 0x17a   : > { %7224 = vmatprep.subr.bf16.mxu0 %v11763_v44  ;;  %8128 = vmatprep.subr.bf16.mxu1 %v11765_v54  ;;  %v1155_v44 = vld [vmem:[#allocation5 + $0xec0] sm:$0xff]  ;;  %v14279_v12 = vpack.c.bf16 %v479_v39, %v463_v29  ;;  %v1164_v29 = vld [vmem:[#allocation5 + $0xf08] sm:$0xff] }
 0x17b   : > { %v1159_v54 = vld [vmem:[#allocation5 + $0xee0] sm:$0xff]  ;;  %v1168_v39 = vld [vmem:[#allocation5 + $0xf28] sm:$0xff] }
 0x17c   : > { %7168 = vmatmul.mubr.bf16.gmra.mrb[16].mxu0 %v14267_v11  ;;  %8072 = vmatmul.mubr.bf16.gmra.mrb[16].mxu1 %v14267_v11  ;;  %16351 = vst [vmem:[#allocation18_spill] sm:$0xff] %v14279_v12  ;;  %v11778_v11 = vcombine.low %v1147_v25, %v1151_v7  ;;  %v11787_v62 = vcombine.high %v1155_v44, %v1159_v54  ;;  %v495_v25 = vld [vmem:[%s14005_s25 + $0x620] sm:$0xff] }
 0x17d   : > { %7225 = vmatpush1.bf16.msra.mxu0 %v11762_v20  ;;  %8129 = vmatpush1.bf16.msra.mxu1 %v11764_v6  ;;  %v512_v20 = vld [vmem:[%s14005_s25 + $0x6a8] sm:$0xff]  ;;  %v11789_v6 = vcombine.high %v1156_v1, %v1160_v55  ;;  %v11786_v7 = vcombine.low %v1155_v44, %v1159_v54  ;;  %v11796_v1 = vcombine.low %v1164_v29, %v1168_v39 }
 0x17e   : > { %7226 = vmatprep.subr.bf16.mxu0 %v11771_v10  ;;  %8130 = vmatprep.subr.bf16.mxu1 %v11773_v14  ;;  %v14283_v10 = vpack.c.bf16 %v512_v20, %v496_v59  ;;  %v1163_v14 = vld [vmem:[#allocation5 + $0xf00] sm:$0xff]  ;;  %v1172_v59 = vld [vmem:[#allocation5 + $0xf48] sm:$0xff] }
 0x17f   : > { %7177 = vmatprep.mubr.bf16.mxu0 %v14271_v17  ;;  %8081 = vmatprep.mubr.bf16.mxu1 %v14271_v17  ;;  %v11795_v47 = vcombine.high %v1163_v14, %v1167_v26  ;;  %v528_v44 = vld [vmem:[%s14005_s25 + $0x728] sm:$0xff]  ;;  %v1183_v17 = vld [vmem:[#allocation5 + $0xfa0] sm:$0xff] }
 0x180   : > { %16352 = vst [vmem:[#allocation19_spill] sm:$0xff] %v14283_v10  ;;  %v544_v54 = vld [vmem:[%s14005_s25 + $0x7a8] sm:$0xff] }
 0x181   : > { %7227 = vmatpush1.bf16.msra.mxu0 %v11770_v27  ;;  %8131 = vmatpush1.bf16.msra.mxu1 %v11772_v36  ;;  %v511_v27 = vld [vmem:[%s14005_s25 + $0x6a0] sm:$0xff]  ;;  %v11797_v36 = vcombine.high %v1164_v29, %v1168_v39 }
 0x182   : > { %7228 = vmatprep.subr.bf16.mxu0 %v11779_v53  ;;  %8132 = vmatprep.subr.bf16.mxu1 %v11781_v42  ;;  %v1171_v53 = vld [vmem:[#allocation5 + $0xf40] sm:$0xff]  ;;  %v14291_v20 = vpack.c.bf16 %v511_v27, %v495_v25  ;;  %v1180_v25 = vld [vmem:[#allocation5 + $0xf88] sm:$0xff] }
 0x183   : > { %v1175_v42 = vld [vmem:[#allocation5 + $0xf60] sm:$0xff]  ;;  %v1184_v27 = vld [vmem:[#allocation5 + $0xfa8] sm:$0xff] }
 0x184   : > { %7178 = vmatmul.mubr.bf16.gmra.mrb[20].mxu0 %v14279_v12  ;;  %8082 = vmatmul.mubr.bf16.gmra.mrb[20].mxu1 %v14279_v12  ;;  %16353 = vst [vmem:[#allocation20_spill] sm:$0xff] %v14291_v20  ;;  %v11794_v12 = vcombine.low %v1163_v14, %v1167_v26  ;;  %v11803_v55 = vcombine.high %v1171_v53, %v1175_v42  ;;  %v527_v14 = vld [vmem:[%s14005_s25 + $0x720] sm:$0xff] }
 0x185   : > { %7229 = vmatpush1.bf16.msra.mxu0 %v11778_v11  ;;  %8133 = vmatpush1.bf16.msra.mxu1 %v11780_v61  ;;  %v1176_v11 = vld [vmem:[#allocation5 + $0xf68] sm:$0xff]  ;;  %v11802_v26 = vcombine.low %v1171_v53, %v1175_v42  ;;  %v306_v53 = vld [vmem:[%s14005_s25 + $0x38] sm:$0xff] }
 0x186   : > { %7230 = vmatprep.subr.bf16.mxu0 %v11787_v62  ;;  %8134 = vmatprep.subr.bf16.mxu1 %v11789_v6  ;;  %v11805_v61 = vcombine.high %v1172_v59, %v1176_v11  ;;  %v14295_v62 = vpack.c.bf16 %v544_v54, %v528_v44  ;;  %v1179_v6 = vld [vmem:[#allocation5 + $0xf80] sm:$0xff]  ;;  %v11804_v29 = vcombine.low %v1172_v59, %v1176_v11  ;;  %v1188_v44 = vld [vmem:[#allocation5 + $0xfc8] sm:$0xff]  ;;  %v322_v42 = vld [vmem:[%s14005_s25 + $0xb8] sm:$0xff] }
 0x187   : > { %7187 = vmatprep.mubr.bf16.mxu0 %v14283_v10  ;;  %8091 = vmatprep.mubr.bf16.mxu1 %v14283_v10  ;;  %v11811_v39 = vcombine.high %v1179_v6, %v1183_v17  ;;  %v11812_v59 = vcombine.low %v1180_v25, %v1184_v27  ;;  %v1199_v10 = vld [vmem:[#allocation5 + $0x1020] sm:$0xff] }
 0x188   : > { %16354 = vst [vmem:[#allocation21_spill] sm:$0xff] %v14295_v62 }
 0x189   : > { %7231 = vmatpush1.bf16.msra.mxu0 %v11786_v7  ;;  %8135 = vmatpush1.bf16.msra.mxu1 %v11788_v41  ;;  %v543_v7 = vld [vmem:[%s14005_s25 + $0x7a0] sm:$0xff]  ;;  %v11813_v41 = vcombine.high %v1180_v25, %v1184_v27 }
 0x18a   : > { %7232 = vmatprep.subr.bf16.mxu0 %v11795_v47  ;;  %8136 = vmatprep.subr.bf16.mxu1 %v11797_v36  ;;  %v1187_v47 = vld [vmem:[#allocation5 + $0xfc0] sm:$0xff]  ;;  %v14303_v54 = vpack.c.bf16 %v543_v7, %v527_v14  ;;  %v1196_v14 = vld [vmem:[#allocation5 + $0x1008] sm:$0xff] }
 0x18b   : > { %v1191_v36 = vld [vmem:[#allocation5 + $0xfe0] sm:$0xff]  ;;  %v1200_v7 = vld [vmem:[#allocation5 + $0x1028] sm:$0xff] }
 0x18c   : > { %7188 = vmatmul.mubr.bf16.gmra.mrb[24].mxu0 %v14291_v20  ;;  %8092 = vmatmul.mubr.bf16.gmra.mrb[24].mxu1 %v14291_v20  ;;  %16355 = vst [vmem:[#allocation22_spill] sm:$0xff] %v14303_v54  ;;  %v11810_v20 = vcombine.low %v1179_v6, %v1183_v17  ;;  %v11819_v11 = vcombine.high %v1187_v47, %v1191_v36  ;;  %v305_v6 = vld [vmem:[%s14005_s25 + $0x30] sm:$0xff] }
 0x18d   : > { %7233 = vmatpush1.bf16.msra.mxu0 %v11794_v12  ;;  %8137 = vmatpush1.bf16.msra.mxu1 %v11796_v1  ;;  %v1192_v12 = vld [vmem:[#allocation5 + $0xfe8] sm:$0xff]  ;;  %v11818_v17 = vcombine.low %v1187_v47, %v1191_v36  ;;  %v338_v47 = vld [vmem:[%s14005_s25 + $0x138] sm:$0xff] }
 0x18e   : > { %7234 = vmatprep.subr.bf16.mxu0 %v11803_v55  ;;  %8138 = vmatprep.subr.bf16.mxu1 %v11805_v61  ;;  %v11821_v1 = vcombine.high %v1188_v44, %v1192_v12  ;;  %v14307_v55 = vpack.c.bf16 %v322_v42, %v306_v53  ;;  %v1195_v61 = vld [vmem:[#allocation5 + $0x1000] sm:$0xff]  ;;  %v11820_v25 = vcombine.low %v1188_v44, %v1192_v12  ;;  %v1204_v53 = vld [vmem:[#allocation5 + $0x1048] sm:$0xff]  ;;  %v354_v36 = vld [vmem:[%s14005_s25 + $0x1b8] sm:$0xff] }
 0x18f   : > { %7197 = vmatprep.mubr.bf16.mxu0 %v14295_v62  ;;  %8101 = vmatprep.mubr.bf16.mxu1 %v14295_v62  ;;  %v11827_v27 = vcombine.high %v1195_v61, %v1199_v10  ;;  %v11828_v44 = vcombine.low %v1196_v14, %v1200_v7  ;;  %v1215_v62 = vld [vmem:[#allocation5 + $0x10a0] sm:$0xff] }
 0x190   : > { %16356 = vst [vmem:[#allocation23_spill] sm:$0xff] %v14307_v55 }
 0x191   : > { %7235 = vmatpush1.bf16.msra.mxu0 %v11802_v26  ;;  %8139 = vmatpush1.bf16.msra.mxu1 %v11804_v29  ;;  %v321_v26 = vld [vmem:[%s14005_s25 + $0xb0] sm:$0xff]  ;;  %v11829_v29 = vcombine.high %v1196_v14, %v1200_v7 }
 0x192   : > { %7236 = vmatprep.subr.bf16.mxu0 %v11811_v39  ;;  %8140 = vmatprep.subr.bf16.mxu1 %v11813_v41  ;;  %v1203_v39 = vld [vmem:[#allocation5 + $0x1040] sm:$0xff]  ;;  %v14315_v42 = vpack.c.bf16 %v321_v26, %v305_v6  ;;  %v1212_v6 = vld [vmem:[#allocation5 + $0x1088] sm:$0xff] }
 0x193   : > { %v1207_v41 = vld [vmem:[#allocation5 + $0x1060] sm:$0xff]  ;;  %v1216_v26 = vld [vmem:[#allocation5 + $0x10a8] sm:$0xff] }
 0x194   : > { %7198 = vmatmul.mubr.bf16.gmra.mrb[28].mxu0 %v14303_v54  ;;  %8102 = vmatmul.mubr.bf16.gmra.mrb[28].mxu1 %v14303_v54  ;;  %16357 = vst [vmem:[#allocation24_spill] sm:$0xff] %v14315_v42  ;;  %v11826_v54 = vcombine.low %v1195_v61, %v1199_v10  ;;  %v11835_v12 = vcombine.high %v1203_v39, %v1207_v41  ;;  %v337_v61 = vld [vmem:[%s14005_s25 + $0x130] sm:$0xff] }
 0x195   : > { %7237 = vmatpush1.bf16.msra.mxu0 %v11810_v20  ;;  %8141 = vmatpush1.bf16.msra.mxu1 %v11812_v59  ;;  %v1208_v20 = vld [vmem:[#allocation5 + $0x1068] sm:$0xff]  ;;  %v11834_v10 = vcombine.low %v1203_v39, %v1207_v41  ;;  %v370_v39 = vld [vmem:[%s14005_s25 + $0x238] sm:$0xff] }
 0x196   : > { %7238 = vmatprep.subr.bf16.mxu0 %v11819_v11  ;;  %8142 = vmatprep.subr.bf16.mxu1 %v11821_v1  ;;  %v11837_v59 = vcombine.high %v1204_v53, %v1208_v20  ;;  %v14319_v11 = vpack.c.bf16 %v354_v36, %v338_v47  ;;  %v1211_v1 = vld [vmem:[#allocation5 + $0x1080] sm:$0xff]  ;;  %v11836_v14 = vcombine.low %v1204_v53, %v1208_v20  ;;  %v1220_v47 = vld [vmem:[#allocation5 + $0x10c8] sm:$0xff]  ;;  %v386_v41 = vld [vmem:[%s14005_s25 + $0x2b8] sm:$0xff] }
 0x197   : > { %7240 = vmatprep.mubr.bf16.mxu0 %v14307_v55  ;;  %8144 = vmatprep.mubr.bf16.mxu1 %v14307_v55  ;;  %v11843_v7 = vcombine.high %v1211_v1, %v1215_v62  ;;  %v11844_v53 = vcombine.low %v1212_v6, %v1216_v26  ;;  %v1231_v55 = vld [vmem:[#allocation5 + $0x1120] sm:$0xff] }
 0x198   : > { %16358 = vst [vmem:[#allocation25_spill] sm:$0xff] %v14319_v11 }
 0x199   : > { %7239 = vmatpush1.bf16.msra.mxu0 %v11818_v17  ;;  %8143 = vmatpush1.bf16.msra.mxu1 %v11820_v25  ;;  %v353_v17 = vld [vmem:[%s14005_s25 + $0x1b0] sm:$0xff]  ;;  %v11845_v25 = vcombine.high %v1212_v6, %v1216_v26 }
 0x19a   : > { %7321 = vmatprep.subr.bf16.mxu0 %v11827_v27  ;;  %8225 = vmatprep.subr.bf16.mxu1 %v11829_v29  ;;  %v1219_v27 = vld [vmem:[#allocation5 + $0x10c0] sm:$0xff]  ;;  %v14327_v36 = vpack.c.bf16 %v353_v17, %v337_v61  ;;  %v1228_v61 = vld [vmem:[#allocation5 + $0x1108] sm:$0xff] }
 0x19b   : > { %v1223_v29 = vld [vmem:[#allocation5 + $0x10e0] sm:$0xff]  ;;  %v1232_v17 = vld [vmem:[#allocation5 + $0x1128] sm:$0xff] }
 0x19c   : > { %7241 = vmatmul.mubr.bf16.vlgmr.msra.gmra.mrb[0].mxu0 %v14315_v42  ;;  %8145 = vmatmul.mubr.bf16.vlgmr.msra.gmra.mrb[0].mxu1 %v14315_v42  ;;  %16359 = vst [vmem:[#allocation26_spill] sm:$0xff] %v14327_v36  ;;  %v11842_v42 = vcombine.low %v1211_v1, %v1215_v62  ;;  %v11851_v20 = vcombine.high %v1219_v27, %v1223_v29  ;;  %v369_v1 = vld [vmem:[%s14005_s25 + $0x230] sm:$0xff] }
 0x19d   : > { %7322 = vmatpush1.bf16.msra.mxu0 %v11826_v54  ;;  %8226 = vmatpush1.bf16.msra.mxu1 %v11828_v44  ;;  %v1224_v54 = vld [vmem:[#allocation5 + $0x10e8] sm:$0xff]  ;;  %v11850_v62 = vcombine.low %v1219_v27, %v1223_v29  ;;  %v402_v27 = vld [vmem:[%s14005_s25 + $0x338] sm:$0xff] }
 0x19e   : > { %7323 = vmatprep.subr.bf16.mxu0 %v11835_v12  ;;  %8227 = vmatprep.subr.bf16.mxu1 %v11837_v59  ;;  %v11853_v44 = vcombine.high %v1220_v47, %v1224_v54  ;;  %v14331_v12 = vpack.c.bf16 %v386_v41, %v370_v39  ;;  %v1227_v59 = vld [vmem:[#allocation5 + $0x1100] sm:$0xff]  ;;  %v11852_v6 = vcombine.low %v1220_v47, %v1224_v54  ;;  %v1236_v39 = vld [vmem:[#allocation5 + $0x1148] sm:$0xff]  ;;  %v418_v29 = vld [vmem:[%s14005_s25 + $0x3b8] sm:$0xff] }
 0x19f   : > { %7250 = vmatprep.mubr.bf16.mxu0 %v14319_v11  ;;  %8154 = vmatprep.mubr.bf16.mxu1 %v14319_v11  ;;  %v11859_v26 = vcombine.high %v1227_v59, %v1231_v55  ;;  %v11860_v47 = vcombine.low %v1228_v61, %v1232_v17  ;;  %v1247_v11 = vld [vmem:[#allocation5 + $0x11a0] sm:$0xff] }
 0x1a0   : > { %16360 = vst [vmem:[#allocation27_spill] sm:$0xff] %v14331_v12 }
 0x1a1   : > { %7324 = vmatpush1.bf16.msra.mxu0 %v11834_v10  ;;  %8228 = vmatpush1.bf16.msra.mxu1 %v11836_v14  ;;  %v385_v10 = vld [vmem:[%s14005_s25 + $0x2b0] sm:$0xff]  ;;  %v11861_v14 = vcombine.high %v1228_v61, %v1232_v17 }
 0x1a2   : > { %7325 = vmatprep.subr.bf16.mxu0 %v11843_v7  ;;  %8229 = vmatprep.subr.bf16.mxu1 %v11845_v25  ;;  %v1235_v7 = vld [vmem:[#allocation5 + $0x1140] sm:$0xff]  ;;  %v14339_v41 = vpack.c.bf16 %v385_v10, %v369_v1  ;;  %v1244_v1 = vld [vmem:[#allocation5 + $0x1188] sm:$0xff] }
 0x1a3   : > { %v1239_v25 = vld [vmem:[#allocation5 + $0x1160] sm:$0xff]  ;;  %v1248_v10 = vld [vmem:[#allocation5 + $0x11a8] sm:$0xff] }
 0x1a4   : > { %7251 = vmatmul.mubr.bf16.gmra.mrb[4].mxu0 %v14327_v36  ;;  %8155 = vmatmul.mubr.bf16.gmra.mrb[4].mxu1 %v14327_v36  ;;  %16361 = vst [vmem:[#allocation28_spill] sm:$0xff] %v14339_v41  ;;  %v11858_v36 = vcombine.low %v1227_v59, %v1231_v55  ;;  %v11867_v54 = vcombine.high %v1235_v7, %v1239_v25  ;;  %v401_v59 = vld [vmem:[%s14005_s25 + $0x330] sm:$0xff] }
 0x1a5   : > { %7326 = vmatpush1.bf16.msra.mxu0 %v11842_v42  ;;  %8230 = vmatpush1.bf16.msra.mxu1 %v11844_v53  ;;  %v1240_v42 = vld [vmem:[#allocation5 + $0x1168] sm:$0xff]  ;;  %v11866_v55 = vcombine.low %v1235_v7, %v1239_v25  ;;  %v434_v7 = vld [vmem:[%s14005_s25 + $0x438] sm:$0xff] }
 0x1a6   : > { %7327 = vmatprep.subr.bf16.mxu0 %v11851_v20  ;;  %8231 = vmatprep.subr.bf16.mxu1 %v11853_v44  ;;  %v11869_v53 = vcombine.high %v1236_v39, %v1240_v42  ;;  %v14343_v20 = vpack.c.bf16 %v418_v29, %v402_v27  ;;  %v1243_v44 = vld [vmem:[#allocation5 + $0x1180] sm:$0xff]  ;;  %v11868_v61 = vcombine.low %v1236_v39, %v1240_v42  ;;  %v1252_v27 = vld [vmem:[#allocation5 + $0x11c8] sm:$0xff]  ;;  %v450_v25 = vld [vmem:[%s14005_s25 + $0x4b8] sm:$0xff] }
 0x1a7   : > { %7260 = vmatprep.mubr.bf16.mxu0 %v14331_v12  ;;  %8164 = vmatprep.mubr.bf16.mxu1 %v14331_v12  ;;  %v11875_v17 = vcombine.high %v1243_v44, %v1247_v11  ;;  %v11876_v39 = vcombine.low %v1244_v1, %v1248_v10  ;;  %v1263_v12 = vld [vmem:[#allocation5 + $0x1220] sm:$0xff] }
 0x1a8   : > { %16362 = vst [vmem:[#allocation29_spill] sm:$0xff] %v14343_v20 }
 0x1a9   : > { %7328 = vmatpush1.bf16.msra.mxu0 %v11850_v62  ;;  %8232 = vmatpush1.bf16.msra.mxu1 %v11852_v6  ;;  %v417_v62 = vld [vmem:[%s14005_s25 + $0x3b0] sm:$0xff]  ;;  %v11877_v6 = vcombine.high %v1244_v1, %v1248_v10 }
 0x1aa   : > { %7329 = vmatprep.subr.bf16.mxu0 %v11859_v26  ;;  %8233 = vmatprep.subr.bf16.mxu1 %v11861_v14  ;;  %v1251_v26 = vld [vmem:[#allocation5 + $0x11c0] sm:$0xff]  ;;  %v14351_v29 = vpack.c.bf16 %v417_v62, %v401_v59  ;;  %v1260_v59 = vld [vmem:[#allocation5 + $0x1208] sm:$0xff] }
 0x1ab   : > { %v1255_v14 = vld [vmem:[#allocation5 + $0x11e0] sm:$0xff]  ;;  %v1264_v62 = vld [vmem:[#allocation5 + $0x1228] sm:$0xff] }
 0x1ac   : > { %7261 = vmatmul.mubr.bf16.gmra.mrb[8].mxu0 %v14339_v41  ;;  %8165 = vmatmul.mubr.bf16.gmra.mrb[8].mxu1 %v14339_v41  ;;  %16363 = vst [vmem:[#allocation30_spill] sm:$0xff] %v14351_v29  ;;  %v11874_v41 = vcombine.low %v1243_v44, %v1247_v11  ;;  %v11883_v42 = vcombine.high %v1251_v26, %v1255_v14  ;;  %v433_v44 = vld [vmem:[%s14005_s25 + $0x430] sm:$0xff] }
 0x1ad   : > { %7330 = vmatpush1.bf16.msra.mxu0 %v11858_v36  ;;  %8234 = vmatpush1.bf16.msra.mxu1 %v11860_v47  ;;  %v1256_v36 = vld [vmem:[#allocation5 + $0x11e8] sm:$0xff]  ;;  %v11882_v11 = vcombine.low %v1251_v26, %v1255_v14  ;;  %v466_v26 = vld [vmem:[%s14005_s25 + $0x538] sm:$0xff] }
 0x1ae   : > { %7331 = vmatprep.subr.bf16.mxu0 %v11867_v54  ;;  %8235 = vmatprep.subr.bf16.mxu1 %v11869_v53  ;;  %v11885_v47 = vcombine.high %v1252_v27, %v1256_v36  ;;  %v14355_v54 = vpack.c.bf16 %v450_v25, %v434_v7  ;;  %v1259_v53 = vld [vmem:[#allocation5 + $0x1200] sm:$0xff]  ;;  %v11884_v1 = vcombine.low %v1252_v27, %v1256_v36  ;;  %v1268_v7 = vld [vmem:[#allocation5 + $0x1248] sm:$0xff]  ;;  %v482_v14 = vld [vmem:[%s14005_s25 + $0x5b8] sm:$0xff] }
 0x1af   : > { %7270 = vmatprep.mubr.bf16.mxu0 %v14343_v20  ;;  %8174 = vmatprep.mubr.bf16.mxu1 %v14343_v20  ;;  %v11891_v10 = vcombine.high %v1259_v53, %v1263_v12  ;;  %v11892_v27 = vcombine.low %v1260_v59, %v1264_v62  ;;  %v1279_v20 = vld [vmem:[#allocation5 + $0x12a0] sm:$0xff] }
 0x1b0   : > { %16364 = vst [vmem:[#allocation31_spill] sm:$0xff] %v14355_v54 }
 0x1b1   : > { %7332 = vmatpush1.bf16.msra.mxu0 %v11866_v55  ;;  %8236 = vmatpush1.bf16.msra.mxu1 %v11868_v61  ;;  %v449_v55 = vld [vmem:[%s14005_s25 + $0x4b0] sm:$0xff]  ;;  %v11893_v61 = vcombine.high %v1260_v59, %v1264_v62 }
 0x1b2   : > { %7333 = vmatprep.subr.bf16.mxu0 %v11875_v17  ;;  %8237 = vmatprep.subr.bf16.mxu1 %v11877_v6  ;;  %v1267_v17 = vld [vmem:[#allocation5 + $0x1240] sm:$0xff]  ;;  %v14363_v25 = vpack.c.bf16 %v449_v55, %v433_v44  ;;  %v1276_v44 = vld [vmem:[#allocation5 + $0x1288] sm:$0xff] }
 0x1b3   : > { %v1271_v6 = vld [vmem:[#allocation5 + $0x1260] sm:$0xff]  ;;  %v1280_v55 = vld [vmem:[#allocation5 + $0x12a8] sm:$0xff] }
 0x1b4   : > { %7271 = vmatmul.mubr.bf16.gmra.mrb[12].mxu0 %v14351_v29  ;;  %8175 = vmatmul.mubr.bf16.gmra.mrb[12].mxu1 %v14351_v29  ;;  %16365 = vst [vmem:[#allocation32_spill] sm:$0xff] %v14363_v25  ;;  %v11890_v29 = vcombine.low %v1259_v53, %v1263_v12  ;;  %v11899_v36 = vcombine.high %v1267_v17, %v1271_v6  ;;  %v465_v53 = vld [vmem:[%s14005_s25 + $0x530] sm:$0xff] }
 0x1b5   : > { %7334 = vmatpush1.bf16.msra.mxu0 %v11874_v41  ;;  %8238 = vmatpush1.bf16.msra.mxu1 %v11876_v39  ;;  %v1272_v41 = vld [vmem:[#allocation5 + $0x1268] sm:$0xff]  ;;  %v11898_v12 = vcombine.low %v1267_v17, %v1271_v6  ;;  %v498_v17 = vld [vmem:[%s14005_s25 + $0x638] sm:$0xff] }
 0x1b6   : > { %7335 = vmatprep.subr.bf16.mxu0 %v11883_v42  ;;  %8239 = vmatprep.subr.bf16.mxu1 %v11885_v47  ;;  %v11901_v39 = vcombine.high %v1268_v7, %v1272_v41  ;;  %v14367_v42 = vpack.c.bf16 %v482_v14, %v466_v26  ;;  %v1275_v47 = vld [vmem:[#allocation5 + $0x1280] sm:$0xff]  ;;  %v11900_v59 = vcombine.low %v1268_v7, %v1272_v41  ;;  %v1284_v26 = vld [vmem:[#allocation5 + $0x12c8] sm:$0xff]  ;;  %v514_v6 = vld [vmem:[%s14005_s25 + $0x6b8] sm:$0xff] }
 0x1b7   : > { %7280 = vmatprep.mubr.bf16.mxu0 %v14355_v54  ;;  %8184 = vmatprep.mubr.bf16.mxu1 %v14355_v54  ;;  %v11907_v62 = vcombine.high %v1275_v47, %v1279_v20  ;;  %v11908_v7 = vcombine.low %v1276_v44, %v1280_v55  ;;  %v1295_v54 = vld [vmem:[#allocation5 + $0x1320] sm:$0xff] }
 0x1b8   : > { %16366 = vst [vmem:[#allocation33_spill] sm:$0xff] %v14367_v42 }
 0x1b9   : > { %7336 = vmatpush1.bf16.msra.mxu0 %v11882_v11  ;;  %8240 = vmatpush1.bf16.msra.mxu1 %v11884_v1  ;;  %v481_v11 = vld [vmem:[%s14005_s25 + $0x5b0] sm:$0xff]  ;;  %v11909_v1 = vcombine.high %v1276_v44, %v1280_v55 }
 0x1ba   : > { %7337 = vmatprep.subr.bf16.mxu0 %v11891_v10  ;;  %8241 = vmatprep.subr.bf16.mxu1 %v11893_v61  ;;  %v1283_v10 = vld [vmem:[#allocation5 + $0x12c0] sm:$0xff]  ;;  %v14375_v14 = vpack.c.bf16 %v481_v11, %v465_v53  ;;  %v1292_v53 = vld [vmem:[#allocation5 + $0x1308] sm:$0xff] }
 0x1bb   : > { %v1287_v61 = vld [vmem:[#allocation5 + $0x12e0] sm:$0xff]  ;;  %v1296_v11 = vld [vmem:[#allocation5 + $0x1328] sm:$0xff] }
 0x1bc   : > { %7281 = vmatmul.mubr.bf16.gmra.mrb[16].mxu0 %v14363_v25  ;;  %8185 = vmatmul.mubr.bf16.gmra.mrb[16].mxu1 %v14363_v25  ;;  %16367 = vst [vmem:[#allocation34_spill] sm:$0xff] %v14375_v14  ;;  %v11906_v25 = vcombine.low %v1275_v47, %v1279_v20  ;;  %v11915_v41 = vcombine.high %v1283_v10, %v1287_v61  ;;  %v497_v47 = vld [vmem:[%s14005_s25 + $0x630] sm:$0xff] }
 0x1bd   : > { %7338 = vmatpush1.bf16.msra.mxu0 %v11890_v29  ;;  %8242 = vmatpush1.bf16.msra.mxu1 %v11892_v27  ;;  %v1288_v29 = vld [vmem:[#allocation5 + $0x12e8] sm:$0xff]  ;;  %v11914_v20 = vcombine.low %v1283_v10, %v1287_v61  ;;  %v530_v10 = vld [vmem:[%s14005_s25 + $0x738] sm:$0xff] }
 0x1be   : > { %7339 = vmatprep.subr.bf16.mxu0 %v11899_v36  ;;  %8243 = vmatprep.subr.bf16.mxu1 %v11901_v39  ;;  %v11917_v27 = vcombine.high %v1284_v26, %v1288_v29  ;;  %v14379_v36 = vpack.c.bf16 %v514_v6, %v498_v17  ;;  %v1291_v39 = vld [vmem:[#allocation5 + $0x1300] sm:$0xff]  ;;  %v11916_v44 = vcombine.low %v1284_v26, %v1288_v29  ;;  %v1300_v17 = vld [vmem:[#allocation5 + $0x1348] sm:$0xff]  ;;  %v546_v61 = vld [vmem:[%s14005_s25 + $0x7b8] sm:$0xff] }
 0x1bf   : > { %7290 = vmatprep.mubr.bf16.mxu0 %v14367_v42  ;;  %8194 = vmatprep.mubr.bf16.mxu1 %v14367_v42  ;;  %v11923_v55 = vcombine.high %v1291_v39, %v1295_v54  ;;  %v11924_v26 = vcombine.low %v1292_v53, %v1296_v11  ;;  %v1311_v42 = vld [vmem:[#allocation5 + $0x13a0] sm:$0xff] }
 0x1c0   : > { %16368 = vst [vmem:[#allocation35_spill] sm:$0xff] %v14379_v36 }
 0x1c1   : > { %7340 = vmatpush1.bf16.msra.mxu0 %v11898_v12  ;;  %8244 = vmatpush1.bf16.msra.mxu1 %v11900_v59  ;;  %v513_v12 = vld [vmem:[%s14005_s25 + $0x6b0] sm:$0xff]  ;;  %v11925_v59 = vcombine.high %v1292_v53, %v1296_v11 }
 0x1c2   : > { %7341 = vmatprep.subr.bf16.mxu0 %v11907_v62  ;;  %8245 = vmatprep.subr.bf16.mxu1 %v11909_v1  ;;  %v1299_v62 = vld [vmem:[#allocation5 + $0x1340] sm:$0xff]  ;;  %v14387_v6 = vpack.c.bf16 %v513_v12, %v497_v47  ;;  %v1308_v47 = vld [vmem:[#allocation5 + $0x1388] sm:$0xff] }
 0x1c3   : > { %v1303_v1 = vld [vmem:[#allocation5 + $0x1360] sm:$0xff]  ;;  %v1312_v12 = vld [vmem:[#allocation5 + $0x13a8] sm:$0xff] }
 0x1c4   : > { %7291 = vmatmul.mubr.bf16.gmra.mrb[20].mxu0 %v14375_v14  ;;  %8195 = vmatmul.mubr.bf16.gmra.mrb[20].mxu1 %v14375_v14  ;;  %16369 = vst [vmem:[#allocation36_spill] sm:$0xff] %v14387_v6  ;;  %v11922_v14 = vcombine.low %v1291_v39, %v1295_v54  ;;  %v11931_v29 = vcombine.high %v1299_v62, %v1303_v1  ;;  %v529_v39 = vld [vmem:[%s14005_s25 + $0x730] sm:$0xff] }
 0x1c5   : > { %7342 = vmatpush1.bf16.msra.mxu0 %v11906_v25  ;;  %8246 = vmatpush1.bf16.msra.mxu1 %v11908_v7  ;;  %v1304_v25 = vld [vmem:[#allocation5 + $0x1368] sm:$0xff]  ;;  %v11930_v54 = vcombine.low %v1299_v62, %v1303_v1 }
 0x1c6   : > { %7343 = vmatprep.subr.bf16.mxu0 %v11915_v41  ;;  %8247 = vmatprep.subr.bf16.mxu1 %v11917_v27  ;;  %v11933_v7 = vcombine.high %v1300_v17, %v1304_v25  ;;  %v14391_v41 = vpack.c.bf16 %v546_v61, %v530_v10  ;;  %v1307_v27 = vld [vmem:[#allocation5 + $0x1380] sm:$0xff]  ;;  %v11932_v53 = vcombine.low %v1300_v17, %v1304_v25  ;;  %v1316_v10 = vld [vmem:[#allocation5 + $0x13c8] sm:$0xff] }
 0x1c7   : > { %7300 = vmatprep.mubr.bf16.mxu0 %v14379_v36  ;;  %8204 = vmatprep.mubr.bf16.mxu1 %v14379_v36  ;;  %v11939_v11 = vcombine.high %v1307_v27, %v1311_v42  ;;  %v308_v62 = vld [vmem:[%s14005_s25 + $0x48] sm:$0xff]  ;;  %v11940_v17 = vcombine.low %v1308_v47, %v1312_v12  ;;  %v1327_v36 = vld [vmem:[#allocation5 + $0x1420] sm:$0xff] }
 0x1c8   : > { %16370 = vst [vmem:[#allocation37_spill] sm:$0xff] %v14391_v41  ;;  %v324_v1 = vld [vmem:[%s14005_s25 + $0xc8] sm:$0xff] }
 0x1c9   : > { %7344 = vmatpush1.bf16.msra.mxu0 %v11914_v20  ;;  %8248 = vmatpush1.bf16.msra.mxu1 %v11916_v44  ;;  %v545_v20 = vld [vmem:[%s14005_s25 + $0x7b0] sm:$0xff]  ;;  %v11941_v44 = vcombine.high %v1308_v47, %v1312_v12 }
 0x1ca   : > { %7345 = vmatprep.subr.bf16.mxu0 %v11923_v55  ;;  %8249 = vmatprep.subr.bf16.mxu1 %v11925_v59  ;;  %v1315_v55 = vld [vmem:[#allocation5 + $0x13c0] sm:$0xff]  ;;  %v14399_v61 = vpack.c.bf16 %v545_v20, %v529_v39  ;;  %v1324_v39 = vld [vmem:[#allocation5 + $0x1408] sm:$0xff] }
 0x1cb   : > { %v1319_v59 = vld [vmem:[#allocation5 + $0x13e0] sm:$0xff]  ;;  %v1328_v20 = vld [vmem:[#allocation5 + $0x1428] sm:$0xff] }
 0x1cc   : > { %7301 = vmatmul.mubr.bf16.gmra.mrb[24].mxu0 %v14387_v6  ;;  %8205 = vmatmul.mubr.bf16.gmra.mrb[24].mxu1 %v14387_v6  ;;  %16371 = vst [vmem:[#allocation38_spill] sm:$0xff] %v14399_v61  ;;  %v11938_v6 = vcombine.low %v1307_v27, %v1311_v42  ;;  %v11947_v25 = vcombine.high %v1315_v55, %v1319_v59  ;;  %v307_v27 = vld [vmem:[%s14005_s25 + $0x40] sm:$0xff] }
 0x1cd   : > { %7346 = vmatpush1.bf16.msra.mxu0 %v11922_v14  ;;  %8250 = vmatpush1.bf16.msra.mxu1 %v11924_v26  ;;  %v1320_v14 = vld [vmem:[#allocation5 + $0x13e8] sm:$0xff]  ;;  %v11946_v42 = vcombine.low %v1315_v55, %v1319_v59 }
 0x1ce   : > { %7347 = vmatprep.subr.bf16.mxu0 %v11931_v29  ;;  %8251 = vmatprep.subr.bf16.mxu1 %v11933_v7  ;;  %v11949_v26 = vcombine.high %v1316_v10, %v1320_v14  ;;  %v14403_v29 = vpack.c.bf16 %v324_v1, %v308_v62  ;;  %v1323_v7 = vld [vmem:[#allocation5 + $0x1400] sm:$0xff]  ;;  %v11948_v47 = vcombine.low %v1316_v10, %v1320_v14  ;;  %v1332_v62 = vld [vmem:[#allocation5 + $0x1448] sm:$0xff] }
 0x1cf   : > { %7310 = vmatprep.mubr.bf16.mxu0 %v14391_v41  ;;  %8214 = vmatprep.mubr.bf16.mxu1 %v14391_v41  ;;  %v11955_v12 = vcombine.high %v1323_v7, %v1327_v36  ;;  %v340_v55 = vld [vmem:[%s14005_s25 + $0x148] sm:$0xff]  ;;  %v11956_v10 = vcombine.low %v1324_v39, %v1328_v20  ;;  %v1343_v41 = vld [vmem:[#allocation5 + $0x14a0] sm:$0xff] }
 0x1d0   : > { %16372 = vst [vmem:[#allocation39_spill] sm:$0xff] %v14403_v29  ;;  %v356_v59 = vld [vmem:[%s14005_s25 + $0x1c8] sm:$0xff] }
 0x1d1   : > { %7348 = vmatpush1.bf16.msra.mxu0 %v11930_v54  ;;  %8252 = vmatpush1.bf16.msra.mxu1 %v11932_v53  ;;  %v323_v54 = vld [vmem:[%s14005_s25 + $0xc0] sm:$0xff]  ;;  %v11957_v53 = vcombine.high %v1324_v39, %v1328_v20 }
 0x1d2   : > { %7349 = vmatprep.subr.bf16.mxu0 %v11939_v11  ;;  %8253 = vmatprep.subr.bf16.mxu1 %v11941_v44  ;;  %v1331_v11 = vld [vmem:[#allocation5 + $0x1440] sm:$0xff]  ;;  %v14411_v1 = vpack.c.bf16 %v323_v54, %v307_v27  ;;  %v1340_v27 = vld [vmem:[#allocation5 + $0x1488] sm:$0xff] }
 0x1d3   : > { %v1335_v44 = vld [vmem:[#allocation5 + $0x1460] sm:$0xff]  ;;  %v1344_v54 = vld [vmem:[#allocation5 + $0x14a8] sm:$0xff] }
 0x1d4   : > { %7311 = vmatmul.mubr.bf16.gmra.mrb[28].mxu0 %v14399_v61  ;;  %8215 = vmatmul.mubr.bf16.gmra.mrb[28].mxu1 %v14399_v61  ;;  %16373 = vst [vmem:[#allocation40_spill] sm:$0xff] %v14411_v1  ;;  %v11954_v61 = vcombine.low %v1323_v7, %v1327_v36  ;;  %v11963_v14 = vcombine.high %v1331_v11, %v1335_v44  ;;  %v339_v7 = vld [vmem:[%s14005_s25 + $0x140] sm:$0xff] }
 0x1d5   : > { %7350 = vmatpush1.bf16.msra.mxu0 %v11938_v6  ;;  %8254 = vmatpush1.bf16.msra.mxu1 %v11940_v17  ;;  %v1336_v6 = vld [vmem:[#allocation5 + $0x1468] sm:$0xff]  ;;  %v11962_v36 = vcombine.low %v1331_v11, %v1335_v44 }
 0x1d6   : > { %7351 = vmatprep.subr.bf16.mxu0 %v11947_v25  ;;  %8255 = vmatprep.subr.bf16.mxu1 %v11949_v26  ;;  %v11965_v17 = vcombine.high %v1332_v62, %v1336_v6  ;;  %v14415_v25 = vpack.c.bf16 %v356_v59, %v340_v55  ;;  %v1339_v26 = vld [vmem:[#allocation5 + $0x1480] sm:$0xff]  ;;  %v11964_v39 = vcombine.low %v1332_v62, %v1336_v6  ;;  %v1348_v55 = vld [vmem:[#allocation5 + $0x14c8] sm:$0xff] }
 0x1d7   : > { %7353 = vmatprep.mubr.bf16.mxu0 %v14403_v29  ;;  %8257 = vmatprep.mubr.bf16.mxu1 %v14403_v29  ;;  %v11971_v20 = vcombine.high %v1339_v26, %v1343_v41  ;;  %v372_v11 = vld [vmem:[%s14005_s25 + $0x248] sm:$0xff]  ;;  %v11972_v62 = vcombine.low %v1340_v27, %v1344_v54  ;;  %v1359_v29 = vld [vmem:[#allocation5 + $0x1520] sm:$0xff] }
 0x1d8   : > { %16374 = vst [vmem:[#allocation41_spill] sm:$0xff] %v14415_v25  ;;  %v388_v44 = vld [vmem:[%s14005_s25 + $0x2c8] sm:$0xff] }
 0x1d9   : > { %7352 = vmatpush1.bf16.msra.mxu0 %v11946_v42  ;;  %8256 = vmatpush1.bf16.msra.mxu1 %v11948_v47  ;;  %v355_v42 = vld [vmem:[%s14005_s25 + $0x1c0] sm:$0xff]  ;;  %v11973_v47 = vcombine.high %v1340_v27, %v1344_v54 }
 0x1da   : > { %7434 = vmatprep.subr.bf16.mxu0 %v11955_v12  ;;  %8338 = vmatprep.subr.bf16.mxu1 %v11957_v53  ;;  %v1347_v12 = vld [vmem:[#allocation5 + $0x14c0] sm:$0xff]  ;;  %v14423_v59 = vpack.c.bf16 %v355_v42, %v339_v7  ;;  %v1356_v7 = vld [vmem:[#allocation5 + $0x1508] sm:$0xff] }
 0x1db   : > { %v1351_v53 = vld [vmem:[#allocation5 + $0x14e0] sm:$0xff]  ;;  %v1360_v42 = vld [vmem:[#allocation5 + $0x1528] sm:$0xff] }
 0x1dc   : > { %7354 = vmatmul.mubr.bf16.vlgmr.msra.gmra.mrb[0].mxu0 %v14411_v1  ;;  %8258 = vmatmul.mubr.bf16.vlgmr.msra.gmra.mrb[0].mxu1 %v14411_v1  ;;  %16375 = vst [vmem:[#allocation42_spill] sm:$0xff] %v14423_v59  ;;  %v11970_v1 = vcombine.low %v1339_v26, %v1343_v41  ;;  %v11979_v6 = vcombine.high %v1347_v12, %v1351_v53  ;;  %v371_v26 = vld [vmem:[%s14005_s25 + $0x240] sm:$0xff] }
 0x1dd   : > { %7435 = vmatpush1.bf16.msra.mxu0 %v11954_v61  ;;  %8339 = vmatpush1.bf16.msra.mxu1 %v11956_v10  ;;  %v1352_v61 = vld [vmem:[#allocation5 + $0x14e8] sm:$0xff]  ;;  %v11978_v41 = vcombine.low %v1347_v12, %v1351_v53 }
 0x1de   : > { %7436 = vmatprep.subr.bf16.mxu0 %v11963_v14  ;;  %8340 = vmatprep.subr.bf16.mxu1 %v11965_v17  ;;  %v11981_v10 = vcombine.high %v1348_v55, %v1352_v61  ;;  %v14427_v14 = vpack.c.bf16 %v388_v44, %v372_v11  ;;  %v1355_v17 = vld [vmem:[#allocation5 + $0x1500] sm:$0xff]  ;;  %v11980_v27 = vcombine.low %v1348_v55, %v1352_v61  ;;  %v1364_v11 = vld [vmem:[#allocation5 + $0x1548] sm:$0xff] }
 0x1df   : > { %7363 = vmatprep.mubr.bf16.mxu0 %v14415_v25  ;;  %8267 = vmatprep.mubr.bf16.mxu1 %v14415_v25  ;;  %v11987_v54 = vcombine.high %v1355_v17, %v1359_v29  ;;  %v404_v12 = vld [vmem:[%s14005_s25 + $0x348] sm:$0xff]  ;;  %v11988_v55 = vcombine.low %v1356_v7, %v1360_v42  ;;  %v1375_v25 = vld [vmem:[#allocation5 + $0x15a0] sm:$0xff] }
 0x1e0   : > { %16376 = vst [vmem:[#allocation43_spill] sm:$0xff] %v14427_v14  ;;  %v420_v53 = vld [vmem:[%s14005_s25 + $0x3c8] sm:$0xff] }
 0x1e1   : > { %7437 = vmatpush1.bf16.msra.mxu0 %v11962_v36  ;;  %8341 = vmatpush1.bf16.msra.mxu1 %v11964_v39  ;;  %v387_v36 = vld [vmem:[%s14005_s25 + $0x2c0] sm:$0xff]  ;;  %v11989_v39 = vcombine.high %v1356_v7, %v1360_v42 }
 0x1e2   : > { %7438 = vmatprep.subr.bf16.mxu0 %v11971_v20  ;;  %8342 = vmatprep.subr.bf16.mxu1 %v11973_v47  ;;  %v1363_v20 = vld [vmem:[#allocation5 + $0x1540] sm:$0xff]  ;;  %v14435_v44 = vpack.c.bf16 %v387_v36, %v371_v26  ;;  %v1372_v26 = vld [vmem:[#allocation5 + $0x1588] sm:$0xff] }
 0x1e3   : > { %v1367_v47 = vld [vmem:[#allocation5 + $0x1560] sm:$0xff]  ;;  %v1376_v36 = vld [vmem:[#allocation5 + $0x15a8] sm:$0xff] }
 0x1e4   : > { %7364 = vmatmul.mubr.bf16.gmra.mrb[4].mxu0 %v14423_v59  ;;  %8268 = vmatmul.mubr.bf16.gmra.mrb[4].mxu1 %v14423_v59  ;;  %16377 = vst [vmem:[#allocation44_spill] sm:$0xff] %v14435_v44  ;;  %v11986_v59 = vcombine.low %v1355_v17, %v1359_v29  ;;  %v11995_v61 = vcombine.high %v1363_v20, %v1367_v47  ;;  %v403_v17 = vld [vmem:[%s14005_s25 + $0x340] sm:$0xff] }
 0x1e5   : > { %7439 = vmatpush1.bf16.msra.mxu0 %v11970_v1  ;;  %8343 = vmatpush1.bf16.msra.mxu1 %v11972_v62  ;;  %v1368_v1 = vld [vmem:[#allocation5 + $0x1568] sm:$0xff]  ;;  %v11994_v29 = vcombine.low %v1363_v20, %v1367_v47 }
 0x1e6   : > { %7440 = vmatprep.subr.bf16.mxu0 %v11979_v6  ;;  %8344 = vmatprep.subr.bf16.mxu1 %v11981_v10  ;;  %v11997_v62 = vcombine.high %v1364_v11, %v1368_v1  ;;  %v14439_v6 = vpack.c.bf16 %v420_v53, %v404_v12  ;;  %v1371_v10 = vld [vmem:[#allocation5 + $0x1580] sm:$0xff]  ;;  %v11996_v7 = vcombine.low %v1364_v11, %v1368_v1  ;;  %v1380_v12 = vld [vmem:[#allocation5 + $0x15c8] sm:$0xff] }
 0x1e7   : > { %7373 = vmatprep.mubr.bf16.mxu0 %v14427_v14  ;;  %8277 = vmatprep.mubr.bf16.mxu1 %v14427_v14  ;;  %v12003_v42 = vcombine.high %v1371_v10, %v1375_v25  ;;  %v436_v20 = vld [vmem:[%s14005_s25 + $0x448] sm:$0xff]  ;;  %v12004_v11 = vcombine.low %v1372_v26, %v1376_v36  ;;  %v1391_v14 = vld [vmem:[#allocation5 + $0x1620] sm:$0xff] }
 0x1e8   : > { %16378 = vst [vmem:[#allocation45_spill] sm:$0xff] %v14439_v6  ;;  %v452_v47 = vld [vmem:[%s14005_s25 + $0x4c8] sm:$0xff] }
 0x1e9   : > { %7441 = vmatpush1.bf16.msra.mxu0 %v11978_v41  ;;  %8345 = vmatpush1.bf16.msra.mxu1 %v11980_v27  ;;  %v419_v41 = vld [vmem:[%s14005_s25 + $0x3c0] sm:$0xff]  ;;  %v12005_v27 = vcombine.high %v1372_v26, %v1376_v36 }
 0x1ea   : > { %7442 = vmatprep.subr.bf16.mxu0 %v11987_v54  ;;  %8346 = vmatprep.subr.bf16.mxu1 %v11989_v39  ;;  %v1379_v54 = vld [vmem:[#allocation5 + $0x15c0] sm:$0xff]  ;;  %v14447_v53 = vpack.c.bf16 %v419_v41, %v403_v17  ;;  %v1388_v17 = vld [vmem:[#allocation5 + $0x1608] sm:$0xff] }
 0x1eb   : > { %v1383_v39 = vld [vmem:[#allocation5 + $0x15e0] sm:$0xff]  ;;  %v1392_v41 = vld [vmem:[#allocation5 + $0x1628] sm:$0xff] }
 0x1ec   : > { %7374 = vmatmul.mubr.bf16.gmra.mrb[8].mxu0 %v14435_v44  ;;  %8278 = vmatmul.mubr.bf16.gmra.mrb[8].mxu1 %v14435_v44  ;;  %16379 = vst [vmem:[#allocation46_spill] sm:$0xff] %v14447_v53  ;;  %v12002_v44 = vcombine.low %v1371_v10, %v1375_v25  ;;  %v12011_v1 = vcombine.high %v1379_v54, %v1383_v39  ;;  %v435_v10 = vld [vmem:[%s14005_s25 + $0x440] sm:$0xff] }
 0x1ed   : > { %7443 = vmatpush1.bf16.msra.mxu0 %v11986_v59  ;;  %8347 = vmatpush1.bf16.msra.mxu1 %v11988_v55  ;;  %v1384_v59 = vld [vmem:[#allocation5 + $0x15e8] sm:$0xff]  ;;  %v12010_v25 = vcombine.low %v1379_v54, %v1383_v39 }
 0x1ee   : > { %7444 = vmatprep.subr.bf16.mxu0 %v11995_v61  ;;  %8348 = vmatprep.subr.bf16.mxu1 %v11997_v62  ;;  %v12013_v55 = vcombine.high %v1380_v12, %v1384_v59  ;;  %v14451_v61 = vpack.c.bf16 %v452_v47, %v436_v20  ;;  %v1387_v62 = vld [vmem:[#allocation5 + $0x1600] sm:$0xff]  ;;  %v12012_v26 = vcombine.low %v1380_v12, %v1384_v59  ;;  %v1396_v20 = vld [vmem:[#allocation5 + $0x1648] sm:$0xff] }
 0x1ef   : > { %7383 = vmatprep.mubr.bf16.mxu0 %v14439_v6  ;;  %8287 = vmatprep.mubr.bf16.mxu1 %v14439_v6  ;;  %v12019_v36 = vcombine.high %v1387_v62, %v1391_v14  ;;  %v468_v54 = vld [vmem:[%s14005_s25 + $0x548] sm:$0xff]  ;;  %v12020_v12 = vcombine.low %v1388_v17, %v1392_v41  ;;  %v1407_v6 = vld [vmem:[#allocation5 + $0x16a0] sm:$0xff] }
 0x1f0   : > { %16380 = vst [vmem:[#allocation47_spill] sm:$0xff] %v14451_v61  ;;  %v484_v39 = vld [vmem:[%s14005_s25 + $0x5c8] sm:$0xff] }
 0x1f1   : > { %7445 = vmatpush1.bf16.msra.mxu0 %v11994_v29  ;;  %8349 = vmatpush1.bf16.msra.mxu1 %v11996_v7  ;;  %v451_v29 = vld [vmem:[%s14005_s25 + $0x4c0] sm:$0xff]  ;;  %v12021_v7 = vcombine.high %v1388_v17, %v1392_v41 }
 0x1f2   : > { %7446 = vmatprep.subr.bf16.mxu0 %v12003_v42  ;;  %8350 = vmatprep.subr.bf16.mxu1 %v12005_v27  ;;  %v1395_v42 = vld [vmem:[#allocation5 + $0x1640] sm:$0xff]  ;;  %v14459_v47 = vpack.c.bf16 %v451_v29, %v435_v10  ;;  %v1404_v10 = vld [vmem:[#allocation5 + $0x1688] sm:$0xff] }
 0x1f3   : > { %v1399_v27 = vld [vmem:[#allocation5 + $0x1660] sm:$0xff]  ;;  %v1408_v29 = vld [vmem:[#allocation5 + $0x16a8] sm:$0xff] }
 0x1f4   : > { %7384 = vmatmul.mubr.bf16.gmra.mrb[12].mxu0 %v14447_v53  ;;  %8288 = vmatmul.mubr.bf16.gmra.mrb[12].mxu1 %v14447_v53  ;;  %16381 = vst [vmem:[#allocation48_spill] sm:$0xff] %v14459_v47  ;;  %v12018_v53 = vcombine.low %v1387_v62, %v1391_v14  ;;  %v12027_v59 = vcombine.high %v1395_v42, %v1399_v27  ;;  %v467_v62 = vld [vmem:[%s14005_s25 + $0x540] sm:$0xff] }
 0x1f5   : > { %7447 = vmatpush1.bf16.msra.mxu0 %v12002_v44  ;;  %8351 = vmatpush1.bf16.msra.mxu1 %v12004_v11  ;;  %v1400_v44 = vld [vmem:[#allocation5 + $0x1668] sm:$0xff]  ;;  %v12026_v14 = vcombine.low %v1395_v42, %v1399_v27 }
 0x1f6   : > { %7448 = vmatprep.subr.bf16.mxu0 %v12011_v1  ;;  %8352 = vmatprep.subr.bf16.mxu1 %v12013_v55  ;;  %v12029_v11 = vcombine.high %v1396_v20, %v1400_v44  ;;  %v14463_v1 = vpack.c.bf16 %v484_v39, %v468_v54  ;;  %v1403_v55 = vld [vmem:[#allocation5 + $0x1680] sm:$0xff]  ;;  %v12028_v17 = vcombine.low %v1396_v20, %v1400_v44  ;;  %v1412_v54 = vld [vmem:[#allocation5 + $0x16c8] sm:$0xff] }
 0x1f7   : > { %7393 = vmatprep.mubr.bf16.mxu0 %v14451_v61  ;;  %8297 = vmatprep.mubr.bf16.mxu1 %v14451_v61  ;;  %v12035_v41 = vcombine.high %v1403_v55, %v1407_v6  ;;  %v500_v42 = vld [vmem:[%s14005_s25 + $0x648] sm:$0xff]  ;;  %v12036_v20 = vcombine.low %v1404_v10, %v1408_v29  ;;  %v1423_v61 = vld [vmem:[#allocation5 + $0x1720] sm:$0xff] }
 0x1f8   : > { %16382 = vst [vmem:[#allocation49_spill] sm:$0xff] %v14463_v1  ;;  %v516_v27 = vld [vmem:[%s14005_s25 + $0x6c8] sm:$0xff] }
 0x1f9   : > { %7449 = vmatpush1.bf16.msra.mxu0 %v12010_v25  ;;  %8353 = vmatpush1.bf16.msra.mxu1 %v12012_v26  ;;  %v483_v25 = vld [vmem:[%s14005_s25 + $0x5c0] sm:$0xff]  ;;  %v12037_v26 = vcombine.high %v1404_v10, %v1408_v29 }
 0x1fa   : > { %7450 = vmatprep.subr.bf16.mxu0 %v12019_v36  ;;  %8354 = vmatprep.subr.bf16.mxu1 %v12021_v7  ;;  %v1411_v36 = vld [vmem:[#allocation5 + $0x16c0] sm:$0xff]  ;;  %v14471_v39 = vpack.c.bf16 %v483_v25, %v467_v62  ;;  %v1420_v62 = vld [vmem:[#allocation5 + $0x1708] sm:$0xff] }
 0x1fb   : > { %v1415_v7 = vld [vmem:[#allocation5 + $0x16e0] sm:$0xff]  ;;  %v1424_v25 = vld [vmem:[#allocation5 + $0x1728] sm:$0xff] }
 0x1fc   : > { %7394 = vmatmul.mubr.bf16.gmra.mrb[16].mxu0 %v14459_v47  ;;  %8298 = vmatmul.mubr.bf16.gmra.mrb[16].mxu1 %v14459_v47  ;;  %16383 = vst [vmem:[#allocation50_spill] sm:$0xff] %v14471_v39  ;;  %v12034_v47 = vcombine.low %v1403_v55, %v1407_v6  ;;  %v12043_v44 = vcombine.high %v1411_v36, %v1415_v7  ;;  %v499_v55 = vld [vmem:[%s14005_s25 + $0x640] sm:$0xff] }
 0x1fd   : > { %7451 = vmatpush1.bf16.msra.mxu0 %v12018_v53  ;;  %8355 = vmatpush1.bf16.msra.mxu1 %v12020_v12  ;;  %v1416_v53 = vld [vmem:[#allocation5 + $0x16e8] sm:$0xff]  ;;  %v12042_v6 = vcombine.low %v1411_v36, %v1415_v7 }
 0x1fe   : > { %7452 = vmatprep.subr.bf16.mxu0 %v12027_v59  ;;  %8356 = vmatprep.subr.bf16.mxu1 %v12029_v11  ;;  %v12045_v12 = vcombine.high %v1412_v54, %v1416_v53  ;;  %v14475_v59 = vpack.c.bf16 %v516_v27, %v500_v42  ;;  %v1419_v11 = vld [vmem:[#allocation5 + $0x1700] sm:$0xff]  ;;  %v12044_v10 = vcombine.low %v1412_v54, %v1416_v53  ;;  %v1428_v42 = vld [vmem:[#allocation5 + $0x1748] sm:$0xff] }
 0x1ff   : > { %7403 = vmatprep.mubr.bf16.mxu0 %v14463_v1  ;;  %8307 = vmatprep.mubr.bf16.mxu1 %v14463_v1  ;;  %v12051_v29 = vcombine.high %v1419_v11, %v1423_v61  ;;  %v532_v36 = vld [vmem:[%s14005_s25 + $0x748] sm:$0xff]  ;;  %v12052_v54 = vcombine.low %v1420_v62, %v1424_v25  ;;  %v1439_v1 = vld [vmem:[#allocation5 + $0x17a0] sm:$0xff] }
 0x200   : > { %16384 = vst [vmem:[#allocation51_spill] sm:$0xff] %v14475_v59  ;;  %v548_v7 = vld [vmem:[%s14005_s25 + $0x7c8] sm:$0xff] }
 0x201   : > { %7453 = vmatpush1.bf16.msra.mxu0 %v12026_v14  ;;  %8357 = vmatpush1.bf16.msra.mxu1 %v12028_v17  ;;  %v515_v14 = vld [vmem:[%s14005_s25 + $0x6c0] sm:$0xff]  ;;  %v12053_v17 = vcombine.high %v1420_v62, %v1424_v25 }
 0x202   : > { %7454 = vmatprep.subr.bf16.mxu0 %v12035_v41  ;;  %8358 = vmatprep.subr.bf16.mxu1 %v12037_v26  ;;  %v1427_v41 = vld [vmem:[#allocation5 + $0x1740] sm:$0xff]  ;;  %v14483_v27 = vpack.c.bf16 %v515_v14, %v499_v55  ;;  %v1436_v55 = vld [vmem:[#allocation5 + $0x1788] sm:$0xff] }
 0x203   : > { %v1431_v26 = vld [vmem:[#allocation5 + $0x1760] sm:$0xff]  ;;  %v1440_v14 = vld [vmem:[#allocation5 + $0x17a8] sm:$0xff] }
 0x204   : > { %7404 = vmatmul.mubr.bf16.gmra.mrb[20].mxu0 %v14471_v39  ;;  %8308 = vmatmul.mubr.bf16.gmra.mrb[20].mxu1 %v14471_v39  ;;  %16385 = vst [vmem:[#allocation52_spill] sm:$0xff] %v14483_v27  ;;  %v12050_v39 = vcombine.low %v1419_v11, %v1423_v61  ;;  %v12059_v53 = vcombine.high %v1427_v41, %v1431_v26  ;;  %v531_v11 = vld [vmem:[%s14005_s25 + $0x740] sm:$0xff] }
 0x205   : > { %7455 = vmatpush1.bf16.msra.mxu0 %v12034_v47  ;;  %8359 = vmatpush1.bf16.msra.mxu1 %v12036_v20  ;;  %v1432_v47 = vld [vmem:[#allocation5 + $0x1768] sm:$0xff]  ;;  %v12058_v61 = vcombine.low %v1427_v41, %v1431_v26  ;;  %v310_v41 = vld [vmem:[%s14005_s25 + $0x58] sm:$0xff] }
 0x206   : > { %7456 = vmatprep.subr.bf16.mxu0 %v12043_v44  ;;  %8360 = vmatprep.subr.bf16.mxu1 %v12045_v12  ;;  %v12061_v20 = vcombine.high %v1428_v42, %v1432_v47  ;;  %v14487_v44 = vpack.c.bf16 %v548_v7, %v532_v36  ;;  %v1435_v12 = vld [vmem:[#allocation5 + $0x1780] sm:$0xff]  ;;  %v12060_v62 = vcombine.low %v1428_v42, %v1432_v47  ;;  %v1444_v36 = vld [vmem:[#allocation5 + $0x17c8] sm:$0xff]  ;;  %v326_v26 = vld [vmem:[%s14005_s25 + $0xd8] sm:$0xff] }
 0x207   : > { %7413 = vmatprep.mubr.bf16.mxu0 %v14475_v59  ;;  %8317 = vmatprep.mubr.bf16.mxu1 %v14475_v59  ;;  %v12067_v25 = vcombine.high %v1435_v12, %v1439_v1  ;;  %v12068_v42 = vcombine.low %v1436_v55, %v1440_v14  ;;  %v1455_v59 = vld [vmem:[#allocation5 + $0x1820] sm:$0xff] }
 0x208   : > { %16386 = vst [vmem:[#allocation53_spill] sm:$0xff] %v14487_v44 }
 0x209   : > { %7457 = vmatpush1.bf16.msra.mxu0 %v12042_v6  ;;  %8361 = vmatpush1.bf16.msra.mxu1 %v12044_v10  ;;  %v547_v6 = vld [vmem:[%s14005_s25 + $0x7c0] sm:$0xff]  ;;  %v12069_v10 = vcombine.high %v1436_v55, %v1440_v14 }
 0x20a   : > { %7458 = vmatprep.subr.bf16.mxu0 %v12051_v29  ;;  %8362 = vmatprep.subr.bf16.mxu1 %v12053_v17  ;;  %v1443_v29 = vld [vmem:[#allocation5 + $0x17c0] sm:$0xff]  ;;  %v14495_v7 = vpack.c.bf16 %v547_v6, %v531_v11  ;;  %v1452_v11 = vld [vmem:[#allocation5 + $0x1808] sm:$0xff] }
 0x20b   : > { %v1447_v17 = vld [vmem:[#allocation5 + $0x17e0] sm:$0xff]  ;;  %v1456_v6 = vld [vmem:[#allocation5 + $0x1828] sm:$0xff] }
 0x20c   : > { %7414 = vmatmul.mubr.bf16.gmra.mrb[24].mxu0 %v14483_v27  ;;  %8318 = vmatmul.mubr.bf16.gmra.mrb[24].mxu1 %v14483_v27  ;;  %16387 = vst [vmem:[#allocation54_spill] sm:$0xff] %v14495_v7  ;;  %v12066_v27 = vcombine.low %v1435_v12, %v1439_v1  ;;  %v12075_v47 = vcombine.high %v1443_v29, %v1447_v17  ;;  %v309_v12 = vld [vmem:[%s14005_s25 + $0x50] sm:$0xff] }
 0x20d   : > { %7459 = vmatpush1.bf16.msra.mxu0 %v12050_v39  ;;  %8363 = vmatpush1.bf16.msra.mxu1 %v12052_v54  ;;  %v1448_v39 = vld [vmem:[#allocation5 + $0x17e8] sm:$0xff]  ;;  %v12074_v1 = vcombine.low %v1443_v29, %v1447_v17  ;;  %v342_v29 = vld [vmem:[%s14005_s25 + $0x158] sm:$0xff] }
 0x20e   : > { %7460 = vmatprep.subr.bf16.mxu0 %v12059_v53  ;;  %8364 = vmatprep.subr.bf16.mxu1 %v12061_v20  ;;  %v12077_v54 = vcombine.high %v1444_v36, %v1448_v39  ;;  %v14499_v53 = vpack.c.bf16 %v326_v26, %v310_v41  ;;  %v1451_v20 = vld [vmem:[#allocation5 + $0x1800] sm:$0xff]  ;;  %v12076_v55 = vcombine.low %v1444_v36, %v1448_v39  ;;  %v1460_v41 = vld [vmem:[#allocation5 + $0x1848] sm:$0xff]  ;;  %v358_v17 = vld [vmem:[%s14005_s25 + $0x1d8] sm:$0xff] }
 0x20f   : > { %7423 = vmatprep.mubr.bf16.mxu0 %v14487_v44  ;;  %8327 = vmatprep.mubr.bf16.mxu1 %v14487_v44  ;;  %v12083_v14 = vcombine.high %v1451_v20, %v1455_v59  ;;  %v12084_v36 = vcombine.low %v1452_v11, %v1456_v6  ;;  %v1471_v44 = vld [vmem:[#allocation5 + $0x18a0] sm:$0xff] }
 0x210   : > { %16388 = vst [vmem:[#allocation55_spill] sm:$0xff] %v14499_v53 }
 0x211   : > { %7461 = vmatpush1.bf16.msra.mxu0 %v12058_v61  ;;  %8365 = vmatpush1.bf16.msra.mxu1 %v12060_v62  ;;  %v325_v61 = vld [vmem:[%s14005_s25 + $0xd0] sm:$0xff]  ;;  %v12085_v62 = vcombine.high %v1452_v11, %v1456_v6 }
 0x212   : > { %7462 = vmatprep.subr.bf16.mxu0 %v12067_v25  ;;  %8366 = vmatprep.subr.bf16.mxu1 %v12069_v10  ;;  %v1459_v25 = vld [vmem:[#allocation5 + $0x1840] sm:$0xff]  ;;  %v14507_v26 = vpack.c.bf16 %v325_v61, %v309_v12  ;;  %v1468_v12 = vld [vmem:[#allocation5 + $0x1888] sm:$0xff] }
 0x213   : > { %v1463_v10 = vld [vmem:[#allocation5 + $0x1860] sm:$0xff]  ;;  %v1472_v61 = vld [vmem:[#allocation5 + $0x18a8] sm:$0xff] }
 0x214   : > { %7424 = vmatmul.mubr.bf16.gmra.mrb[28].mxu0 %v14495_v7  ;;  %8328 = vmatmul.mubr.bf16.gmra.mrb[28].mxu1 %v14495_v7  ;;  %16389 = vst [vmem:[#allocation56_spill] sm:$0xff] %v14507_v26  ;;  %v12082_v7 = vcombine.low %v1451_v20, %v1455_v59  ;;  %v12091_v39 = vcombine.high %v1459_v25, %v1463_v10  ;;  %v341_v20 = vld [vmem:[%s14005_s25 + $0x150] sm:$0xff] }
 0x215   : > { %7463 = vmatpush1.bf16.msra.mxu0 %v12066_v27  ;;  %8367 = vmatpush1.bf16.msra.mxu1 %v12068_v42  ;;  %v1464_v27 = vld [vmem:[#allocation5 + $0x1868] sm:$0xff]  ;;  %v12090_v59 = vcombine.low %v1459_v25, %v1463_v10  ;;  %v374_v25 = vld [vmem:[%s14005_s25 + $0x258] sm:$0xff] }
 0x216   : > { %7464 = vmatprep.subr.bf16.mxu0 %v12075_v47  ;;  %8368 = vmatprep.subr.bf16.mxu1 %v12077_v54  ;;  %v12093_v42 = vcombine.high %v1460_v41, %v1464_v27  ;;  %v14511_v47 = vpack.c.bf16 %v358_v17, %v342_v29  ;;  %v1467_v54 = vld [vmem:[#allocation5 + $0x1880] sm:$0xff]  ;;  %v12092_v11 = vcombine.low %v1460_v41, %v1464_v27  ;;  %v1476_v29 = vld [vmem:[#allocation5 + $0x18c8] sm:$0xff]  ;;  %v390_v10 = vld [vmem:[%s14005_s25 + $0x2d8] sm:$0xff] }
 0x217   : > { %7466 = vmatprep.mubr.bf16.mxu0 %v14499_v53  ;;  %8370 = vmatprep.mubr.bf16.mxu1 %v14499_v53  ;;  %v12099_v6 = vcombine.high %v1467_v54, %v1471_v44  ;;  %v12100_v41 = vcombine.low %v1468_v12, %v1472_v61  ;;  %v1487_v53 = vld [vmem:[#allocation5 + $0x1920] sm:$0xff] }
 0x218   : > { %16390 = vst [vmem:[#allocation57_spill] sm:$0xff] %v14511_v47 }
 0x219   : > { %7465 = vmatpush1.bf16.msra.mxu0 %v12074_v1  ;;  %8369 = vmatpush1.bf16.msra.mxu1 %v12076_v55  ;;  %v357_v1 = vld [vmem:[%s14005_s25 + $0x1d0] sm:$0xff]  ;;  %v12101_v55 = vcombine.high %v1468_v12, %v1472_v61 }
 0x21a   : > { %7547 = vmatprep.subr.bf16.mxu0 %v12083_v14  ;;  %8451 = vmatprep.subr.bf16.mxu1 %v12085_v62  ;;  %v1475_v14 = vld [vmem:[#allocation5 + $0x18c0] sm:$0xff]  ;;  %v14519_v17 = vpack.c.bf16 %v357_v1, %v341_v20  ;;  %v1484_v20 = vld [vmem:[#allocation5 + $0x1908] sm:$0xff] }
 0x21b   : > { %v1479_v62 = vld [vmem:[#allocation5 + $0x18e0] sm:$0xff]  ;;  %v1488_v1 = vld [vmem:[#allocation5 + $0x1928] sm:$0xff] }
 0x21c   : > { %7467 = vmatmul.mubr.bf16.vlgmr.msra.gmra.mrb[0].mxu0 %v14507_v26  ;;  %8371 = vmatmul.mubr.bf16.vlgmr.msra.gmra.mrb[0].mxu1 %v14507_v26  ;;  %16391 = vst [vmem:[#allocation58_spill] sm:$0xff] %v14519_v17  ;;  %v12098_v26 = vcombine.low %v1467_v54, %v1471_v44  ;;  %v12107_v27 = vcombine.high %v1475_v14, %v1479_v62  ;;  %v373_v54 = vld [vmem:[%s14005_s25 + $0x250] sm:$0xff] }
 0x21d   : > { %7548 = vmatpush1.bf16.msra.mxu0 %v12082_v7  ;;  %8452 = vmatpush1.bf16.msra.mxu1 %v12084_v36  ;;  %v1480_v7 = vld [vmem:[#allocation5 + $0x18e8] sm:$0xff]  ;;  %v12106_v44 = vcombine.low %v1475_v14, %v1479_v62  ;;  %v406_v14 = vld [vmem:[%s14005_s25 + $0x358] sm:$0xff] }
 0x21e   : > { %7549 = vmatprep.subr.bf16.mxu0 %v12091_v39  ;;  %8453 = vmatprep.subr.bf16.mxu1 %v12093_v42  ;;  %v12109_v36 = vcombine.high %v1476_v29, %v1480_v7  ;;  %v14523_v39 = vpack.c.bf16 %v390_v10, %v374_v25  ;;  %v1483_v42 = vld [vmem:[#allocation5 + $0x1900] sm:$0xff]  ;;  %v12108_v12 = vcombine.low %v1476_v29, %v1480_v7  ;;  %v1492_v25 = vld [vmem:[#allocation5 + $0x1948] sm:$0xff]  ;;  %v422_v62 = vld [vmem:[%s14005_s25 + $0x3d8] sm:$0xff] }
 0x21f   : > { %7476 = vmatprep.mubr.bf16.mxu0 %v14511_v47  ;;  %8380 = vmatprep.mubr.bf16.mxu1 %v14511_v47  ;;  %v12115_v61 = vcombine.high %v1483_v42, %v1487_v53  ;;  %v12116_v29 = vcombine.low %v1484_v20, %v1488_v1  ;;  %v1503_v47 = vld [vmem:[#allocation5 + $0x19a0] sm:$0xff] }
 0x220   : > { %16392 = vst [vmem:[#allocation59_spill] sm:$0xff] %v14523_v39 }
 0x221   : > { %7550 = vmatpush1.bf16.msra.mxu0 %v12090_v59  ;;  %8454 = vmatpush1.bf16.msra.mxu1 %v12092_v11  ;;  %v389_v59 = vld [vmem:[%s14005_s25 + $0x2d0] sm:$0xff]  ;;  %v12117_v11 = vcombine.high %v1484_v20, %v1488_v1 }
 0x222   : > { %7551 = vmatprep.subr.bf16.mxu0 %v12099_v6  ;;  %8455 = vmatprep.subr.bf16.mxu1 %v12101_v55  ;;  %v1491_v6 = vld [vmem:[#allocation5 + $0x1940] sm:$0xff]  ;;  %v14531_v10 = vpack.c.bf16 %v389_v59, %v373_v54  ;;  %v1500_v54 = vld [vmem:[#allocation5 + $0x1988] sm:$0xff] }
 0x223   : > { %v1495_v55 = vld [vmem:[#allocation5 + $0x1960] sm:$0xff]  ;;  %v1504_v59 = vld [vmem:[#allocation5 + $0x19a8] sm:$0xff] }
 0x224   : > { %7477 = vmatmul.mubr.bf16.gmra.mrb[4].mxu0 %v14519_v17  ;;  %8381 = vmatmul.mubr.bf16.gmra.mrb[4].mxu1 %v14519_v17  ;;  %16393 = vst [vmem:[#allocation60_spill] sm:$0xff] %v14531_v10  ;;  %v12114_v17 = vcombine.low %v1483_v42, %v1487_v53  ;;  %v12123_v7 = vcombine.high %v1491_v6, %v1495_v55  ;;  %v405_v42 = vld [vmem:[%s14005_s25 + $0x350] sm:$0xff] }
 0x225   : > { %7552 = vmatpush1.bf16.msra.mxu0 %v12098_v26  ;;  %8456 = vmatpush1.bf16.msra.mxu1 %v12100_v41  ;;  %v1496_v26 = vld [vmem:[#allocation5 + $0x1968] sm:$0xff]  ;;  %v12122_v53 = vcombine.low %v1491_v6, %v1495_v55  ;;  %v438_v6 = vld [vmem:[%s14005_s25 + $0x458] sm:$0xff] }
 0x226   : > { %7553 = vmatprep.subr.bf16.mxu0 %v12107_v27  ;;  %8457 = vmatprep.subr.bf16.mxu1 %v12109_v36  ;;  %v12125_v41 = vcombine.high %v1492_v25, %v1496_v26  ;;  %v14535_v27 = vpack.c.bf16 %v422_v62, %v406_v14  ;;  %v1499_v36 = vld [vmem:[#allocation5 + $0x1980] sm:$0xff]  ;;  %v12124_v20 = vcombine.low %v1492_v25, %v1496_v26  ;;  %v1508_v14 = vld [vmem:[#allocation5 + $0x19c8] sm:$0xff]  ;;  %v454_v55 = vld [vmem:[%s14005_s25 + $0x4d8] sm:$0xff] }
 0x227   : > { %7486 = vmatprep.mubr.bf16.mxu0 %v14523_v39  ;;  %8390 = vmatprep.mubr.bf16.mxu1 %v14523_v39  ;;  %v12131_v1 = vcombine.high %v1499_v36, %v1503_v47  ;;  %v12132_v25 = vcombine.low %v1500_v54, %v1504_v59  ;;  %v1519_v39 = vld [vmem:[#allocation5 + $0x1a20] sm:$0xff] }
 0x228   : > { %16394 = vst [vmem:[#allocation61_spill] sm:$0xff] %v14535_v27 }
 0x229   : > { %7554 = vmatpush1.bf16.msra.mxu0 %v12106_v44  ;;  %8458 = vmatpush1.bf16.msra.mxu1 %v12108_v12  ;;  %v421_v44 = vld [vmem:[%s14005_s25 + $0x3d0] sm:$0xff]  ;;  %v12133_v12 = vcombine.high %v1500_v54, %v1504_v59 }
 0x22a   : > { %7555 = vmatprep.subr.bf16.mxu0 %v12115_v61  ;;  %8459 = vmatprep.subr.bf16.mxu1 %v12117_v11  ;;  %v1507_v61 = vld [vmem:[#allocation5 + $0x19c0] sm:$0xff]  ;;  %v14543_v62 = vpack.c.bf16 %v421_v44, %v405_v42  ;;  %v1516_v42 = vld [vmem:[#allocation5 + $0x1a08] sm:$0xff] }
 0x22b   : > { %v1511_v11 = vld [vmem:[#allocation5 + $0x19e0] sm:$0xff]  ;;  %v1520_v44 = vld [vmem:[#allocation5 + $0x1a28] sm:$0xff] }
 0x22c   : > { %7487 = vmatmul.mubr.bf16.gmra.mrb[8].mxu0 %v14531_v10  ;;  %8391 = vmatmul.mubr.bf16.gmra.mrb[8].mxu1 %v14531_v10  ;;  %16395 = vst [vmem:[#allocation62_spill] sm:$0xff] %v14543_v62  ;;  %v12130_v10 = vcombine.low %v1499_v36, %v1503_v47  ;;  %v12139_v26 = vcombine.high %v1507_v61, %v1511_v11  ;;  %v437_v36 = vld [vmem:[%s14005_s25 + $0x450] sm:$0xff] }
 0x22d   : > { %7556 = vmatpush1.bf16.msra.mxu0 %v12114_v17  ;;  %8460 = vmatpush1.bf16.msra.mxu1 %v12116_v29  ;;  %v1512_v17 = vld [vmem:[#allocation5 + $0x19e8] sm:$0xff]  ;;  %v12138_v47 = vcombine.low %v1507_v61, %v1511_v11  ;;  %v470_v61 = vld [vmem:[%s14005_s25 + $0x558] sm:$0xff] }
 0x22e   : > { %7557 = vmatprep.subr.bf16.mxu0 %v12123_v7  ;;  %8461 = vmatprep.subr.bf16.mxu1 %v12125_v41  ;;  %v12141_v29 = vcombine.high %v1508_v14, %v1512_v17  ;;  %v14547_v7 = vpack.c.bf16 %v454_v55, %v438_v6  ;;  %v1515_v41 = vld [vmem:[#allocation5 + $0x1a00] sm:$0xff]  ;;  %v12140_v54 = vcombine.low %v1508_v14, %v1512_v17  ;;  %v1524_v6 = vld [vmem:[#allocation5 + $0x1a48] sm:$0xff]  ;;  %v486_v11 = vld [vmem:[%s14005_s25 + $0x5d8] sm:$0xff] }
 0x22f   : > { %7496 = vmatprep.mubr.bf16.mxu0 %v14535_v27  ;;  %8400 = vmatprep.mubr.bf16.mxu1 %v14535_v27  ;;  %v12147_v59 = vcombine.high %v1515_v41, %v1519_v39  ;;  %v12148_v14 = vcombine.low %v1516_v42, %v1520_v44  ;;  %v1535_v27 = vld [vmem:[#allocation5 + $0x1aa0] sm:$0xff] }
 0x230   : > { %16396 = vst [vmem:[#allocation63_spill] sm:$0xff] %v14547_v7 }
 0x231   : > { %7558 = vmatpush1.bf16.msra.mxu0 %v12122_v53  ;;  %8462 = vmatpush1.bf16.msra.mxu1 %v12124_v20  ;;  %v453_v53 = vld [vmem:[%s14005_s25 + $0x4d0] sm:$0xff]  ;;  %v12149_v20 = vcombine.high %v1516_v42, %v1520_v44 }
 0x232   : > { %7559 = vmatprep.subr.bf16.mxu0 %v12131_v1  ;;  %8463 = vmatprep.subr.bf16.mxu1 %v12133_v12  ;;  %v1523_v1 = vld [vmem:[#allocation5 + $0x1a40] sm:$0xff]  ;;  %v14555_v55 = vpack.c.bf16 %v453_v53, %v437_v36  ;;  %v1532_v36 = vld [vmem:[#allocation5 + $0x1a88] sm:$0xff] }
 0x233   : > { %v1527_v12 = vld [vmem:[#allocation5 + $0x1a60] sm:$0xff]  ;;  %v1536_v53 = vld [vmem:[#allocation5 + $0x1aa8] sm:$0xff] }
 0x234   : > { %7497 = vmatmul.mubr.bf16.gmra.mrb[12].mxu0 %v14543_v62  ;;  %8401 = vmatmul.mubr.bf16.gmra.mrb[12].mxu1 %v14543_v62  ;;  %16397 = vst [vmem:[#allocation64_spill] sm:$0xff] %v14555_v55  ;;  %v12146_v62 = vcombine.low %v1515_v41, %v1519_v39  ;;  %v12155_v17 = vcombine.high %v1523_v1, %v1527_v12  ;;  %v469_v41 = vld [vmem:[%s14005_s25 + $0x550] sm:$0xff] }
 0x235   : > { %7560 = vmatpush1.bf16.msra.mxu0 %v12130_v10  ;;  %8464 = vmatpush1.bf16.msra.mxu1 %v12132_v25  ;;  %v1528_v10 = vld [vmem:[#allocation5 + $0x1a68] sm:$0xff]  ;;  %v12154_v39 = vcombine.low %v1523_v1, %v1527_v12  ;;  %v502_v1 = vld [vmem:[%s14005_s25 + $0x658] sm:$0xff] }
 0x236   : > { %7561 = vmatprep.subr.bf16.mxu0 %v12139_v26  ;;  %8465 = vmatprep.subr.bf16.mxu1 %v12141_v29  ;;  %v12157_v25 = vcombine.high %v1524_v6, %v1528_v10  ;;  %v14559_v26 = vpack.c.bf16 %v486_v11, %v470_v61  ;;  %v1531_v29 = vld [vmem:[#allocation5 + $0x1a80] sm:$0xff]  ;;  %v12156_v42 = vcombine.low %v1524_v6, %v1528_v10  ;;  %v1540_v61 = vld [vmem:[#allocation5 + $0x1ac8] sm:$0xff]  ;;  %v518_v12 = vld [vmem:[%s14005_s25 + $0x6d8] sm:$0xff] }
 0x237   : > { %7506 = vmatprep.mubr.bf16.mxu0 %v14547_v7  ;;  %8410 = vmatprep.mubr.bf16.mxu1 %v14547_v7  ;;  %v12163_v44 = vcombine.high %v1531_v29, %v1535_v27  ;;  %v12164_v6 = vcombine.low %v1532_v36, %v1536_v53  ;;  %v1551_v7 = vld [vmem:[#allocation5 + $0x1b20] sm:$0xff] }
 0x238   : > { %16398 = vst [vmem:[#allocation65_spill] sm:$0xff] %v14559_v26 }
 0x239   : > { %7562 = vmatpush1.bf16.msra.mxu0 %v12138_v47  ;;  %8466 = vmatpush1.bf16.msra.mxu1 %v12140_v54  ;;  %v485_v47 = vld [vmem:[%s14005_s25 + $0x5d0] sm:$0xff]  ;;  %v12165_v54 = vcombine.high %v1532_v36, %v1536_v53 }
 0x23a   : > { %7563 = vmatprep.subr.bf16.mxu0 %v12147_v59  ;;  %8467 = vmatprep.subr.bf16.mxu1 %v12149_v20  ;;  %v1539_v59 = vld [vmem:[#allocation5 + $0x1ac0] sm:$0xff]  ;;  %v14567_v11 = vpack.c.bf16 %v485_v47, %v469_v41  ;;  %v1548_v41 = vld [vmem:[#allocation5 + $0x1b08] sm:$0xff] }
 0x23b   : > { %v1543_v20 = vld [vmem:[#allocation5 + $0x1ae0] sm:$0xff]  ;;  %v1552_v47 = vld [vmem:[#allocation5 + $0x1b28] sm:$0xff] }
 0x23c   : > { %7507 = vmatmul.mubr.bf16.gmra.mrb[16].mxu0 %v14555_v55  ;;  %8411 = vmatmul.mubr.bf16.gmra.mrb[16].mxu1 %v14555_v55  ;;  %16399 = vst [vmem:[#allocation66_spill] sm:$0xff] %v14567_v11  ;;  %v12162_v55 = vcombine.low %v1531_v29, %v1535_v27  ;;  %v12171_v10 = vcombine.high %v1539_v59, %v1543_v20  ;;  %v501_v29 = vld [vmem:[%s14005_s25 + $0x650] sm:$0xff] }
 0x23d   : > { %7564 = vmatpush1.bf16.msra.mxu0 %v12146_v62  ;;  %8468 = vmatpush1.bf16.msra.mxu1 %v12148_v14  ;;  %v1544_v62 = vld [vmem:[#allocation5 + $0x1ae8] sm:$0xff]  ;;  %v12170_v27 = vcombine.low %v1539_v59, %v1543_v20  ;;  %v534_v59 = vld [vmem:[%s14005_s25 + $0x758] sm:$0xff] }
 0x23e   : > { %7565 = vmatprep.subr.bf16.mxu0 %v12155_v17  ;;  %8469 = vmatprep.subr.bf16.mxu1 %v12157_v25  ;;  %v12173_v14 = vcombine.high %v1540_v61, %v1544_v62  ;;  %v14571_v17 = vpack.c.bf16 %v518_v12, %v502_v1  ;;  %v1547_v25 = vld [vmem:[#allocation5 + $0x1b00] sm:$0xff]  ;;  %v12172_v36 = vcombine.low %v1540_v61, %v1544_v62  ;;  %v1556_v1 = vld [vmem:[#allocation5 + $0x1b48] sm:$0xff]  ;;  %v550_v20 = vld [vmem:[%s14005_s25 + $0x7d8] sm:$0xff] }
 0x23f   : > { %7516 = vmatprep.mubr.bf16.mxu0 %v14559_v26  ;;  %8420 = vmatprep.mubr.bf16.mxu1 %v14559_v26  ;;  %v12179_v53 = vcombine.high %v1547_v25, %v1551_v7  ;;  %v12180_v61 = vcombine.low %v1548_v41, %v1552_v47  ;;  %v1567_v26 = vld [vmem:[#allocation5 + $0x1ba0] sm:$0xff] }
 0x240   : > { %16400 = vst [vmem:[#allocation67_spill] sm:$0xff] %v14571_v17 }
 0x241   : > { %7566 = vmatpush1.bf16.msra.mxu0 %v12154_v39  ;;  %8470 = vmatpush1.bf16.msra.mxu1 %v12156_v42  ;;  %v517_v39 = vld [vmem:[%s14005_s25 + $0x6d0] sm:$0xff]  ;;  %v12181_v42 = vcombine.high %v1548_v41, %v1552_v47 }
 0x242   : > { %7567 = vmatprep.subr.bf16.mxu0 %v12163_v44  ;;  %8471 = vmatprep.subr.bf16.mxu1 %v12165_v54  ;;  %v1555_v44 = vld [vmem:[#allocation5 + $0x1b40] sm:$0xff]  ;;  %v14579_v12 = vpack.c.bf16 %v517_v39, %v501_v29  ;;  %v1564_v29 = vld [vmem:[#allocation5 + $0x1b88] sm:$0xff] }
 0x243   : > { %v1559_v54 = vld [vmem:[#allocation5 + $0x1b60] sm:$0xff]  ;;  %v1568_v39 = vld [vmem:[#allocation5 + $0x1ba8] sm:$0xff] }
 0x244   : > { %7517 = vmatmul.mubr.bf16.gmra.mrb[20].mxu0 %v14567_v11  ;;  %8421 = vmatmul.mubr.bf16.gmra.mrb[20].mxu1 %v14567_v11  ;;  %16401 = vst [vmem:[#allocation68_spill] sm:$0xff] %v14579_v12  ;;  %v12178_v11 = vcombine.low %v1547_v25, %v1551_v7  ;;  %v12187_v62 = vcombine.high %v1555_v44, %v1559_v54  ;;  %v533_v25 = vld [vmem:[%s14005_s25 + $0x750] sm:$0xff] }
 0x245   : > { %7568 = vmatpush1.bf16.msra.mxu0 %v12162_v55  ;;  %8472 = vmatpush1.bf16.msra.mxu1 %v12164_v6  ;;  %v1560_v55 = vld [vmem:[#allocation5 + $0x1b68] sm:$0xff]  ;;  %v12186_v7 = vcombine.low %v1555_v44, %v1559_v54 }
 0x246   : > { %7569 = vmatprep.subr.bf16.mxu0 %v12171_v10  ;;  %8473 = vmatprep.subr.bf16.mxu1 %v12173_v14  ;;  %v12189_v6 = vcombine.high %v1556_v1, %v1560_v55  ;;  %v14583_v10 = vpack.c.bf16 %v550_v20, %v534_v59  ;;  %v1563_v14 = vld [vmem:[#allocation5 + $0x1b80] sm:$0xff]  ;;  %v12188_v41 = vcombine.low %v1556_v1, %v1560_v55  ;;  %v1572_v59 = vld [vmem:[#allocation5 + $0x1bc8] sm:$0xff] }
 0x247   : > { %7526 = vmatprep.mubr.bf16.mxu0 %v14571_v17  ;;  %8430 = vmatprep.mubr.bf16.mxu1 %v14571_v17  ;;  %v12195_v47 = vcombine.high %v1563_v14, %v1567_v26  ;;  %v312_v44 = vld [vmem:[%s14005_s25 + $0x68] sm:$0xff]  ;;  %v12196_v1 = vcombine.low %v1564_v29, %v1568_v39  ;;  %v1583_v17 = vld [vmem:[#allocation5 + $0x1c20] sm:$0xff] }
 0x248   : > { %16402 = vst [vmem:[#allocation69_spill] sm:$0xff] %v14583_v10  ;;  %v328_v54 = vld [vmem:[%s14005_s25 + $0xe8] sm:$0xff] }
 0x249   : > { %7570 = vmatpush1.bf16.msra.mxu0 %v12170_v27  ;;  %8474 = vmatpush1.bf16.msra.mxu1 %v12172_v36  ;;  %v549_v27 = vld [vmem:[%s14005_s25 + $0x7d0] sm:$0xff]  ;;  %v12197_v36 = vcombine.high %v1564_v29, %v1568_v39 }
 0x24a   : > { %7571 = vmatprep.subr.bf16.mxu0 %v12179_v53  ;;  %8475 = vmatprep.subr.bf16.mxu1 %v12181_v42  ;;  %v1571_v53 = vld [vmem:[#allocation5 + $0x1bc0] sm:$0xff]  ;;  %v14591_v20 = vpack.c.bf16 %v549_v27, %v533_v25  ;;  %v1580_v25 = vld [vmem:[#allocation5 + $0x1c08] sm:$0xff] }
 0x24b   : > { %v1575_v42 = vld [vmem:[#allocation5 + $0x1be0] sm:$0xff]  ;;  %v1584_v27 = vld [vmem:[#allocation5 + $0x1c28] sm:$0xff] }
 0x24c   : > { %7527 = vmatmul.mubr.bf16.gmra.mrb[24].mxu0 %v14579_v12  ;;  %8431 = vmatmul.mubr.bf16.gmra.mrb[24].mxu1 %v14579_v12  ;;  %16403 = vst [vmem:[#allocation70_spill] sm:$0xff] %v14591_v20  ;;  %v12194_v12 = vcombine.low %v1563_v14, %v1567_v26  ;;  %v12203_v55 = vcombine.high %v1571_v53, %v1575_v42  ;;  %v311_v14 = vld [vmem:[%s14005_s25 + $0x60] sm:$0xff] }
 0x24d   : > { %7572 = vmatpush1.bf16.msra.mxu0 %v12178_v11  ;;  %8476 = vmatpush1.bf16.msra.mxu1 %v12180_v61  ;;  %v1576_v11 = vld [vmem:[#allocation5 + $0x1be8] sm:$0xff]  ;;  %v12202_v26 = vcombine.low %v1571_v53, %v1575_v42 }
 0x24e   : > { %7573 = vmatprep.subr.bf16.mxu0 %v12187_v62  ;;  %8477 = vmatprep.subr.bf16.mxu1 %v12189_v6  ;;  %v12205_v61 = vcombine.high %v1572_v59, %v1576_v11  ;;  %v14595_v62 = vpack.c.bf16 %v328_v54, %v312_v44  ;;  %v1579_v6 = vld [vmem:[#allocation5 + $0x1c00] sm:$0xff]  ;;  %v12204_v29 = vcombine.low %v1572_v59, %v1576_v11  ;;  %v1588_v44 = vld [vmem:[#allocation5 + $0x1c48] sm:$0xff] }
 0x24f   : > { %7536 = vmatprep.mubr.bf16.mxu0 %v14583_v10  ;;  %8440 = vmatprep.mubr.bf16.mxu1 %v14583_v10  ;;  %v12211_v39 = vcombine.high %v1579_v6, %v1583_v17  ;;  %v344_v53 = vld [vmem:[%s14005_s25 + $0x168] sm:$0xff]  ;;  %v12212_v59 = vcombine.low %v1580_v25, %v1584_v27  ;;  %v1599_v10 = vld [vmem:[#allocation5 + $0x1ca0] sm:$0xff] }
 0x250   : > { %16404 = vst [vmem:[#allocation71_spill] sm:$0xff] %v14595_v62  ;;  %v360_v42 = vld [vmem:[%s14005_s25 + $0x1e8] sm:$0xff] }
 0x251   : > { %7574 = vmatpush1.bf16.msra.mxu0 %v12186_v7  ;;  %8478 = vmatpush1.bf16.msra.mxu1 %v12188_v41  ;;  %v327_v7 = vld [vmem:[%s14005_s25 + $0xe0] sm:$0xff]  ;;  %v12213_v41 = vcombine.high %v1580_v25, %v1584_v27 }
 0x252   : > { %7575 = vmatprep.subr.bf16.mxu0 %v12195_v47  ;;  %8479 = vmatprep.subr.bf16.mxu1 %v12197_v36  ;;  %v1587_v47 = vld [vmem:[#allocation5 + $0x1c40] sm:$0xff]  ;;  %v14603_v54 = vpack.c.bf16 %v327_v7, %v311_v14  ;;  %v1596_v14 = vld [vmem:[#allocation5 + $0x1c88] sm:$0xff] }
 0x253   : > { %v1591_v36 = vld [vmem:[#allocation5 + $0x1c60] sm:$0xff]  ;;  %v1600_v7 = vld [vmem:[#allocation5 + $0x1ca8] sm:$0xff] }
 0x254   : > { %7537 = vmatmul.mubr.bf16.gmra.mrb[28].mxu0 %v14591_v20  ;;  %8441 = vmatmul.mubr.bf16.gmra.mrb[28].mxu1 %v14591_v20  ;;  %16405 = vst [vmem:[#allocation72_spill] sm:$0xff] %v14603_v54  ;;  %v12210_v20 = vcombine.low %v1579_v6, %v1583_v17  ;;  %v12219_v11 = vcombine.high %v1587_v47, %v1591_v36  ;;  %v343_v6 = vld [vmem:[%s14005_s25 + $0x160] sm:$0xff] }
 0x255   : > { %7576 = vmatpush1.bf16.msra.mxu0 %v12194_v12  ;;  %8480 = vmatpush1.bf16.msra.mxu1 %v12196_v1  ;;  %v1592_v12 = vld [vmem:[#allocation5 + $0x1c68] sm:$0xff]  ;;  %v12218_v17 = vcombine.low %v1587_v47, %v1591_v36 }
 0x256   : > { %7577 = vmatprep.subr.bf16.mxu0 %v12203_v55  ;;  %8481 = vmatprep.subr.bf16.mxu1 %v12205_v61  ;;  %v12221_v1 = vcombine.high %v1588_v44, %v1592_v12  ;;  %v14607_v55 = vpack.c.bf16 %v360_v42, %v344_v53  ;;  %v1595_v61 = vld [vmem:[#allocation5 + $0x1c80] sm:$0xff]  ;;  %v12220_v25 = vcombine.low %v1588_v44, %v1592_v12  ;;  %v1604_v53 = vld [vmem:[#allocation5 + $0x1cc8] sm:$0xff] }
 0x257   : > { %7579 = vmatprep.mubr.bf16.mxu0 %v14595_v62  ;;  %8483 = vmatprep.mubr.bf16.mxu1 %v14595_v62  ;;  %v12227_v27 = vcombine.high %v1595_v61, %v1599_v10  ;;  %v376_v47 = vld [vmem:[%s14005_s25 + $0x268] sm:$0xff]  ;;  %v12228_v44 = vcombine.low %v1596_v14, %v1600_v7  ;;  %v1615_v62 = vld [vmem:[#allocation5 + $0x1d20] sm:$0xff] }
 0x258   : > { %16406 = vst [vmem:[#allocation73_spill] sm:$0xff] %v14607_v55  ;;  %v392_v36 = vld [vmem:[%s14005_s25 + $0x2e8] sm:$0xff] }
 0x259   : > { %7578 = vmatpush1.bf16.msra.mxu0 %v12202_v26  ;;  %8482 = vmatpush1.bf16.msra.mxu1 %v12204_v29  ;;  %v359_v26 = vld [vmem:[%s14005_s25 + $0x1e0] sm:$0xff]  ;;  %v12229_v29 = vcombine.high %v1596_v14, %v1600_v7 }
 0x25a   : > { %7660 = vmatprep.subr.bf16.mxu0 %v12211_v39  ;;  %8564 = vmatprep.subr.bf16.mxu1 %v12213_v41  ;;  %v1603_v39 = vld [vmem:[#allocation5 + $0x1cc0] sm:$0xff]  ;;  %v14615_v42 = vpack.c.bf16 %v359_v26, %v343_v6  ;;  %v1612_v6 = vld [vmem:[#allocation5 + $0x1d08] sm:$0xff] }
 0x25b   : > { %v1607_v41 = vld [vmem:[#allocation5 + $0x1ce0] sm:$0xff]  ;;  %v1616_v26 = vld [vmem:[#allocation5 + $0x1d28] sm:$0xff] }
 0x25c   : > { %7580 = vmatmul.mubr.bf16.vlgmr.msra.gmra.mrb[0].mxu0 %v14603_v54  ;;  %8484 = vmatmul.mubr.bf16.vlgmr.msra.gmra.mrb[0].mxu1 %v14603_v54  ;;  %16407 = vst [vmem:[#allocation74_spill] sm:$0xff] %v14615_v42  ;;  %v12226_v54 = vcombine.low %v1595_v61, %v1599_v10  ;;  %v12235_v12 = vcombine.high %v1603_v39, %v1607_v41  ;;  %v375_v61 = vld [vmem:[%s14005_s25 + $0x260] sm:$0xff] }
 0x25d   : > { %7661 = vmatpush1.bf16.msra.mxu0 %v12210_v20  ;;  %8565 = vmatpush1.bf16.msra.mxu1 %v12212_v59  ;;  %v1608_v20 = vld [vmem:[#allocation5 + $0x1ce8] sm:$0xff]  ;;  %v12234_v10 = vcombine.low %v1603_v39, %v1607_v41 }
 0x25e   : > { %7662 = vmatprep.subr.bf16.mxu0 %v12219_v11  ;;  %8566 = vmatprep.subr.bf16.mxu1 %v12221_v1  ;;  %v12237_v59 = vcombine.high %v1604_v53, %v1608_v20  ;;  %v14619_v11 = vpack.c.bf16 %v392_v36, %v376_v47  ;;  %v1611_v1 = vld [vmem:[#allocation5 + $0x1d00] sm:$0xff]  ;;  %v12236_v14 = vcombine.low %v1604_v53, %v1608_v20  ;;  %v1620_v47 = vld [vmem:[#allocation5 + $0x1d48] sm:$0xff] }
 0x25f   : > { %7589 = vmatprep.mubr.bf16.mxu0 %v14607_v55  ;;  %8493 = vmatprep.mubr.bf16.mxu1 %v14607_v55  ;;  %v12243_v7 = vcombine.high %v1611_v1, %v1615_v62  ;;  %v408_v39 = vld [vmem:[%s14005_s25 + $0x368] sm:$0xff]  ;;  %v12244_v53 = vcombine.low %v1612_v6, %v1616_v26  ;;  %v1631_v55 = vld [vmem:[#allocation5 + $0x1da0] sm:$0xff] }
 0x260   : > { %16408 = vst [vmem:[#allocation75_spill] sm:$0xff] %v14619_v11  ;;  %v424_v41 = vld [vmem:[%s14005_s25 + $0x3e8] sm:$0xff] }
 0x261   : > { %7663 = vmatpush1.bf16.msra.mxu0 %v12218_v17  ;;  %8567 = vmatpush1.bf16.msra.mxu1 %v12220_v25  ;;  %v391_v17 = vld [vmem:[%s14005_s25 + $0x2e0] sm:$0xff]  ;;  %v12245_v25 = vcombine.high %v1612_v6, %v1616_v26 }
 0x262   : > { %7664 = vmatprep.subr.bf16.mxu0 %v12227_v27  ;;  %8568 = vmatprep.subr.bf16.mxu1 %v12229_v29  ;;  %v1619_v27 = vld [vmem:[#allocation5 + $0x1d40] sm:$0xff]  ;;  %v14627_v36 = vpack.c.bf16 %v391_v17, %v375_v61  ;;  %v1628_v61 = vld [vmem:[#allocation5 + $0x1d88] sm:$0xff] }
 0x263   : > { %v1623_v29 = vld [vmem:[#allocation5 + $0x1d60] sm:$0xff]  ;;  %v1632_v17 = vld [vmem:[#allocation5 + $0x1da8] sm:$0xff] }
 0x264   : > { %7590 = vmatmul.mubr.bf16.gmra.mrb[4].mxu0 %v14615_v42  ;;  %8494 = vmatmul.mubr.bf16.gmra.mrb[4].mxu1 %v14615_v42  ;;  %16409 = vst [vmem:[#allocation76_spill] sm:$0xff] %v14627_v36  ;;  %v12242_v42 = vcombine.low %v1611_v1, %v1615_v62  ;;  %v12251_v20 = vcombine.high %v1619_v27, %v1623_v29  ;;  %v407_v1 = vld [vmem:[%s14005_s25 + $0x360] sm:$0xff] }
 0x265   : > { %7665 = vmatpush1.bf16.msra.mxu0 %v12226_v54  ;;  %8569 = vmatpush1.bf16.msra.mxu1 %v12228_v44  ;;  %v1624_v54 = vld [vmem:[#allocation5 + $0x1d68] sm:$0xff]  ;;  %v12250_v62 = vcombine.low %v1619_v27, %v1623_v29 }
 0x266   : > { %7666 = vmatprep.subr.bf16.mxu0 %v12235_v12  ;;  %8570 = vmatprep.subr.bf16.mxu1 %v12237_v59  ;;  %v12253_v44 = vcombine.high %v1620_v47, %v1624_v54  ;;  %v14631_v12 = vpack.c.bf16 %v424_v41, %v408_v39  ;;  %v1627_v59 = vld [vmem:[#allocation5 + $0x1d80] sm:$0xff]  ;;  %v12252_v6 = vcombine.low %v1620_v47, %v1624_v54  ;;  %v1636_v39 = vld [vmem:[#allocation5 + $0x1dc8] sm:$0xff] }
 0x267   : > { %7599 = vmatprep.mubr.bf16.mxu0 %v14619_v11  ;;  %8503 = vmatprep.mubr.bf16.mxu1 %v14619_v11  ;;  %v12259_v26 = vcombine.high %v1627_v59, %v1631_v55  ;;  %v440_v27 = vld [vmem:[%s14005_s25 + $0x468] sm:$0xff]  ;;  %v12260_v47 = vcombine.low %v1628_v61, %v1632_v17  ;;  %v1647_v11 = vld [vmem:[#allocation5 + $0x1e20] sm:$0xff] }
 0x268   : > { %16410 = vst [vmem:[#allocation77_spill] sm:$0xff] %v14631_v12  ;;  %v456_v29 = vld [vmem:[%s14005_s25 + $0x4e8] sm:$0xff] }
 0x269   : > { %7667 = vmatpush1.bf16.msra.mxu0 %v12234_v10  ;;  %8571 = vmatpush1.bf16.msra.mxu1 %v12236_v14  ;;  %v423_v10 = vld [vmem:[%s14005_s25 + $0x3e0] sm:$0xff]  ;;  %v12261_v14 = vcombine.high %v1628_v61, %v1632_v17 }
 0x26a   : > { %7668 = vmatprep.subr.bf16.mxu0 %v12243_v7  ;;  %8572 = vmatprep.subr.bf16.mxu1 %v12245_v25  ;;  %v1635_v7 = vld [vmem:[#allocation5 + $0x1dc0] sm:$0xff]  ;;  %v14639_v41 = vpack.c.bf16 %v423_v10, %v407_v1  ;;  %v1644_v1 = vld [vmem:[#allocation5 + $0x1e08] sm:$0xff] }
 0x26b   : > { %v1639_v25 = vld [vmem:[#allocation5 + $0x1de0] sm:$0xff]  ;;  %v1648_v10 = vld [vmem:[#allocation5 + $0x1e28] sm:$0xff] }
 0x26c   : > { %7600 = vmatmul.mubr.bf16.gmra.mrb[8].mxu0 %v14627_v36  ;;  %8504 = vmatmul.mubr.bf16.gmra.mrb[8].mxu1 %v14627_v36  ;;  %16411 = vst [vmem:[#allocation78_spill] sm:$0xff] %v14639_v41  ;;  %v12258_v36 = vcombine.low %v1627_v59, %v1631_v55  ;;  %v12267_v54 = vcombine.high %v1635_v7, %v1639_v25  ;;  %v439_v59 = vld [vmem:[%s14005_s25 + $0x460] sm:$0xff] }
 0x26d   : > { %7669 = vmatpush1.bf16.msra.mxu0 %v12242_v42  ;;  %8573 = vmatpush1.bf16.msra.mxu1 %v12244_v53  ;;  %v1640_v42 = vld [vmem:[#allocation5 + $0x1de8] sm:$0xff]  ;;  %v12266_v55 = vcombine.low %v1635_v7, %v1639_v25 }
 0x26e   : > { %7670 = vmatprep.subr.bf16.mxu0 %v12251_v20  ;;  %8574 = vmatprep.subr.bf16.mxu1 %v12253_v44  ;;  %v12269_v53 = vcombine.high %v1636_v39, %v1640_v42  ;;  %v14643_v20 = vpack.c.bf16 %v456_v29, %v440_v27  ;;  %v1643_v44 = vld [vmem:[#allocation5 + $0x1e00] sm:$0xff]  ;;  %v12268_v61 = vcombine.low %v1636_v39, %v1640_v42  ;;  %v1652_v27 = vld [vmem:[#allocation5 + $0x1e48] sm:$0xff] }
 0x26f   : > { %7609 = vmatprep.mubr.bf16.mxu0 %v14631_v12  ;;  %8513 = vmatprep.mubr.bf16.mxu1 %v14631_v12  ;;  %v12275_v17 = vcombine.high %v1643_v44, %v1647_v11  ;;  %v472_v7 = vld [vmem:[%s14005_s25 + $0x568] sm:$0xff]  ;;  %v12276_v39 = vcombine.low %v1644_v1, %v1648_v10  ;;  %v1663_v12 = vld [vmem:[#allocation5 + $0x1ea0] sm:$0xff] }
 0x270   : > { %16412 = vst [vmem:[#allocation79_spill] sm:$0xff] %v14643_v20  ;;  %v488_v25 = vld [vmem:[%s14005_s25 + $0x5e8] sm:$0xff] }
 0x271   : > { %7671 = vmatpush1.bf16.msra.mxu0 %v12250_v62  ;;  %8575 = vmatpush1.bf16.msra.mxu1 %v12252_v6  ;;  %v455_v62 = vld [vmem:[%s14005_s25 + $0x4e0] sm:$0xff]  ;;  %v12277_v6 = vcombine.high %v1644_v1, %v1648_v10 }
 0x272   : > { %7672 = vmatprep.subr.bf16.mxu0 %v12259_v26  ;;  %8576 = vmatprep.subr.bf16.mxu1 %v12261_v14  ;;  %v1651_v26 = vld [vmem:[#allocation5 + $0x1e40] sm:$0xff]  ;;  %v14651_v29 = vpack.c.bf16 %v455_v62, %v439_v59  ;;  %v1660_v59 = vld [vmem:[#allocation5 + $0x1e88] sm:$0xff] }
 0x273   : > { %v1655_v14 = vld [vmem:[#allocation5 + $0x1e60] sm:$0xff]  ;;  %v1664_v62 = vld [vmem:[#allocation5 + $0x1ea8] sm:$0xff] }
 0x274   : > { %7610 = vmatmul.mubr.bf16.gmra.mrb[12].mxu0 %v14639_v41  ;;  %8514 = vmatmul.mubr.bf16.gmra.mrb[12].mxu1 %v14639_v41  ;;  %16413 = vst [vmem:[#allocation80_spill] sm:$0xff] %v14651_v29  ;;  %v12274_v41 = vcombine.low %v1643_v44, %v1647_v11  ;;  %v12283_v42 = vcombine.high %v1651_v26, %v1655_v14  ;;  %v471_v44 = vld [vmem:[%s14005_s25 + $0x560] sm:$0xff] }
 0x275   : > { %7673 = vmatpush1.bf16.msra.mxu0 %v12258_v36  ;;  %8577 = vmatpush1.bf16.msra.mxu1 %v12260_v47  ;;  %v1656_v36 = vld [vmem:[#allocation5 + $0x1e68] sm:$0xff]  ;;  %v12282_v11 = vcombine.low %v1651_v26, %v1655_v14 }
 0x276   : > { %7674 = vmatprep.subr.bf16.mxu0 %v12267_v54  ;;  %8578 = vmatprep.subr.bf16.mxu1 %v12269_v53  ;;  %v12285_v47 = vcombine.high %v1652_v27, %v1656_v36  ;;  %v14655_v54 = vpack.c.bf16 %v488_v25, %v472_v7  ;;  %v1659_v53 = vld [vmem:[#allocation5 + $0x1e80] sm:$0xff]  ;;  %v12284_v1 = vcombine.low %v1652_v27, %v1656_v36  ;;  %v1668_v7 = vld [vmem:[#allocation5 + $0x1ec8] sm:$0xff] }
 0x277   : > { %7619 = vmatprep.mubr.bf16.mxu0 %v14643_v20  ;;  %8523 = vmatprep.mubr.bf16.mxu1 %v14643_v20  ;;  %v12291_v10 = vcombine.high %v1659_v53, %v1663_v12  ;;  %v504_v26 = vld [vmem:[%s14005_s25 + $0x668] sm:$0xff]  ;;  %v12292_v27 = vcombine.low %v1660_v59, %v1664_v62  ;;  %v1679_v20 = vld [vmem:[#allocation5 + $0x1f20] sm:$0xff] }
 0x278   : > { %16414 = vst [vmem:[#allocation81_spill] sm:$0xff] %v14655_v54  ;;  %v520_v14 = vld [vmem:[%s14005_s25 + $0x6e8] sm:$0xff] }
 0x279   : > { %7675 = vmatpush1.bf16.msra.mxu0 %v12266_v55  ;;  %8579 = vmatpush1.bf16.msra.mxu1 %v12268_v61  ;;  %v487_v55 = vld [vmem:[%s14005_s25 + $0x5e0] sm:$0xff]  ;;  %v12293_v61 = vcombine.high %v1660_v59, %v1664_v62 }
 0x27a   : > { %7676 = vmatprep.subr.bf16.mxu0 %v12275_v17  ;;  %8580 = vmatprep.subr.bf16.mxu1 %v12277_v6  ;;  %v1667_v17 = vld [vmem:[#allocation5 + $0x1ec0] sm:$0xff]  ;;  %v14663_v25 = vpack.c.bf16 %v487_v55, %v471_v44  ;;  %v1676_v44 = vld [vmem:[#allocation5 + $0x1f08] sm:$0xff] }
 0x27b   : > { %v1671_v6 = vld [vmem:[#allocation5 + $0x1ee0] sm:$0xff]  ;;  %v1680_v55 = vld [vmem:[#allocation5 + $0x1f28] sm:$0xff] }
 0x27c   : > { %7620 = vmatmul.mubr.bf16.gmra.mrb[16].mxu0 %v14651_v29  ;;  %8524 = vmatmul.mubr.bf16.gmra.mrb[16].mxu1 %v14651_v29  ;;  %16415 = vst [vmem:[#allocation82_spill] sm:$0xff] %v14663_v25  ;;  %v12290_v29 = vcombine.low %v1659_v53, %v1663_v12  ;;  %v12299_v36 = vcombine.high %v1667_v17, %v1671_v6  ;;  %v503_v53 = vld [vmem:[%s14005_s25 + $0x660] sm:$0xff] }
 0x27d   : > { %7677 = vmatpush1.bf16.msra.mxu0 %v12274_v41  ;;  %8581 = vmatpush1.bf16.msra.mxu1 %v12276_v39  ;;  %v1672_v41 = vld [vmem:[#allocation5 + $0x1ee8] sm:$0xff]  ;;  %v12298_v12 = vcombine.low %v1667_v17, %v1671_v6 }
 0x27e   : > { %7678 = vmatprep.subr.bf16.mxu0 %v12283_v42  ;;  %8582 = vmatprep.subr.bf16.mxu1 %v12285_v47  ;;  %v12301_v39 = vcombine.high %v1668_v7, %v1672_v41  ;;  %v14667_v42 = vpack.c.bf16 %v520_v14, %v504_v26  ;;  %v1675_v47 = vld [vmem:[#allocation5 + $0x1f00] sm:$0xff]  ;;  %v12300_v59 = vcombine.low %v1668_v7, %v1672_v41  ;;  %v1684_v26 = vld [vmem:[#allocation5 + $0x1f48] sm:$0xff] }
 0x27f   : > { %7629 = vmatprep.mubr.bf16.mxu0 %v14655_v54  ;;  %8533 = vmatprep.mubr.bf16.mxu1 %v14655_v54  ;;  %v12307_v62 = vcombine.high %v1675_v47, %v1679_v20  ;;  %v536_v17 = vld [vmem:[%s14005_s25 + $0x768] sm:$0xff]  ;;  %v12308_v7 = vcombine.low %v1676_v44, %v1680_v55  ;;  %v1695_v54 = vld [vmem:[#allocation5 + $0x1fa0] sm:$0xff] }
 0x280   : > { %16416 = vst [vmem:[#allocation83_spill] sm:$0xff] %v14667_v42  ;;  %v552_v6 = vld [vmem:[%s14005_s25 + $0x7e8] sm:$0xff] }
 0x281   : > { %7679 = vmatpush1.bf16.msra.mxu0 %v12282_v11  ;;  %8583 = vmatpush1.bf16.msra.mxu1 %v12284_v1  ;;  %v519_v11 = vld [vmem:[%s14005_s25 + $0x6e0] sm:$0xff]  ;;  %v12309_v1 = vcombine.high %v1676_v44, %v1680_v55 }
 0x282   : > { %7680 = vmatprep.subr.bf16.mxu0 %v12291_v10  ;;  %8584 = vmatprep.subr.bf16.mxu1 %v12293_v61  ;;  %v1683_v10 = vld [vmem:[#allocation5 + $0x1f40] sm:$0xff]  ;;  %v14675_v14 = vpack.c.bf16 %v519_v11, %v503_v53  ;;  %v1692_v53 = vld [vmem:[#allocation5 + $0x1f88] sm:$0xff] }
 0x283   : > { %v1687_v61 = vld [vmem:[#allocation5 + $0x1f60] sm:$0xff]  ;;  %v1696_v11 = vld [vmem:[#allocation5 + $0x1fa8] sm:$0xff] }
 0x284   : > { %7630 = vmatmul.mubr.bf16.gmra.mrb[20].mxu0 %v14663_v25  ;;  %8534 = vmatmul.mubr.bf16.gmra.mrb[20].mxu1 %v14663_v25  ;;  %16417 = vst [vmem:[#allocation84_spill] sm:$0xff] %v14675_v14  ;;  %v12306_v25 = vcombine.low %v1675_v47, %v1679_v20  ;;  %v12315_v41 = vcombine.high %v1683_v10, %v1687_v61  ;;  %v535_v47 = vld [vmem:[%s14005_s25 + $0x760] sm:$0xff] }
 0x285   : > { %7681 = vmatpush1.bf16.msra.mxu0 %v12290_v29  ;;  %8585 = vmatpush1.bf16.msra.mxu1 %v12292_v27  ;;  %v1688_v29 = vld [vmem:[#allocation5 + $0x1f68] sm:$0xff]  ;;  %v12314_v20 = vcombine.low %v1683_v10, %v1687_v61  ;;  %v314_v10 = vld [vmem:[%s14005_s25 + $0x78] sm:$0xff] }
 0x286   : > { %7682 = vmatprep.subr.bf16.mxu0 %v12299_v36  ;;  %8586 = vmatprep.subr.bf16.mxu1 %v12301_v39  ;;  %v12317_v27 = vcombine.high %v1684_v26, %v1688_v29  ;;  %v14679_v36 = vpack.c.bf16 %v552_v6, %v536_v17  ;;  %v1691_v39 = vld [vmem:[#allocation5 + $0x1f80] sm:$0xff]  ;;  %v12316_v44 = vcombine.low %v1684_v26, %v1688_v29  ;;  %v1700_v17 = vld [vmem:[#allocation5 + $0x1fc8] sm:$0xff]  ;;  %v330_v61 = vld [vmem:[%s14005_s25 + $0xf8] sm:$0xff] }
 0x287   : > { %7639 = vmatprep.mubr.bf16.mxu0 %v14667_v42  ;;  %8543 = vmatprep.mubr.bf16.mxu1 %v14667_v42  ;;  %v12323_v55 = vcombine.high %v1691_v39, %v1695_v54  ;;  %v12324_v26 = vcombine.low %v1692_v53, %v1696_v11  ;;  %v689_v42 = vld [vmem:[#allocation5 + $0x30] sm:$0xff] }
 0x288   : > { %16418 = vst [vmem:[#allocation85_spill] sm:$0xff] %v14679_v36 }
 0x289   : > { %7683 = vmatpush1.bf16.msra.mxu0 %v12298_v12  ;;  %8587 = vmatpush1.bf16.msra.mxu1 %v12300_v59  ;;  %v551_v12 = vld [vmem:[%s14005_s25 + $0x7e0] sm:$0xff]  ;;  %v12325_v59 = vcombine.high %v1692_v53, %v1696_v11 }
 0x28a   : > { %7684 = vmatprep.subr.bf16.mxu0 %v12307_v62  ;;  %8588 = vmatprep.subr.bf16.mxu1 %v12309_v1  ;;  %v1699_v62 = vld [vmem:[#allocation5 + $0x1fc0] sm:$0xff]  ;;  %v14687_v6 = vpack.c.bf16 %v551_v12, %v535_v47  ;;  %v686_v47 = vld [vmem:[#allocation5 + $0x18] sm:$0xff] }
 0x28b   : > { %v1703_v1 = vld [vmem:[#allocation5 + $0x1fe0] sm:$0xff]  ;;  %v690_v12 = vld [vmem:[#allocation5 + $0x38] sm:$0xff] }
 0x28c   : > { %7640 = vmatmul.mubr.bf16.gmra.mrb[24].mxu0 %v14675_v14  ;;  %8544 = vmatmul.mubr.bf16.gmra.mrb[24].mxu1 %v14675_v14  ;;  %16419 = vst [vmem:[#allocation86_spill] sm:$0xff] %v14687_v6  ;;  %v12322_v14 = vcombine.low %v1691_v39, %v1695_v54  ;;  %v12331_v29 = vcombine.high %v1699_v62, %v1703_v1  ;;  %v313_v39 = vld [vmem:[%s14005_s25 + $0x70] sm:$0xff] }
 0x28d   : > { %7685 = vmatpush1.bf16.msra.mxu0 %v12306_v25  ;;  %8589 = vmatpush1.bf16.msra.mxu1 %v12308_v7  ;;  %v1704_v25 = vld [vmem:[#allocation5 + $0x1fe8] sm:$0xff]  ;;  %v12330_v54 = vcombine.low %v1699_v62, %v1703_v1  ;;  %v346_v62 = vld [vmem:[%s14005_s25 + $0x178] sm:$0xff] }
 0x28e   : > { %7686 = vmatprep.subr.bf16.mxu0 %v12315_v41  ;;  %8590 = vmatprep.subr.bf16.mxu1 %v12317_v27  ;;  %v12333_v7 = vcombine.high %v1700_v17, %v1704_v25  ;;  %v14691_v41 = vpack.c.bf16 %v330_v61, %v314_v10  ;;  %v685_v27 = vld [vmem:[#allocation5 + $0x10] sm:$0xff]  ;;  %v12332_v53 = vcombine.low %v1700_v17, %v1704_v25  ;;  %v694_v10 = vld [vmem:[#allocation5 + $0x58] sm:$0xff] }
 0x28f   : > { %7649 = vmatprep.mubr.bf16.mxu0 %v14679_v36  ;;  %8553 = vmatprep.mubr.bf16.mxu1 %v14679_v36  ;;  %v11319_v11 = vcombine.high %v685_v27, %v689_v42  ;;  %v362_v1 = vld [vmem:[%s14005_s25 + $0x1f8] sm:$0xff]  ;;  %v11320_v17 = vcombine.low %v686_v47, %v690_v12  ;;  %v705_v36 = vld [vmem:[#allocation5 + $0xb0] sm:$0xff] }
 0x290   : > { %16420 = vst [vmem:[#allocation87_spill] sm:$0xff] %v14691_v41 }
 0x291   : > { %7687 = vmatpush1.bf16.msra.mxu0 %v12314_v20  ;;  %8591 = vmatpush1.bf16.msra.mxu1 %v12316_v44  ;;  %v329_v20 = vld [vmem:[%s14005_s25 + $0xf0] sm:$0xff]  ;;  %v11321_v44 = vcombine.high %v686_v47, %v690_v12 }
 0x292   : > { %7688 = vmatprep.subr.bf16.mxu0 %v12323_v55  ;;  %8592 = vmatprep.subr.bf16.mxu1 %v12325_v59  ;;  %v693_v55 = vld [vmem:[#allocation5 + $0x50] sm:$0xff]  ;;  %v14699_v61 = vpack.c.bf16 %v329_v20, %v313_v39  ;;  %v702_v39 = vld [vmem:[#allocation5 + $0x98] sm:$0xff] }
 0x293   : > { %v697_v59 = vld [vmem:[#allocation5 + $0x70] sm:$0xff]  ;;  %v706_v20 = vld [vmem:[#allocation5 + $0xb8] sm:$0xff] }
 0x294   : > { %7650 = vmatmul.mubr.bf16.gmra.mrb[28].mxu0 %v14687_v6  ;;  %8554 = vmatmul.mubr.bf16.gmra.mrb[28].mxu1 %v14687_v6  ;;  %16421 = vst [vmem:[#allocation88_spill] sm:$0xff] %v14699_v61  ;;  %v11318_v6 = vcombine.low %v685_v27, %v689_v42  ;;  %v11327_v25 = vcombine.high %v693_v55, %v697_v59  ;;  %v345_v27 = vld [vmem:[%s14005_s25 + $0x170] sm:$0xff] }
 0x295   : > { %7689 = vmatpush1.bf16.msra.mxu0 %v12322_v14  ;;  %8593 = vmatpush1.bf16.msra.mxu1 %v12324_v26  ;;  %v698_v14 = vld [vmem:[#allocation5 + $0x78] sm:$0xff]  ;;  %v11326_v42 = vcombine.low %v693_v55, %v697_v59 }
 0x296   : > { %7690 = vmatprep.subr.bf16.mxu0 %v12331_v29  ;;  %8594 = vmatprep.subr.bf16.mxu1 %v12333_v7  ;;  %v11329_v26 = vcombine.high %v694_v10, %v698_v14  ;;  %v14703_v29 = vpack.c.bf16 %v362_v1, %v346_v62  ;;  %v701_v7 = vld [vmem:[#allocation5 + $0x90] sm:$0xff]  ;;  %v11328_v47 = vcombine.low %v694_v10, %v698_v14  ;;  %v710_v62 = vld [vmem:[#allocation5 + $0xd8] sm:$0xff] }
 0x297   : > { %7692 = vmatprep.mubr.bf16.mxu0 %v14691_v41  ;;  %8596 = vmatprep.mubr.bf16.mxu1 %v14691_v41  ;;  %v11335_v12 = vcombine.high %v701_v7, %v705_v36  ;;  %v378_v55 = vld [vmem:[%s14005_s25 + $0x278] sm:$0xff]  ;;  %v11336_v10 = vcombine.low %v702_v39, %v706_v20  ;;  %v721_v41 = vld [vmem:[#allocation5 + $0x130] sm:$0xff] }
 0x298   : > { %16422 = vst [vmem:[#allocation89_spill] sm:$0xff] %v14703_v29  ;;  %v394_v59 = vld [vmem:[%s14005_s25 + $0x2f8] sm:$0xff] }
 0x299   : > { %7691 = vmatpush1.bf16.msra.mxu0 %v12330_v54  ;;  %8595 = vmatpush1.bf16.msra.mxu1 %v12332_v53  ;;  %v361_v54 = vld [vmem:[%s14005_s25 + $0x1f0] sm:$0xff]  ;;  %v11337_v53 = vcombine.high %v702_v39, %v706_v20 }
 0x29a   : > { %8677 = vmatprep.subr.bf16.mxu0 %v11319_v11  ;;  %9581 = vmatprep.subr.bf16.mxu1 %v11321_v44  ;;  %v709_v11 = vld [vmem:[#allocation5 + $0xd0] sm:$0xff]  ;;  %v14711_v1 = vpack.c.bf16 %v361_v54, %v345_v27  ;;  %v718_v27 = vld [vmem:[#allocation5 + $0x118] sm:$0xff] }
 0x29b   : > { %v713_v44 = vld [vmem:[#allocation5 + $0xf0] sm:$0xff]  ;;  %v722_v54 = vld [vmem:[#allocation5 + $0x138] sm:$0xff] }
 0x29c   : > { %7693 = vmatmul.mubr.bf16.vlgmr.msra.gmra.mrb[0].mxu0 %v14699_v61  ;;  %8597 = vmatmul.mubr.bf16.vlgmr.msra.gmra.mrb[0].mxu1 %v14699_v61  ;;  %16423 = vst [vmem:[#allocation90_spill] sm:$0xff] %v14711_v1  ;;  %v11334_v61 = vcombine.low %v701_v7, %v705_v36  ;;  %v11343_v14 = vcombine.high %v709_v11, %v713_v44  ;;  %v377_v7 = vld [vmem:[%s14005_s25 + $0x270] sm:$0xff] }
 0x29d   : > { %8678 = vmatpush1.bf16.msra.mxu0 %v11318_v6  ;;  %9582 = vmatpush1.bf16.msra.mxu1 %v11320_v17  ;;  %v714_v6 = vld [vmem:[#allocation5 + $0xf8] sm:$0xff]  ;;  %v11342_v36 = vcombine.low %v709_v11, %v713_v44 }
 0x29e   : > { %8679 = vmatprep.subr.bf16.mxu0 %v11327_v25  ;;  %9583 = vmatprep.subr.bf16.mxu1 %v11329_v26  ;;  %v11345_v17 = vcombine.high %v710_v62, %v714_v6  ;;  %v14715_v25 = vpack.c.bf16 %v394_v59, %v378_v55  ;;  %v717_v26 = vld [vmem:[#allocation5 + $0x110] sm:$0xff]  ;;  %v11344_v39 = vcombine.low %v710_v62, %v714_v6  ;;  %v726_v55 = vld [vmem:[#allocation5 + $0x158] sm:$0xff] }
 0x29f   : > { %7702 = vmatprep.mubr.bf16.mxu0 %v14703_v29  ;;  %8606 = vmatprep.mubr.bf16.mxu1 %v14703_v29  ;;  %v11351_v20 = vcombine.high %v717_v26, %v721_v41  ;;  %v410_v11 = vld [vmem:[%s14005_s25 + $0x378] sm:$0xff]  ;;  %v11352_v62 = vcombine.low %v718_v27, %v722_v54  ;;  %v737_v29 = vld [vmem:[#allocation5 + $0x1b0] sm:$0xff] }
 0x2a0   : > { %16424 = vst [vmem:[#allocation91_spill] sm:$0xff] %v14715_v25  ;;  %v426_v44 = vld [vmem:[%s14005_s25 + $0x3f8] sm:$0xff] }
 0x2a1   : > { %8680 = vmatpush1.bf16.msra.mxu0 %v11326_v42  ;;  %9584 = vmatpush1.bf16.msra.mxu1 %v11328_v47  ;;  %v393_v42 = vld [vmem:[%s14005_s25 + $0x2f0] sm:$0xff]  ;;  %v11353_v47 = vcombine.high %v718_v27, %v722_v54 }
 0x2a2   : > { %8681 = vmatprep.subr.bf16.mxu0 %v11335_v12  ;;  %9585 = vmatprep.subr.bf16.mxu1 %v11337_v53  ;;  %v725_v12 = vld [vmem:[#allocation5 + $0x150] sm:$0xff]  ;;  %v14723_v59 = vpack.c.bf16 %v393_v42, %v377_v7  ;;  %v734_v7 = vld [vmem:[#allocation5 + $0x198] sm:$0xff] }
 0x2a3   : > { %v729_v53 = vld [vmem:[#allocation5 + $0x170] sm:$0xff]  ;;  %v738_v42 = vld [vmem:[#allocation5 + $0x1b8] sm:$0xff] }
 0x2a4   : > { %7703 = vmatmul.mubr.bf16.gmra.mrb[4].mxu0 %v14711_v1  ;;  %8607 = vmatmul.mubr.bf16.gmra.mrb[4].mxu1 %v14711_v1  ;;  %16425 = vst [vmem:[#allocation92_spill] sm:$0xff] %v14723_v59  ;;  %v11350_v1 = vcombine.low %v717_v26, %v721_v41  ;;  %v11359_v6 = vcombine.high %v725_v12, %v729_v53  ;;  %v409_v26 = vld [vmem:[%s14005_s25 + $0x370] sm:$0xff] }
 0x2a5   : > { %8682 = vmatpush1.bf16.msra.mxu0 %v11334_v61  ;;  %9586 = vmatpush1.bf16.msra.mxu1 %v11336_v10  ;;  %v730_v61 = vld [vmem:[#allocation5 + $0x178] sm:$0xff]  ;;  %v11358_v41 = vcombine.low %v725_v12, %v729_v53 }
 0x2a6   : > { %8683 = vmatprep.subr.bf16.mxu0 %v11343_v14  ;;  %9587 = vmatprep.subr.bf16.mxu1 %v11345_v17  ;;  %v11361_v10 = vcombine.high %v726_v55, %v730_v61  ;;  %v14727_v14 = vpack.c.bf16 %v426_v44, %v410_v11  ;;  %v733_v17 = vld [vmem:[#allocation5 + $0x190] sm:$0xff]  ;;  %v11360_v27 = vcombine.low %v726_v55, %v730_v61  ;;  %v742_v11 = vld [vmem:[#allocation5 + $0x1d8] sm:$0xff] }
 0x2a7   : > { %7712 = vmatprep.mubr.bf16.mxu0 %v14715_v25  ;;  %8616 = vmatprep.mubr.bf16.mxu1 %v14715_v25  ;;  %v11367_v54 = vcombine.high %v733_v17, %v737_v29  ;;  %v442_v12 = vld [vmem:[%s14005_s25 + $0x478] sm:$0xff]  ;;  %v11368_v55 = vcombine.low %v734_v7, %v738_v42  ;;  %v753_v25 = vld [vmem:[#allocation5 + $0x230] sm:$0xff] }
 0x2a8   : > { %16426 = vst [vmem:[#allocation93_spill] sm:$0xff] %v14727_v14  ;;  %v458_v53 = vld [vmem:[%s14005_s25 + $0x4f8] sm:$0xff] }
 0x2a9   : > { %8684 = vmatpush1.bf16.msra.mxu0 %v11342_v36  ;;  %9588 = vmatpush1.bf16.msra.mxu1 %v11344_v39  ;;  %v425_v36 = vld [vmem:[%s14005_s25 + $0x3f0] sm:$0xff]  ;;  %v11369_v39 = vcombine.high %v734_v7, %v738_v42 }
 0x2aa   : > { %8685 = vmatprep.subr.bf16.mxu0 %v11351_v20  ;;  %9589 = vmatprep.subr.bf16.mxu1 %v11353_v47  ;;  %v741_v20 = vld [vmem:[#allocation5 + $0x1d0] sm:$0xff]  ;;  %v14735_v44 = vpack.c.bf16 %v425_v36, %v409_v26  ;;  %v750_v26 = vld [vmem:[#allocation5 + $0x218] sm:$0xff] }
 0x2ab   : > { %v745_v47 = vld [vmem:[#allocation5 + $0x1f0] sm:$0xff]  ;;  %v754_v36 = vld [vmem:[#allocation5 + $0x238] sm:$0xff] }
 0x2ac   : > { %7713 = vmatmul.mubr.bf16.gmra.mrb[8].mxu0 %v14723_v59  ;;  %8617 = vmatmul.mubr.bf16.gmra.mrb[8].mxu1 %v14723_v59  ;;  %16427 = vst [vmem:[#allocation94_spill] sm:$0xff] %v14735_v44  ;;  %v11366_v59 = vcombine.low %v733_v17, %v737_v29  ;;  %v11375_v61 = vcombine.high %v741_v20, %v745_v47  ;;  %v441_v17 = vld [vmem:[%s14005_s25 + $0x470] sm:$0xff] }
 0x2ad   : > { %8686 = vmatpush1.bf16.msra.mxu0 %v11350_v1  ;;  %9590 = vmatpush1.bf16.msra.mxu1 %v11352_v62  ;;  %v746_v1 = vld [vmem:[#allocation5 + $0x1f8] sm:$0xff]  ;;  %v11374_v29 = vcombine.low %v741_v20, %v745_v47 }
 0x2ae   : > { %8687 = vmatprep.subr.bf16.mxu0 %v11359_v6  ;;  %9591 = vmatprep.subr.bf16.mxu1 %v11361_v10  ;;  %v11377_v62 = vcombine.high %v742_v11, %v746_v1  ;;  %v14739_v6 = vpack.c.bf16 %v458_v53, %v442_v12  ;;  %v749_v10 = vld [vmem:[#allocation5 + $0x210] sm:$0xff]  ;;  %v11376_v7 = vcombine.low %v742_v11, %v746_v1  ;;  %v758_v12 = vld [vmem:[#allocation5 + $0x258] sm:$0xff] }
 0x2af   : > { %7722 = vmatprep.mubr.bf16.mxu0 %v14727_v14  ;;  %8626 = vmatprep.mubr.bf16.mxu1 %v14727_v14  ;;  %v11383_v42 = vcombine.high %v749_v10, %v753_v25  ;;  %v474_v20 = vld [vmem:[%s14005_s25 + $0x578] sm:$0xff]  ;;  %v11384_v11 = vcombine.low %v750_v26, %v754_v36  ;;  %v769_v14 = vld [vmem:[#allocation5 + $0x2b0] sm:$0xff] }
 0x2b0   : > { %16428 = vst [vmem:[#allocation95_spill] sm:$0xff] %v14739_v6  ;;  %v490_v47 = vld [vmem:[%s14005_s25 + $0x5f8] sm:$0xff] }
 0x2b1   : > { %8688 = vmatpush1.bf16.msra.mxu0 %v11358_v41  ;;  %9592 = vmatpush1.bf16.msra.mxu1 %v11360_v27  ;;  %v457_v41 = vld [vmem:[%s14005_s25 + $0x4f0] sm:$0xff]  ;;  %v11385_v27 = vcombine.high %v750_v26, %v754_v36 }
 0x2b2   : > { %8689 = vmatprep.subr.bf16.mxu0 %v11367_v54  ;;  %9593 = vmatprep.subr.bf16.mxu1 %v11369_v39  ;;  %v757_v54 = vld [vmem:[#allocation5 + $0x250] sm:$0xff]  ;;  %v14747_v53 = vpack.c.bf16 %v457_v41, %v441_v17  ;;  %v766_v17 = vld [vmem:[#allocation5 + $0x298] sm:$0xff] }
 0x2b3   : > { %v761_v39 = vld [vmem:[#allocation5 + $0x270] sm:$0xff]  ;;  %v770_v41 = vld [vmem:[#allocation5 + $0x2b8] sm:$0xff] }
 0x2b4   : > { %7723 = vmatmul.mubr.bf16.gmra.mrb[12].mxu0 %v14735_v44  ;;  %8627 = vmatmul.mubr.bf16.gmra.mrb[12].mxu1 %v14735_v44  ;;  %16429 = vst [vmem:[#allocation96_spill] sm:$0xff] %v14747_v53  ;;  %v11382_v44 = vcombine.low %v749_v10, %v753_v25  ;;  %v11391_v1 = vcombine.high %v757_v54, %v761_v39  ;;  %v473_v10 = vld [vmem:[%s14005_s25 + $0x570] sm:$0xff] }
 0x2b5   : > { %8690 = vmatpush1.bf16.msra.mxu0 %v11366_v59  ;;  %9594 = vmatpush1.bf16.msra.mxu1 %v11368_v55  ;;  %v762_v59 = vld [vmem:[#allocation5 + $0x278] sm:$0xff]  ;;  %v11390_v25 = vcombine.low %v757_v54, %v761_v39 }
 0x2b6   : > { %8691 = vmatprep.subr.bf16.mxu0 %v11375_v61  ;;  %9595 = vmatprep.subr.bf16.mxu1 %v11377_v62  ;;  %v11393_v55 = vcombine.high %v758_v12, %v762_v59  ;;  %v14751_v61 = vpack.c.bf16 %v490_v47, %v474_v20  ;;  %v765_v62 = vld [vmem:[#allocation5 + $0x290] sm:$0xff]  ;;  %v11392_v26 = vcombine.low %v758_v12, %v762_v59  ;;  %v774_v20 = vld [vmem:[#allocation5 + $0x2d8] sm:$0xff] }
 0x2b7   : > { %7732 = vmatprep.mubr.bf16.mxu0 %v14739_v6  ;;  %8636 = vmatprep.mubr.bf16.mxu1 %v14739_v6  ;;  %v11399_v36 = vcombine.high %v765_v62, %v769_v14  ;;  %v506_v54 = vld [vmem:[%s14005_s25 + $0x678] sm:$0xff]  ;;  %v11400_v12 = vcombine.low %v766_v17, %v770_v41  ;;  %v785_v6 = vld [vmem:[#allocation5 + $0x330] sm:$0xff] }
 0x2b8   : > { %16430 = vst [vmem:[#allocation97_spill] sm:$0xff] %v14751_v61  ;;  %v522_v39 = vld [vmem:[%s14005_s25 + $0x6f8] sm:$0xff] }
 0x2b9   : > { %8692 = vmatpush1.bf16.msra.mxu0 %v11374_v29  ;;  %9596 = vmatpush1.bf16.msra.mxu1 %v11376_v7  ;;  %v489_v29 = vld [vmem:[%s14005_s25 + $0x5f0] sm:$0xff]  ;;  %v11401_v7 = vcombine.high %v766_v17, %v770_v41 }
 0x2ba   : > { %8693 = vmatprep.subr.bf16.mxu0 %v11383_v42  ;;  %9597 = vmatprep.subr.bf16.mxu1 %v11385_v27  ;;  %v773_v42 = vld [vmem:[#allocation5 + $0x2d0] sm:$0xff]  ;;  %v14759_v47 = vpack.c.bf16 %v489_v29, %v473_v10  ;;  %v782_v10 = vld [vmem:[#allocation5 + $0x318] sm:$0xff] }
 0x2bb   : > { %v777_v27 = vld [vmem:[#allocation5 + $0x2f0] sm:$0xff]  ;;  %v786_v29 = vld [vmem:[#allocation5 + $0x338] sm:$0xff] }
 0x2bc   : > { %7733 = vmatmul.mubr.bf16.gmra.mrb[16].mxu0 %v14747_v53  ;;  %8637 = vmatmul.mubr.bf16.gmra.mrb[16].mxu1 %v14747_v53  ;;  %16431 = vst [vmem:[#allocation98_spill] sm:$0xff] %v14759_v47  ;;  %v11398_v53 = vcombine.low %v765_v62, %v769_v14  ;;  %v11407_v59 = vcombine.high %v773_v42, %v777_v27  ;;  %v505_v62 = vld [vmem:[%s14005_s25 + $0x670] sm:$0xff] }
 0x2bd   : > { %8694 = vmatpush1.bf16.msra.mxu0 %v11382_v44  ;;  %9598 = vmatpush1.bf16.msra.mxu1 %v11384_v11  ;;  %v778_v44 = vld [vmem:[#allocation5 + $0x2f8] sm:$0xff]  ;;  %v11406_v14 = vcombine.low %v773_v42, %v777_v27 }
 0x2be   : > { %8695 = vmatprep.subr.bf16.mxu0 %v11391_v1  ;;  %9599 = vmatprep.subr.bf16.mxu1 %v11393_v55  ;;  %v11409_v11 = vcombine.high %v774_v20, %v778_v44  ;;  %v14763_v1 = vpack.c.bf16 %v522_v39, %v506_v54  ;;  %v781_v55 = vld [vmem:[#allocation5 + $0x310] sm:$0xff]  ;;  %v11408_v17 = vcombine.low %v774_v20, %v778_v44  ;;  %v790_v54 = vld [vmem:[#allocation5 + $0x358] sm:$0xff] }
 0x2bf   : > { %7742 = vmatprep.mubr.bf16.mxu0 %v14751_v61  ;;  %8646 = vmatprep.mubr.bf16.mxu1 %v14751_v61  ;;  %v11415_v41 = vcombine.high %v781_v55, %v785_v6  ;;  %v538_v42 = vld [vmem:[%s14005_s25 + $0x778] sm:$0xff]  ;;  %v11416_v20 = vcombine.low %v782_v10, %v786_v29  ;;  %v801_v61 = vld [vmem:[#allocation5 + $0x3b0] sm:$0xff] }
 0x2c0   : > { %16432 = vst [vmem:[#allocation99_spill] sm:$0xff] %v14763_v1  ;;  %v554_v27 = vld [vmem:[%s14005_s25 + $0x7f8] sm:$0xff] }
 0x2c1   : > { %8696 = vmatpush1.bf16.msra.mxu0 %v11390_v25  ;;  %9600 = vmatpush1.bf16.msra.mxu1 %v11392_v26  ;;  %v521_v25 = vld [vmem:[%s14005_s25 + $0x6f0] sm:$0xff]  ;;  %v11417_v26 = vcombine.high %v782_v10, %v786_v29 }
 0x2c2   : > { %8697 = vmatprep.subr.bf16.mxu0 %v11399_v36  ;;  %9601 = vmatprep.subr.bf16.mxu1 %v11401_v7  ;;  %v789_v36 = vld [vmem:[#allocation5 + $0x350] sm:$0xff]  ;;  %v14771_v39 = vpack.c.bf16 %v521_v25, %v505_v62  ;;  %v798_v62 = vld [vmem:[#allocation5 + $0x398] sm:$0xff] }
 0x2c3   : > { %v793_v7 = vld [vmem:[#allocation5 + $0x370] sm:$0xff]  ;;  %v802_v25 = vld [vmem:[#allocation5 + $0x3b8] sm:$0xff] }
 0x2c4   : > { %7743 = vmatmul.mubr.bf16.gmra.mrb[20].mxu0 %v14759_v47  ;;  %8647 = vmatmul.mubr.bf16.gmra.mrb[20].mxu1 %v14759_v47  ;;  %16433 = vst [vmem:[#allocation100_spill] sm:$0xff] %v14771_v39  ;;  %v11414_v47 = vcombine.low %v781_v55, %v785_v6  ;;  %v11423_v44 = vcombine.high %v789_v36, %v793_v7  ;;  %v537_v55 = vld [vmem:[%s14005_s25 + $0x770] sm:$0xff] }
 0x2c5   : > { %8698 = vmatpush1.bf16.msra.mxu0 %v11398_v53  ;;  %9602 = vmatpush1.bf16.msra.mxu1 %v11400_v12  ;;  %v794_v53 = vld [vmem:[#allocation5 + $0x378] sm:$0xff]  ;;  %v11422_v6 = vcombine.low %v789_v36, %v793_v7  ;;  %v11432_v36 = vcombine.low %v798_v62, %v802_v25 }
 0x2c6   : > { %8699 = vmatprep.subr.bf16.mxu0 %v11407_v59  ;;  %9603 = vmatprep.subr.bf16.mxu1 %v11409_v11  ;;  %v11425_v12 = vcombine.high %v790_v54, %v794_v53  ;;  %v14775_v59 = vpack.c.bf16 %v554_v27, %v538_v42  ;;  %v797_v11 = vld [vmem:[#allocation5 + $0x390] sm:$0xff]  ;;  %v11424_v10 = vcombine.low %v790_v54, %v794_v53  ;;  %v806_v27 = vld [vmem:[#allocation5 + $0x3d8] sm:$0xff] }
 0x2c7   : > { %7752 = vmatprep.mubr.bf16.mxu0 %v14763_v1  ;;  %8656 = vmatprep.mubr.bf16.mxu1 %v14763_v1  ;;  %v11431_v29 = vcombine.high %v797_v11, %v801_v61  ;;  %v813_v53 = vld [vmem:[#allocation5 + $0x410] sm:$0xff] }
 0x2c8   : > { %16434 = vst [vmem:[#allocation101_spill] sm:$0xff] %v14775_v59  ;;  %v15128_v1 = vld [vmem:[#allocation5 + $0x1030] sm:$0xff] }
 0x2c9   : > { %8700 = vmatpush1.bf16.msra.mxu0 %v11406_v14  ;;  %9604 = vmatpush1.bf16.msra.mxu1 %v11408_v17  ;;  %v553_v14 = vld [vmem:[%s14005_s25 + $0x7f0] sm:$0xff]  ;;  %v11433_v17 = vcombine.high %v798_v62, %v802_v25  ;;  %16448 = vst [vmem:[#allocation112_spill] sm:$0xff] %v15128_v1 }
 0x2ca   : > { %8701 = vmatprep.subr.bf16.mxu0 %v11415_v41  ;;  %9605 = vmatprep.subr.bf16.mxu1 %v11417_v26  ;;  %v805_v41 = vld [vmem:[#allocation5 + $0x3d0] sm:$0xff]  ;;  %v14783_v42 = vpack.c.bf16 %v553_v14, %v537_v55  ;;  %v822_v14 = vld [vmem:[#allocation5 + $0x458] sm:$0xff] }
 0x2cb   : > { %v809_v26 = vld [vmem:[#allocation5 + $0x3f0] sm:$0xff] }
 0x2cc   : > { %7753 = vmatmul.mubr.bf16.gmra.mrb[24].mxu0 %v14771_v39  ;;  %8657 = vmatmul.mubr.bf16.gmra.mrb[24].mxu1 %v14771_v39  ;;  %16435 = vst [vmem:[#allocation102_spill] sm:$0xff] %v14783_v42  ;;  %v810_v39 = vld [vmem:[#allocation5 + $0x3f8] sm:$0xff]  ;;  %v11439_v7 = vcombine.high %v805_v41, %v809_v26  ;;  %v11438_v55 = vcombine.low %v805_v41, %v809_v26  ;;  %v821_v62 = vld [vmem:[#allocation5 + $0x450] sm:$0xff] }
 0x2cd   : > { %8702 = vmatpush1.bf16.msra.mxu0 %v11414_v47  ;;  %9606 = vmatpush1.bf16.msra.mxu1 %v11416_v20  ;;  %v11430_v47 = vcombine.low %v797_v11, %v801_v61  ;;  %v11441_v54 = vcombine.high %v806_v27, %v810_v39  ;;  %v817_v20 = vld [vmem:[#allocation5 + $0x430] sm:$0xff] }
 0x2ce   : > { %8703 = vmatprep.subr.bf16.mxu0 %v11423_v44  ;;  %9607 = vmatprep.subr.bf16.mxu1 %v11425_v12  ;;  %v814_v44 = vld [vmem:[#allocation5 + $0x418] sm:$0xff]  ;;  %v11447_v61 = vcombine.high %v813_v53, %v817_v20  ;;  %v825_v25 = vld [vmem:[#allocation5 + $0x470] sm:$0xff] }
 0x2cf   : > { %7762 = vmatprep.mubr.bf16.mxu0 %v14775_v59  ;;  %8666 = vmatprep.mubr.bf16.mxu1 %v14775_v59  ;;  %v818_v12 = vld [vmem:[#allocation5 + $0x438] sm:$0xff]  ;;  %v11455_v41 = vcombine.high %v821_v62, %v825_v25  ;;  %v15126_v59 = vld [vmem:[#allocation5 + $0x1010] sm:$0xff] }
 0x2d0   : > { %v11449_v11 = vcombine.high %v814_v44, %v818_v12 }
 0x2d1   : > { %8704 = vmatpush1.bf16.msra.mxu0 %v11422_v6  ;;  %9608 = vmatpush1.bf16.msra.mxu1 %v11424_v10  ;;  %v11440_v6 = vcombine.low %v806_v27, %v810_v39  ;;  %v826_v10 = vld [vmem:[#allocation5 + $0x478] sm:$0xff]  ;;  %v829_v39 = vld [vmem:[#allocation5 + $0x490] sm:$0xff] }
 0x2d2   : > { %8705 = vmatprep.subr.bf16.mxu0 %v11431_v29  ;;  %9609 = vmatprep.subr.bf16.mxu1 %v11433_v17  ;;  %v11446_v29 = vcombine.low %v813_v53, %v817_v20  ;;  %v11448_v17 = vcombine.low %v814_v44, %v818_v12  ;;  %v11457_v26 = vcombine.high %v822_v14, %v826_v10  ;;  %v833_v27 = vld [vmem:[#allocation5 + $0x4b0] sm:$0xff]  ;;  %v838_v12 = vld [vmem:[#allocation5 + $0x4d8] sm:$0xff] }
 0x2d3   : > { %v837_v20 = vld [vmem:[#allocation5 + $0x4d0] sm:$0xff] }
 0x2d4   : > { %7763 = vmatmul.mubr.bf16.gmra.mrb[28].mxu0 %v14783_v42  ;;  %8667 = vmatmul.mubr.bf16.gmra.mrb[28].mxu1 %v14783_v42  ;;  %v841_v44 = vld [vmem:[#allocation5 + $0x4f0] sm:$0xff]  ;;  %v15113_v42 = vld [vmem:[#allocation5 + $0xfd8] sm:$0xff] }
 0x2d5   : > { %8706 = vmatpush1.bf16.msra.mxu0 %v11430_v47  ;;  %9610 = vmatpush1.bf16.msra.mxu1 %v11432_v36  ;;  %v830_v47 = vld [vmem:[#allocation5 + $0x498] sm:$0xff]  ;;  %16446 = vst [vmem:[#allocation110_spill] sm:$0xff] %v15113_v42 }
 0x2d6   : > { %8707 = vmatprep.subr.bf16.mxu0 %v11439_v7  ;;  %9611 = vmatprep.subr.bf16.mxu1 %v11441_v54  ;;  %v834_v36 = vld [vmem:[#allocation5 + $0x4b8] sm:$0xff]  ;;  %v11456_v7 = vcombine.low %v822_v14, %v826_v10  ;;  %v11463_v54 = vcombine.high %v829_v39, %v833_v27 }
 0x2d7   : > { %8709 = vmatprep.mubr.bf16.mxu0 %v14021_v58  ;;  %9613 = vmatprep.mubr.bf16.mxu1 %v14021_v58  ;;  %v11454_v58 = vcombine.low %v821_v62, %v825_v25  ;;  %v11465_v53 = vcombine.high %v830_v47, %v834_v36  ;;  %v845_v62 = vld [vmem:[#allocation5 + $0x510] sm:$0xff]  ;;  %v846_v14 = vld [vmem:[#allocation5 + $0x518] sm:$0xff] }
 0x2d8   : > { %v849_v25 = vld [vmem:[#allocation5 + $0x530] sm:$0xff]  ;;  %v850_v10 = vld [vmem:[#allocation5 + $0x538] sm:$0xff] }
 0x2d9   : > { %8708 = vmatpush1.bf16.msra.mxu0 %v11438_v55  ;;  %9612 = vmatpush1.bf16.msra.mxu1 %v11440_v6  ;;  %v842_v55 = vld [vmem:[#allocation5 + $0x4f8] sm:$0xff]  ;;  %v11462_v6 = vcombine.low %v829_v39, %v833_v27  ;;  %v857_v39 = vld [vmem:[#allocation5 + $0x570] sm:$0xff] }
 0x2da   : > { %8790 = vmatprep.subr.bf16.mxu0 %v11447_v61  ;;  %9694 = vmatprep.subr.bf16.mxu1 %v11449_v11  ;;  %v11471_v61 = vcombine.high %v837_v20, %v841_v44  ;;  %v11473_v11 = vcombine.high %v838_v12, %v842_v55  ;;  %v854_v27 = vld [vmem:[#allocation5 + $0x558] sm:$0xff] }
 0x2dc   : > { %8710 = vmatmul.mubr.bf16.vlgmr.msra.gmra.mrb[32].mxu0 %v14027_v15  ;;  %9614 = vmatmul.mubr.bf16.vlgmr.msra.gmra.mrb[32].mxu1 %v14027_v15  ;;  %v11464_v15 = vcombine.low %v830_v47, %v834_v36  ;;  %v858_v47 = vld [vmem:[#allocation5 + $0x578] sm:$0xff]  ;;  %v11478_v36 = vcombine.low %v845_v62, %v849_v25 }
 0x2dd   : > { %8791 = vmatpush1.bf16.msra.mxu0 %v11446_v29  ;;  %9695 = vmatpush1.bf16.msra.mxu1 %v11448_v17  ;;  %v11472_v29 = vcombine.low %v838_v12, %v842_v55  ;;  %v11479_v17 = vcombine.high %v845_v62, %v849_v25  ;;  %v11488_v12 = vcombine.low %v854_v27, %v858_v47  ;;  %v874_v62 = vld [vmem:[#allocation5 + $0x5f8] sm:$0xff] }
 0x2de   : > { %8792 = vmatprep.subr.bf16.mxu0 %v11455_v41  ;;  %9696 = vmatprep.subr.bf16.mxu1 %v11457_v26  ;;  %v11481_v41 = vcombine.high %v846_v14, %v850_v10  ;;  %v853_v26 = vld [vmem:[#allocation5 + $0x550] sm:$0xff] }
 0x2df   : > { %8719 = vmatprep.mubr.bf16.mxu0 %v14031_v23  ;;  %9623 = vmatprep.mubr.bf16.mxu1 %v14031_v23  ;;  %v11470_v23 = vcombine.low %v837_v20, %v841_v44  ;;  %v862_v20 = vld [vmem:[#allocation5 + $0x598] sm:$0xff] }
 0x2e0   : > { %v866_v44 = vld [vmem:[#allocation5 + $0x5b8] sm:$0xff] }
 0x2e1   : > { %8793 = vmatpush1.bf16.msra.mxu0 %v11454_v58  ;;  %9697 = vmatpush1.bf16.msra.mxu1 %v11456_v7  ;;  %v11487_v58 = vcombine.high %v853_v26, %v857_v39  ;;  %v11489_v7 = vcombine.high %v854_v27, %v858_v47  ;;  %v885_v47 = vld [vmem:[#allocation5 + $0x650] sm:$0xff] }
 0x2e2   : > { %8794 = vmatprep.subr.bf16.mxu0 %v11463_v54  ;;  %9698 = vmatprep.subr.bf16.mxu1 %v11465_v53  ;;  %v861_v54 = vld [vmem:[#allocation5 + $0x590] sm:$0xff] }
 0x2e3   : > { %v865_v53 = vld [vmem:[#allocation5 + $0x5b0] sm:$0xff] }
 0x2e4   : > { %8720 = vmatmul.mubr.bf16.gmra.mrb[36].mxu0 %v14039_v37  ;;  %9624 = vmatmul.mubr.bf16.gmra.mrb[36].mxu1 %v14039_v37  ;;  %v11480_v37 = vcombine.low %v846_v14, %v850_v10  ;;  %v11495_v55 = vcombine.high %v861_v54, %v865_v53  ;;  %v11494_v25 = vcombine.low %v861_v54, %v865_v53 }
 0x2e5   : > { %8795 = vmatpush1.bf16.msra.mxu0 %v11462_v6  ;;  %9699 = vmatpush1.bf16.msra.mxu1 %v11464_v15  ;;  %v11497_v6 = vcombine.high %v862_v20, %v866_v44  ;;  %v869_v15 = vld [vmem:[#allocation5 + $0x5d0] sm:$0xff] }
 0x2e6   : > { %8796 = vmatprep.subr.bf16.mxu0 %v11471_v61  ;;  %9700 = vmatprep.subr.bf16.mxu1 %v11473_v11  ;;  %v873_v61 = vld [vmem:[#allocation5 + $0x5f0] sm:$0xff]  ;;  %v870_v11 = vld [vmem:[#allocation5 + $0x5d8] sm:$0xff] }
 0x2e7   : > { %8729 = vmatprep.mubr.bf16.mxu0 %v14043_v45  ;;  %9633 = vmatprep.mubr.bf16.mxu1 %v14043_v45  ;;  %v11486_v45 = vcombine.low %v853_v26, %v857_v39  ;;  %v11503_v14 = vcombine.high %v869_v15, %v873_v61  ;;  %v11505_v10 = vcombine.high %v870_v11, %v874_v62 }
 0x2e8   : > { %v11504_v26 = vcombine.low %v870_v11, %v874_v62  ;;  %v905_v11 = vld [vmem:[#allocation5 + $0x6f0] sm:$0xff]  ;;  %v902_v62 = vld [vmem:[#allocation5 + $0x6d8] sm:$0xff] }
 0x2e9   : > { %8797 = vmatpush1.bf16.msra.mxu0 %v11470_v23  ;;  %9701 = vmatpush1.bf16.msra.mxu1 %v11472_v29  ;;  %v877_v23 = vld [vmem:[#allocation5 + $0x610] sm:$0xff] }
 0x2ea   : > { %8798 = vmatprep.subr.bf16.mxu0 %v11479_v17  ;;  %9702 = vmatprep.subr.bf16.mxu1 %v11481_v41  ;;  %v881_v29 = vld [vmem:[#allocation5 + $0x630] sm:$0xff]  ;;  %v878_v17 = vld [vmem:[#allocation5 + $0x618] sm:$0xff] }
 0x2eb   : > { %v882_v41 = vld [vmem:[#allocation5 + $0x638] sm:$0xff]  ;;  %v11511_v39 = vcombine.high %v877_v23, %v881_v29 }
 0x2ec   : > { %8730 = vmatmul.mubr.bf16.gmra.mrb[40].mxu0 %v14051_v60  ;;  %9634 = vmatmul.mubr.bf16.gmra.mrb[40].mxu1 %v14051_v60  ;;  %v11496_v60 = vcombine.low %v862_v20, %v866_v44  ;;  %v11513_v27 = vcombine.high %v878_v17, %v882_v41  ;;  %v893_v20 = vld [vmem:[#allocation5 + $0x690] sm:$0xff] }
 0x2ed   : > { %8799 = vmatpush1.bf16.msra.mxu0 %v11478_v36  ;;  %9703 = vmatpush1.bf16.msra.mxu1 %v11480_v37  ;;  %v889_v36 = vld [vmem:[#allocation5 + $0x670] sm:$0xff]  ;;  %v886_v37 = vld [vmem:[#allocation5 + $0x658] sm:$0xff] }
 0x2ee   : > { %8800 = vmatprep.subr.bf16.mxu0 %v11487_v58  ;;  %9704 = vmatprep.subr.bf16.mxu1 %v11489_v7  ;;  %v890_v58 = vld [vmem:[#allocation5 + $0x678] sm:$0xff]  ;;  %v11510_v7 = vcombine.low %v877_v23, %v881_v29  ;;  %v11519_v54 = vcombine.high %v885_v47, %v889_v36  ;;  %v897_v44 = vld [vmem:[#allocation5 + $0x6b0] sm:$0xff] }
 0x2ef   : > { %8739 = vmatprep.mubr.bf16.mxu0 %v14055_v4  ;;  %9643 = vmatprep.mubr.bf16.mxu1 %v14055_v4  ;;  %v11502_v4 = vcombine.low %v869_v15, %v873_v61  ;;  %v11521_v53 = vcombine.high %v886_v37, %v890_v58  ;;  %v901_v61 = vld [vmem:[#allocation5 + $0x6d0] sm:$0xff] }
 0x2f0   : > { %v909_v23 = vld [vmem:[#allocation5 + $0x710] sm:$0xff] }
 0x2f1   : > { %8801 = vmatpush1.bf16.msra.mxu0 %v11486_v45  ;;  %9705 = vmatpush1.bf16.msra.mxu1 %v11488_v12  ;;  %v894_v45 = vld [vmem:[#allocation5 + $0x698] sm:$0xff]  ;;  %v913_v29 = vld [vmem:[#allocation5 + $0x730] sm:$0xff] }
 0x2f2   : > { %8802 = vmatprep.subr.bf16.mxu0 %v11495_v55  ;;  %9706 = vmatprep.subr.bf16.mxu1 %v11497_v6  ;;  %v898_v12 = vld [vmem:[#allocation5 + $0x6b8] sm:$0xff]  ;;  %v11520_v55 = vcombine.low %v886_v37, %v890_v58  ;;  %v11527_v6 = vcombine.high %v893_v20, %v897_v44  ;;  %v11542_v58 = vcombine.low %v909_v23, %v913_v29 }
 0x2f3   : > { %v11529_v15 = vcombine.high %v894_v45, %v898_v12  ;;  %v922_v37 = vld [vmem:[#allocation5 + $0x778] sm:$0xff] }
 0x2f4   : > { %8740 = vmatmul.mubr.bf16.gmra.mrb[44].mxu0 %v14063_v19  ;;  %9644 = vmatmul.mubr.bf16.gmra.mrb[44].mxu1 %v14063_v19  ;;  %v11512_v19 = vcombine.low %v878_v17, %v882_v41  ;;  %v910_v17 = vld [vmem:[#allocation5 + $0x718] sm:$0xff] }
 0x2f5   : > { %8803 = vmatpush1.bf16.msra.mxu0 %v11494_v25  ;;  %9707 = vmatpush1.bf16.msra.mxu1 %v11496_v60  ;;  %v906_v25 = vld [vmem:[#allocation5 + $0x6f8] sm:$0xff]  ;;  %v11526_v60 = vcombine.low %v893_v20, %v897_v44 }
 0x2f6   : > { %8804 = vmatprep.subr.bf16.mxu0 %v11503_v14  ;;  %9708 = vmatprep.subr.bf16.mxu1 %v11505_v10  ;;  %v11535_v14 = vcombine.high %v901_v61, %v905_v11  ;;  %v11537_v10 = vcombine.high %v902_v62, %v906_v25  ;;  %v914_v41 = vld [vmem:[#allocation5 + $0x738] sm:$0xff] }
 0x2f7   : > { %8749 = vmatprep.mubr.bf16.mxu0 %v14067_v28  ;;  %9653 = vmatprep.mubr.bf16.mxu1 %v14067_v28  ;;  %v11518_v28 = vcombine.low %v885_v47, %v889_v36  ;;  %v921_v47 = vld [vmem:[#allocation5 + $0x770] sm:$0xff]  ;;  %v918_v36 = vld [vmem:[#allocation5 + $0x758] sm:$0xff] }
 0x2f8   : > { %v926_v20 = vld [vmem:[#allocation5 + $0x798] sm:$0xff] }
 0x2f9   : > { %8805 = vmatpush1.bf16.msra.mxu0 %v11502_v4  ;;  %9709 = vmatpush1.bf16.msra.mxu1 %v11504_v26  ;;  %v11536_v4 = vcombine.low %v902_v62, %v906_v25  ;;  %v11543_v26 = vcombine.high %v909_v23, %v913_v29  ;;  %v930_v44 = vld [vmem:[#allocation5 + $0x7b8] sm:$0xff] }
 0x2fa   : > { %8806 = vmatprep.subr.bf16.mxu0 %v11511_v39  ;;  %9710 = vmatprep.subr.bf16.mxu1 %v11513_v27  ;;  %v11545_v39 = vcombine.high %v910_v17, %v914_v41  ;;  %v917_v27 = vld [vmem:[#allocation5 + $0x750] sm:$0xff] }
 0x2fc   : > { %8750 = vmatmul.mubr.bf16.gmra.mrb[48].mxu0 %v14075_v43  ;;  %9654 = vmatmul.mubr.bf16.gmra.mrb[48].mxu1 %v14075_v43  ;;  %v11528_v43 = vcombine.low %v894_v45, %v898_v12  ;;  %v11552_v45 = vcombine.low %v918_v36, %v922_v37 }
 0x2fd   : > { %8807 = vmatpush1.bf16.msra.mxu0 %v11510_v7  ;;  %9711 = vmatpush1.bf16.msra.mxu1 %v11512_v19  ;;  %v11551_v7 = vcombine.high %v917_v27, %v921_v47  ;;  %v11553_v19 = vcombine.high %v918_v36, %v922_v37  ;;  %v957_v36 = vld [vmem:[#allocation5 + $0x890] sm:$0xff] }
 0x2fe   : > { %8808 = vmatprep.subr.bf16.mxu0 %v11519_v54  ;;  %9712 = vmatprep.subr.bf16.mxu1 %v11521_v53  ;;  %v925_v54 = vld [vmem:[#allocation5 + $0x790] sm:$0xff] }
 0x2ff   : > { %8759 = vmatprep.mubr.bf16.mxu0 %v14079_v52  ;;  %9663 = vmatprep.mubr.bf16.mxu1 %v14079_v52  ;;  %v11534_v52 = vcombine.low %v901_v61, %v905_v11  ;;  %v929_v53 = vld [vmem:[#allocation5 + $0x7b0] sm:$0xff]  ;;  %v938_v61 = vld [vmem:[#allocation5 + $0x7f8] sm:$0xff] }
 0x300   : > { %v11559_v12 = vcombine.high %v925_v54, %v929_v53  ;;  %v11558_v11 = vcombine.low %v925_v54, %v929_v53  ;;  %v961_v37 = vld [vmem:[#allocation5 + $0x8b0] sm:$0xff] }
 0x301   : > { %8809 = vmatpush1.bf16.msra.mxu0 %v11518_v28  ;;  %9713 = vmatpush1.bf16.msra.mxu1 %v11520_v55  ;;  %v11561_v28 = vcombine.high %v926_v20, %v930_v44  ;;  %v933_v55 = vld [vmem:[#allocation5 + $0x7d0] sm:$0xff] }
 0x302   : > { %8810 = vmatprep.subr.bf16.mxu0 %v11527_v6  ;;  %9714 = vmatprep.subr.bf16.mxu1 %v11529_v15  ;;  %v937_v6 = vld [vmem:[#allocation5 + $0x7f0] sm:$0xff]  ;;  %v934_v15 = vld [vmem:[#allocation5 + $0x7d8] sm:$0xff] }
 0x303   : > { %v11567_v62 = vcombine.high %v933_v55, %v937_v6  ;;  %v11569_v25 = vcombine.high %v934_v15, %v938_v61  ;;  %v11568_v23 = vcombine.low %v934_v15, %v938_v61  ;;  %v965_v53 = vld [vmem:[#allocation5 + $0x8d0] sm:$0xff]  ;;  %v974_v15 = vld [vmem:[#allocation5 + $0x918] sm:$0xff] }
 0x304   : > { %8760 = vmatmul.mubr.bf16.gmra.mrb[52].mxu0 %v14087_v5  ;;  %9664 = vmatmul.mubr.bf16.gmra.mrb[52].mxu1 %v14087_v5  ;;  %v11544_v5 = vcombine.low %v910_v17, %v914_v41  ;;  %v949_v41 = vld [vmem:[#allocation5 + $0x850] sm:$0xff]  ;;  %v978_v61 = vld [vmem:[#allocation5 + $0x938] sm:$0xff] }
 0x305   : > { %8811 = vmatpush1.bf16.msra.mxu0 %v11526_v60  ;;  %9715 = vmatpush1.bf16.msra.mxu1 %v11528_v43  ;;  %v941_v60 = vld [vmem:[#allocation5 + $0x810] sm:$0xff] }
 0x306   : > { %8812 = vmatprep.subr.bf16.mxu0 %v11535_v14  ;;  %9716 = vmatprep.subr.bf16.mxu1 %v11537_v10  ;;  %v945_v43 = vld [vmem:[#allocation5 + $0x830] sm:$0xff]  ;;  %v942_v14 = vld [vmem:[#allocation5 + $0x818] sm:$0xff] }
 0x307   : > { %8769 = vmatprep.mubr.bf16.mxu0 %v14091_v13  ;;  %9673 = vmatprep.mubr.bf16.mxu1 %v14091_v13  ;;  %v11550_v13 = vcombine.low %v917_v27, %v921_v47  ;;  %v946_v10 = vld [vmem:[#allocation5 + $0x838] sm:$0xff]  ;;  %v11575_v29 = vcombine.high %v941_v60, %v945_v43 }
 0x308   : > { %v11577_v17 = vcombine.high %v942_v14, %v946_v10 }
 0x309   : > { %8813 = vmatpush1.bf16.msra.mxu0 %v11534_v52  ;;  %9717 = vmatpush1.bf16.msra.mxu1 %v11536_v4  ;;  %v953_v52 = vld [vmem:[#allocation5 + $0x870] sm:$0xff]  ;;  %v950_v4 = vld [vmem:[#allocation5 + $0x858] sm:$0xff] }
 0x30a   : > { %8814 = vmatprep.subr.bf16.mxu0 %v11543_v26  ;;  %9718 = vmatprep.subr.bf16.mxu1 %v11545_v39  ;;  %v954_v26 = vld [vmem:[#allocation5 + $0x878] sm:$0xff]  ;;  %v11574_v39 = vcombine.low %v941_v60, %v945_v43  ;;  %v11583_v27 = vcombine.high %v949_v41, %v953_v52  ;;  %v985_v60 = vld [vmem:[#allocation5 + $0x970] sm:$0xff] }
 0x30b   : > { %v11585_v47 = vcombine.high %v950_v4, %v954_v26  ;;  %v982_v43 = vld [vmem:[#allocation5 + $0x958] sm:$0xff] }
 0x30c   : > { %8770 = vmatmul.mubr.bf16.gmra.mrb[56].mxu0 %v14099_v31  ;;  %9674 = vmatmul.mubr.bf16.gmra.mrb[56].mxu1 %v14099_v31  ;;  %v11560_v31 = vcombine.low %v926_v20, %v930_v44  ;;  %v969_v20 = vld [vmem:[#allocation5 + $0x8f0] sm:$0xff]  ;;  %v966_v44 = vld [vmem:[#allocation5 + $0x8d8] sm:$0xff] }
 0x30d   : > { %8815 = vmatpush1.bf16.msra.mxu0 %v11542_v58  ;;  %9719 = vmatpush1.bf16.msra.mxu1 %v11544_v5  ;;  %v958_v58 = vld [vmem:[#allocation5 + $0x898] sm:$0xff] }
 0x30e   : > { %8816 = vmatprep.subr.bf16.mxu0 %v11551_v7  ;;  %9720 = vmatprep.subr.bf16.mxu1 %v11553_v19  ;;  %v962_v5 = vld [vmem:[#allocation5 + $0x8b8] sm:$0xff]  ;;  %v11584_v7 = vcombine.low %v950_v4, %v954_v26  ;;  %v11591_v19 = vcombine.high %v957_v36, %v961_v37 }
 0x30f   : > { %8779 = vmatprep.mubr.bf16.mxu0 %v14103_v40  ;;  %9683 = vmatprep.mubr.bf16.mxu1 %v14103_v40  ;;  %v11566_v40 = vcombine.low %v933_v55, %v937_v6  ;;  %v11593_v54 = vcombine.high %v958_v58, %v962_v5  ;;  %v973_v55 = vld [vmem:[#allocation5 + $0x910] sm:$0xff] }
 0x310   : > { %v977_v6 = vld [vmem:[#allocation5 + $0x930] sm:$0xff] }
 0x311   : > { %8817 = vmatpush1.bf16.msra.mxu0 %v11550_v13  ;;  %9721 = vmatpush1.bf16.msra.mxu1 %v11552_v45  ;;  %v970_v13 = vld [vmem:[#allocation5 + $0x8f8] sm:$0xff]  ;;  %v11590_v45 = vcombine.low %v957_v36, %v961_v37 }
 0x312   : > { %8818 = vmatprep.subr.bf16.mxu0 %v11559_v12  ;;  %9722 = vmatprep.subr.bf16.mxu1 %v11561_v28  ;;  %v11599_v12 = vcombine.high %v965_v53, %v969_v20  ;;  %v11601_v28 = vcombine.high %v966_v44, %v970_v13  ;;  %v1002_v36 = vld [vmem:[#allocation5 + $0x9f8] sm:$0xff] }
 0x314   : > { %8780 = vmatmul.mubr.bf16.gmra.mrb[60].mxu0 %v14111_v57  ;;  %9684 = vmatmul.mubr.bf16.gmra.mrb[60].mxu1 %v14111_v57  ;;  %v11576_v57 = vcombine.low %v942_v14, %v946_v10  ;;  %v986_v14 = vld [vmem:[#allocation5 + $0x978] sm:$0xff]  ;;  %v11606_v10 = vcombine.low %v973_v55, %v977_v6 }
 0x315   : > { %8819 = vmatpush1.bf16.msra.mxu0 %v11558_v11  ;;  %9723 = vmatpush1.bf16.msra.mxu1 %v11560_v31  ;;  %v11600_v11 = vcombine.low %v966_v44, %v970_v13  ;;  %v11607_v31 = vcombine.high %v973_v55, %v977_v6  ;;  %v11616_v4 = vcombine.low %v982_v43, %v986_v14  ;;  %v1013_v13 = vld [vmem:[#allocation5 + $0xa50] sm:$0xff] }
 0x316   : > { %8820 = vmatprep.subr.bf16.mxu0 %v11567_v62  ;;  %9724 = vmatprep.subr.bf16.mxu1 %v11569_v25  ;;  %v11609_v62 = vcombine.high %v974_v15, %v978_v61  ;;  %v981_v25 = vld [vmem:[#allocation5 + $0x950] sm:$0xff] }
 0x317   : > { %8822 = vmatprep.mubr.bf16.mxu0 %v14115_v3  ;;  %9726 = vmatprep.mubr.bf16.mxu1 %v14115_v3  ;;  %v11582_v3 = vcombine.low %v949_v41, %v953_v52  ;;  %v990_v41 = vld [vmem:[#allocation5 + $0x998] sm:$0xff] }
 0x318   : > { %v994_v52 = vld [vmem:[#allocation5 + $0x9b8] sm:$0xff] }
 0x319   : > { %8821 = vmatpush1.bf16.msra.mxu0 %v11566_v40  ;;  %9725 = vmatpush1.bf16.msra.mxu1 %v11568_v23  ;;  %v11615_v40 = vcombine.high %v981_v25, %v985_v60  ;;  %v11617_v23 = vcombine.high %v982_v43, %v986_v14  ;;  %v1033_v43 = vld [vmem:[#allocation5 + $0xaf0] sm:$0xff]  ;;  %v1030_v14 = vld [vmem:[#allocation5 + $0xad8] sm:$0xff] }
 0x31a   : > { %8903 = vmatprep.subr.bf16.mxu0 %v11575_v29  ;;  %9807 = vmatprep.subr.bf16.mxu1 %v11577_v17  ;;  %v989_v29 = vld [vmem:[#allocation5 + $0x990] sm:$0xff] }
 0x31b   : > { %v993_v17 = vld [vmem:[#allocation5 + $0x9b0] sm:$0xff] }
 0x31c   : > { %8823 = vmatmul.mubr.bf16.vlgmr.msra.gmra.mrb[32].mxu0 %v14123_v22  ;;  %9727 = vmatmul.mubr.bf16.vlgmr.msra.gmra.mrb[32].mxu1 %v14123_v22  ;;  %v11592_v22 = vcombine.low %v958_v58, %v962_v5  ;;  %v11623_v26 = vcombine.high %v989_v29, %v993_v17  ;;  %v11622_v37 = vcombine.low %v989_v29, %v993_v17  ;;  %v1037_v29 = vld [vmem:[#allocation5 + $0xb10] sm:$0xff] }
 0x31d   : > { %8904 = vmatpush1.bf16.msra.mxu0 %v11574_v39  ;;  %9808 = vmatpush1.bf16.msra.mxu1 %v11576_v57  ;;  %v11625_v39 = vcombine.high %v990_v41, %v994_v52  ;;  %v997_v57 = vld [vmem:[#allocation5 + $0x9d0] sm:$0xff] }
 0x31e   : > { %8905 = vmatprep.subr.bf16.mxu0 %v11583_v27  ;;  %9809 = vmatprep.subr.bf16.mxu1 %v11585_v47  ;;  %v1001_v27 = vld [vmem:[#allocation5 + $0x9f0] sm:$0xff]  ;;  %v998_v47 = vld [vmem:[#allocation5 + $0x9d8] sm:$0xff] }
 0x31f   : > { %8832 = vmatprep.mubr.bf16.mxu0 %v14127_v33  ;;  %9736 = vmatprep.mubr.bf16.mxu1 %v14127_v33  ;;  %v11598_v33 = vcombine.low %v965_v53, %v969_v20  ;;  %v11631_v58 = vcombine.high %v997_v57, %v1001_v27  ;;  %v11633_v5 = vcombine.high %v998_v47, %v1002_v36  ;;  %v1041_v17 = vld [vmem:[#allocation5 + $0xb30] sm:$0xff] }
 0x320   : > { %v11632_v53 = vcombine.low %v998_v47, %v1002_v36  ;;  %v1050_v47 = vld [vmem:[#allocation5 + $0xb78] sm:$0xff]  ;;  %v11670_v36 = vcombine.low %v1037_v29, %v1041_v17 }
 0x321   : > { %8906 = vmatpush1.bf16.msra.mxu0 %v11582_v3  ;;  %9810 = vmatpush1.bf16.msra.mxu1 %v11584_v7  ;;  %v1005_v3 = vld [vmem:[#allocation5 + $0xa10] sm:$0xff] }
 0x322   : > { %8907 = vmatprep.subr.bf16.mxu0 %v11591_v19  ;;  %9811 = vmatprep.subr.bf16.mxu1 %v11593_v54  ;;  %v1009_v7 = vld [vmem:[#allocation5 + $0xa30] sm:$0xff]  ;;  %v1006_v19 = vld [vmem:[#allocation5 + $0xa18] sm:$0xff] }
 0x323   : > { %v1010_v54 = vld [vmem:[#allocation5 + $0xa38] sm:$0xff]  ;;  %v11639_v20 = vcombine.high %v1005_v3, %v1009_v7 }
 0x324   : > { %8833 = vmatmul.mubr.bf16.gmra.mrb[36].mxu0 %v14135_v51  ;;  %9737 = vmatmul.mubr.bf16.gmra.mrb[36].mxu1 %v14135_v51  ;;  %v11608_v51 = vcombine.low %v974_v15, %v978_v61  ;;  %v11641_v44 = vcombine.high %v1006_v19, %v1010_v54  ;;  %v1021_v15 = vld [vmem:[#allocation5 + $0xa90] sm:$0xff] }
 0x325   : > { %8908 = vmatpush1.bf16.msra.mxu0 %v11590_v45  ;;  %9812 = vmatpush1.bf16.msra.mxu1 %v11592_v22  ;;  %v1017_v45 = vld [vmem:[#allocation5 + $0xa70] sm:$0xff]  ;;  %v1014_v22 = vld [vmem:[#allocation5 + $0xa58] sm:$0xff] }
 0x326   : > { %8909 = vmatprep.subr.bf16.mxu0 %v11599_v12  ;;  %9813 = vmatprep.subr.bf16.mxu1 %v11601_v28  ;;  %v1018_v12 = vld [vmem:[#allocation5 + $0xa78] sm:$0xff]  ;;  %v11638_v28 = vcombine.low %v1005_v3, %v1009_v7  ;;  %v11647_v55 = vcombine.high %v1013_v13, %v1017_v45  ;;  %v1025_v61 = vld [vmem:[#allocation5 + $0xab0] sm:$0xff] }
 0x327   : > { %8842 = vmatprep.mubr.bf16.mxu0 %v14139_v63  ;;  %9746 = vmatprep.mubr.bf16.mxu1 %v14139_v63  ;;  %v11614_v63 = vcombine.low %v981_v25, %v985_v60  ;;  %v11649_v6 = vcombine.high %v1014_v22, %v1018_v12  ;;  %v1029_v60 = vld [vmem:[#allocation5 + $0xad0] sm:$0xff]  ;;  %v1054_v3 = vld [vmem:[#allocation5 + $0xb98] sm:$0xff] }
 0x328   : > { %v1058_v7 = vld [vmem:[#allocation5 + $0xbb8] sm:$0xff] }
 0x329   : > { %8910 = vmatpush1.bf16.msra.mxu0 %v11598_v33  ;;  %9814 = vmatpush1.bf16.msra.mxu1 %v11600_v11  ;;  %v1022_v33 = vld [vmem:[#allocation5 + $0xa98] sm:$0xff] }
 0x32a   : > { %8911 = vmatprep.subr.bf16.mxu0 %v11607_v31  ;;  %9815 = vmatprep.subr.bf16.mxu1 %v11609_v62  ;;  %v1026_v11 = vld [vmem:[#allocation5 + $0xab8] sm:$0xff]  ;;  %v11648_v31 = vcombine.low %v1014_v22, %v1018_v12  ;;  %v11655_v62 = vcombine.high %v1021_v15, %v1025_v61 }
 0x32b   : > { %v11657_v25 = vcombine.high %v1022_v33, %v1026_v11 }
 0x32c   : > { %8843 = vmatmul.mubr.bf16.gmra.mrb[40].mxu0 %v14147_v18  ;;  %9747 = vmatmul.mubr.bf16.gmra.mrb[40].mxu1 %v14147_v18  ;;  %v11624_v18 = vcombine.low %v990_v41, %v994_v52  ;;  %v1038_v41 = vld [vmem:[#allocation5 + $0xb18] sm:$0xff] }
 0x32d   : > { %8912 = vmatpush1.bf16.msra.mxu0 %v11606_v10  ;;  %9816 = vmatpush1.bf16.msra.mxu1 %v11608_v51  ;;  %v1034_v10 = vld [vmem:[#allocation5 + $0xaf8] sm:$0xff]  ;;  %v11654_v51 = vcombine.low %v1021_v15, %v1025_v61  ;;  %v1709_v15 = vlaneseq }
 0x32e   : > { %8913 = vmatprep.subr.bf16.mxu0 %v11615_v40  ;;  %9817 = vmatprep.subr.bf16.mxu1 %v11617_v23  ;;  %v11663_v40 = vcombine.high %v1029_v60, %v1033_v43  ;;  %v11665_v23 = vcombine.high %v1030_v14, %v1034_v10  ;;  %v1042_v52 = vld [vmem:[#allocation5 + $0xb38] sm:$0xff] }
 0x32f   : > { %8852 = vmatprep.mubr.bf16.mxu0 %v14151_v30  ;;  %9756 = vmatprep.mubr.bf16.mxu1 %v14151_v30  ;;  %v11630_v30 = vcombine.low %v997_v57, %v1001_v27  ;;  %v1049_v57 = vld [vmem:[#allocation5 + $0xb70] sm:$0xff]  ;;  %v1046_v27 = vld [vmem:[#allocation5 + $0xb58] sm:$0xff] }
 0x331   : > { %8914 = vmatpush1.bf16.msra.mxu0 %v11614_v63  ;;  %9818 = vmatpush1.bf16.msra.mxu1 %v11616_v4  ;;  %v11664_v63 = vcombine.low %v1030_v14, %v1034_v10  ;;  %v11671_v4 = vcombine.high %v1037_v29, %v1041_v17  ;;  %v14865_v14 = vld [vmem:[#allocation5 + $0xcb0] sm:$0xff]  ;;  %v14867_v10 = vld [vmem:[#allocation5 + $0xc98] sm:$0xff] }
 0x332   : > { %8915 = vmatprep.subr.bf16.mxu0 %v11623_v26  ;;  %9819 = vmatprep.subr.bf16.mxu1 %v11625_v39  ;;  %v11673_v26 = vcombine.high %v1038_v41, %v1042_v52  ;;  %v1045_v39 = vld [vmem:[#allocation5 + $0xb50] sm:$0xff] }
 0x334   : > { %8853 = vmatmul.mubr.bf16.gmra.mrb[44].mxu0 %v14159_v50  ;;  %9757 = vmatmul.mubr.bf16.gmra.mrb[44].mxu1 %v14159_v50  ;;  %v11640_v50 = vcombine.low %v1006_v19, %v1010_v54  ;;  %v11680_v19 = vcombine.low %v1046_v27, %v1050_v47 }
 0x335   : > { %8916 = vmatpush1.bf16.msra.mxu0 %v11622_v37  ;;  %9820 = vmatpush1.bf16.msra.mxu1 %v11624_v18  ;;  %v11679_v37 = vcombine.high %v1045_v39, %v1049_v57  ;;  %v11681_v18 = vcombine.high %v1046_v27, %v1050_v47  ;;  %v14898_v27 = vld [vmem:[#allocation5 + $0xd38] sm:$0xff] }
 0x336   : > { %8917 = vmatprep.subr.bf16.mxu0 %v11631_v58  ;;  %9821 = vmatprep.subr.bf16.mxu1 %v11633_v5  ;;  %v1053_v58 = vld [vmem:[#allocation5 + $0xb90] sm:$0xff] }
 0x337   : > { %8862 = vmatprep.mubr.bf16.mxu0 %v14163_v0  ;;  %9766 = vmatprep.mubr.bf16.mxu1 %v14163_v0  ;;  %v11646_v0 = vcombine.low %v1013_v13, %v1017_v45  ;;  %v1057_v5 = vld [vmem:[#allocation5 + $0xbb0] sm:$0xff]  ;;  %v1066_v13 = vld [vmem:[#allocation5 + $0xbf8] sm:$0xff] }
 0x338   : > { %v11687_v54 = vcombine.high %v1053_v58, %v1057_v5  ;;  %v11686_v45 = vcombine.low %v1053_v58, %v1057_v5  ;;  %v14907_v5 = vld [vmem:[#allocation5 + $0xd50] sm:$0xff] }
 0x339   : > { %8918 = vmatpush1.bf16.msra.mxu0 %v11630_v30  ;;  %9822 = vmatpush1.bf16.msra.mxu1 %v11632_v53  ;;  %v11689_v30 = vcombine.high %v1054_v3, %v1058_v7  ;;  %v1061_v53 = vld [vmem:[#allocation5 + $0xbd0] sm:$0xff] }
 0x33a   : > { %8919 = vmatprep.subr.bf16.mxu0 %v11639_v20  ;;  %9823 = vmatprep.subr.bf16.mxu1 %v11641_v44  ;;  %v1065_v20 = vld [vmem:[#allocation5 + $0xbf0] sm:$0xff]  ;;  %v1062_v44 = vld [vmem:[#allocation5 + $0xbd8] sm:$0xff] }
 0x33b   : > { %v11695_v22 = vcombine.high %v1061_v53, %v1065_v20  ;;  %v11697_v12 = vcombine.high %v1062_v44, %v1066_v13  ;;  %v11696_v61 = vcombine.low %v1062_v44, %v1066_v13  ;;  %v14928_v13 = vld [vmem:[#allocation5 + $0xd90] sm:$0xff]  ;;  %v15076_v44 = vld [vmem:[#allocation5 + $0xf78] sm:$0xff] }
 0x33c   : > { %8863 = vmatmul.mubr.bf16.gmra.mrb[48].mxu0 %v14171_v21  ;;  %9767 = vmatmul.mubr.bf16.gmra.mrb[48].mxu1 %v14171_v21  ;;  %v11656_v21 = vcombine.low %v1022_v33, %v1026_v11  ;;  %16438 = vst [vmem:[#allocation105_spill] sm:$0xff] %v15076_v44  ;;  %v15140_v44 = vld [vmem:[#allocation5 + $0x1018] sm:$0xff] }
 0x33d   : > { %8920 = vmatpush1.bf16.msra.mxu0 %v11638_v28  ;;  %9824 = vmatpush1.bf16.msra.mxu1 %v11640_v50  ;;  %v1069_v28 = vld [vmem:[#allocation5 + $0xc10] sm:$0xff] }
 0x33e   : > { %8921 = vmatprep.subr.bf16.mxu0 %v11647_v55  ;;  %9825 = vmatprep.subr.bf16.mxu1 %v11649_v6  ;;  %v1073_v50 = vld [vmem:[#allocation5 + $0xc30] sm:$0xff]  ;;  %v1070_v55 = vld [vmem:[#allocation5 + $0xc18] sm:$0xff] }
 0x33f   : > { %8872 = vmatprep.mubr.bf16.mxu0 %v14175_v35  ;;  %9776 = vmatprep.mubr.bf16.mxu1 %v14175_v35  ;;  %v11662_v35 = vcombine.low %v1029_v60, %v1033_v43  ;;  %v1074_v6 = vld [vmem:[#allocation5 + $0xc38] sm:$0xff]  ;;  %v11703_v33 = vcombine.high %v1069_v28, %v1073_v50  ;;  %v11702_v60 = vcombine.low %v1069_v28, %v1073_v50  ;;  %v14863_v43 = vld [vmem:[#allocation5 + $0xc90] sm:$0xff] }
 0x340   : > { %v11705_v11 = vcombine.high %v1070_v55, %v1074_v6  ;;  %v15061_v28 = vld [vmem:[#allocation5 + $0xf70] sm:$0xff] }
 0x341   : > { %8922 = vmatpush1.bf16.msra.mxu0 %v11646_v0  ;;  %9826 = vmatpush1.bf16.msra.mxu1 %v11648_v31  ;;  %v14852_v0 = vld [vmem:[#allocation5 + $0xc50] sm:$0xff] }
 0x342   : > { %8923 = vmatprep.subr.bf16.mxu0 %v11655_v62  ;;  %9827 = vmatprep.subr.bf16.mxu1 %v11657_v25  ;;  %v14854_v31 = vld [vmem:[#allocation5 + $0xc70] sm:$0xff]  ;;  %v14857_v62 = vld [vmem:[#allocation5 + $0xc58] sm:$0xff] }
 0x343   : > { %v14859_v25 = vld [vmem:[#allocation5 + $0xc78] sm:$0xff]  ;;  %v11710_v29 = vcombine.low %v14852_v0, %v14854_v31 }
 0x344   : > { %8873 = vmatmul.mubr.bf16.gmra.mrb[52].mxu0 %v14183_v56  ;;  %9777 = vmatmul.mubr.bf16.gmra.mrb[52].mxu1 %v14183_v56  ;;  %v11672_v56 = vcombine.low %v1038_v41, %v1042_v52  ;;  %v11713_v17 = vcombine.high %v14857_v62, %v14859_v25  ;;  %v14881_v41 = vld [vmem:[#allocation5 + $0xcd8] sm:$0xff] }
 0x345   : > { %8924 = vmatpush1.bf16.msra.mxu0 %v11654_v51  ;;  %9828 = vmatpush1.bf16.msra.mxu1 %v11656_v21  ;;  %v11704_v51 = vcombine.low %v1070_v55, %v1074_v6  ;;  %v14871_v21 = vld [vmem:[#allocation5 + $0xcb8] sm:$0xff]  ;;  %v14945_v6 = vld [vmem:[#allocation5 + $0xdd0] sm:$0xff] }
 0x346   : > { %8925 = vmatprep.subr.bf16.mxu0 %v11663_v40  ;;  %9829 = vmatprep.subr.bf16.mxu1 %v11665_v23  ;;  %v14873_v40 = vld [vmem:[#allocation5 + $0xcd0] sm:$0xff]  ;;  %v14883_v52 = vld [vmem:[#allocation5 + $0xcf8] sm:$0xff] }
 0x347   : > { %8882 = vmatprep.mubr.bf16.mxu0 %v14187_v8  ;;  %9786 = vmatprep.mubr.bf16.mxu1 %v14187_v8  ;;  %v11678_v8 = vcombine.low %v1045_v39, %v1049_v57  ;;  %v14875_v23 = vld [vmem:[#allocation5 + $0xcf0] sm:$0xff]  ;;  %v14896_v57 = vld [vmem:[#allocation5 + $0xd18] sm:$0xff] }
 0x348   : > { %v14894_v39 = vld [vmem:[#allocation5 + $0xd30] sm:$0xff]  ;;  %v14943_v55 = vld [vmem:[#allocation5 + $0xdb8] sm:$0xff] }
 0x349   : > { %8926 = vmatpush1.bf16.msra.mxu0 %v11662_v35  ;;  %9830 = vmatpush1.bf16.msra.mxu1 %v11664_v63  ;;  %v14885_v35 = vld [vmem:[#allocation5 + $0xd10] sm:$0xff]  ;;  %v11712_v63 = vcombine.low %v14857_v62, %v14859_v25 }
 0x34a   : > { %8927 = vmatprep.subr.bf16.mxu0 %v11671_v4  ;;  %9831 = vmatprep.subr.bf16.mxu1 %v11673_v26  ;;  %v11718_v4 = vcombine.low %v14863_v43, %v14865_v14  ;;  %v11719_v26 = vcombine.high %v14863_v43, %v14865_v14  ;;  %v14983_v25 = vld [vmem:[#allocation5 + $0xe50] sm:$0xff]  ;;  %v15046_v14 = vld [vmem:[#allocation5 + $0xf18] sm:$0xff] }
 0x34b   : > { %v14985_v62 = vld [vmem:[#allocation5 + $0xe70] sm:$0xff] }
 0x34c   : > { %8883 = vmatmul.mubr.bf16.gmra.mrb[56].mxu0 %v14195_v32  ;;  %9787 = vmatmul.mubr.bf16.gmra.mrb[56].mxu1 %v14195_v32  ;;  %v11688_v32 = vcombine.low %v1054_v3, %v1058_v7  ;;  %v14909_v3 = vld [vmem:[#allocation5 + $0xd70] sm:$0xff]  ;;  %v11726_v7 = vcombine.low %v14873_v40, %v14875_v23 }
 0x34d   : > { %8928 = vmatpush1.bf16.msra.mxu0 %v11670_v36  ;;  %9832 = vmatpush1.bf16.msra.mxu1 %v11672_v56  ;;  %v11720_v36 = vcombine.low %v14867_v10, %v14871_v21  ;;  %v1707_v56 = vld [vmem:[#allocation7] sm:$0xff]  ;;  %v15044_v43 = vld [vmem:[#allocation5 + $0xf30] sm:$0xff] }
 0x34e   : > { %8929 = vmatprep.subr.bf16.mxu0 %v11679_v37  ;;  %9833 = vmatprep.subr.bf16.mxu1 %v11681_v18 }
 0x34f   : > { %8892 = vmatprep.mubr.bf16.mxu0 %v14199_v46  ;;  %9796 = vmatprep.mubr.bf16.mxu1 %v14199_v46  ;;  %v11694_v46 = vcombine.low %v1061_v53, %v1065_v20  ;;  %v11729_v20 = vcombine.high %v14881_v41, %v14883_v52  ;;  %v15078_v53 = vld [vmem:[#allocation5 + $0xf90] sm:$0xff] }
 0x351   : > { %8930 = vmatpush1.bf16.msra.mxu0 %v11678_v8  ;;  %9834 = vmatpush1.bf16.msra.mxu1 %v11680_v19  ;;  %v11727_v8 = vcombine.high %v14873_v40, %v14875_v23  ;;  %v10613_v19 = vld [vmem:[#allocation8] sm:$0xff]  ;;  %v16439_v40 = vcombine.low %v14881_v41, %v14883_v52  ;;  %v16440_v23 = vcombine.high %v14885_v35, %v14894_v39  ;;  %v15156_v52 = vld [vmem:[#allocation5 + $0x1050] sm:$0xff] }
 0x352   : > { %8931 = vmatprep.subr.bf16.mxu0 %v11687_v54  ;;  %9835 = vmatprep.subr.bf16.mxu1 %v11689_v30  ;;  %v14917_v54 = vld [vmem:[#allocation5 + $0xd58] sm:$0xff]  ;;  %v16443_v41 = vcombine.high %v14896_v57, %v14898_v27  ;;  %16453 = vst [vmem:[#allocation114_spill] sm:$0xff] %v15156_v52 }
 0x353   : > { %v14919_v30 = vld [vmem:[#allocation5 + $0xd78] sm:$0xff] }
 0x354   : > { %8893 = vmatmul.mubr.bf16.gmra.mrb[60].mxu0 %v14207_v9  ;;  %9797 = vmatmul.mubr.bf16.gmra.mrb[60].mxu1 %v14207_v9  ;;  %v14861_v9 = vshrl.u32 %v1709_v15, 7  ;;  %v14947_v15 = vld [vmem:[#allocation5 + $0xdf0] sm:$0xff] }
 0x355   : > { %8932 = vmatpush1.bf16.msra.mxu0 %v11686_v45  ;;  %9836 = vmatpush1.bf16.msra.mxu1 %v11688_v32  ;;  %v14930_v45 = vld [vmem:[#allocation5 + $0xdb0] sm:$0xff]  ;;  %v14932_v32 = vld [vmem:[#allocation5 + $0xd98] sm:$0xff] }
 0x356   : > { %8933 = vmatprep.subr.bf16.mxu0 %v11695_v22  ;;  %9837 = vmatprep.subr.bf16.mxu1 %v11697_v12  ;;  %16436 = vst [vmem:[#allocation103_spill] sm:$0xff] %v14861_v9  ;;  %v1711_v47 = vsub.s32 0, %v14861_v9  ;;  %v1719_v37 = vsub.s32 2, %v14861_v9  ;;  %v1715_v18 = vsub.s32 1, %v14861_v9  ;;  %v1723_v58 = vsub.s32 3, %v14861_v9  ;;  %v15002_v12 = vld [vmem:[#allocation5 + $0xeb0] sm:$0xff] }
 0x357   : > { %8935 = vmatprep.mubr.bf16.mxu0 %v14211_v24  ;;  %9839 = vmatprep.mubr.bf16.mxu1 %v14211_v24  ;;  %v11711_v24 = vcombine.high %v14852_v0, %v14854_v31  ;;  %v14959_v0 = vld [vmem:[#allocation5 + $0xdf8] sm:$0xff]  ;;  %v14961_v31 = vld [vmem:[#allocation5 + $0xe10] sm:$0xff] }
 0x358   : > { %v14941_v50 = vrot.slane %v1707_v56, %v1711_v47  ;;  %v15018_v22 = vld [vmem:[#allocation5 + $0xed0] sm:$0xff]  ;;  %v15096_v9 = vld [vmem:[#allocation5 + $0xfb8] sm:$0xff] }
 0x359   : > { %8934 = vmatpush1.bf16.msra.mxu0 %v11694_v46  ;;  %9838 = vmatpush1.bf16.msra.mxu1 %v11696_v61  ;;  %v14949_v46 = vrot.slane %v1707_v56, %v1719_v37  ;;  %v14953_v61 = vrot.slane %v1707_v56, %v1723_v58  ;;  %16442 = vst [vmem:[#allocation107_spill] sm:$0xff] %v15096_v9 }
 0x35a   : > { %9016 = vmatprep.subr.bf16.mxu0 %v11703_v33  ;;  %9920 = vmatprep.subr.bf16.mxu1 %v11705_v11  ;;  %v14957_v11 = vld [vmem:[#allocation5 + $0xdd8] sm:$0xff]  ;;  %v14990_v33 = vrot.slane %v10613_v19, %v1723_v58 }
 0x35b   : > { %v15033_v58 = vld [vmem:[#allocation5 + $0xef8] sm:$0xff] }
 0x35c   : > { %8936 = vmatmul.mubr.bf16.vlgmr.msra.gmra.mrb[32].mxu0 %v14219_v49  ;;  %9840 = vmatmul.mubr.bf16.vlgmr.msra.gmra.mrb[32].mxu1 %v14219_v49  ;;  %v11721_v49 = vcombine.high %v14867_v10, %v14871_v21  ;;  %v15074_v21 = vld [vmem:[#allocation5 + $0xf58] sm:$0xff]  ;;  %v15111_v10 = vld [vmem:[#allocation5 + $0xff0] sm:$0xff] }
 0x35d   : > { %9017 = vmatpush1.bf16.msra.mxu0 %v11702_v60  ;;  %9921 = vmatpush1.bf16.msra.mxu1 %v11704_v51  ;;  %v14969_v51 = vld [vmem:[#allocation5 + $0xe30] sm:$0xff]  ;;  %v14987_v60 = vld [vmem:[#allocation5 + $0xe58] sm:$0xff]  ;;  %16437 = vst [vmem:[#allocation104_spill] sm:$0xff] %v15074_v21  ;;  %16445 = vst [vmem:[#allocation109_spill] sm:$0xff] %v15111_v10 }
 0x35e   : > { %9018 = vmatprep.subr.bf16.mxu0 %v11711_v24  ;;  %9922 = vmatprep.subr.bf16.mxu1 %v11713_v17  ;;  %v14971_v24 = vld [vmem:[#allocation5 + $0xe18] sm:$0xff]  ;;  %v14975_v17 = vrot.slane %v10613_v19, %v1711_v47 }
 0x35f   : > { %8945 = vmatprep.mubr.bf16.mxu0 %v14223_v2  ;;  %9849 = vmatprep.mubr.bf16.mxu1 %v14223_v2  ;;  %v14951_v2 = vrot.slane %v1707_v56, %v1715_v18  ;;  %v15000_v56 = vld [vmem:[#allocation5 + $0xe90] sm:$0xff]  ;;  %v15014_v47 = vld [vmem:[#allocation5 + $0xe98] sm:$0xff] }
 0x360   : > { %v15142_v21 = vld [vmem:[#allocation5 + $0x1038] sm:$0xff] }
 0x361   : > { %9019 = vmatpush1.bf16.msra.mxu0 %v11710_v29  ;;  %9923 = vmatpush1.bf16.msra.mxu1 %v11712_v63  ;;  %v14973_v29 = vld [vmem:[#allocation5 + $0xe38] sm:$0xff]  ;;  %v14977_v63 = vrot.slane %v10613_v19, %v1719_v37  ;;  %16450 = vst [vmem:[#allocation113_spill] sm:$0xff] %v15142_v21 }
 0x362   : > { %9020 = vmatprep.subr.bf16.mxu0 %v11719_v26  ;;  %9924 = vmatprep.subr.bf16.mxu1 %v11721_v49  ;;  %v14979_v26 = vrot.slane %v10613_v19, %v1715_v18  ;;  %v14998_v49 = vld [vmem:[#allocation5 + $0xe78] sm:$0xff]  ;;  %v15059_v19 = vld [vmem:[#allocation5 + $0xf50] sm:$0xff] }
 0x363   : > { %v15016_v18 = vld [vmem:[#allocation5 + $0xeb8] sm:$0xff] }
 0x364   : > { %8946 = vmatmul.mubr.bf16.gmra.mrb[36].mxu0 %v14231_v34  ;;  %9850 = vmatmul.mubr.bf16.gmra.mrb[36].mxu1 %v14231_v34  ;;  %v15031_v37 = vld [vmem:[#allocation5 + $0xed8] sm:$0xff] }
 0x365   : > { %9021 = vmatpush1.bf16.msra.mxu0 %v11718_v4  ;;  %9925 = vmatpush1.bf16.msra.mxu1 %v11720_v36  ;;  %v15029_v4 = vld [vmem:[#allocation5 + $0xef0] sm:$0xff]  ;;  %v15057_v34 = vld [vmem:[#allocation5 + $0xf38] sm:$0xff] }
 0x366   : > { %9022 = vmatprep.subr.bf16.mxu0 %v11727_v8  ;;  %9926 = vmatprep.subr.bf16.mxu1 %v11729_v20  ;;  %v15042_v8 = vld [vmem:[#allocation5 + $0xf10] sm:$0xff]  ;;  %v15094_v20 = vld [vmem:[#allocation5 + $0xf98] sm:$0xff] }
 0x367   : > { %8955 = vmatprep.mubr.bf16.mxu0 %v14235_v48  ;;  %9859 = vmatprep.mubr.bf16.mxu1 %v14235_v48  ;;  %v15092_v48 = vld [vmem:[#allocation5 + $0xfb0] sm:$0xff]  ;;  %v15172_v36 = vld [vmem:[#allocation5 + $0x1078] sm:$0xff] }
 0x368   : > { %16441 = vst [vmem:[#allocation106_spill] sm:$0xff] %v15092_v48 }
 0x369   : > { %9023 = vmatpush1.bf16.msra.mxu0 %v11726_v7  ;;  %9927 = vmatpush1.bf16.msra.mxu1 %v16439_v40  ;;  %v15109_v7 = vld [vmem:[#allocation5 + $0xfd0] sm:$0xff]  ;;  %v15124_v40 = vld [vmem:[#allocation5 + $0xff8] sm:$0xff] }
 0x36a   : > { %9024 = vmatprep.subr.bf16.mxu0 %v16440_v23  ;;  %9928 = vmatprep.subr.bf16.mxu1 %v16443_v41  ;;  %16444 = vst [vmem:[#allocation108_spill] sm:$0xff] %v15109_v7  ;;  %16447 = vst [vmem:[#allocation111_spill] sm:$0xff] %v15124_v40  ;;  %v16449_v41 = vcombine.low %v14885_v35, %v14894_v39  ;;  %v16452_v35 = vcombine.high %v14907_v5, %v14909_v3  ;;  %v15158_v23 = vld [vmem:[#allocation5 + $0x1070] sm:$0xff] }
 0x36b   : > { %16454 = vst [vmem:[#allocation115_spill] sm:$0xff] %v15158_v23 }
 0x36c   : > { %8956 = vmatmul.mubr.bf16.gmra.mrb[40].mxu0 %v14243_v16  ;;  %9860 = vmatmul.mubr.bf16.gmra.mrb[40].mxu1 %v14243_v16  ;;  %v16451_v16 = vcombine.low %v14896_v57, %v14898_v27  ;;  %v16455_v57 = vcombine.high %v14917_v54, %v14919_v30 }
 0x36d   : > { %9025 = vmatpush1.bf16.msra.mxu0 %v16449_v41  ;;  %8965 = vmatprep.mubr.bf16.mxu0 %v14247_v38  ;;  %v15170_v41 = vld [vmem:[#allocation5 + $0x1058] sm:$0xff] }
 0x36e   : > { %9929 = vmatpush1.bf16.msra.mxu1 %v16451_v16  ;;  %9026 = vmatprep.subr.bf16.mxu0 %v16452_v35 }
 0x36f   : > { %v7694_v48 = vpop.f32.mrb[0].mxu0  ;;  %9930 = vmatprep.subr.bf16.mxu1 %v16455_v57  ;;  %v8598_v10 = vpop.f32.mrb[0].mxu1  ;;  %9869 = vmatprep.mubr.bf16.mxu1 %v14247_v38  ;;  %v16459_v57 = vcombine.high %v14932_v32, %v14943_v55 }
 0x370   : > { %v12361_v39 = vadd.f32 %v7694_v48, %v14941_v50  ;;  %v7696_v7 = vpop.f32.mrb[1].mxu0  ;;  %v12393_v35 = vadd.f32 %v8598_v10, %v14949_v46  ;;  %v8600_v42 = vpop.f32.mrb[1].mxu1  ;;  %v16456_v48 = vcombine.low %v14907_v5, %v14909_v3  ;;  %v16458_v5 = vcombine.high %v14928_v13, %v14930_v45 }
 0x371   : > { %v12362_v40 = vadd.f32 %v7696_v7, %v14951_v2  ;;  %v7698_v9 = vpop.f32.mrb[2].mxu0  ;;  %v12394_v1 = vadd.f32 %v8600_v42, %v14953_v61  ;;  %v8602_v10 = vpop.f32.mrb[2].mxu1  ;;  %v16457_v7 = vcombine.low %v14917_v54, %v14919_v30  ;;  %v15206_v54 = vld [vmem:[#allocation5 + $0x1090] sm:$0xff] }
 0x372   : > { %9027 = vmatpush1.bf16.msra.mxu0 %v16456_v48  ;;  %v10485_v27 = vmax.f32 %v12361_v39, 0.0  ;;  %v12363_v16 = vadd.f32 %v7698_v9, %v14941_v50  ;;  %v7700_v21 = vpop.f32.mrb[3].mxu0  ;;  %v10487_v48 = vmax.f32 %v12393_v35, 0.0  ;;  %v12395_v39 = vadd.f32 %v8602_v10, %v14949_v46  ;;  %v8604_v9 = vpop.f32.mrb[3].mxu1  ;;  %16460 = vst [vmem:[#allocation116_spill] sm:$0xff] %v15206_v54  ;;  %v15208_v30 = vld [vmem:[#allocation5 + $0x10b0] sm:$0xff] }
 0x373   : > { %9931 = vmatpush1.bf16.msra.mxu1 %v16457_v7  ;;  %9028 = vmatprep.subr.bf16.mxu0 %v16458_v5  ;;  %v10486_v38 = vmax.f32 %v12362_v40, 0.0  ;;  %v12364_v42 = vadd.f32 %v7700_v21, %v14951_v2  ;;  %16461 = vst [vmem:[#allocation117_spill] sm:$0xff] %v15208_v30  ;;  %v10488_v5 = vmax.f32 %v12394_v1, 0.0  ;;  %v12396_v35 = vadd.f32 %v8604_v9, %v14953_v61  ;;  %v16462_v40 = vld [vmem:[#allocation14_spill] sm:$0xff]  ;;  %v15222_v1 = vld [vmem:[#allocation5 + $0x10b8] sm:$0xff] }
 0x374   : > { %9932 = vmatprep.subr.bf16.mxu1 %v16459_v57  ;;  %v10655_v7 = vmul.f32 %v14975_v17, %v10485_v27  ;;  %v10493_v23 = vmax.f32 %v12363_v16, 0.0  ;;  %8966 = vmatmul.mubr.bf16.gmra.mrb[44].mxu0 %v16462_v40  ;;  %v10495_v21 = vmax.f32 %v12395_v39, 0.0  ;;  %v16463_v57 = vcombine.low %v14928_v13, %v14930_v45  ;;  %v15220_v27 = vld [vmem:[#allocation5 + $0x1098] sm:$0xff] }
 0x375   : > { %v10656_v10 = vmul.f32 %v14979_v26, %v10486_v38  ;;  %v10494_v3 = vmax.f32 %v12364_v42, 0.0  ;;  %9870 = vmatmul.mubr.bf16.gmra.mrb[44].mxu1 %v16462_v40  ;;  %v10496_v9 = vmax.f32 %v12396_v35, 0.0  ;;  %v16464_v38 = vcombine.low %v14932_v32, %v14943_v55  ;;  %v16467_v55 = vld [vmem:[#allocation15_spill] sm:$0xff] }
 0x376   : > { %9029 = vmatpush1.bf16.msra.mxu0 %v16463_v57  ;;  %v10663_v16 = vmul.f32 %v14975_v17, %v10493_v23  ;;  %v16465_v39 = vcombine.high %v14945_v6, %v14947_v15  ;;  %v10657_v42 = vmul.f32 %v14977_v63, %v10487_v48  ;;  %v16466_v32 = vcombine.high %v14957_v11, %v14959_v0 }
 0x377   : > { %9933 = vmatpush1.bf16.msra.mxu1 %v16464_v38  ;;  %v10783_v40 = vadd.f32 %v10656_v10, %v10655_v7  ;;  %v10664_v23 = vmul.f32 %v14979_v26, %v10494_v3  ;;  %v7704_v35 = vpop.f32.mrb[4].mxu0  ;;  %8975 = vmatprep.mubr.bf16.mxu0 %v16467_v55  ;;  %v10658_v57 = vmul.f32 %v14990_v33, %v10488_v5  ;;  %v8608_v13 = vpop.f32.mrb[4].mxu1 }
 0x378   : > { %9030 = vmatprep.subr.bf16.mxu0 %v16465_v39  ;;  %9934 = vmatprep.subr.bf16.mxu1 %v16466_v32  ;;  %v10665_v38 = vmul.f32 %v14977_v63, %v10495_v21  ;;  %v12365_v39 = vadd.f32 %v7704_v35, %v14941_v50  ;;  %v7706_v45 = vpop.f32.mrb[5].mxu0  ;;  %v12397_v10 = vadd.f32 %v8608_v13, %v14949_v46  ;;  %v8610_v52 = vpop.f32.mrb[5].mxu1 }
 0x379   : > { %9879 = vmatprep.mubr.bf16.mxu1 %v16467_v55  ;;  %v10784_v48 = vadd.f32 %v10783_v40, %v10657_v42  ;;  %v10792_v7 = vadd.f32 %v10664_v23, %v10663_v16  ;;  %v12366_v32 = vadd.f32 %v7706_v45, %v14951_v2  ;;  %v7708_v30 = vpop.f32.mrb[6].mxu0  ;;  %v16468_v5 = vcombine.low %v14945_v6, %v14947_v15  ;;  %v8612_v3 = vpop.f32.mrb[6].mxu1  ;;  %v15268_v23 = vld [vmem:[#allocation5 + $0x10f0] sm:$0xff] }
 0x37a   : > { %v10666_v21 = vmul.f32 %v14990_v33, %v10496_v9  ;;  %v10501_v35 = vmax.f32 %v12365_v39, 0.0  ;;  %v12398_v55 = vadd.f32 %v8610_v52, %v14953_v61  ;;  %v12367_v54 = vadd.f32 %v7708_v30, %v14941_v50  ;;  %v7710_v13 = vpop.f32.mrb[7].mxu0  ;;  %v8614_v40 = vpop.f32.mrb[7].mxu1  ;;  %v15266_v30 = vld [vmem:[#allocation5 + $0x10d0] sm:$0xff] }
 0x37b   : > { %9031 = vmatpush1.bf16.msra.mxu0 %v16468_v5  ;;  %v16469_v16 = vcombine.low %v14957_v11, %v14959_v0  ;;  %v16470_v45 = vcombine.high %v14961_v31, %v14969_v51  ;;  %v15261_v42 = vadd.f32 %v10784_v48, %v10658_v57  ;;  %v10793_v6 = vadd.f32 %v10792_v7, %v10665_v38  ;;  %v16472_v57 = vld [vmem:[#allocation16_spill] sm:$0xff] }
 0x37c   : > { %v10503_v15 = vmax.f32 %v12397_v10, 0.0  ;;  %v10502_v9 = vmax.f32 %v12366_v32, 0.0  ;;  %v16471_v52 = vcombine.high %v14971_v24, %v14973_v29  ;;  %v10671_v11 = vmul.f32 %v14975_v17, %v10501_v35  ;;  %8976 = vmatmul.mubr.bf16.gmra.mrb[48].mxu0 %v16472_v57  ;;  %v15280_v32 = vld [vmem:[#allocation5 + $0x10d8] sm:$0xff] }
 0x37d   : > { %9935 = vmatpush1.bf16.msra.mxu1 %v16469_v16  ;;  %9032 = vmatprep.subr.bf16.mxu0 %v16470_v45  ;;  %v10504_v0 = vmax.f32 %v12398_v55, 0.0  ;;  %v10509_v39 = vmax.f32 %v12367_v54, 0.0  ;;  %v12399_v5 = vadd.f32 %v8612_v3, %v14949_v46  ;;  %v15273_v38 = vadd.f32 %v10793_v6, %v10666_v21  ;;  %v15282_v35 = vld [vmem:[#allocation5 + $0x10f8] sm:$0xff] }
 0x37e   : > { %9936 = vmatprep.subr.bf16.mxu1 %v16471_v52  ;;  %v10672_v48 = vmul.f32 %v14979_v26, %v10502_v9  ;;  %v12368_v7 = vadd.f32 %v7710_v13, %v14951_v2  ;;  %9880 = vmatmul.mubr.bf16.gmra.mrb[48].mxu1 %v16472_v57  ;;  %v11849_v10 = vcombine.high %v15220_v27, %v15222_v1 }
 0x37f   : > { %v10511_v54 = vmax.f32 %v12399_v5, 0.0  ;;  %v12400_v3 = vadd.f32 %v8614_v40, %v14953_v61  ;;  %v16473_v21 = vcombine.low %v14961_v31, %v14969_v51  ;;  %v16474_v55 = vcombine.low %v14971_v24, %v14973_v29  ;;  %v7714_v52 = vpop.f32.mrb[8].mxu0  ;;  %v8618_v57 = vpop.f32.mrb[8].mxu1 }
 0x380   : > { %v11855_v13 = vcombine.high %v15266_v30, %v15268_v23  ;;  %v10673_v45 = vmul.f32 %v14977_v63, %v10503_v15  ;;  %v10801_v6 = vadd.f32 %v10672_v48, %v10671_v11  ;;  %v10679_v9 = vmul.f32 %v14975_v17, %v10509_v39  ;;  %v7716_v15 = vpop.f32.mrb[9].mxu0  ;;  %v16477_v11 = vld [vmem:[#allocation17_spill] sm:$0xff] }
 0x381   : > { %9033 = vmatpush1.bf16.msra.mxu0 %v16473_v21  ;;  %9937 = vmatpush1.bf16.msra.mxu1 %v16474_v55  ;;  %v10510_v40 = vmax.f32 %v12368_v7, 0.0  ;;  %v16475_v31 = vcombine.high %v14983_v25, %v14985_v62  ;;  %v16476_v51 = vcombine.high %v14987_v60, %v14998_v49  ;;  %v10674_v24 = vmul.f32 %v14990_v33, %v10504_v0  ;;  %v8620_v0 = vpop.f32.mrb[9].mxu1 }
 0x382   : > { %v10512_v29 = vmax.f32 %v12400_v3, 0.0  ;;  %v12369_v5 = vadd.f32 %v7714_v52, %v14941_v50  ;;  %8985 = vmatprep.mubr.bf16.mxu0 %v16477_v11  ;;  %9889 = vmatprep.mubr.bf16.mxu1 %v16477_v11  ;;  %v10802_v48 = vadd.f32 %v10801_v6, %v10673_v45  ;;  %v12401_v21 = vadd.f32 %v8618_v57, %v14949_v46  ;;  %v7718_v3 = vpop.f32.mrb[10].mxu0  ;;  %v8622_v11 = vpop.f32.mrb[10].mxu1 }
 0x383   : > { %9034 = vmatprep.subr.bf16.mxu0 %v16475_v31  ;;  %9938 = vmatprep.subr.bf16.mxu1 %v16476_v51  ;;  %v10680_v7 = vmul.f32 %v14979_v26, %v10510_v40  ;;  %v12370_v55 = vadd.f32 %v7716_v15, %v14951_v2  ;;  %v10681_v52 = vmul.f32 %v14977_v63, %v10511_v54  ;;  %v7720_v6 = vpop.f32.mrb[11].mxu0 }
 0x384   : > { %v10517_v31 = vmax.f32 %v12369_v5, 0.0  ;;  %v12402_v51 = vadd.f32 %v8620_v0, %v14953_v61  ;;  %v12371_v16 = vadd.f32 %v7718_v3, %v14941_v50  ;;  %v16478_v39 = vcombine.low %v14983_v25, %v14985_v62  ;;  %v8624_v5 = vpop.f32.mrb[11].mxu1 }
 0x385   : > { %v16479_v45 = vcombine.low %v14987_v60, %v14998_v49  ;;  %v15321_v40 = vadd.f32 %v10802_v48, %v10674_v24  ;;  %v10810_v57 = vadd.f32 %v10680_v7, %v10679_v9  ;;  %v10519_v15 = vmax.f32 %v12401_v21, 0.0  ;;  %v16482_v24 = vld [vmem:[#allocation18_spill] sm:$0xff] }
 0x386   : > { %9035 = vmatpush1.bf16.msra.mxu0 %v16478_v39  ;;  %v10518_v54 = vmax.f32 %v12370_v55, 0.0  ;;  %v16480_v0 = vcombine.high %v15000_v56, %v15002_v12  ;;  %v16481_v3 = vcombine.high %v15014_v47, %v15016_v18  ;;  %v10687_v62 = vmul.f32 %v14975_v17, %v10517_v31  ;;  %9890 = vmatmul.mubr.bf16.gmra.mrb[52].mxu1 %v16482_v24  ;;  %v15336_v21 = vld [vmem:[#allocation5 + $0x1110] sm:$0xff] }
 0x387   : > { %9939 = vmatpush1.bf16.msra.mxu1 %v16479_v45  ;;  %v10520_v25 = vmax.f32 %v12402_v51, 0.0  ;;  %v10525_v60 = vmax.f32 %v12371_v16, 0.0  ;;  %v12403_v49 = vadd.f32 %v8622_v11, %v14949_v46  ;;  %8986 = vmatmul.mubr.bf16.gmra.mrb[52].mxu0 %v16482_v24  ;;  %v10682_v9 = vmul.f32 %v14990_v33, %v10512_v29  ;;  %v15338_v55 = vld [vmem:[#allocation5 + $0x1130] sm:$0xff] }
 0x388   : > { %9036 = vmatprep.subr.bf16.mxu0 %v16480_v0  ;;  %9940 = vmatprep.subr.bf16.mxu1 %v16481_v3  ;;  %v10811_v39 = vadd.f32 %v10810_v57, %v10681_v52  ;;  %v10688_v48 = vmul.f32 %v14979_v26, %v10518_v54  ;;  %v12372_v7 = vadd.f32 %v7720_v6, %v14951_v2  ;;  %v7724_v54 = vpop.f32.mrb[12].mxu0  ;;  %v8628_v0 = vpop.f32.mrb[12].mxu1 }
 0x389   : > { %v10689_v31 = vmul.f32 %v14977_v63, %v10519_v15  ;;  %v10527_v16 = vmax.f32 %v12403_v49, 0.0  ;;  %v12404_v51 = vadd.f32 %v8624_v5, %v14953_v61  ;;  %v16483_v11 = vcombine.low %v15000_v56, %v15002_v12  ;;  %v7726_v3 = vpop.f32.mrb[13].mxu0 }
 0x38a   : > { %v16484_v29 = vcombine.low %v15014_v47, %v15016_v18  ;;  %v11857_v52 = vcombine.high %v15280_v32, %v15282_v35  ;;  %v15350_v45 = vadd.f32 %v10811_v39, %v10682_v9  ;;  %v10819_v6 = vadd.f32 %v10688_v48, %v10687_v62  ;;  %v16487_v62 = vld [vmem:[#allocation19_spill] sm:$0xff]  ;;  %v7728_v48 = vpop.f32.mrb[14].mxu0 }
 0x38b   : > { %9037 = vmatpush1.bf16.msra.mxu0 %v16483_v11  ;;  %v10695_v57 = vmul.f32 %v14975_v17, %v10525_v60  ;;  %v10526_v15 = vmax.f32 %v12372_v7, 0.0  ;;  %v16485_v5 = vcombine.high %v15018_v22, %v15029_v4  ;;  %v16486_v12 = vcombine.high %v15031_v37, %v15033_v58  ;;  %8995 = vmatprep.mubr.bf16.mxu0 %v16487_v62 }
 0x38c   : > { %9941 = vmatpush1.bf16.msra.mxu1 %v16484_v29  ;;  %v10690_v56 = vmul.f32 %v14990_v33, %v10520_v25  ;;  %v10528_v47 = vmax.f32 %v12404_v51, 0.0  ;;  %v12373_v18 = vadd.f32 %v7724_v54, %v14941_v50  ;;  %9899 = vmatprep.mubr.bf16.mxu1 %v16487_v62  ;;  %v10820_v49 = vadd.f32 %v10819_v6, %v10689_v31  ;;  %v8630_v25 = vpop.f32.mrb[13].mxu1  ;;  %v7730_v6 = vpop.f32.mrb[15].mxu0 }
 0x38d   : > { %9038 = vmatprep.subr.bf16.mxu0 %v16485_v5  ;;  %9942 = vmatprep.subr.bf16.mxu1 %v16486_v12  ;;  %v10696_v24 = vmul.f32 %v14979_v26, %v10526_v15  ;;  %v12405_v9 = vadd.f32 %v8628_v0, %v14949_v46  ;;  %v12374_v39 = vadd.f32 %v7726_v3, %v14951_v2  ;;  %v8632_v54 = vpop.f32.mrb[14].mxu1 }
 0x38e   : > { %v10697_v7 = vmul.f32 %v14977_v63, %v10527_v16  ;;  %v10533_v51 = vmax.f32 %v12373_v18, 0.0  ;;  %v12406_v11 = vadd.f32 %v8630_v25, %v14953_v61  ;;  %v12375_v29 = vadd.f32 %v7728_v48, %v14941_v50  ;;  %v8634_v18 = vpop.f32.mrb[15].mxu1  ;;  %v15394_v25 = vld [vmem:[#allocation5 + $0x1138] sm:$0xff] }
 0x38f   : > { %v16488_v5 = vcombine.low %v15018_v22, %v15029_v4  ;;  %v16489_v31 = vcombine.low %v15031_v37, %v15033_v58  ;;  %v15377_v15 = vadd.f32 %v10820_v49, %v10690_v56  ;;  %v10828_v12 = vadd.f32 %v10696_v24, %v10695_v57  ;;  %v16492_v56 = vld [vmem:[#allocation20_spill] sm:$0xff] }
 0x390   : > { %v10535_v0 = vmax.f32 %v12405_v9, 0.0  ;;  %v10534_v16 = vmax.f32 %v12374_v39, 0.0  ;;  %v16490_v3 = vcombine.high %v15042_v8, %v15044_v43  ;;  %v16491_v62 = vcombine.high %v15046_v14, %v15057_v34  ;;  %8996 = vmatmul.mubr.bf16.gmra.mrb[56].mxu0 %v16492_v56  ;;  %9900 = vmatmul.mubr.bf16.gmra.mrb[56].mxu1 %v16492_v56  ;;  %v15392_v39 = vld [vmem:[#allocation5 + $0x1118] sm:$0xff] }
 0x391   : > { %9039 = vmatpush1.bf16.msra.mxu0 %v16488_v5  ;;  %9943 = vmatpush1.bf16.msra.mxu1 %v16489_v31  ;;  %v10703_v22 = vmul.f32 %v14975_v17, %v10533_v51  ;;  %v10536_v4 = vmax.f32 %v12406_v11, 0.0  ;;  %v10541_v37 = vmax.f32 %v12375_v29, 0.0  ;;  %v12407_v58 = vadd.f32 %v8632_v54, %v14949_v46 }
 0x392   : > { %9040 = vmatprep.subr.bf16.mxu0 %v16490_v3  ;;  %9944 = vmatprep.subr.bf16.mxu1 %v16491_v62  ;;  %v10698_v57 = vmul.f32 %v14990_v33, %v10528_v47  ;;  %v10829_v49 = vadd.f32 %v10828_v12, %v10697_v7  ;;  %v10704_v24 = vmul.f32 %v14979_v26, %v10534_v16  ;;  %v7734_v12 = vpop.f32.mrb[16].mxu0  ;;  %v8638_v3 = vpop.f32.mrb[16].mxu1 }
 0x393   : > { %v12376_v9 = vadd.f32 %v7730_v6, %v14951_v2  ;;  %v10705_v48 = vmul.f32 %v14977_v63, %v10535_v0  ;;  %v10543_v51 = vmax.f32 %v12407_v58, 0.0  ;;  %v12408_v11 = vadd.f32 %v8634_v18, %v14953_v61  ;;  %v7736_v62 = vpop.f32.mrb[17].mxu0 }
 0x394   : > { %v16493_v29 = vcombine.low %v15042_v8, %v15044_v43  ;;  %v16494_v47 = vcombine.low %v15046_v14, %v15057_v34  ;;  %v15406_v54 = vadd.f32 %v10829_v49, %v10698_v57  ;;  %v10837_v5 = vadd.f32 %v10704_v24, %v10703_v22  ;;  %v16496_v43 = vld [vmem:[#allocation104_spill] sm:$0xff]  ;;  %v16497_v8 = vld [vmem:[#allocation105_spill] sm:$0xff]  ;;  %v7738_v24 = vpop.f32.mrb[18].mxu0 }
 0x395   : > { %v10711_v31 = vmul.f32 %v14975_v17, %v10541_v37  ;;  %v10542_v6 = vmax.f32 %v12376_v9, 0.0  ;;  %v16495_v0 = vcombine.high %v15059_v19, %v15061_v28  ;;  %v16498_v16 = vcombine.high %v16496_v43, %v16497_v8  ;;  %v16499_v22 = vld [vmem:[#allocation21_spill] sm:$0xff] }
 0x396   : > { %9041 = vmatpush1.bf16.msra.mxu0 %v16493_v29  ;;  %9945 = vmatpush1.bf16.msra.mxu1 %v16494_v47  ;;  %v10706_v34 = vmul.f32 %v14990_v33, %v10536_v4  ;;  %v10544_v14 = vmax.f32 %v12408_v11, 0.0  ;;  %v12377_v18 = vadd.f32 %v7734_v12, %v14941_v50  ;;  %v10838_v58 = vadd.f32 %v10837_v5, %v10705_v48  ;;  %v8640_v4 = vpop.f32.mrb[17].mxu1  ;;  %v7740_v5 = vpop.f32.mrb[19].mxu0 }
 0x397   : > { %9042 = vmatprep.subr.bf16.mxu0 %v16495_v0  ;;  %9946 = vmatprep.subr.bf16.mxu1 %v16498_v16  ;;  %v10712_v56 = vmul.f32 %v14979_v26, %v10542_v6  ;;  %v12409_v57 = vadd.f32 %v8638_v3, %v14949_v46  ;;  %v12378_v49 = vadd.f32 %v7736_v62, %v14951_v2  ;;  %v8642_v12 = vpop.f32.mrb[18].mxu1  ;;  %v16502_v62 = vld [vmem:[#allocation106_spill] sm:$0xff] }
 0x398   : > { %9005 = vmatprep.mubr.bf16.mxu0 %v16499_v22  ;;  %9909 = vmatprep.mubr.bf16.mxu1 %v16499_v22  ;;  %v10713_v9 = vmul.f32 %v14977_v63, %v10543_v51  ;;  %v10549_v11 = vmax.f32 %v12377_v18, 0.0  ;;  %v12410_v29 = vadd.f32 %v8640_v4, %v14953_v61  ;;  %v12379_v47 = vadd.f32 %v7738_v24, %v14941_v50  ;;  %v8644_v18 = vpop.f32.mrb[19].mxu1  ;;  %v16504_v4 = vld [vmem:[#allocation107_spill] sm:$0xff] }
 0x399   : > { %v16500_v0 = vcombine.low %v15059_v19, %v15061_v28  ;;  %v16501_v48 = vcombine.low %v16496_v43, %v16497_v8  ;;  %v15433_v6 = vadd.f32 %v10838_v58, %v10706_v34  ;;  %v10846_v16 = vadd.f32 %v10712_v56, %v10711_v31  ;;  %v16506_v34 = vld [vmem:[#allocation22_spill] sm:$0xff] }
 0x39a   : > { %v10551_v3 = vmax.f32 %v12409_v57, 0.0  ;;  %v10550_v51 = vmax.f32 %v12378_v49, 0.0  ;;  %v16503_v22 = vcombine.high %v15078_v53, %v16502_v62  ;;  %v16505_v24 = vcombine.high %v15094_v20, %v16504_v4  ;;  %9006 = vmatmul.mubr.bf16.gmra.mrb[60].mxu0 %v16506_v34  ;;  %9910 = vmatmul.mubr.bf16.gmra.mrb[60].mxu1 %v16506_v34  ;;  %v15448_v49 = vld [vmem:[#allocation5 + $0x1150] sm:$0xff] }
 0x39b   : > { %9043 = vmatpush1.bf16.msra.mxu0 %v16500_v0  ;;  %9947 = vmatpush1.bf16.msra.mxu1 %v16501_v48  ;;  %v10719_v28 = vmul.f32 %v14975_v17, %v10549_v11  ;;  %v10552_v19 = vmax.f32 %v12410_v29, 0.0  ;;  %v10557_v43 = vmax.f32 %v12379_v47, 0.0  ;;  %v12411_v8 = vadd.f32 %v8642_v12, %v14949_v46  ;;  %v15450_v0 = vld [vmem:[#allocation5 + $0x1170] sm:$0xff] }
 0x39c   : > { %9044 = vmatprep.subr.bf16.mxu0 %v16503_v22  ;;  %9948 = vmatprep.subr.bf16.mxu1 %v16505_v24  ;;  %v10714_v31 = vmul.f32 %v14990_v33, %v10544_v14  ;;  %v10847_v58 = vadd.f32 %v10846_v16, %v10713_v9  ;;  %v10720_v56 = vmul.f32 %v14979_v26, %v10550_v51  ;;  %v7744_v51 = vpop.f32.mrb[20].mxu0  ;;  %v16509_v22 = vld [vmem:[#allocation108_spill] sm:$0xff] }
 0x39d   : > { %v12380_v57 = vadd.f32 %v7740_v5, %v14951_v2  ;;  %v10721_v11 = vmul.f32 %v14977_v63, %v10551_v3  ;;  %v10559_v29 = vmax.f32 %v12411_v8, 0.0  ;;  %v12412_v47 = vadd.f32 %v8644_v18, %v14953_v61  ;;  %v16510_v18 = vld [vmem:[#allocation109_spill] sm:$0xff] }
 0x39e   : > { %v16507_v12 = vcombine.low %v15078_v53, %v16502_v62  ;;  %v16508_v14 = vcombine.low %v15094_v20, %v16504_v4  ;;  %v15462_v48 = vadd.f32 %v10847_v58, %v10714_v31  ;;  %v10855_v5 = vadd.f32 %v10720_v56, %v10719_v28  ;;  %v16512_v53 = vld [vmem:[#allocation110_spill] sm:$0xff]  ;;  %v16513_v62 = vld [vmem:[#allocation111_spill] sm:$0xff]  ;;  %v8648_v31 = vpop.f32.mrb[20].mxu1  ;;  %v7746_v58 = vpop.f32.mrb[21].mxu0 }
 0x39f   : > { %v10727_v16 = vmul.f32 %v14975_v17, %v10557_v43  ;;  %v10558_v3 = vmax.f32 %v12380_v57, 0.0  ;;  %v16511_v24 = vcombine.high %v16509_v22, %v16510_v18  ;;  %v16514_v8 = vcombine.high %v16512_v53, %v16513_v62  ;;  %v16515_v28 = vld [vmem:[#allocation23_spill] sm:$0xff] }
 0x3a0   : > { %9045 = vmatpush1.bf16.msra.mxu0 %v16507_v12  ;;  %9949 = vmatpush1.bf16.msra.mxu1 %v16508_v14  ;;  %v10722_v20 = vmul.f32 %v14990_v33, %v10552_v19  ;;  %v10560_v4 = vmax.f32 %v12412_v47, 0.0  ;;  %v12381_v34 = vadd.f32 %v7744_v51, %v14941_v50  ;;  %v10856_v56 = vadd.f32 %v10855_v5, %v10721_v11  ;;  %v8650_v19 = vpop.f32.mrb[21].mxu1  ;;  %v7748_v47 = vpop.f32.mrb[22].mxu0 }
 0x3a1   : > { %9046 = vmatprep.subr.bf16.mxu0 %v16511_v24  ;;  %9950 = vmatprep.subr.bf16.mxu1 %v16514_v8  ;;  %v10728_v57 = vmul.f32 %v14979_v26, %v10558_v3  ;;  %v12413_v12 = vadd.f32 %v8648_v31, %v14949_v46  ;;  %v12382_v14 = vadd.f32 %v7746_v58, %v14951_v2  ;;  %v7750_v5 = vpop.f32.mrb[23].mxu0 }
 0x3a2   : > { %9048 = vmatprep.mubr.bf16.mxu0 %v16515_v28  ;;  %9952 = vmatprep.mubr.bf16.mxu1 %v16515_v28  ;;  %v10729_v51 = vmul.f32 %v14977_v63, %v10559_v29  ;;  %v10565_v24 = vmax.f32 %v12381_v34, 0.0  ;;  %v12414_v8 = vadd.f32 %v8650_v19, %v14953_v61  ;;  %v12383_v37 = vadd.f32 %v7748_v47, %v14941_v50  ;;  %v8652_v28 = vpop.f32.mrb[22].mxu1  ;;  %v16518_v19 = vld [vmem:[#allocation112_spill] sm:$0xff]  ;;  %v16520_v47 = vld [vmem:[#allocation113_spill] sm:$0xff] }
 0x3a3   : > { %v16516_v43 = vcombine.low %v16509_v22, %v16510_v18  ;;  %v16517_v11 = vcombine.low %v16512_v53, %v16513_v62  ;;  %v15489_v3 = vadd.f32 %v10856_v56, %v10722_v20  ;;  %v10864_v31 = vadd.f32 %v10728_v57, %v10727_v16  ;;  %v8654_v34 = vpop.f32.mrb[23].mxu1  ;;  %v16522_v57 = vld [vmem:[#allocation24_spill] sm:$0xff] }
 0x3a4   : > { %v10567_v58 = vmax.f32 %v12413_v12, 0.0  ;;  %v10566_v29 = vmax.f32 %v12382_v14, 0.0  ;;  %v16519_v7 = vcombine.high %v15126_v59, %v16518_v19  ;;  %v16521_v9 = vcombine.high %v15140_v44, %v16520_v47  ;;  %v15505_v12 = vld [vmem:[#allocation5 + $0x1178] sm:$0xff] }
 0x3a5   : > { %9047 = vmatpush1.bf16.msra.mxu0 %v16516_v43  ;;  %9951 = vmatpush1.bf16.msra.mxu1 %v16517_v11  ;;  %v10735_v22 = vmul.f32 %v14975_v17, %v10565_v24  ;;  %v10568_v18 = vmax.f32 %v12414_v8, 0.0  ;;  %v10573_v53 = vmax.f32 %v12383_v37, 0.0  ;;  %v12415_v62 = vadd.f32 %v8652_v28, %v14949_v46 }
 0x3a6   : > { %9129 = vmatprep.subr.bf16.mxu0 %v16519_v7  ;;  %10033 = vmatprep.subr.bf16.mxu1 %v16521_v9  ;;  %v10730_v20 = vmul.f32 %v14990_v33, %v10560_v4  ;;  %v10865_v16 = vadd.f32 %v10864_v31, %v10729_v51  ;;  %v10736_v43 = vmul.f32 %v14979_v26, %v10566_v29  ;;  %v15503_v7 = vld [vmem:[#allocation5 + $0x1158] sm:$0xff]  ;;  %v7754_v31 = vpop.f32.mrb[24].mxu0 }
 0x3a7   : > { %v12384_v56 = vadd.f32 %v7750_v5, %v14951_v2  ;;  %v10737_v9 = vmul.f32 %v14977_v63, %v10567_v58  ;;  %v10575_v14 = vmax.f32 %v12415_v62, 0.0  ;;  %v12416_v37 = vadd.f32 %v8654_v34, %v14953_v61  ;;  %v16525_v58 = vld [vmem:[#allocation114_spill] sm:$0xff]  ;;  %v16526_v29 = vld [vmem:[#allocation115_spill] sm:$0xff] }
 0x3a8   : > { %9049 = vmatmul.mubr.bf16.vlgmr.msra.gmra.mrb[32].mxu0 %v16522_v57  ;;  %9953 = vmatmul.mubr.bf16.vlgmr.msra.gmra.mrb[32].mxu1 %v16522_v57  ;;  %v16523_v4 = vcombine.low %v15126_v59, %v16518_v19  ;;  %v15515_v24 = vadd.f32 %v10865_v16, %v10730_v20  ;;  %v10873_v8 = vadd.f32 %v10736_v43, %v10735_v22  ;;  %v8658_v20 = vpop.f32.mrb[24].mxu1  ;;  %v7756_v16 = vpop.f32.mrb[25].mxu0 }
 0x3a9   : > { %v10743_v28 = vmul.f32 %v14975_v17, %v10573_v53  ;;  %v10574_v11 = vmax.f32 %v12384_v56, 0.0  ;;  %v16524_v5 = vcombine.low %v15140_v44, %v16520_v47  ;;  %v16527_v34 = vcombine.high %v16525_v58, %v16526_v29  ;;  %v16529_v53 = vld [vmem:[#allocation25_spill] sm:$0xff]  ;;  %v8660_v57 = vpop.f32.mrb[25].mxu1 }
 0x3aa   : > { %9130 = vmatpush1.bf16.msra.mxu0 %v16523_v4  ;;  %v10738_v59 = vmul.f32 %v14990_v33, %v10568_v18  ;;  %v10576_v19 = vmax.f32 %v12416_v37, 0.0  ;;  %v12385_v62 = vadd.f32 %v7754_v31, %v14941_v50  ;;  %v16528_v22 = vcombine.high %v15170_v41, %v15172_v36  ;;  %9058 = vmatprep.mubr.bf16.mxu0 %v16529_v53  ;;  %v7758_v37 = vpop.f32.mrb[26].mxu0 }
 0x3ab   : > { %10034 = vmatpush1.bf16.msra.mxu1 %v16524_v5  ;;  %9131 = vmatprep.subr.bf16.mxu0 %v16527_v34  ;;  %v10874_v47 = vadd.f32 %v10873_v8, %v10737_v9  ;;  %v10744_v43 = vmul.f32 %v14979_v26, %v10574_v11  ;;  %v12417_v56 = vadd.f32 %v8658_v20, %v14949_v46  ;;  %v7760_v8 = vpop.f32.mrb[27].mxu0 }
 0x3ac   : > { %10035 = vmatprep.subr.bf16.mxu1 %v16528_v22  ;;  %v12386_v18 = vadd.f32 %v7756_v16, %v14951_v2  ;;  %9962 = vmatprep.mubr.bf16.mxu1 %v16529_v53  ;;  %v10745_v4 = vmul.f32 %v14977_v63, %v10575_v14  ;;  %v10581_v5 = vmax.f32 %v12385_v62, 0.0  ;;  %v12418_v31 = vadd.f32 %v8660_v57, %v14953_v61  ;;  %v8662_v22 = vpop.f32.mrb[26].mxu1  ;;  %v16532_v62 = vld [vmem:[#allocation116_spill] sm:$0xff]  ;;  %v16533_v57 = vld [vmem:[#allocation117_spill] sm:$0xff] }
 0x3ad   : > { %v12387_v34 = vadd.f32 %v7758_v37, %v14941_v50  ;;  %v16530_v9 = vcombine.low %v16525_v58, %v16526_v29  ;;  %v15542_v11 = vadd.f32 %v10874_v47, %v10738_v59  ;;  %v10882_v20 = vadd.f32 %v10744_v43, %v10743_v28  ;;  %v8664_v14 = vpop.f32.mrb[27].mxu1  ;;  %v16535_v47 = vld [vmem:[#allocation26_spill] sm:$0xff] }
 0x3ae   : > { %v10583_v16 = vmax.f32 %v12417_v56, 0.0  ;;  %v10582_v44 = vmax.f32 %v12386_v18, 0.0  ;;  %v16531_v53 = vcombine.low %v15170_v41, %v15172_v36  ;;  %v16534_v51 = vcombine.high %v16532_v62, %v16533_v57  ;;  %v15561_v43 = vld [vmem:[#allocation5 + $0x11b0] sm:$0xff] }
 0x3af   : > { %9132 = vmatpush1.bf16.msra.mxu0 %v16530_v9  ;;  %v10751_v37 = vmul.f32 %v14975_v17, %v10581_v5  ;;  %v10584_v60 = vmax.f32 %v12418_v31, 0.0  ;;  %v10589_v58 = vmax.f32 %v12387_v34, 0.0  ;;  %v12419_v29 = vadd.f32 %v8662_v22, %v14949_v46  ;;  %v7764_v9 = vpop.f32.mrb[28].mxu0 }
 0x3b0   : > { %10036 = vmatpush1.bf16.msra.mxu1 %v16531_v53  ;;  %9133 = vmatprep.subr.bf16.mxu0 %v16534_v51  ;;  %v10746_v28 = vmul.f32 %v14990_v33, %v10576_v19  ;;  %v10883_v59 = vadd.f32 %v10882_v20, %v10745_v4  ;;  %v10752_v36 = vmul.f32 %v14979_v26, %v10582_v44  ;;  %v15559_v51 = vld [vmem:[#allocation5 + $0x1190] sm:$0xff]  ;;  %v8668_v53 = vpop.f32.mrb[28].mxu1 }
 0x3b1   : > { %10037 = vmatprep.subr.bf16.mxu1 %v11849_v10  ;;  %v12388_v41 = vadd.f32 %v7760_v8, %v14951_v2  ;;  %9059 = vmatmul.mubr.bf16.gmra.mrb[36].mxu0 %v16535_v47  ;;  %v10753_v56 = vmul.f32 %v14977_v63, %v10583_v16  ;;  %v10591_v18 = vmax.f32 %v12419_v29, 0.0  ;;  %v12420_v5 = vadd.f32 %v8664_v14, %v14953_v61  ;;  %v7766_v14 = vpop.f32.mrb[29].mxu0 }
 0x3b2   : > { %9963 = vmatmul.mubr.bf16.gmra.mrb[36].mxu1 %v16535_v47  ;;  %v16536_v10 = vcombine.low %v16532_v62, %v16533_v57  ;;  %v11873_v19 = vcombine.high %v15503_v7, %v15505_v12  ;;  %v15571_v44 = vadd.f32 %v10883_v59, %v10746_v28  ;;  %v10891_v4 = vadd.f32 %v10752_v36, %v10751_v37  ;;  %v16538_v62 = vld [vmem:[#allocation27_spill] sm:$0xff]  ;;  %v8670_v37 = vpop.f32.mrb[29].mxu1 }
 0x3b3   : > { %v10759_v31 = vmul.f32 %v14975_v17, %v10589_v58  ;;  %v10590_v34 = vmax.f32 %v12388_v41, 0.0  ;;  %v16537_v22 = vcombine.low %v15220_v27, %v15222_v1  ;;  %v10754_v8 = vmul.f32 %v14990_v33, %v10584_v60  ;;  %9068 = vmatprep.mubr.bf16.mxu0 %v16538_v62  ;;  %v7768_v58 = vpop.f32.mrb[30].mxu0  ;;  %9972 = vmatprep.mubr.bf16.mxu1 %v16538_v62  ;;  %v8672_v36 = vpop.f32.mrb[30].mxu1  ;;  %v1250_v62 = vld [vmem:[#allocation5 + $0x11b8] sm:$0xff] }
 0x3b4   : > { %9134 = vmatpush1.bf16.msra.mxu0 %v16536_v10  ;;  %v10592_v20 = vmax.f32 %v12420_v5, 0.0  ;;  %v12389_v16 = vadd.f32 %v7764_v9, %v14941_v50  ;;  %v11879_v27 = vcombine.high %v15559_v51, %v15561_v43  ;;  %v10892_v1 = vadd.f32 %v10891_v4, %v10753_v56  ;;  %v7770_v47 = vpop.f32.mrb[31].mxu0 }
 0x3b5   : > { %10038 = vmatpush1.bf16.msra.mxu1 %v16537_v22  ;;  %9135 = vmatprep.subr.bf16.mxu0 %v11855_v13  ;;  %v10760_v57 = vmul.f32 %v14979_v26, %v10590_v34  ;;  %v12421_v13 = vadd.f32 %v8668_v53, %v14949_v46  ;;  %v12390_v60 = vadd.f32 %v7766_v14, %v14951_v2  ;;  %v16543_v53 = vld [vmem:[#allocation28_spill] sm:$0xff]  ;;  %v1246_v14 = vld [vmem:[#allocation5 + $0x1198] sm:$0xff] }
 0x3b6   : > { %10039 = vmatprep.subr.bf16.mxu1 %v11857_v52  ;;  %v10761_v29 = vmul.f32 %v14977_v63, %v10591_v18  ;;  %v10597_v28 = vmax.f32 %v12389_v16, 0.0  ;;  %v12422_v52 = vadd.f32 %v8670_v37, %v14953_v61  ;;  %v12391_v59 = vadd.f32 %v7768_v58, %v14941_v50  ;;  %v8674_v18 = vpop.f32.mrb[31].mxu1 }
 0x3b7   : > { %v16539_v41 = vcombine.low %v15266_v30, %v15268_v23  ;;  %v15598_v56 = vadd.f32 %v10892_v1, %v10754_v8  ;;  %v10900_v5 = vadd.f32 %v10760_v57, %v10759_v31  ;;  %v10599_v10 = vmax.f32 %v12421_v13, 0.0 }
 0x3b8   : > { %v10598_v4 = vmax.f32 %v12390_v60, 0.0  ;;  %v16540_v34 = vcombine.low %v15280_v32, %v15282_v35  ;;  %v16541_v22 = vcombine.high %v15336_v21, %v15338_v55  ;;  %v10762_v50 = vmul.f32 %v14990_v33, %v10592_v20 }
 0x3b9   : > { %9136 = vmatpush1.bf16.msra.mxu0 %v16539_v41  ;;  %v10767_v30 = vmul.f32 %v14975_v17, %v10597_v28  ;;  %v10605_v23 = vmax.f32 %v12391_v59, 0.0  ;;  %v12423_v9 = vadd.f32 %v8672_v36, %v14949_v46  ;;  %v16542_v31 = vcombine.high %v15392_v39, %v15394_v25  ;;  %v16547_v28 = vld [vmem:[#allocation29_spill] sm:$0xff] }
 0x3ba   : > { %10040 = vmatpush1.bf16.msra.mxu1 %v16540_v34  ;;  %9137 = vmatprep.subr.bf16.mxu0 %v16541_v22  ;;  %v10901_v8 = vadd.f32 %v10900_v5, %v10761_v29  ;;  %v10768_v32 = vmul.f32 %v14979_v26, %v10598_v4  ;;  %v10600_v35 = vmax.f32 %v12422_v52, 0.0  ;;  %v12392_v16 = vadd.f32 %v7770_v47, %v14951_v2  ;;  %v1257_v29 = vld [vmem:[#allocation5 + $0x11f0] sm:$0xff] }
 0x3bb   : > { %10041 = vmatprep.subr.bf16.mxu1 %v16542_v31  ;;  %9069 = vmatmul.mubr.bf16.gmra.mrb[40].mxu0 %v16543_v53  ;;  %v10769_v20 = vmul.f32 %v14977_v63, %v10599_v10  ;;  %v10775_v1 = vmul.f32 %v14975_v17, %v10605_v23  ;;  %v12424_v46 = vadd.f32 %v8674_v18, %v14953_v61  ;;  %v10607_v2 = vmax.f32 %v12423_v9, 0.0  ;;  %v1253_v61 = vld [vmem:[#allocation5 + $0x11d0] sm:$0xff]  ;;  %v1262_v23 = vld [vmem:[#allocation5 + $0x1218] sm:$0xff] }
 0x3bc   : > { %9973 = vmatmul.mubr.bf16.gmra.mrb[40].mxu1 %v16543_v53  ;;  %v16544_v57 = vcombine.low %v15336_v21, %v15338_v55  ;;  %v15622_v13 = vadd.f32 %v10901_v8, %v10762_v50  ;;  %v10909_v60 = vadd.f32 %v10768_v32, %v10767_v30  ;;  %v10606_v37 = vmax.f32 %v12392_v16, 0.0  ;;  %9078 = vmatprep.mubr.bf16.mxu0 %v16547_v28  ;;  %v1265_v18 = vld [vmem:[#allocation5 + $0x1230] sm:$0xff]  ;;  %v1270_v8 = vld [vmem:[#allocation5 + $0x1258] sm:$0xff] }
 0x3bd   : > { %v16545_v58 = vcombine.low %v15392_v39, %v15394_v25  ;;  %v16546_v17 = vcombine.high %v15448_v49, %v15450_v0  ;;  %v11881_v21 = vcombine.high %v1246_v14, %v1250_v62  ;;  %v10770_v55 = vmul.f32 %v14990_v33, %v10600_v35  ;;  %9982 = vmatprep.mubr.bf16.mxu1 %v16547_v28  ;;  %v1254_v39 = vld [vmem:[#allocation5 + $0x11d8] sm:$0xff]  ;;  %v16550_v30 = vld [vmem:[#allocation30_spill] sm:$0xff] }
 0x3be   : > { %9138 = vmatpush1.bf16.msra.mxu0 %v16544_v57  ;;  %v10910_v52 = vadd.f32 %v10909_v60, %v10769_v20  ;;  %v10776_v59 = vmul.f32 %v14979_v26, %v10606_v37  ;;  %v10608_v36 = vmax.f32 %v12424_v46, 0.0  ;;  %v1258_v25 = vld [vmem:[#allocation5 + $0x11f8] sm:$0xff]  ;;  %v16548_v41 = vcombine.low %v15448_v49, %v15450_v0  ;;  %v1261_v0 = vld [vmem:[#allocation5 + $0x1210] sm:$0xff] }
 0x3bf   : > { %10042 = vmatpush1.bf16.msra.mxu1 %v16545_v58  ;;  %9139 = vmatprep.subr.bf16.mxu0 %v16546_v17  ;;  %v11880_v47 = vcombine.low %v1246_v14, %v1250_v62  ;;  %v11887_v5 = vcombine.high %v1253_v61, %v1257_v29  ;;  %v10777_v4 = vmul.f32 %v14977_v63, %v10607_v2  ;;  %v1266_v63 = vld [vmem:[#allocation5 + $0x1238] sm:$0xff]  ;;  %v1273_v31 = vld [vmem:[#allocation5 + $0x1270] sm:$0xff]  ;;  %v16553_v58 = vld [vmem:[#allocation33_spill] sm:$0xff] }
 0x3c0   : > { %10043 = vmatprep.subr.bf16.mxu1 %v11873_v19  ;;  %v11878_v19 = vcombine.low %v15559_v51, %v15561_v43  ;;  %v15639_v10 = vadd.f32 %v10910_v52, %v10770_v55  ;;  %v10918_v34 = vadd.f32 %v10776_v59, %v10775_v1  ;;  %v16549_v26 = vcombine.low %v15503_v7, %v15505_v12  ;;  %v1274_v32 = vld [vmem:[#allocation5 + $0x1278] sm:$0xff]  ;;  %v1277_v62 = vld [vmem:[#allocation5 + $0x1290] sm:$0xff]  ;;  %v16552_v1 = vld [vmem:[#allocation32_spill] sm:$0xff] }
 0x3c1   : > { %v11889_v49 = vcombine.high %v1254_v39, %v1258_v25  ;;  %v10778_v22 = vmul.f32 %v14990_v33, %v10608_v36  ;;  %v11886_v7 = vcombine.low %v1253_v61, %v1257_v29  ;;  %v11888_v51 = vcombine.low %v1254_v39, %v1258_v25  ;;  %v1269_v33 = vld [vmem:[#allocation5 + $0x1250] sm:$0xff]  ;;  %v1278_v46 = vld [vmem:[#allocation5 + $0x1298] sm:$0xff] }
 0x3c2   : > { %9140 = vmatpush1.bf16.msra.mxu0 %v16548_v41  ;;  %v10919_v50 = vadd.f32 %v10918_v34, %v10777_v4  ;;  %v11895_v43 = vcombine.high %v1261_v0, %v1265_v18  ;;  %v11897_v9 = vcombine.high %v1262_v23, %v1266_v63  ;;  %v11894_v35 = vcombine.low %v1261_v0, %v1265_v18  ;;  %v1281_v20 = vld [vmem:[#allocation5 + $0x12b0] sm:$0xff]  ;;  %v1282_v57 = vld [vmem:[#allocation5 + $0x12b8] sm:$0xff] }
 0x3c3   : > { %10044 = vmatpush1.bf16.msra.mxu1 %v16549_v26  ;;  %9141 = vmatprep.subr.bf16.mxu0 %v11879_v27  ;;  %v16551_v27 = vld [vmem:[#allocation31_spill] sm:$0xff]  ;;  %v11896_v16 = vcombine.low %v1262_v23, %v1266_v63  ;;  %v11903_v53 = vcombine.high %v1269_v33, %v1273_v31  ;;  %v11905_v14 = vcombine.high %v1270_v8, %v1274_v32  ;;  %v1285_v61 = vld [vmem:[#allocation5 + $0x12d0] sm:$0xff] }
 0x3c4   : > { %10045 = vmatprep.subr.bf16.mxu1 %v11881_v21  ;;  %9079 = vmatmul.mubr.bf16.gmra.mrb[44].mxu0 %v16550_v30  ;;  %v15651_v12 = vadd.f32 %v10919_v50, %v10778_v22  ;;  %v11902_v60 = vcombine.low %v1269_v33, %v1273_v31  ;;  %v11904_v2 = vcombine.low %v1270_v8, %v1274_v32  ;;  %v1289_v29 = vld [vmem:[#allocation5 + $0x12f0] sm:$0xff]  ;;  %v1286_v28 = vld [vmem:[#allocation5 + $0x12d8] sm:$0xff] }
 0x3c5   : > { %9983 = vmatmul.mubr.bf16.gmra.mrb[44].mxu1 %v16550_v30  ;;  %9088 = vmatprep.mubr.bf16.mxu0 %v16551_v27  ;;  %v11911_v37 = vcombine.high %v1277_v62, %v1281_v20  ;;  %v11913_v17 = vcombine.high %v1278_v46, %v1282_v57  ;;  %v1290_v21 = vld [vmem:[#allocation5 + $0x12f8] sm:$0xff]  ;;  %v11910_v55 = vcombine.low %v1277_v62, %v1281_v20  ;;  %v1293_v39 = vld [vmem:[#allocation5 + $0x1310] sm:$0xff] }
 0x3c6   : > { %9142 = vmatpush1.bf16.msra.mxu0 %v11878_v19  ;;  %9992 = vmatprep.mubr.bf16.mxu1 %v16551_v27  ;;  %v11912_v52 = vcombine.low %v1278_v46, %v1282_v57  ;;  %v11919_v59 = vcombine.high %v1285_v61, %v1289_v29  ;;  %v11921_v36 = vcombine.high %v1286_v28, %v1290_v21  ;;  %v1297_v25 = vld [vmem:[#allocation5 + $0x1330] sm:$0xff]  ;;  %v1294_v19 = vld [vmem:[#allocation5 + $0x1318] sm:$0xff]  ;;  %v16556_v27 = vld [vmem:[#allocation36_spill] sm:$0xff] }
 0x3c7   : > { %10046 = vmatpush1.bf16.msra.mxu1 %v11880_v47  ;;  %9143 = vmatprep.subr.bf16.mxu0 %v11887_v5  ;;  %v16554_v41 = vld [vmem:[#allocation34_spill] sm:$0xff]  ;;  %v1298_v47 = vld [vmem:[#allocation5 + $0x1338] sm:$0xff]  ;;  %v11918_v5 = vcombine.low %v1285_v61, %v1289_v29  ;;  %v11920_v4 = vcombine.low %v1286_v28, %v1290_v21  ;;  %v11927_v34 = vcombine.high %v1293_v39, %v1297_v25 }
 0x3c8   : > { %10047 = vmatprep.subr.bf16.mxu1 %v11889_v49  ;;  %v16555_v26 = vld [vmem:[#allocation35_spill] sm:$0xff]  ;;  %v11929_v49 = vcombine.high %v1294_v19, %v1298_v47  ;;  %v1301_v0 = vld [vmem:[#allocation5 + $0x1350] sm:$0xff]  ;;  %v11926_v30 = vcombine.low %v1293_v39, %v1297_v25  ;;  %v11928_v23 = vcombine.low %v1294_v19, %v1298_v47 }
 0x3c9   : > { %v1305_v18 = vld [vmem:[#allocation5 + $0x1370] sm:$0xff]  ;;  %v1302_v22 = vld [vmem:[#allocation5 + $0x1358] sm:$0xff] }
 0x3ca   : > { %9144 = vmatpush1.bf16.msra.mxu0 %v11886_v7  ;;  %v1306_v50 = vld [vmem:[#allocation5 + $0x1378] sm:$0xff]  ;;  %v11935_v63 = vcombine.high %v1301_v0, %v1305_v18  ;;  %v11934_v31 = vcombine.low %v1301_v0, %v1305_v18 }
 0x3cb   : > { %10048 = vmatpush1.bf16.msra.mxu1 %v11888_v51  ;;  %9145 = vmatprep.subr.bf16.mxu0 %v11895_v43  ;;  %v11937_v7 = vcombine.high %v1302_v22, %v1306_v50  ;;  %v1309_v51 = vld [vmem:[#allocation5 + $0x1390] sm:$0xff]  ;;  %v1314_v33 = vld [vmem:[#allocation5 + $0x13b8] sm:$0xff]  ;;  %v11936_v8 = vcombine.low %v1302_v22, %v1306_v50 }
 0x3cc   : > { %10049 = vmatprep.subr.bf16.mxu1 %v11897_v9  ;;  %9089 = vmatmul.mubr.bf16.gmra.mrb[48].mxu0 %v16552_v1  ;;  %v1313_v43 = vld [vmem:[#allocation5 + $0x13b0] sm:$0xff]  ;;  %v1310_v9 = vld [vmem:[#allocation5 + $0x1398] sm:$0xff] }
 0x3cd   : > { %9993 = vmatmul.mubr.bf16.gmra.mrb[48].mxu1 %v16552_v1  ;;  %9098 = vmatprep.mubr.bf16.mxu0 %v16553_v58  ;;  %v11943_v32 = vcombine.high %v1309_v51, %v1313_v43  ;;  %v1318_v62 = vld [vmem:[#allocation5 + $0x13d8] sm:$0xff]  ;;  %v11942_v1 = vcombine.low %v1309_v51, %v1313_v43  ;;  %v11944_v46 = vcombine.low %v1310_v9, %v1314_v33 }
 0x3ce   : > { %9146 = vmatpush1.bf16.msra.mxu0 %v11894_v35  ;;  %10002 = vmatprep.mubr.bf16.mxu1 %v16553_v58  ;;  %v16557_v35 = vld [vmem:[#allocation37_spill] sm:$0xff]  ;;  %v1322_v20 = vld [vmem:[#allocation5 + $0x13f8] sm:$0xff]  ;;  %v16558_v58 = vld [vmem:[#allocation38_spill] sm:$0xff] }
 0x3cf   : > { %10050 = vmatpush1.bf16.msra.mxu1 %v11896_v16  ;;  %9147 = vmatprep.subr.bf16.mxu0 %v11903_v53  ;;  %v11945_v16 = vcombine.high %v1310_v9, %v1314_v33  ;;  %v1317_v53 = vld [vmem:[#allocation5 + $0x13d0] sm:$0xff]  ;;  %v1330_v61 = vld [vmem:[#allocation5 + $0x1438] sm:$0xff]  ;;  %v11952_v28 = vcombine.low %v1318_v62, %v1322_v20 }
 0x3d0   : > { %10051 = vmatprep.subr.bf16.mxu1 %v11905_v14  ;;  %v1321_v14 = vld [vmem:[#allocation5 + $0x13f0] sm:$0xff]  ;;  %v1334_v39 = vld [vmem:[#allocation5 + $0x1458] sm:$0xff] }
 0x3d1   : > { %v11951_v57 = vcombine.high %v1317_v53, %v1321_v14  ;;  %v11950_v29 = vcombine.low %v1317_v53, %v1321_v14  ;;  %v1338_v25 = vld [vmem:[#allocation5 + $0x1478] sm:$0xff] }
 0x3d2   : > { %9148 = vmatpush1.bf16.msra.mxu0 %v11902_v60  ;;  %v11953_v60 = vcombine.high %v1318_v62, %v1322_v20  ;;  %v1346_v0 = vld [vmem:[#allocation5 + $0x14b8] sm:$0xff]  ;;  %v11968_v22 = vcombine.low %v1334_v39, %v1338_v25 }
 0x3d3   : > { %10052 = vmatpush1.bf16.msra.mxu1 %v11904_v2  ;;  %9149 = vmatprep.subr.bf16.mxu0 %v11911_v37  ;;  %v1325_v2 = vld [vmem:[#allocation5 + $0x1410] sm:$0xff]  ;;  %v1350_v51 = vld [vmem:[#allocation5 + $0x14d8] sm:$0xff] }
 0x3d4   : > { %10053 = vmatprep.subr.bf16.mxu1 %v11913_v17  ;;  %9099 = vmatmul.mubr.bf16.gmra.mrb[52].mxu0 %v16554_v41  ;;  %v1329_v37 = vld [vmem:[#allocation5 + $0x1430] sm:$0xff]  ;;  %v1326_v17 = vld [vmem:[#allocation5 + $0x1418] sm:$0xff] }
 0x3d5   : > { %10003 = vmatmul.mubr.bf16.gmra.mrb[52].mxu1 %v16554_v41  ;;  %9108 = vmatprep.mubr.bf16.mxu0 %v16555_v26  ;;  %v11959_v21 = vcombine.high %v1325_v2, %v1329_v37  ;;  %v11958_v41 = vcombine.low %v1325_v2, %v1329_v37  ;;  %v11960_v19 = vcombine.low %v1326_v17, %v1330_v61  ;;  %v1354_v43 = vld [vmem:[#allocation5 + $0x14f8] sm:$0xff] }
 0x3d6   : > { %9150 = vmatpush1.bf16.msra.mxu0 %v11910_v55  ;;  %10012 = vmatprep.mubr.bf16.mxu1 %v16555_v26  ;;  %v16559_v55 = vld [vmem:[#allocation39_spill] sm:$0xff]  ;;  %v16560_v26 = vld [vmem:[#allocation40_spill] sm:$0xff]  ;;  %v11984_v62 = vcombine.low %v1350_v51, %v1354_v43 }
 0x3d7   : > { %10054 = vmatpush1.bf16.msra.mxu1 %v11912_v52  ;;  %9151 = vmatprep.subr.bf16.mxu0 %v11919_v59  ;;  %v11961_v52 = vcombine.high %v1326_v17, %v1330_v61  ;;  %v1333_v59 = vld [vmem:[#allocation5 + $0x1450] sm:$0xff]  ;;  %v1362_v53 = vld [vmem:[#allocation5 + $0x1538] sm:$0xff] }
 0x3d8   : > { %10055 = vmatprep.subr.bf16.mxu1 %v11921_v36  ;;  %v1337_v36 = vld [vmem:[#allocation5 + $0x1470] sm:$0xff]  ;;  %v1366_v2 = vld [vmem:[#allocation5 + $0x1558] sm:$0xff] }
 0x3d9   : > { %v11967_v47 = vcombine.high %v1333_v59, %v1337_v36  ;;  %v11966_v18 = vcombine.low %v1333_v59, %v1337_v36  ;;  %v1370_v37 = vld [vmem:[#allocation5 + $0x1578] sm:$0xff] }
 0x3da   : > { %9152 = vmatpush1.bf16.msra.mxu0 %v11918_v5  ;;  %v11969_v5 = vcombine.high %v1334_v39, %v1338_v25  ;;  %v1378_v59 = vld [vmem:[#allocation5 + $0x15b8] sm:$0xff]  ;;  %v12000_v39 = vcombine.low %v1366_v2, %v1370_v37 }
 0x3db   : > { %10056 = vmatpush1.bf16.msra.mxu1 %v11920_v4  ;;  %9153 = vmatprep.subr.bf16.mxu0 %v11927_v34  ;;  %v1341_v4 = vld [vmem:[#allocation5 + $0x1490] sm:$0xff] }
 0x3dc   : > { %10057 = vmatprep.subr.bf16.mxu1 %v11929_v49  ;;  %9109 = vmatmul.mubr.bf16.gmra.mrb[56].mxu0 %v16556_v27  ;;  %v1345_v34 = vld [vmem:[#allocation5 + $0x14b0] sm:$0xff]  ;;  %v1342_v49 = vld [vmem:[#allocation5 + $0x1498] sm:$0xff] }
 0x3dd   : > { %10013 = vmatmul.mubr.bf16.gmra.mrb[56].mxu1 %v16556_v27  ;;  %9118 = vmatprep.mubr.bf16.mxu0 %v16557_v35  ;;  %v11975_v50 = vcombine.high %v1341_v4, %v1345_v34  ;;  %v11974_v27 = vcombine.low %v1341_v4, %v1345_v34  ;;  %v11976_v9 = vcombine.low %v1342_v49, %v1346_v0  ;;  %v1382_v4 = vld [vmem:[#allocation5 + $0x15d8] sm:$0xff] }
 0x3de   : > { %9154 = vmatpush1.bf16.msra.mxu0 %v11926_v30  ;;  %10022 = vmatprep.mubr.bf16.mxu1 %v16557_v35  ;;  %v16561_v30 = vld [vmem:[#allocation41_spill] sm:$0xff]  ;;  %v16562_v35 = vld [vmem:[#allocation42_spill] sm:$0xff]  ;;  %v1386_v34 = vld [vmem:[#allocation5 + $0x15f8] sm:$0xff] }
 0x3df   : > { %10058 = vmatpush1.bf16.msra.mxu1 %v11928_v23  ;;  %9155 = vmatprep.subr.bf16.mxu0 %v11935_v63  ;;  %v11977_v23 = vcombine.high %v1342_v49, %v1346_v0  ;;  %v1349_v63 = vld [vmem:[#allocation5 + $0x14d0] sm:$0xff] }
 0x3e0   : > { %10059 = vmatprep.subr.bf16.mxu1 %v11937_v7  ;;  %v1353_v7 = vld [vmem:[#allocation5 + $0x14f0] sm:$0xff] }
 0x3e1   : > { %v11983_v33 = vcombine.high %v1349_v63, %v1353_v7  ;;  %v11982_v14 = vcombine.low %v1349_v63, %v1353_v7  ;;  %v1394_v63 = vld [vmem:[#allocation5 + $0x1638] sm:$0xff] }
 0x3e2   : > { %9156 = vmatpush1.bf16.msra.mxu0 %v11934_v31  ;;  %v11985_v31 = vcombine.high %v1350_v51, %v1354_v43  ;;  %v12016_v51 = vcombine.low %v1382_v4, %v1386_v34 }
 0x3e3   : > { %10060 = vmatpush1.bf16.msra.mxu1 %v11936_v8  ;;  %9157 = vmatprep.subr.bf16.mxu0 %v11943_v32  ;;  %v1357_v8 = vld [vmem:[#allocation5 + $0x1510] sm:$0xff] }
 0x3e4   : > { %10061 = vmatprep.subr.bf16.mxu1 %v11945_v16  ;;  %9119 = vmatmul.mubr.bf16.gmra.mrb[60].mxu0 %v16558_v58  ;;  %v1361_v32 = vld [vmem:[#allocation5 + $0x1530] sm:$0xff]  ;;  %v1358_v16 = vld [vmem:[#allocation5 + $0x1518] sm:$0xff] }
 0x3e5   : > { %10023 = vmatmul.mubr.bf16.gmra.mrb[60].mxu1 %v16558_v58  ;;  %9161 = vmatprep.mubr.bf16.mxu0 %v16559_v55  ;;  %v11991_v20 = vcombine.high %v1357_v8, %v1361_v32  ;;  %v11990_v58 = vcombine.low %v1357_v8, %v1361_v32  ;;  %v11992_v17 = vcombine.low %v1358_v16, %v1362_v53  ;;  %v1398_v8 = vld [vmem:[#allocation5 + $0x1658] sm:$0xff] }
 0x3e6   : > { %9158 = vmatpush1.bf16.msra.mxu0 %v11942_v1  ;;  %10065 = vmatprep.mubr.bf16.mxu1 %v16559_v55  ;;  %v16563_v1 = vld [vmem:[#allocation43_spill] sm:$0xff]  ;;  %v16564_v55 = vld [vmem:[#allocation44_spill] sm:$0xff] }
 0x3e7   : > { %10062 = vmatpush1.bf16.msra.mxu1 %v11944_v46  ;;  %9159 = vmatprep.subr.bf16.mxu0 %v11951_v57  ;;  %v11993_v46 = vcombine.high %v1358_v16, %v1362_v53  ;;  %v1365_v57 = vld [vmem:[#allocation5 + $0x1550] sm:$0xff]  ;;  %v1402_v32 = vld [vmem:[#allocation5 + $0x1678] sm:$0xff] }
 0x3e8   : > { %10063 = vmatprep.subr.bf16.mxu1 %v11953_v60  ;;  %v1369_v60 = vld [vmem:[#allocation5 + $0x1570] sm:$0xff] }
 0x3e9   : > { %v11999_v61 = vcombine.high %v1365_v57, %v1369_v60  ;;  %v11998_v36 = vcombine.low %v1365_v57, %v1369_v60  ;;  %v1410_v57 = vld [vmem:[#allocation5 + $0x16b8] sm:$0xff] }
 0x3ea   : > { %9160 = vmatpush1.bf16.msra.mxu0 %v11950_v29  ;;  %v12001_v29 = vcombine.high %v1366_v2, %v1370_v37  ;;  %v12032_v2 = vcombine.low %v1398_v8, %v1402_v32 }
 0x3eb   : > { %10064 = vmatpush1.bf16.msra.mxu1 %v11952_v28  ;;  %9242 = vmatprep.subr.bf16.mxu0 %v11959_v21  ;;  %v1373_v28 = vld [vmem:[#allocation5 + $0x1590] sm:$0xff] }
 0x3ec   : > { %10146 = vmatprep.subr.bf16.mxu1 %v11961_v52  ;;  %v1377_v21 = vld [vmem:[#allocation5 + $0x15b0] sm:$0xff]  ;;  %v1374_v52 = vld [vmem:[#allocation5 + $0x1598] sm:$0xff] }
 0x3ed   : > { %9162 = vmatmul.mubr.bf16.vlgmr.msra.gmra.mrb[32].mxu0 %v16560_v26  ;;  %v12007_v25 = vcombine.high %v1373_v28, %v1377_v21  ;;  %v12008_v49 = vcombine.low %v1374_v52, %v1378_v59 }
 0x3ee   : > { %10066 = vmatmul.mubr.bf16.vlgmr.msra.gmra.mrb[32].mxu1 %v16560_v26  ;;  %9243 = vmatpush1.bf16.msra.mxu0 %v11958_v41  ;;  %v16565_v41 = vld [vmem:[#allocation45_spill] sm:$0xff]  ;;  %v12006_v26 = vcombine.low %v1373_v28, %v1377_v21  ;;  %v1414_v28 = vld [vmem:[#allocation5 + $0x16d8] sm:$0xff] }
 0x3ef   : > { %10147 = vmatpush1.bf16.msra.mxu1 %v11960_v19  ;;  %9244 = vmatprep.subr.bf16.mxu0 %v11967_v47  ;;  %v12009_v19 = vcombine.high %v1374_v52, %v1378_v59  ;;  %v1381_v47 = vld [vmem:[#allocation5 + $0x15d0] sm:$0xff]  ;;  %v1418_v21 = vld [vmem:[#allocation5 + $0x16f8] sm:$0xff] }
 0x3f0   : > { %10148 = vmatprep.subr.bf16.mxu1 %v11969_v5  ;;  %9171 = vmatprep.mubr.bf16.mxu0 %v16561_v30  ;;  %v1385_v5 = vld [vmem:[#allocation5 + $0x15f0] sm:$0xff] }
 0x3f1   : > { %10075 = vmatprep.mubr.bf16.mxu1 %v16561_v30  ;;  %v12015_v0 = vcombine.high %v1381_v47, %v1385_v5  ;;  %v16566_v30 = vld [vmem:[#allocation46_spill] sm:$0xff]  ;;  %v12014_v7 = vcombine.low %v1381_v47, %v1385_v5  ;;  %v1426_v47 = vld [vmem:[#allocation5 + $0x1738] sm:$0xff] }
 0x3f2   : > { %9245 = vmatpush1.bf16.msra.mxu0 %v11966_v18  ;;  %v12017_v18 = vcombine.high %v1382_v4, %v1386_v34  ;;  %v12048_v4 = vcombine.low %v1414_v28, %v1418_v21 }
 0x3f3   : > { %10149 = vmatpush1.bf16.msra.mxu1 %v11968_v22  ;;  %9246 = vmatprep.subr.bf16.mxu0 %v11975_v50  ;;  %v1389_v22 = vld [vmem:[#allocation5 + $0x1610] sm:$0xff] }
 0x3f4   : > { %10150 = vmatprep.subr.bf16.mxu1 %v11977_v23  ;;  %v1393_v50 = vld [vmem:[#allocation5 + $0x1630] sm:$0xff]  ;;  %v1390_v23 = vld [vmem:[#allocation5 + $0x1618] sm:$0xff] }
 0x3f5   : > { %9172 = vmatmul.mubr.bf16.gmra.mrb[36].mxu0 %v16562_v35  ;;  %v12023_v43 = vcombine.high %v1389_v22, %v1393_v50  ;;  %v12024_v16 = vcombine.low %v1390_v23, %v1394_v63 }
 0x3f6   : > { %10076 = vmatmul.mubr.bf16.gmra.mrb[36].mxu1 %v16562_v35  ;;  %9247 = vmatpush1.bf16.msra.mxu0 %v11974_v27  ;;  %v16567_v27 = vld [vmem:[#allocation47_spill] sm:$0xff]  ;;  %v12022_v35 = vcombine.low %v1389_v22, %v1393_v50 }
 0x3f7   : > { %10151 = vmatpush1.bf16.msra.mxu1 %v11976_v9  ;;  %9248 = vmatprep.subr.bf16.mxu0 %v11983_v33  ;;  %v12025_v9 = vcombine.high %v1390_v23, %v1394_v63  ;;  %v1397_v33 = vld [vmem:[#allocation5 + $0x1650] sm:$0xff]  ;;  %v1430_v22 = vld [vmem:[#allocation5 + $0x1758] sm:$0xff] }
 0x3f8   : > { %10152 = vmatprep.subr.bf16.mxu1 %v11985_v31  ;;  %9181 = vmatprep.mubr.bf16.mxu0 %v16563_v1  ;;  %v1401_v31 = vld [vmem:[#allocation5 + $0x1670] sm:$0xff]  ;;  %v1434_v50 = vld [vmem:[#allocation5 + $0x1778] sm:$0xff] }
 0x3f9   : > { %10085 = vmatprep.mubr.bf16.mxu1 %v16563_v1  ;;  %v12031_v53 = vcombine.high %v1397_v33, %v1401_v31  ;;  %v16568_v1 = vld [vmem:[#allocation48_spill] sm:$0xff]  ;;  %v12030_v60 = vcombine.low %v1397_v33, %v1401_v31  ;;  %v1442_v33 = vld [vmem:[#allocation5 + $0x17b8] sm:$0xff] }
 0x3fa   : > { %9249 = vmatpush1.bf16.msra.mxu0 %v11982_v14  ;;  %v12033_v14 = vcombine.high %v1398_v8, %v1402_v32  ;;  %v12064_v8 = vcombine.low %v1430_v22, %v1434_v50 }
 0x3fb   : > { %10153 = vmatpush1.bf16.msra.mxu1 %v11984_v62  ;;  %9250 = vmatprep.subr.bf16.mxu0 %v11991_v20  ;;  %v1405_v62 = vld [vmem:[#allocation5 + $0x1690] sm:$0xff] }
 0x3fc   : > { %10154 = vmatprep.subr.bf16.mxu1 %v11993_v46  ;;  %v1409_v20 = vld [vmem:[#allocation5 + $0x16b0] sm:$0xff]  ;;  %v1406_v46 = vld [vmem:[#allocation5 + $0x1698] sm:$0xff] }
 0x3fd   : > { %9182 = vmatmul.mubr.bf16.gmra.mrb[40].mxu0 %v16564_v55  ;;  %v12039_v37 = vcombine.high %v1405_v62, %v1409_v20  ;;  %v12040_v52 = vcombine.low %v1406_v46, %v1410_v57 }
 0x3fe   : > { %10086 = vmatmul.mubr.bf16.gmra.mrb[40].mxu1 %v16564_v55  ;;  %9251 = vmatpush1.bf16.msra.mxu0 %v11990_v58  ;;  %v16569_v58 = vld [vmem:[#allocation49_spill] sm:$0xff]  ;;  %v12038_v55 = vcombine.low %v1405_v62, %v1409_v20  ;;  %v1446_v62 = vld [vmem:[#allocation5 + $0x17d8] sm:$0xff] }
 0x3ff   : > { %10155 = vmatpush1.bf16.msra.mxu1 %v11992_v17  ;;  %9252 = vmatprep.subr.bf16.mxu0 %v11999_v61  ;;  %v12041_v17 = vcombine.high %v1406_v46, %v1410_v57  ;;  %v1413_v61 = vld [vmem:[#allocation5 + $0x16d0] sm:$0xff]  ;;  %v1450_v20 = vld [vmem:[#allocation5 + $0x17f8] sm:$0xff] }
 0x400   : > { %10156 = vmatprep.subr.bf16.mxu1 %v12001_v29  ;;  %9191 = vmatprep.mubr.bf16.mxu0 %v16565_v41  ;;  %v1417_v29 = vld [vmem:[#allocation5 + $0x16f0] sm:$0xff] }
 0x401   : > { %10095 = vmatprep.mubr.bf16.mxu1 %v16565_v41  ;;  %v12047_v59 = vcombine.high %v1413_v61, %v1417_v29  ;;  %v16570_v41 = vld [vmem:[#allocation50_spill] sm:$0xff]  ;;  %v12046_v5 = vcombine.low %v1413_v61, %v1417_v29  ;;  %v1458_v61 = vld [vmem:[#allocation5 + $0x1838] sm:$0xff] }
 0x402   : > { %9253 = vmatpush1.bf16.msra.mxu0 %v11998_v36  ;;  %v12049_v36 = vcombine.high %v1414_v28, %v1418_v21  ;;  %v12080_v28 = vcombine.low %v1446_v62, %v1450_v20 }
 0x403   : > { %10157 = vmatpush1.bf16.msra.mxu1 %v12000_v39  ;;  %9254 = vmatprep.subr.bf16.mxu0 %v12007_v25  ;;  %v1421_v39 = vld [vmem:[#allocation5 + $0x1710] sm:$0xff] }
 0x404   : > { %10158 = vmatprep.subr.bf16.mxu1 %v12009_v19  ;;  %v1425_v25 = vld [vmem:[#allocation5 + $0x1730] sm:$0xff]  ;;  %v1422_v19 = vld [vmem:[#allocation5 + $0x1718] sm:$0xff] }
 0x405   : > { %9192 = vmatmul.mubr.bf16.gmra.mrb[44].mxu0 %v16566_v30  ;;  %v12055_v34 = vcombine.high %v1421_v39, %v1425_v25  ;;  %v12056_v23 = vcombine.low %v1422_v19, %v1426_v47 }
 0x406   : > { %10096 = vmatmul.mubr.bf16.gmra.mrb[44].mxu1 %v16566_v30  ;;  %9255 = vmatpush1.bf16.msra.mxu0 %v12006_v26  ;;  %v16571_v26 = vld [vmem:[#allocation51_spill] sm:$0xff]  ;;  %v12054_v30 = vcombine.low %v1421_v39, %v1425_v25 }
 0x407   : > { %10159 = vmatpush1.bf16.msra.mxu1 %v12008_v49  ;;  %9256 = vmatprep.subr.bf16.mxu0 %v12015_v0  ;;  %v12057_v49 = vcombine.high %v1422_v19, %v1426_v47  ;;  %v1429_v0 = vld [vmem:[#allocation5 + $0x1750] sm:$0xff]  ;;  %v1462_v39 = vld [vmem:[#allocation5 + $0x1858] sm:$0xff] }
 0x408   : > { %10160 = vmatprep.subr.bf16.mxu1 %v12017_v18  ;;  %9201 = vmatprep.mubr.bf16.mxu0 %v16567_v27  ;;  %v1433_v18 = vld [vmem:[#allocation5 + $0x1770] sm:$0xff]  ;;  %v1466_v25 = vld [vmem:[#allocation5 + $0x1878] sm:$0xff] }
 0x409   : > { %10105 = vmatprep.mubr.bf16.mxu1 %v16567_v27  ;;  %v12063_v63 = vcombine.high %v1429_v0, %v1433_v18  ;;  %v16572_v27 = vld [vmem:[#allocation52_spill] sm:$0xff]  ;;  %v12062_v31 = vcombine.low %v1429_v0, %v1433_v18  ;;  %v1474_v0 = vld [vmem:[#allocation5 + $0x18b8] sm:$0xff] }
 0x40a   : > { %9257 = vmatpush1.bf16.msra.mxu0 %v12014_v7  ;;  %v12065_v7 = vcombine.high %v1430_v22, %v1434_v50  ;;  %v12096_v22 = vcombine.low %v1462_v39, %v1466_v25 }
 0x40b   : > { %10161 = vmatpush1.bf16.msra.mxu1 %v12016_v51  ;;  %9258 = vmatprep.subr.bf16.mxu0 %v12023_v43  ;;  %v1437_v51 = vld [vmem:[#allocation5 + $0x1790] sm:$0xff] }
 0x40c   : > { %10162 = vmatprep.subr.bf16.mxu1 %v12025_v9  ;;  %v1441_v43 = vld [vmem:[#allocation5 + $0x17b0] sm:$0xff]  ;;  %v1438_v9 = vld [vmem:[#allocation5 + $0x1798] sm:$0xff] }
 0x40d   : > { %9202 = vmatmul.mubr.bf16.gmra.mrb[48].mxu0 %v16568_v1  ;;  %v12071_v32 = vcombine.high %v1437_v51, %v1441_v43  ;;  %v12072_v46 = vcombine.low %v1438_v9, %v1442_v33 }
 0x40e   : > { %10106 = vmatmul.mubr.bf16.gmra.mrb[48].mxu1 %v16568_v1  ;;  %9259 = vmatpush1.bf16.msra.mxu0 %v12022_v35  ;;  %v16573_v35 = vld [vmem:[#allocation53_spill] sm:$0xff]  ;;  %v12070_v1 = vcombine.low %v1437_v51, %v1441_v43  ;;  %v1478_v51 = vld [vmem:[#allocation5 + $0x18d8] sm:$0xff] }
 0x40f   : > { %10163 = vmatpush1.bf16.msra.mxu1 %v12024_v16  ;;  %9260 = vmatprep.subr.bf16.mxu0 %v12031_v53  ;;  %v12073_v16 = vcombine.high %v1438_v9, %v1442_v33  ;;  %v1445_v53 = vld [vmem:[#allocation5 + $0x17d0] sm:$0xff]  ;;  %v1482_v43 = vld [vmem:[#allocation5 + $0x18f8] sm:$0xff] }
 0x410   : > { %10164 = vmatprep.subr.bf16.mxu1 %v12033_v14  ;;  %9211 = vmatprep.mubr.bf16.mxu0 %v16569_v58  ;;  %v1449_v14 = vld [vmem:[#allocation5 + $0x17f0] sm:$0xff] }
 0x411   : > { %10115 = vmatprep.mubr.bf16.mxu1 %v16569_v58  ;;  %v12079_v57 = vcombine.high %v1445_v53, %v1449_v14  ;;  %v16574_v58 = vld [vmem:[#allocation54_spill] sm:$0xff]  ;;  %v12078_v29 = vcombine.low %v1445_v53, %v1449_v14  ;;  %v1490_v53 = vld [vmem:[#allocation5 + $0x1938] sm:$0xff] }
 0x412   : > { %9261 = vmatpush1.bf16.msra.mxu0 %v12030_v60  ;;  %v12081_v60 = vcombine.high %v1446_v62, %v1450_v20  ;;  %v12112_v62 = vcombine.low %v1478_v51, %v1482_v43 }
 0x413   : > { %10165 = vmatpush1.bf16.msra.mxu1 %v12032_v2  ;;  %9262 = vmatprep.subr.bf16.mxu0 %v12039_v37  ;;  %v1453_v2 = vld [vmem:[#allocation5 + $0x1810] sm:$0xff] }
 0x414   : > { %10166 = vmatprep.subr.bf16.mxu1 %v12041_v17  ;;  %v1457_v37 = vld [vmem:[#allocation5 + $0x1830] sm:$0xff]  ;;  %v1454_v17 = vld [vmem:[#allocation5 + $0x1818] sm:$0xff] }
 0x415   : > { %9212 = vmatmul.mubr.bf16.gmra.mrb[52].mxu0 %v16570_v41  ;;  %v12087_v21 = vcombine.high %v1453_v2, %v1457_v37  ;;  %v12088_v19 = vcombine.low %v1454_v17, %v1458_v61 }
 0x416   : > { %10116 = vmatmul.mubr.bf16.gmra.mrb[52].mxu1 %v16570_v41  ;;  %9263 = vmatpush1.bf16.msra.mxu0 %v12038_v55  ;;  %v16575_v55 = vld [vmem:[#allocation55_spill] sm:$0xff]  ;;  %v12086_v41 = vcombine.low %v1453_v2, %v1457_v37 }
 0x417   : > { %10167 = vmatpush1.bf16.msra.mxu1 %v12040_v52  ;;  %9264 = vmatprep.subr.bf16.mxu0 %v12047_v59  ;;  %v12089_v52 = vcombine.high %v1454_v17, %v1458_v61  ;;  %v1461_v59 = vld [vmem:[#allocation5 + $0x1850] sm:$0xff]  ;;  %v1494_v2 = vld [vmem:[#allocation5 + $0x1958] sm:$0xff] }
 0x418   : > { %10168 = vmatprep.subr.bf16.mxu1 %v12049_v36  ;;  %9221 = vmatprep.mubr.bf16.mxu0 %v16571_v26  ;;  %v1465_v36 = vld [vmem:[#allocation5 + $0x1870] sm:$0xff]  ;;  %v1498_v37 = vld [vmem:[#allocation5 + $0x1978] sm:$0xff] }
 0x419   : > { %10125 = vmatprep.mubr.bf16.mxu1 %v16571_v26  ;;  %v12095_v47 = vcombine.high %v1461_v59, %v1465_v36  ;;  %v16576_v26 = vld [vmem:[#allocation56_spill] sm:$0xff]  ;;  %v12094_v18 = vcombine.low %v1461_v59, %v1465_v36  ;;  %v1506_v59 = vld [vmem:[#allocation5 + $0x19b8] sm:$0xff] }
 0x41a   : > { %9265 = vmatpush1.bf16.msra.mxu0 %v12046_v5  ;;  %v12097_v5 = vcombine.high %v1462_v39, %v1466_v25  ;;  %v12128_v39 = vcombine.low %v1494_v2, %v1498_v37 }
 0x41b   : > { %10169 = vmatpush1.bf16.msra.mxu1 %v12048_v4  ;;  %9266 = vmatprep.subr.bf16.mxu0 %v12055_v34  ;;  %v1469_v4 = vld [vmem:[#allocation5 + $0x1890] sm:$0xff] }
 0x41c   : > { %10170 = vmatprep.subr.bf16.mxu1 %v12057_v49  ;;  %v1473_v34 = vld [vmem:[#allocation5 + $0x18b0] sm:$0xff]  ;;  %v1470_v49 = vld [vmem:[#allocation5 + $0x1898] sm:$0xff] }
 0x41d   : > { %9222 = vmatmul.mubr.bf16.gmra.mrb[56].mxu0 %v16572_v27  ;;  %v12103_v50 = vcombine.high %v1469_v4, %v1473_v34  ;;  %v12104_v9 = vcombine.low %v1470_v49, %v1474_v0 }
 0x41e   : > { %10126 = vmatmul.mubr.bf16.gmra.mrb[56].mxu1 %v16572_v27  ;;  %9267 = vmatpush1.bf16.msra.mxu0 %v12054_v30  ;;  %v16577_v30 = vld [vmem:[#allocation57_spill] sm:$0xff]  ;;  %v12102_v27 = vcombine.low %v1469_v4, %v1473_v34  ;;  %v1510_v4 = vld [vmem:[#allocation5 + $0x19d8] sm:$0xff] }
 0x41f   : > { %10171 = vmatpush1.bf16.msra.mxu1 %v12056_v23  ;;  %9268 = vmatprep.subr.bf16.mxu0 %v12063_v63  ;;  %v12105_v23 = vcombine.high %v1470_v49, %v1474_v0  ;;  %v1477_v63 = vld [vmem:[#allocation5 + $0x18d0] sm:$0xff]  ;;  %v1514_v34 = vld [vmem:[#allocation5 + $0x19f8] sm:$0xff] }
 0x420   : > { %10172 = vmatprep.subr.bf16.mxu1 %v12065_v7  ;;  %9231 = vmatprep.mubr.bf16.mxu0 %v16573_v35  ;;  %v1481_v7 = vld [vmem:[#allocation5 + $0x18f0] sm:$0xff] }
 0x421   : > { %10135 = vmatprep.mubr.bf16.mxu1 %v16573_v35  ;;  %v12111_v33 = vcombine.high %v1477_v63, %v1481_v7  ;;  %v16578_v35 = vld [vmem:[#allocation58_spill] sm:$0xff]  ;;  %v12110_v14 = vcombine.low %v1477_v63, %v1481_v7  ;;  %v1522_v63 = vld [vmem:[#allocation5 + $0x1a38] sm:$0xff] }
 0x422   : > { %9269 = vmatpush1.bf16.msra.mxu0 %v12062_v31  ;;  %v12113_v31 = vcombine.high %v1478_v51, %v1482_v43  ;;  %v12144_v51 = vcombine.low %v1510_v4, %v1514_v34 }
 0x423   : > { %10173 = vmatpush1.bf16.msra.mxu1 %v12064_v8  ;;  %9270 = vmatprep.subr.bf16.mxu0 %v12071_v32  ;;  %v1485_v8 = vld [vmem:[#allocation5 + $0x1910] sm:$0xff] }
 0x424   : > { %10174 = vmatprep.subr.bf16.mxu1 %v12073_v16  ;;  %v1489_v32 = vld [vmem:[#allocation5 + $0x1930] sm:$0xff]  ;;  %v1486_v16 = vld [vmem:[#allocation5 + $0x1918] sm:$0xff] }
 0x425   : > { %9232 = vmatmul.mubr.bf16.gmra.mrb[60].mxu0 %v16574_v58  ;;  %v12119_v20 = vcombine.high %v1485_v8, %v1489_v32  ;;  %v12120_v17 = vcombine.low %v1486_v16, %v1490_v53 }
 0x426   : > { %10136 = vmatmul.mubr.bf16.gmra.mrb[60].mxu1 %v16574_v58  ;;  %9271 = vmatpush1.bf16.msra.mxu0 %v12070_v1  ;;  %v16579_v1 = vld [vmem:[#allocation59_spill] sm:$0xff]  ;;  %v12118_v58 = vcombine.low %v1485_v8, %v1489_v32 }
 0x427   : > { %10175 = vmatpush1.bf16.msra.mxu1 %v12072_v46  ;;  %9272 = vmatprep.subr.bf16.mxu0 %v12079_v57  ;;  %v12121_v46 = vcombine.high %v1486_v16, %v1490_v53  ;;  %v1493_v57 = vld [vmem:[#allocation5 + $0x1950] sm:$0xff]  ;;  %v1526_v8 = vld [vmem:[#allocation5 + $0x1a58] sm:$0xff] }
 0x428   : > { %10176 = vmatprep.subr.bf16.mxu1 %v12081_v60  ;;  %9274 = vmatprep.mubr.bf16.mxu0 %v16575_v55  ;;  %v1497_v60 = vld [vmem:[#allocation5 + $0x1970] sm:$0xff]  ;;  %v1530_v32 = vld [vmem:[#allocation5 + $0x1a78] sm:$0xff] }
 0x429   : > { %10178 = vmatprep.mubr.bf16.mxu1 %v16575_v55  ;;  %v12127_v61 = vcombine.high %v1493_v57, %v1497_v60  ;;  %v16580_v55 = vld [vmem:[#allocation60_spill] sm:$0xff]  ;;  %v12126_v36 = vcombine.low %v1493_v57, %v1497_v60  ;;  %v1538_v57 = vld [vmem:[#allocation5 + $0x1ab8] sm:$0xff] }
 0x42a   : > { %9273 = vmatpush1.bf16.msra.mxu0 %v12078_v29  ;;  %v12129_v29 = vcombine.high %v1494_v2, %v1498_v37  ;;  %v12160_v2 = vcombine.low %v1526_v8, %v1530_v32 }
 0x42b   : > { %10177 = vmatpush1.bf16.msra.mxu1 %v12080_v28  ;;  %9355 = vmatprep.subr.bf16.mxu0 %v12087_v21  ;;  %v1501_v28 = vld [vmem:[#allocation5 + $0x1990] sm:$0xff] }
 0x42c   : > { %10259 = vmatprep.subr.bf16.mxu1 %v12089_v52  ;;  %v1505_v21 = vld [vmem:[#allocation5 + $0x19b0] sm:$0xff]  ;;  %v1502_v52 = vld [vmem:[#allocation5 + $0x1998] sm:$0xff] }
 0x42d   : > { %9275 = vmatmul.mubr.bf16.vlgmr.msra.gmra.mrb[32].mxu0 %v16576_v26  ;;  %v12135_v25 = vcombine.high %v1501_v28, %v1505_v21  ;;  %v12136_v49 = vcombine.low %v1502_v52, %v1506_v59 }
 0x42e   : > { %10179 = vmatmul.mubr.bf16.vlgmr.msra.gmra.mrb[32].mxu1 %v16576_v26  ;;  %9356 = vmatpush1.bf16.msra.mxu0 %v12086_v41  ;;  %v16581_v41 = vld [vmem:[#allocation61_spill] sm:$0xff]  ;;  %v12134_v26 = vcombine.low %v1501_v28, %v1505_v21  ;;  %v1542_v28 = vld [vmem:[#allocation5 + $0x1ad8] sm:$0xff] }
 0x42f   : > { %10260 = vmatpush1.bf16.msra.mxu1 %v12088_v19  ;;  %9357 = vmatprep.subr.bf16.mxu0 %v12095_v47  ;;  %v12137_v19 = vcombine.high %v1502_v52, %v1506_v59  ;;  %v1509_v47 = vld [vmem:[#allocation5 + $0x19d0] sm:$0xff]  ;;  %v1546_v21 = vld [vmem:[#allocation5 + $0x1af8] sm:$0xff] }
 0x430   : > { %10261 = vmatprep.subr.bf16.mxu1 %v12097_v5  ;;  %9284 = vmatprep.mubr.bf16.mxu0 %v16577_v30  ;;  %v1513_v5 = vld [vmem:[#allocation5 + $0x19f0] sm:$0xff] }
 0x431   : > { %10188 = vmatprep.mubr.bf16.mxu1 %v16577_v30  ;;  %v12143_v0 = vcombine.high %v1509_v47, %v1513_v5  ;;  %v16582_v30 = vld [vmem:[#allocation62_spill] sm:$0xff]  ;;  %v12142_v7 = vcombine.low %v1509_v47, %v1513_v5  ;;  %v1554_v47 = vld [vmem:[#allocation5 + $0x1b38] sm:$0xff] }
 0x432   : > { %9358 = vmatpush1.bf16.msra.mxu0 %v12094_v18  ;;  %v12145_v18 = vcombine.high %v1510_v4, %v1514_v34  ;;  %v12176_v4 = vcombine.low %v1542_v28, %v1546_v21 }
 0x433   : > { %10262 = vmatpush1.bf16.msra.mxu1 %v12096_v22  ;;  %9359 = vmatprep.subr.bf16.mxu0 %v12103_v50  ;;  %v1517_v22 = vld [vmem:[#allocation5 + $0x1a10] sm:$0xff] }
 0x434   : > { %10263 = vmatprep.subr.bf16.mxu1 %v12105_v23  ;;  %v1521_v50 = vld [vmem:[#allocation5 + $0x1a30] sm:$0xff]  ;;  %v1518_v23 = vld [vmem:[#allocation5 + $0x1a18] sm:$0xff] }
 0x435   : > { %9285 = vmatmul.mubr.bf16.gmra.mrb[36].mxu0 %v16578_v35  ;;  %v12151_v43 = vcombine.high %v1517_v22, %v1521_v50  ;;  %v12152_v16 = vcombine.low %v1518_v23, %v1522_v63 }
 0x436   : > { %10189 = vmatmul.mubr.bf16.gmra.mrb[36].mxu1 %v16578_v35  ;;  %9360 = vmatpush1.bf16.msra.mxu0 %v12102_v27  ;;  %v16583_v27 = vld [vmem:[#allocation63_spill] sm:$0xff]  ;;  %v12150_v35 = vcombine.low %v1517_v22, %v1521_v50 }
 0x437   : > { %10264 = vmatpush1.bf16.msra.mxu1 %v12104_v9  ;;  %9361 = vmatprep.subr.bf16.mxu0 %v12111_v33  ;;  %v12153_v9 = vcombine.high %v1518_v23, %v1522_v63  ;;  %v1525_v33 = vld [vmem:[#allocation5 + $0x1a50] sm:$0xff]  ;;  %v1558_v22 = vld [vmem:[#allocation5 + $0x1b58] sm:$0xff] }
 0x438   : > { %10265 = vmatprep.subr.bf16.mxu1 %v12113_v31  ;;  %9294 = vmatprep.mubr.bf16.mxu0 %v16579_v1  ;;  %v1529_v31 = vld [vmem:[#allocation5 + $0x1a70] sm:$0xff]  ;;  %v1562_v50 = vld [vmem:[#allocation5 + $0x1b78] sm:$0xff] }
 0x439   : > { %10198 = vmatprep.mubr.bf16.mxu1 %v16579_v1  ;;  %v12159_v53 = vcombine.high %v1525_v33, %v1529_v31  ;;  %v16584_v1 = vld [vmem:[#allocation64_spill] sm:$0xff]  ;;  %v12158_v60 = vcombine.low %v1525_v33, %v1529_v31  ;;  %v1570_v33 = vld [vmem:[#allocation5 + $0x1bb8] sm:$0xff] }
 0x43a   : > { %9362 = vmatpush1.bf16.msra.mxu0 %v12110_v14  ;;  %v12161_v14 = vcombine.high %v1526_v8, %v1530_v32  ;;  %v12192_v8 = vcombine.low %v1558_v22, %v1562_v50 }
 0x43b   : > { %10266 = vmatpush1.bf16.msra.mxu1 %v12112_v62  ;;  %9363 = vmatprep.subr.bf16.mxu0 %v12119_v20  ;;  %v1533_v62 = vld [vmem:[#allocation5 + $0x1a90] sm:$0xff] }
 0x43c   : > { %10267 = vmatprep.subr.bf16.mxu1 %v12121_v46  ;;  %v1537_v20 = vld [vmem:[#allocation5 + $0x1ab0] sm:$0xff]  ;;  %v1534_v46 = vld [vmem:[#allocation5 + $0x1a98] sm:$0xff] }
 0x43d   : > { %9295 = vmatmul.mubr.bf16.gmra.mrb[40].mxu0 %v16580_v55  ;;  %v12167_v37 = vcombine.high %v1533_v62, %v1537_v20  ;;  %v12168_v52 = vcombine.low %v1534_v46, %v1538_v57 }
 0x43e   : > { %10199 = vmatmul.mubr.bf16.gmra.mrb[40].mxu1 %v16580_v55  ;;  %9364 = vmatpush1.bf16.msra.mxu0 %v12118_v58  ;;  %v16585_v58 = vld [vmem:[#allocation65_spill] sm:$0xff]  ;;  %v12166_v55 = vcombine.low %v1533_v62, %v1537_v20  ;;  %v1574_v62 = vld [vmem:[#allocation5 + $0x1bd8] sm:$0xff] }
 0x43f   : > { %10268 = vmatpush1.bf16.msra.mxu1 %v12120_v17  ;;  %9365 = vmatprep.subr.bf16.mxu0 %v12127_v61  ;;  %v12169_v17 = vcombine.high %v1534_v46, %v1538_v57  ;;  %v1541_v61 = vld [vmem:[#allocation5 + $0x1ad0] sm:$0xff]  ;;  %v1578_v20 = vld [vmem:[#allocation5 + $0x1bf8] sm:$0xff] }
 0x440   : > { %10269 = vmatprep.subr.bf16.mxu1 %v12129_v29  ;;  %9304 = vmatprep.mubr.bf16.mxu0 %v16581_v41  ;;  %v1545_v29 = vld [vmem:[#allocation5 + $0x1af0] sm:$0xff] }
 0x441   : > { %10208 = vmatprep.mubr.bf16.mxu1 %v16581_v41  ;;  %v12175_v59 = vcombine.high %v1541_v61, %v1545_v29  ;;  %v16586_v41 = vld [vmem:[#allocation66_spill] sm:$0xff]  ;;  %v12174_v5 = vcombine.low %v1541_v61, %v1545_v29  ;;  %v1586_v61 = vld [vmem:[#allocation5 + $0x1c38] sm:$0xff] }
 0x442   : > { %9366 = vmatpush1.bf16.msra.mxu0 %v12126_v36  ;;  %v12177_v36 = vcombine.high %v1542_v28, %v1546_v21  ;;  %v12208_v28 = vcombine.low %v1574_v62, %v1578_v20 }
 0x443   : > { %10270 = vmatpush1.bf16.msra.mxu1 %v12128_v39  ;;  %9367 = vmatprep.subr.bf16.mxu0 %v12135_v25  ;;  %v1549_v39 = vld [vmem:[#allocation5 + $0x1b10] sm:$0xff] }
 0x444   : > { %10271 = vmatprep.subr.bf16.mxu1 %v12137_v19  ;;  %v1553_v25 = vld [vmem:[#allocation5 + $0x1b30] sm:$0xff]  ;;  %v1550_v19 = vld [vmem:[#allocation5 + $0x1b18] sm:$0xff] }
 0x445   : > { %9305 = vmatmul.mubr.bf16.gmra.mrb[44].mxu0 %v16582_v30  ;;  %v12183_v34 = vcombine.high %v1549_v39, %v1553_v25  ;;  %v12184_v23 = vcombine.low %v1550_v19, %v1554_v47 }
 0x446   : > { %10209 = vmatmul.mubr.bf16.gmra.mrb[44].mxu1 %v16582_v30  ;;  %9368 = vmatpush1.bf16.msra.mxu0 %v12134_v26  ;;  %v16587_v26 = vld [vmem:[#allocation67_spill] sm:$0xff]  ;;  %v12182_v30 = vcombine.low %v1549_v39, %v1553_v25 }
 0x447   : > { %10272 = vmatpush1.bf16.msra.mxu1 %v12136_v49  ;;  %9369 = vmatprep.subr.bf16.mxu0 %v12143_v0  ;;  %v12185_v49 = vcombine.high %v1550_v19, %v1554_v47  ;;  %v1557_v0 = vld [vmem:[#allocation5 + $0x1b50] sm:$0xff]  ;;  %v1590_v39 = vld [vmem:[#allocation5 + $0x1c58] sm:$0xff] }
 0x448   : > { %10273 = vmatprep.subr.bf16.mxu1 %v12145_v18  ;;  %9314 = vmatprep.mubr.bf16.mxu0 %v16583_v27  ;;  %v1561_v18 = vld [vmem:[#allocation5 + $0x1b70] sm:$0xff]  ;;  %v1594_v25 = vld [vmem:[#allocation5 + $0x1c78] sm:$0xff] }
 0x449   : > { %10218 = vmatprep.mubr.bf16.mxu1 %v16583_v27  ;;  %v12191_v63 = vcombine.high %v1557_v0, %v1561_v18  ;;  %v16588_v27 = vld [vmem:[#allocation68_spill] sm:$0xff]  ;;  %v12190_v31 = vcombine.low %v1557_v0, %v1561_v18  ;;  %v1602_v0 = vld [vmem:[#allocation5 + $0x1cb8] sm:$0xff] }
 0x44a   : > { %9370 = vmatpush1.bf16.msra.mxu0 %v12142_v7  ;;  %v12193_v7 = vcombine.high %v1558_v22, %v1562_v50  ;;  %v12224_v22 = vcombine.low %v1590_v39, %v1594_v25 }
 0x44b   : > { %10274 = vmatpush1.bf16.msra.mxu1 %v12144_v51  ;;  %9371 = vmatprep.subr.bf16.mxu0 %v12151_v43  ;;  %v1565_v51 = vld [vmem:[#allocation5 + $0x1b90] sm:$0xff] }
 0x44c   : > { %10275 = vmatprep.subr.bf16.mxu1 %v12153_v9  ;;  %v1569_v43 = vld [vmem:[#allocation5 + $0x1bb0] sm:$0xff]  ;;  %v1566_v9 = vld [vmem:[#allocation5 + $0x1b98] sm:$0xff] }
 0x44d   : > { %9315 = vmatmul.mubr.bf16.gmra.mrb[48].mxu0 %v16584_v1  ;;  %v12199_v32 = vcombine.high %v1565_v51, %v1569_v43  ;;  %v12200_v46 = vcombine.low %v1566_v9, %v1570_v33 }
 0x44e   : > { %10219 = vmatmul.mubr.bf16.gmra.mrb[48].mxu1 %v16584_v1  ;;  %9372 = vmatpush1.bf16.msra.mxu0 %v12150_v35  ;;  %v16589_v35 = vld [vmem:[#allocation69_spill] sm:$0xff]  ;;  %v12198_v1 = vcombine.low %v1565_v51, %v1569_v43  ;;  %v1606_v51 = vld [vmem:[#allocation5 + $0x1cd8] sm:$0xff] }
 0x44f   : > { %10276 = vmatpush1.bf16.msra.mxu1 %v12152_v16  ;;  %9373 = vmatprep.subr.bf16.mxu0 %v12159_v53  ;;  %v12201_v16 = vcombine.high %v1566_v9, %v1570_v33  ;;  %v1573_v53 = vld [vmem:[#allocation5 + $0x1bd0] sm:$0xff]  ;;  %v1610_v43 = vld [vmem:[#allocation5 + $0x1cf8] sm:$0xff] }
 0x450   : > { %10277 = vmatprep.subr.bf16.mxu1 %v12161_v14  ;;  %9324 = vmatprep.mubr.bf16.mxu0 %v16585_v58  ;;  %v1577_v14 = vld [vmem:[#allocation5 + $0x1bf0] sm:$0xff] }
 0x451   : > { %10228 = vmatprep.mubr.bf16.mxu1 %v16585_v58  ;;  %v12207_v57 = vcombine.high %v1573_v53, %v1577_v14  ;;  %v16590_v58 = vld [vmem:[#allocation70_spill] sm:$0xff]  ;;  %v12206_v29 = vcombine.low %v1573_v53, %v1577_v14  ;;  %v1618_v53 = vld [vmem:[#allocation5 + $0x1d38] sm:$0xff] }
 0x452   : > { %9374 = vmatpush1.bf16.msra.mxu0 %v12158_v60  ;;  %v12209_v60 = vcombine.high %v1574_v62, %v1578_v20  ;;  %v12240_v62 = vcombine.low %v1606_v51, %v1610_v43 }
 0x453   : > { %10278 = vmatpush1.bf16.msra.mxu1 %v12160_v2  ;;  %9375 = vmatprep.subr.bf16.mxu0 %v12167_v37  ;;  %v1581_v2 = vld [vmem:[#allocation5 + $0x1c10] sm:$0xff] }
 0x454   : > { %10279 = vmatprep.subr.bf16.mxu1 %v12169_v17  ;;  %v1585_v37 = vld [vmem:[#allocation5 + $0x1c30] sm:$0xff]  ;;  %v1582_v17 = vld [vmem:[#allocation5 + $0x1c18] sm:$0xff] }
 0x455   : > { %9325 = vmatmul.mubr.bf16.gmra.mrb[52].mxu0 %v16586_v41  ;;  %v12215_v21 = vcombine.high %v1581_v2, %v1585_v37  ;;  %v12216_v19 = vcombine.low %v1582_v17, %v1586_v61 }
 0x456   : > { %10229 = vmatmul.mubr.bf16.gmra.mrb[52].mxu1 %v16586_v41  ;;  %9376 = vmatpush1.bf16.msra.mxu0 %v12166_v55  ;;  %v16591_v55 = vld [vmem:[#allocation71_spill] sm:$0xff]  ;;  %v12214_v41 = vcombine.low %v1581_v2, %v1585_v37 }
 0x457   : > { %10280 = vmatpush1.bf16.msra.mxu1 %v12168_v52  ;;  %9377 = vmatprep.subr.bf16.mxu0 %v12175_v59  ;;  %v12217_v52 = vcombine.high %v1582_v17, %v1586_v61  ;;  %v1589_v59 = vld [vmem:[#allocation5 + $0x1c50] sm:$0xff]  ;;  %v1622_v2 = vld [vmem:[#allocation5 + $0x1d58] sm:$0xff] }
 0x458   : > { %10281 = vmatprep.subr.bf16.mxu1 %v12177_v36  ;;  %9334 = vmatprep.mubr.bf16.mxu0 %v16587_v26  ;;  %v1593_v36 = vld [vmem:[#allocation5 + $0x1c70] sm:$0xff]  ;;  %v1626_v37 = vld [vmem:[#allocation5 + $0x1d78] sm:$0xff] }
 0x459   : > { %10238 = vmatprep.mubr.bf16.mxu1 %v16587_v26  ;;  %v12223_v47 = vcombine.high %v1589_v59, %v1593_v36  ;;  %v16592_v26 = vld [vmem:[#allocation72_spill] sm:$0xff]  ;;  %v12222_v18 = vcombine.low %v1589_v59, %v1593_v36  ;;  %v1634_v59 = vld [vmem:[#allocation5 + $0x1db8] sm:$0xff] }
 0x45a   : > { %9378 = vmatpush1.bf16.msra.mxu0 %v12174_v5  ;;  %v12225_v5 = vcombine.high %v1590_v39, %v1594_v25  ;;  %v12256_v39 = vcombine.low %v1622_v2, %v1626_v37 }
 0x45b   : > { %10282 = vmatpush1.bf16.msra.mxu1 %v12176_v4  ;;  %9379 = vmatprep.subr.bf16.mxu0 %v12183_v34  ;;  %v1597_v4 = vld [vmem:[#allocation5 + $0x1c90] sm:$0xff] }
 0x45c   : > { %10283 = vmatprep.subr.bf16.mxu1 %v12185_v49  ;;  %v1601_v34 = vld [vmem:[#allocation5 + $0x1cb0] sm:$0xff]  ;;  %v1598_v49 = vld [vmem:[#allocation5 + $0x1c98] sm:$0xff] }
 0x45d   : > { %9335 = vmatmul.mubr.bf16.gmra.mrb[56].mxu0 %v16588_v27  ;;  %v12231_v50 = vcombine.high %v1597_v4, %v1601_v34  ;;  %v12232_v9 = vcombine.low %v1598_v49, %v1602_v0 }
 0x45e   : > { %10239 = vmatmul.mubr.bf16.gmra.mrb[56].mxu1 %v16588_v27  ;;  %9380 = vmatpush1.bf16.msra.mxu0 %v12182_v30  ;;  %v16593_v30 = vld [vmem:[#allocation73_spill] sm:$0xff]  ;;  %v12230_v27 = vcombine.low %v1597_v4, %v1601_v34  ;;  %v1638_v4 = vld [vmem:[#allocation5 + $0x1dd8] sm:$0xff] }
 0x45f   : > { %10284 = vmatpush1.bf16.msra.mxu1 %v12184_v23  ;;  %9381 = vmatprep.subr.bf16.mxu0 %v12191_v63  ;;  %v12233_v23 = vcombine.high %v1598_v49, %v1602_v0  ;;  %v1605_v63 = vld [vmem:[#allocation5 + $0x1cd0] sm:$0xff]  ;;  %v1642_v34 = vld [vmem:[#allocation5 + $0x1df8] sm:$0xff] }
 0x460   : > { %10285 = vmatprep.subr.bf16.mxu1 %v12193_v7  ;;  %9344 = vmatprep.mubr.bf16.mxu0 %v16589_v35  ;;  %v1609_v7 = vld [vmem:[#allocation5 + $0x1cf0] sm:$0xff] }
 0x461   : > { %10248 = vmatprep.mubr.bf16.mxu1 %v16589_v35  ;;  %v12239_v33 = vcombine.high %v1605_v63, %v1609_v7  ;;  %v16594_v35 = vld [vmem:[#allocation74_spill] sm:$0xff]  ;;  %v12238_v14 = vcombine.low %v1605_v63, %v1609_v7  ;;  %v1650_v63 = vld [vmem:[#allocation5 + $0x1e38] sm:$0xff] }
 0x462   : > { %9382 = vmatpush1.bf16.msra.mxu0 %v12190_v31  ;;  %v12241_v31 = vcombine.high %v1606_v51, %v1610_v43  ;;  %v12272_v51 = vcombine.low %v1638_v4, %v1642_v34 }
 0x463   : > { %10286 = vmatpush1.bf16.msra.mxu1 %v12192_v8  ;;  %9383 = vmatprep.subr.bf16.mxu0 %v12199_v32  ;;  %v1613_v8 = vld [vmem:[#allocation5 + $0x1d10] sm:$0xff] }
 0x464   : > { %10287 = vmatprep.subr.bf16.mxu1 %v12201_v16  ;;  %v1617_v32 = vld [vmem:[#allocation5 + $0x1d30] sm:$0xff]  ;;  %v1614_v16 = vld [vmem:[#allocation5 + $0x1d18] sm:$0xff] }
 0x465   : > { %9345 = vmatmul.mubr.bf16.gmra.mrb[60].mxu0 %v16590_v58  ;;  %v12247_v20 = vcombine.high %v1613_v8, %v1617_v32  ;;  %v12248_v17 = vcombine.low %v1614_v16, %v1618_v53 }
 0x466   : > { %10249 = vmatmul.mubr.bf16.gmra.mrb[60].mxu1 %v16590_v58  ;;  %9384 = vmatpush1.bf16.msra.mxu0 %v12198_v1  ;;  %v16595_v1 = vld [vmem:[#allocation75_spill] sm:$0xff]  ;;  %v12246_v58 = vcombine.low %v1613_v8, %v1617_v32 }
 0x467   : > { %10288 = vmatpush1.bf16.msra.mxu1 %v12200_v46  ;;  %9385 = vmatprep.subr.bf16.mxu0 %v12207_v57  ;;  %v12249_v46 = vcombine.high %v1614_v16, %v1618_v53  ;;  %v1621_v57 = vld [vmem:[#allocation5 + $0x1d50] sm:$0xff]  ;;  %v1654_v8 = vld [vmem:[#allocation5 + $0x1e58] sm:$0xff] }
 0x468   : > { %10289 = vmatprep.subr.bf16.mxu1 %v12209_v60  ;;  %9387 = vmatprep.mubr.bf16.mxu0 %v16591_v55  ;;  %v1625_v60 = vld [vmem:[#allocation5 + $0x1d70] sm:$0xff]  ;;  %v1658_v32 = vld [vmem:[#allocation5 + $0x1e78] sm:$0xff] }
 0x469   : > { %10291 = vmatprep.mubr.bf16.mxu1 %v16591_v55  ;;  %v12255_v61 = vcombine.high %v1621_v57, %v1625_v60  ;;  %v16596_v55 = vld [vmem:[#allocation76_spill] sm:$0xff]  ;;  %v12254_v36 = vcombine.low %v1621_v57, %v1625_v60  ;;  %v1666_v57 = vld [vmem:[#allocation5 + $0x1eb8] sm:$0xff] }
 0x46a   : > { %9386 = vmatpush1.bf16.msra.mxu0 %v12206_v29  ;;  %v12257_v29 = vcombine.high %v1622_v2, %v1626_v37  ;;  %v12288_v2 = vcombine.low %v1654_v8, %v1658_v32 }
 0x46b   : > { %10290 = vmatpush1.bf16.msra.mxu1 %v12208_v28  ;;  %9468 = vmatprep.subr.bf16.mxu0 %v12215_v21  ;;  %v1629_v28 = vld [vmem:[#allocation5 + $0x1d90] sm:$0xff] }
 0x46c   : > { %10372 = vmatprep.subr.bf16.mxu1 %v12217_v52  ;;  %v1633_v21 = vld [vmem:[#allocation5 + $0x1db0] sm:$0xff]  ;;  %v1630_v52 = vld [vmem:[#allocation5 + $0x1d98] sm:$0xff] }
 0x46d   : > { %9388 = vmatmul.mubr.bf16.vlgmr.msra.gmra.mrb[32].mxu0 %v16592_v26  ;;  %v12263_v25 = vcombine.high %v1629_v28, %v1633_v21  ;;  %v12264_v49 = vcombine.low %v1630_v52, %v1634_v59 }
 0x46e   : > { %10292 = vmatmul.mubr.bf16.vlgmr.msra.gmra.mrb[32].mxu1 %v16592_v26  ;;  %9469 = vmatpush1.bf16.msra.mxu0 %v12214_v41  ;;  %v16597_v41 = vld [vmem:[#allocation77_spill] sm:$0xff]  ;;  %v12262_v26 = vcombine.low %v1629_v28, %v1633_v21  ;;  %v1670_v28 = vld [vmem:[#allocation5 + $0x1ed8] sm:$0xff] }
 0x46f   : > { %10373 = vmatpush1.bf16.msra.mxu1 %v12216_v19  ;;  %9470 = vmatprep.subr.bf16.mxu0 %v12223_v47  ;;  %v12265_v19 = vcombine.high %v1630_v52, %v1634_v59  ;;  %v1637_v47 = vld [vmem:[#allocation5 + $0x1dd0] sm:$0xff]  ;;  %v1674_v21 = vld [vmem:[#allocation5 + $0x1ef8] sm:$0xff] }
 0x470   : > { %10374 = vmatprep.subr.bf16.mxu1 %v12225_v5  ;;  %9397 = vmatprep.mubr.bf16.mxu0 %v16593_v30  ;;  %v1641_v5 = vld [vmem:[#allocation5 + $0x1df0] sm:$0xff] }
 0x471   : > { %10301 = vmatprep.mubr.bf16.mxu1 %v16593_v30  ;;  %v12271_v0 = vcombine.high %v1637_v47, %v1641_v5  ;;  %v16598_v30 = vld [vmem:[#allocation78_spill] sm:$0xff]  ;;  %v12270_v7 = vcombine.low %v1637_v47, %v1641_v5  ;;  %v1682_v47 = vld [vmem:[#allocation5 + $0x1f38] sm:$0xff] }
 0x472   : > { %9471 = vmatpush1.bf16.msra.mxu0 %v12222_v18  ;;  %v12273_v18 = vcombine.high %v1638_v4, %v1642_v34  ;;  %v12304_v4 = vcombine.low %v1670_v28, %v1674_v21 }
 0x473   : > { %10375 = vmatpush1.bf16.msra.mxu1 %v12224_v22  ;;  %9472 = vmatprep.subr.bf16.mxu0 %v12231_v50  ;;  %v1645_v22 = vld [vmem:[#allocation5 + $0x1e10] sm:$0xff] }
 0x474   : > { %10376 = vmatprep.subr.bf16.mxu1 %v12233_v23  ;;  %v1649_v50 = vld [vmem:[#allocation5 + $0x1e30] sm:$0xff]  ;;  %v1646_v23 = vld [vmem:[#allocation5 + $0x1e18] sm:$0xff] }
 0x475   : > { %9398 = vmatmul.mubr.bf16.gmra.mrb[36].mxu0 %v16594_v35  ;;  %v12279_v43 = vcombine.high %v1645_v22, %v1649_v50  ;;  %v12280_v16 = vcombine.low %v1646_v23, %v1650_v63 }
 0x476   : > { %10302 = vmatmul.mubr.bf16.gmra.mrb[36].mxu1 %v16594_v35  ;;  %9473 = vmatpush1.bf16.msra.mxu0 %v12230_v27  ;;  %v16599_v27 = vld [vmem:[#allocation79_spill] sm:$0xff]  ;;  %v12278_v35 = vcombine.low %v1645_v22, %v1649_v50 }
 0x477   : > { %10377 = vmatpush1.bf16.msra.mxu1 %v12232_v9  ;;  %9474 = vmatprep.subr.bf16.mxu0 %v12239_v33  ;;  %v12281_v9 = vcombine.high %v1646_v23, %v1650_v63  ;;  %v1653_v33 = vld [vmem:[#allocation5 + $0x1e50] sm:$0xff]  ;;  %v1686_v22 = vld [vmem:[#allocation5 + $0x1f58] sm:$0xff] }
 0x478   : > { %10378 = vmatprep.subr.bf16.mxu1 %v12241_v31  ;;  %9407 = vmatprep.mubr.bf16.mxu0 %v16595_v1  ;;  %v1657_v31 = vld [vmem:[#allocation5 + $0x1e70] sm:$0xff]  ;;  %v1690_v50 = vld [vmem:[#allocation5 + $0x1f78] sm:$0xff] }
 0x479   : > { %10311 = vmatprep.mubr.bf16.mxu1 %v16595_v1  ;;  %v12287_v53 = vcombine.high %v1653_v33, %v1657_v31  ;;  %v16600_v1 = vld [vmem:[#allocation80_spill] sm:$0xff]  ;;  %v12286_v60 = vcombine.low %v1653_v33, %v1657_v31  ;;  %v1698_v33 = vld [vmem:[#allocation5 + $0x1fb8] sm:$0xff] }
 0x47a   : > { %9475 = vmatpush1.bf16.msra.mxu0 %v12238_v14  ;;  %v12289_v14 = vcombine.high %v1654_v8, %v1658_v32  ;;  %v12320_v8 = vcombine.low %v1686_v22, %v1690_v50 }
 0x47b   : > { %10379 = vmatpush1.bf16.msra.mxu1 %v12240_v62  ;;  %9476 = vmatprep.subr.bf16.mxu0 %v12247_v20  ;;  %v1661_v62 = vld [vmem:[#allocation5 + $0x1e90] sm:$0xff] }
 0x47c   : > { %10380 = vmatprep.subr.bf16.mxu1 %v12249_v46  ;;  %v1665_v20 = vld [vmem:[#allocation5 + $0x1eb0] sm:$0xff]  ;;  %v1662_v46 = vld [vmem:[#allocation5 + $0x1e98] sm:$0xff] }
 0x47d   : > { %9408 = vmatmul.mubr.bf16.gmra.mrb[40].mxu0 %v16596_v55  ;;  %v12295_v37 = vcombine.high %v1661_v62, %v1665_v20  ;;  %v12296_v52 = vcombine.low %v1662_v46, %v1666_v57 }
 0x47e   : > { %10312 = vmatmul.mubr.bf16.gmra.mrb[40].mxu1 %v16596_v55  ;;  %9477 = vmatpush1.bf16.msra.mxu0 %v12246_v58  ;;  %v16601_v58 = vld [vmem:[#allocation81_spill] sm:$0xff]  ;;  %v12294_v55 = vcombine.low %v1661_v62, %v1665_v20  ;;  %v1702_v62 = vld [vmem:[#allocation5 + $0x1fd8] sm:$0xff] }
 0x47f   : > { %10381 = vmatpush1.bf16.msra.mxu1 %v12248_v17  ;;  %9478 = vmatprep.subr.bf16.mxu0 %v12255_v61  ;;  %v12297_v17 = vcombine.high %v1662_v46, %v1666_v57  ;;  %v1669_v61 = vld [vmem:[#allocation5 + $0x1ed0] sm:$0xff]  ;;  %v1706_v20 = vld [vmem:[#allocation5 + $0x1ff8] sm:$0xff] }
 0x480   : > { %10382 = vmatprep.subr.bf16.mxu1 %v12257_v29  ;;  %9417 = vmatprep.mubr.bf16.mxu0 %v16597_v41  ;;  %v1673_v29 = vld [vmem:[#allocation5 + $0x1ef0] sm:$0xff] }
 0x481   : > { %10321 = vmatprep.mubr.bf16.mxu1 %v16597_v41  ;;  %v12303_v59 = vcombine.high %v1669_v61, %v1673_v29  ;;  %v16602_v41 = vld [vmem:[#allocation82_spill] sm:$0xff]  ;;  %v12302_v5 = vcombine.low %v1669_v61, %v1673_v29  ;;  %v16608_v61 = vld [vmem:[#allocation88_spill] sm:$0xff]  ;;  %v16609_v29 = vld [vmem:[#allocation89_spill] sm:$0xff] }
 0x482   : > { %9479 = vmatpush1.bf16.msra.mxu0 %v12254_v36  ;;  %v12305_v36 = vcombine.high %v1670_v28, %v1674_v21  ;;  %v16610_v28 = vld [vmem:[#allocation90_spill] sm:$0xff]  ;;  %v16611_v21 = vld [vmem:[#allocation91_spill] sm:$0xff] }
 0x483   : > { %10383 = vmatpush1.bf16.msra.mxu1 %v12256_v39  ;;  %9480 = vmatprep.subr.bf16.mxu0 %v12263_v25  ;;  %v1677_v39 = vld [vmem:[#allocation5 + $0x1f10] sm:$0xff] }
 0x484   : > { %10384 = vmatprep.subr.bf16.mxu1 %v12265_v19  ;;  %v1681_v25 = vld [vmem:[#allocation5 + $0x1f30] sm:$0xff]  ;;  %v1678_v19 = vld [vmem:[#allocation5 + $0x1f18] sm:$0xff] }
 0x485   : > { %9418 = vmatmul.mubr.bf16.gmra.mrb[44].mxu0 %v16598_v30  ;;  %v12311_v34 = vcombine.high %v1677_v39, %v1681_v25  ;;  %v12312_v23 = vcombine.low %v1678_v19, %v1682_v47 }
 0x486   : > { %10322 = vmatmul.mubr.bf16.gmra.mrb[44].mxu1 %v16598_v30  ;;  %9481 = vmatpush1.bf16.msra.mxu0 %v12262_v26  ;;  %v16603_v26 = vld [vmem:[#allocation83_spill] sm:$0xff]  ;;  %v12310_v30 = vcombine.low %v1677_v39, %v1681_v25  ;;  %v16616_v39 = vld [vmem:[#allocation96_spill] sm:$0xff]  ;;  %v16617_v25 = vld [vmem:[#allocation97_spill] sm:$0xff] }
 0x487   : > { %10385 = vmatpush1.bf16.msra.mxu1 %v12264_v49  ;;  %9482 = vmatprep.subr.bf16.mxu0 %v12271_v0  ;;  %v12313_v49 = vcombine.high %v1678_v19, %v1682_v47  ;;  %v1685_v0 = vld [vmem:[#allocation5 + $0x1f50] sm:$0xff]  ;;  %v16619_v19 = vld [vmem:[#allocation99_spill] sm:$0xff]  ;;  %v16620_v47 = vld [vmem:[#allocation100_spill] sm:$0xff] }
 0x488   : > { %10386 = vmatprep.subr.bf16.mxu1 %v12273_v18  ;;  %9427 = vmatprep.mubr.bf16.mxu0 %v16599_v27  ;;  %v1689_v18 = vld [vmem:[#allocation5 + $0x1f70] sm:$0xff] }
 0x489   : > { %10331 = vmatprep.mubr.bf16.mxu1 %v16599_v27  ;;  %v12319_v63 = vcombine.high %v1685_v0, %v1689_v18  ;;  %v16604_v27 = vld [vmem:[#allocation84_spill] sm:$0xff]  ;;  %v12318_v31 = vcombine.low %v1685_v0, %v1689_v18 }
 0x48a   : > { %9483 = vmatpush1.bf16.msra.mxu0 %v12270_v7  ;;  %v12321_v7 = vcombine.high %v1686_v22, %v1690_v50  ;;  %v13549_v18 = vld [vmem:[#allocation7] sm:$0xff] }
 0x48b   : > { %10387 = vmatpush1.bf16.msra.mxu1 %v12272_v51  ;;  %9484 = vmatprep.subr.bf16.mxu0 %v12279_v43  ;;  %v1693_v51 = vld [vmem:[#allocation5 + $0x1f90] sm:$0xff] }
 0x48c   : > { %10388 = vmatprep.subr.bf16.mxu1 %v12281_v9  ;;  %v1697_v43 = vld [vmem:[#allocation5 + $0x1fb0] sm:$0xff]  ;;  %v1694_v9 = vld [vmem:[#allocation5 + $0x1f98] sm:$0xff] }
 0x48d   : > { %9428 = vmatmul.mubr.bf16.gmra.mrb[48].mxu0 %v16600_v1  ;;  %v12327_v32 = vcombine.high %v1693_v51, %v1697_v43  ;;  %v12328_v46 = vcombine.low %v1694_v9, %v1698_v33 }
 0x48e   : > { %10332 = vmatmul.mubr.bf16.gmra.mrb[48].mxu1 %v16600_v1  ;;  %9485 = vmatpush1.bf16.msra.mxu0 %v12278_v35  ;;  %v16605_v35 = vld [vmem:[#allocation85_spill] sm:$0xff]  ;;  %v12326_v1 = vcombine.low %v1693_v51, %v1697_v43 }
 0x48f   : > { %10389 = vmatpush1.bf16.msra.mxu1 %v12280_v16  ;;  %9486 = vmatprep.subr.bf16.mxu0 %v12287_v53  ;;  %v12329_v16 = vcombine.high %v1694_v9, %v1698_v33  ;;  %v1701_v53 = vld [vmem:[#allocation5 + $0x1fd0] sm:$0xff]  ;;  %v13550_v51 = vld [vmem:[#allocation8] sm:$0xff] }
 0x490   : > { %10390 = vmatprep.subr.bf16.mxu1 %v12289_v14  ;;  %9437 = vmatprep.mubr.bf16.mxu0 %v16601_v58  ;;  %v1705_v14 = vld [vmem:[#allocation5 + $0x1ff0] sm:$0xff] }
 0x491   : > { %10341 = vmatprep.mubr.bf16.mxu1 %v16601_v58  ;;  %v12335_v57 = vcombine.high %v1701_v53, %v1705_v14  ;;  %v12336_v58 = vcombine.low %v1702_v62, %v1706_v20 }
 0x492   : > { %9487 = vmatpush1.bf16.msra.mxu0 %v12286_v60  ;;  %v12337_v60 = vcombine.high %v1702_v62, %v1706_v20 }
 0x493   : > { %10391 = vmatpush1.bf16.msra.mxu1 %v12288_v2  ;;  %9488 = vmatprep.subr.bf16.mxu0 %v12295_v37  ;;  %v16606_v2 = vld [vmem:[#allocation86_spill] sm:$0xff]  ;;  %v12334_v37 = vcombine.low %v1701_v53, %v1705_v14 }
 0x494   : > { %10392 = vmatprep.subr.bf16.mxu1 %v12297_v17  ;;  %v16607_v17 = vld [vmem:[#allocation87_spill] sm:$0xff] }
 0x495   : > { %9438 = vmatmul.mubr.bf16.gmra.mrb[52].mxu0 %v16602_v41 }
 0x496   : > { %10342 = vmatmul.mubr.bf16.gmra.mrb[52].mxu1 %v16602_v41  ;;  %9489 = vmatpush1.bf16.msra.mxu0 %v12294_v55  ;;  %v16612_v55 = vld [vmem:[#allocation92_spill] sm:$0xff]  ;;  %v16618_v41 = vld [vmem:[#allocation98_spill] sm:$0xff] }
 0x497   : > { %10393 = vmatpush1.bf16.msra.mxu1 %v12296_v52  ;;  %9490 = vmatprep.subr.bf16.mxu0 %v12303_v59  ;;  %v16613_v52 = vld [vmem:[#allocation93_spill] sm:$0xff]  ;;  %v16614_v59 = vld [vmem:[#allocation94_spill] sm:$0xff] }
 0x498   : > { %10394 = vmatprep.subr.bf16.mxu1 %v12305_v36  ;;  %9447 = vmatprep.mubr.bf16.mxu0 %v16603_v26  ;;  %v16615_v36 = vld [vmem:[#allocation95_spill] sm:$0xff] }
 0x499   : > { %10351 = vmatprep.mubr.bf16.mxu1 %v16603_v26 }
 0x49a   : > { %9491 = vmatpush1.bf16.msra.mxu0 %v12302_v5  ;;  %v16621_v5 = vld [vmem:[#allocation101_spill] sm:$0xff] }
 0x49b   : > { %10395 = vmatpush1.bf16.msra.mxu1 %v12304_v4  ;;  %9492 = vmatprep.subr.bf16.mxu0 %v12311_v34  ;;  %v16622_v4 = vld [vmem:[#allocation102_spill] sm:$0xff]  ;;  %v16623_v34 = vld [vmem:[#allocation103_spill] sm:$0xff] }
 0x49c   : > { %10396 = vmatprep.subr.bf16.mxu1 %v12313_v49  ;;  %v1727_v26 = vsub.s32 4, %v16623_v34  ;;  %v1735_v49 = vsub.s32 6, %v16623_v34  ;;  %v1731_v0 = vsub.s32 5, %v16623_v34  ;;  %v1739_v50 = vsub.s32 7, %v16623_v34 }
 0x49d   : > { %9448 = vmatmul.mubr.bf16.gmra.mrb[56].mxu0 %v16604_v27 }
 0x49e   : > { %10352 = vmatmul.mubr.bf16.gmra.mrb[56].mxu1 %v16604_v27  ;;  %9493 = vmatpush1.bf16.msra.mxu0 %v12310_v30  ;;  %v15800_v22 = vrot.slane %v13549_v18, %v1727_v26  ;;  %v15803_v30 = vrot.slane %v13549_v18, %v1735_v49  ;;  %v15808_v43 = vrot.slane %v13550_v51, %v1727_v26 }
 0x49f   : > { %10397 = vmatpush1.bf16.msra.mxu1 %v12312_v23  ;;  %9494 = vmatprep.subr.bf16.mxu0 %v12319_v63  ;;  %v15805_v23 = vrot.slane %v13549_v18, %v1731_v0  ;;  %v15810_v33 = vrot.slane %v13549_v18, %v1739_v50 }
 0x4a0   : > { %10398 = vmatprep.subr.bf16.mxu1 %v12321_v7  ;;  %9457 = vmatprep.mubr.bf16.mxu0 %v16605_v35 }
 0x4a1   : > { %10361 = vmatprep.mubr.bf16.mxu1 %v16605_v35 }
 0x4a2   : > { %9495 = vmatpush1.bf16.msra.mxu0 %v12318_v31 }
 0x4a3   : > { %10399 = vmatpush1.bf16.msra.mxu1 %v12320_v8  ;;  %9496 = vmatprep.subr.bf16.mxu0 %v12327_v32  ;;  %v15814_v32 = vrot.slane %v13550_v51, %v1731_v0 }
 0x4a4   : > { %10400 = vmatprep.subr.bf16.mxu1 %v12329_v16 }
 0x4a5   : > { %9458 = vmatmul.mubr.bf16.gmra.mrb[60].mxu0 %v16606_v2 }
 0x4a6   : > { %10362 = vmatmul.mubr.bf16.gmra.mrb[60].mxu1 %v16606_v2  ;;  %9497 = vmatpush1.bf16.msra.mxu0 %v12326_v1  ;;  %v15817_v1 = vrot.slane %v13550_v51, %v1735_v49 }
 0x4a7   : > { %10401 = vmatpush1.bf16.msra.mxu1 %v12328_v46  ;;  %9498 = vmatprep.subr.bf16.mxu0 %v12335_v57 }
 0x4a8   : > { %10402 = vmatprep.subr.bf16.mxu1 %v12337_v60  ;;  %9500 = vmatprep.mubr.bf16.mxu0 %v16607_v17 }
 0x4a9   : > { %10404 = vmatprep.mubr.bf16.mxu1 %v16607_v17 }
 0x4aa   : > { %9499 = vmatpush1.bf16.msra.mxu0 %v12334_v37 }
 0x4ab   : > { %10403 = vmatpush1.bf16.msra.mxu1 %v12336_v58 }
 0x4ad   : > { %9501 = vmatmul.mubr.bf16.vlgmr.msra.gmra.mrb[32].mxu0 %v16608_v61 }
 0x4ae   : > { %10405 = vmatmul.mubr.bf16.vlgmr.msra.gmra.mrb[32].mxu1 %v16608_v61  ;;  %9510 = vmatprep.mubr.bf16.mxu0 %v16609_v29 }
 0x4af   : > { %10414 = vmatprep.mubr.bf16.mxu1 %v16609_v29 }
 0x4b5   : > { %9511 = vmatmul.mubr.bf16.gmra.mrb[36].mxu0 %v16610_v28 }
 0x4b6   : > { %10415 = vmatmul.mubr.bf16.gmra.mrb[36].mxu1 %v16610_v28  ;;  %9520 = vmatprep.mubr.bf16.mxu0 %v16611_v21 }
 0x4b7   : > { %10424 = vmatprep.mubr.bf16.mxu1 %v16611_v21 }
 0x4bd   : > { %9521 = vmatmul.mubr.bf16.gmra.mrb[40].mxu0 %v16612_v55 }
 0x4be   : > { %10425 = vmatmul.mubr.bf16.gmra.mrb[40].mxu1 %v16612_v55  ;;  %9530 = vmatprep.mubr.bf16.mxu0 %v16613_v52 }
 0x4bf   : > { %10434 = vmatprep.mubr.bf16.mxu1 %v16613_v52 }
 0x4c5   : > { %9531 = vmatmul.mubr.bf16.gmra.mrb[44].mxu0 %v16614_v59 }
 0x4c6   : > { %10435 = vmatmul.mubr.bf16.gmra.mrb[44].mxu1 %v16614_v59  ;;  %9540 = vmatprep.mubr.bf16.mxu0 %v16615_v36 }
 0x4c7   : > { %10444 = vmatprep.mubr.bf16.mxu1 %v16615_v36  ;;  %v15828_v36 = vrot.slane %v13550_v51, %v1739_v50 }
 0x4cd   : > { %9541 = vmatmul.mubr.bf16.gmra.mrb[48].mxu0 %v16616_v39 }
 0x4ce   : > { %10445 = vmatmul.mubr.bf16.gmra.mrb[48].mxu1 %v16616_v39  ;;  %9550 = vmatprep.mubr.bf16.mxu0 %v16617_v25 }
 0x4cf   : > { %10454 = vmatprep.mubr.bf16.mxu1 %v16617_v25 }
 0x4d5   : > { %9551 = vmatmul.mubr.bf16.gmra.mrb[52].mxu0 %v16618_v41 }
 0x4d6   : > { %10455 = vmatmul.mubr.bf16.gmra.mrb[52].mxu1 %v16618_v41  ;;  %9560 = vmatprep.mubr.bf16.mxu0 %v16619_v19 }
 0x4d7   : > { %10464 = vmatprep.mubr.bf16.mxu1 %v16619_v19 }
 0x4dd   : > { %9561 = vmatmul.mubr.bf16.gmra.mrb[56].mxu0 %v16620_v47 }
 0x4de   : > { %10465 = vmatmul.mubr.bf16.gmra.mrb[56].mxu1 %v16620_v47  ;;  %9570 = vmatprep.mubr.bf16.mxu0 %v16621_v5 }
 0x4df   : > { %10474 = vmatprep.mubr.bf16.mxu1 %v16621_v5 }
 0x4e5   : > { %9571 = vmatmul.mubr.bf16.gmra.mrb[60].mxu0 %v16622_v4 }
 0x4e6   : > { %10475 = vmatmul.mubr.bf16.gmra.mrb[60].mxu1 %v16622_v4 }
 0x580   : > { %v9502_v63 = vpop.f32.mrb[32].mxu0 }
 0x581   : > { %v12425_v7 = vadd.f32 %v9502_v63, %v15800_v22  ;;  %v10406_v27 = vpop.f32.mrb[32].mxu1  ;;  %v9504_v9 = vpop.f32.mrb[33].mxu0 }
 0x582   : > { %v12457_v31 = vadd.f32 %v10406_v27, %v15803_v30  ;;  %v12426_v8 = vadd.f32 %v9504_v9, %v15805_v23  ;;  %v10408_v35 = vpop.f32.mrb[33].mxu1  ;;  %v9506_v16 = vpop.f32.mrb[34].mxu0 }
 0x583   : > { %v10489_v53 = vmax.f32 %v12425_v7, 0.0  ;;  %v12427_v14 = vadd.f32 %v9506_v16, %v15800_v22  ;;  %v10410_v62 = vpop.f32.mrb[34].mxu1  ;;  %v9508_v20 = vpop.f32.mrb[35].mxu0  ;;  %v12458_v58 = vadd.f32 %v10408_v35, %v15810_v33 }
 0x584   : > { %v10490_v46 = vmax.f32 %v12426_v8, 0.0  ;;  %v12428_v57 = vadd.f32 %v9508_v20, %v15805_v23  ;;  %v10412_v60 = vpop.f32.mrb[35].mxu1  ;;  %v10491_v37 = vmax.f32 %v12457_v31, 0.0  ;;  %v12459_v29 = vadd.f32 %v10410_v62, %v15803_v30 }
 0x585   : > { %v10659_v2 = vmul.f32 %v15808_v43, %v10489_v53  ;;  %v10497_v17 = vmax.f32 %v12427_v14, 0.0  ;;  %v12460_v21 = vadd.f32 %v10412_v60, %v15810_v33  ;;  %v10492_v25 = vmax.f32 %v12458_v58, 0.0 }
 0x586   : > { %v10660_v61 = vmul.f32 %v15814_v32, %v10490_v46  ;;  %v10498_v28 = vmax.f32 %v12428_v57, 0.0  ;;  %v10661_v34 = vmul.f32 %v15817_v1, %v10491_v37  ;;  %v10499_v26 = vmax.f32 %v12459_v29, 0.0 }
 0x587   : > { %v10786_v55 = vadd.f32 %v15261_v42, %v10659_v2  ;;  %v10667_v52 = vmul.f32 %v15808_v43, %v10497_v17  ;;  %v10500_v49 = vmax.f32 %v12460_v21, 0.0  ;;  %v10662_v20 = vmul.f32 %v15828_v36, %v10492_v25 }
 0x588   : > { %v10668_v59 = vmul.f32 %v15814_v32, %v10498_v28  ;;  %v9512_v39 = vpop.f32.mrb[36].mxu0  ;;  %v10669_v46 = vmul.f32 %v15817_v1, %v10499_v26 }
 0x589   : > { %v10795_v41 = vadd.f32 %v15273_v38, %v10667_v52  ;;  %v12429_v19 = vadd.f32 %v9512_v39, %v15800_v22  ;;  %v10416_v47 = vpop.f32.mrb[36].mxu1  ;;  %v9514_v5 = vpop.f32.mrb[37].mxu0  ;;  %v10787_v4 = vadd.f32 %v10786_v55, %v10660_v61  ;;  %v10670_v57 = vmul.f32 %v15828_v36, %v10500_v49 }
 0x58a   : > { %v12430_v42 = vadd.f32 %v9514_v5, %v15805_v23  ;;  %v10418_v0 = vpop.f32.mrb[37].mxu1  ;;  %v9516_v18 = vpop.f32.mrb[38].mxu0  ;;  %v12461_v7 = vadd.f32 %v10416_v47, %v15803_v30 }
 0x58b   : > { %v10796_v63 = vadd.f32 %v10795_v41, %v10668_v59  ;;  %v10505_v50 = vmax.f32 %v12429_v19, 0.0  ;;  %v12431_v51 = vadd.f32 %v9516_v18, %v15800_v22  ;;  %v10420_v38 = vpop.f32.mrb[38].mxu1  ;;  %v9518_v27 = vpop.f32.mrb[39].mxu0  ;;  %v12462_v31 = vadd.f32 %v10418_v0, %v15810_v33 }
 0x58c   : > { %v10506_v9 = vmax.f32 %v12430_v42, 0.0  ;;  %v12463_v8 = vadd.f32 %v10420_v38, %v15803_v30  ;;  %v12432_v35 = vadd.f32 %v9518_v27, %v15805_v23  ;;  %v10422_v16 = vpop.f32.mrb[39].mxu1  ;;  %v10507_v58 = vmax.f32 %v12461_v7, 0.0 }
 0x58d   : > { %v10675_v53 = vmul.f32 %v15808_v43, %v10505_v50  ;;  %v10513_v14 = vmax.f32 %v12431_v51, 0.0  ;;  %v12464_v62 = vadd.f32 %v10422_v16, %v15810_v33  ;;  %v10788_v61 = vadd.f32 %v10787_v4, %v10661_v34 }
 0x58e   : > { %v10676_v60 = vmul.f32 %v15814_v32, %v10506_v9  ;;  %v10514_v2 = vmax.f32 %v12432_v35, 0.0  ;;  %v10508_v29 = vmax.f32 %v12462_v31, 0.0  ;;  %v10515_v28 = vmax.f32 %v12463_v8, 0.0 }
 0x58f   : > { %v10804_v37 = vadd.f32 %v15321_v40, %v10675_v53  ;;  %v10683_v17 = vmul.f32 %v15808_v43, %v10513_v14  ;;  %v10797_v52 = vadd.f32 %v10796_v63, %v10669_v46  ;;  %v10516_v39 = vmax.f32 %v12464_v62, 0.0 }
 0x590   : > { %v10684_v21 = vmul.f32 %v15814_v32, %v10514_v2  ;;  %v9522_v55 = vpop.f32.mrb[40].mxu0  ;;  %v10789_v25 = vadd.f32 %v10788_v61, %v10662_v20  ;;  %v10677_v7 = vmul.f32 %v15817_v1, %v10507_v58  ;;  %v10685_v31 = vmul.f32 %v15817_v1, %v10515_v28 }
 0x591   : > { %v10813_v59 = vadd.f32 %v15350_v45, %v10683_v17  ;;  %v12433_v41 = vadd.f32 %v9522_v55, %v15800_v22  ;;  %v10426_v19 = vpop.f32.mrb[40].mxu1  ;;  %v9524_v47 = vpop.f32.mrb[41].mxu0  ;;  %v10798_v34 = vadd.f32 %v10797_v52, %v10670_v57  ;;  %v10805_v49 = vadd.f32 %v10804_v37, %v10676_v60 }
 0x592   : > { %v12465_v40 = vadd.f32 %v10426_v19, %v15803_v30  ;;  %v12434_v5 = vadd.f32 %v9524_v47, %v15805_v23  ;;  %v10428_v26 = vpop.f32.mrb[41].mxu1  ;;  %v9526_v4 = vpop.f32.mrb[42].mxu0  ;;  %10790 = vadd.xlane.f32.xlu0 %v10789_v25  ;;  %v10686_v53 = vmul.f32 %v15828_v36, %v10516_v39  ;;  %v10678_v20 = vmul.f32 %v15828_v36, %v10508_v29 }
 0x593   : > { %v10814_v42 = vadd.f32 %v10813_v59, %v10684_v21  ;;  %v10521_v0 = vmax.f32 %v12433_v41, 0.0  ;;  %v12466_v18 = vadd.f32 %v10428_v26, %v15810_v33  ;;  %v12435_v45 = vadd.f32 %v9526_v4, %v15800_v22  ;;  %v10430_v63 = vpop.f32.mrb[42].mxu1  ;;  %v9528_v50 = vpop.f32.mrb[43].mxu0 }
 0x594   : > { %v10522_v51 = vmax.f32 %v12434_v5, 0.0  ;;  %v12467_v38 = vadd.f32 %v10430_v63, %v15803_v30  ;;  %v12436_v27 = vadd.f32 %v9528_v50, %v15805_v23  ;;  %v10432_v9 = vpop.f32.mrb[43].mxu1  ;;  %v10523_v57 = vmax.f32 %v12465_v40, 0.0 }
 0x595   : > { %v10691_v8 = vmul.f32 %v15808_v43, %v10521_v0  ;;  %v10529_v35 = vmax.f32 %v12435_v45, 0.0  ;;  %v12468_v16 = vadd.f32 %v10432_v9, %v15810_v33  ;;  %v10524_v60 = vmax.f32 %v12466_v18, 0.0 }
 0x596   : > { %v10692_v14 = vmul.f32 %v15814_v32, %v10522_v51  ;;  %v10530_v62 = vmax.f32 %v12436_v27, 0.0  ;;  %10799 = vadd.xlane.f32.xlu0 %v10798_v34  ;;  %v10531_v37 = vmax.f32 %v12467_v38, 0.0  ;;  %v10806_v17 = vadd.f32 %v10805_v49, %v10677_v7 }
 0x597   : > { %v10822_v46 = vadd.f32 %v15377_v15, %v10691_v8  ;;  %v10699_v2 = vmul.f32 %v15808_v43, %v10529_v35  ;;  %v10815_v28 = vadd.f32 %v10814_v42, %v10685_v31  ;;  %v10532_v52 = vmax.f32 %v12468_v16, 0.0 }
 0x598   : > { %v10700_v58 = vmul.f32 %v15814_v32, %v10530_v62  ;;  %v9532_v61 = vpop.f32.mrb[44].mxu0  ;;  %v10807_v15 = vadd.f32 %v10806_v17, %v10678_v20  ;;  %v10693_v42 = vmul.f32 %v15817_v1, %v10523_v57  ;;  %v10694_v50 = vmul.f32 %v15828_v36, %v10524_v60 }
 0x599   : > { %v10823_v21 = vadd.f32 %v10822_v46, %v10692_v14  ;;  %v10831_v55 = vadd.f32 %v15406_v54, %v10699_v2  ;;  %v12437_v59 = vadd.f32 %v9532_v61, %v15800_v22  ;;  %v10436_v29 = vpop.f32.mrb[44].mxu1  ;;  %v9534_v39 = vpop.f32.mrb[45].mxu0  ;;  %v10816_v40 = vadd.f32 %v10815_v28, %v10686_v53 }
 0x59a   : > { %v12469_v25 = vadd.f32 %v10436_v29, %v15803_v30  ;;  %v12438_v41 = vadd.f32 %v9534_v39, %v15805_v23  ;;  %v10438_v19 = vpop.f32.mrb[45].mxu1  ;;  %v9536_v47 = vpop.f32.mrb[46].mxu0  ;;  %10808 = vadd.xlane.f32.xlu1 %v10807_v15  ;;  %v10701_v27 = vmul.f32 %v15817_v1, %v10531_v37  ;;  %v10702_v9 = vmul.f32 %v15828_v36, %v10532_v52 }
 0x59b   : > { %v10832_v5 = vadd.f32 %v10831_v55, %v10700_v58  ;;  %v10537_v26 = vmax.f32 %v12437_v59, 0.0  ;;  %v12470_v4 = vadd.f32 %v10438_v19, %v15810_v33  ;;  %v12439_v34 = vadd.f32 %v9536_v47, %v15800_v22  ;;  %v10440_v54 = vpop.f32.mrb[46].mxu1  ;;  %v9538_v49 = vpop.f32.mrb[47].mxu0 }
 0x59c   : > { %v10538_v0 = vmax.f32 %v12438_v41, 0.0  ;;  %v12471_v18 = vadd.f32 %v10440_v54, %v15803_v30  ;;  %v12440_v45 = vadd.f32 %v9538_v49, %v15805_v23  ;;  %v10442_v63 = vpop.f32.mrb[47].mxu1  ;;  %v10539_v16 = vmax.f32 %v12469_v25, 0.0 }
 0x59d   : > { %v10707_v7 = vmul.f32 %v15808_v43, %v10537_v26  ;;  %v10545_v51 = vmax.f32 %v12439_v34, 0.0  ;;  %v12472_v38 = vadd.f32 %v10442_v63, %v15810_v33  ;;  %v10540_v53 = vmax.f32 %v12470_v4, 0.0 }
 0x59e   : > { %v10708_v31 = vmul.f32 %v15814_v32, %v10538_v0  ;;  %v10546_v8 = vmax.f32 %v12440_v45, 0.0  ;;  %v10547_v62 = vmax.f32 %v12471_v18, 0.0  ;;  %10817 = vadd.xlane.f32.xlu1 %v10816_v40  ;;  %v10824_v46 = vadd.f32 %v10823_v21, %v10693_v42 }
 0x59f   : > { %v10840_v35 = vadd.f32 %v15433_v6, %v10707_v7  ;;  %v10715_v14 = vmul.f32 %v15808_v43, %v10545_v51  ;;  %v10833_v60 = vadd.f32 %v10832_v5, %v10701_v27  ;;  %v10548_v58 = vmax.f32 %v12472_v38, 0.0 }
 0x5a0   : > { %v10716_v20 = vmul.f32 %v15814_v32, %v10546_v8  ;;  %v9542_v57 = vpop.f32.mrb[48].mxu0  ;;  %v10825_v6 = vadd.f32 %v10824_v46, %v10694_v50  ;;  %v10709_v47 = vmul.f32 %v15817_v1, %v10539_v16  ;;  %v10710_v34 = vmul.f32 %v15828_v36, %v10540_v53 }
 0x5a1   : > { %v10841_v2 = vadd.f32 %v10840_v35, %v10708_v31  ;;  %v10849_v37 = vadd.f32 %v15462_v48, %v10715_v14  ;;  %v12441_v17 = vadd.f32 %v9542_v57, %v15800_v22  ;;  %v10446_v61 = vpop.f32.mrb[48].mxu1  ;;  %v9544_v28 = vpop.f32.mrb[49].mxu0  ;;  %v10834_v29 = vadd.f32 %v10833_v60, %v10702_v9 }
 0x5a2   : > { %v12473_v55 = vadd.f32 %v10446_v61, %v15803_v30  ;;  %v12442_v52 = vadd.f32 %v9544_v28, %v15805_v23  ;;  %v10448_v59 = vpop.f32.mrb[49].mxu1  ;;  %v9546_v39 = vpop.f32.mrb[50].mxu0  ;;  %10826 = vadd.xlane.f32.xlu0 %v10825_v6  ;;  %v10717_v0 = vmul.f32 %v15817_v1, %v10547_v62  ;;  %v10718_v18 = vmul.f32 %v15828_v36, %v10548_v58 }
 0x5a3   : > { %v10850_v15 = vadd.f32 %v10849_v37, %v10716_v20  ;;  %v10553_v21 = vmax.f32 %v12441_v17, 0.0  ;;  %v12474_v25 = vadd.f32 %v10448_v59, %v15810_v33  ;;  %v12443_v41 = vadd.f32 %v9546_v39, %v15800_v22  ;;  %v10450_v48 = vpop.f32.mrb[50].mxu1  ;;  %v9548_v19 = vpop.f32.mrb[51].mxu0  ;;  %10835 = vadd.xlane.f32.xlu1 %v10834_v29 }
 0x5a4   : > { %v10554_v40 = vmax.f32 %v12442_v52, 0.0  ;;  %v12475_v5 = vadd.f32 %v10450_v48, %v15803_v30  ;;  %v12444_v26 = vadd.f32 %v9548_v19, %v15805_v23  ;;  %v10452_v4 = vpop.f32.mrb[51].mxu1  ;;  %v10555_v7 = vmax.f32 %v12473_v55, 0.0 }
 0x5a5   : > { %v10723_v54 = vmul.f32 %v15808_v43, %v10553_v21  ;;  %v10561_v49 = vmax.f32 %v12443_v41, 0.0  ;;  %v12476_v42 = vadd.f32 %v10452_v4, %v15810_v33  ;;  %v10556_v51 = vmax.f32 %v12474_v25, 0.0 }
 0x5a6   : > { %v10724_v45 = vmul.f32 %v15814_v32, %v10554_v40  ;;  %v10562_v63 = vmax.f32 %v12444_v26, 0.0  ;;  %v10563_v27 = vmax.f32 %v12475_v5, 0.0  ;;  %v10842_v31 = vadd.f32 %v10841_v2, %v10709_v47 }
 0x5a7   : > { %v10858_v50 = vadd.f32 %v15489_v3, %v10723_v54  ;;  %v10731_v38 = vmul.f32 %v15808_v43, %v10561_v49  ;;  %v10851_v35 = vadd.f32 %v10850_v15, %v10717_v0  ;;  %v10564_v14 = vmax.f32 %v12476_v42, 0.0 }
 0x5a8   : > { %v10732_v9 = vmul.f32 %v15814_v32, %v10562_v63  ;;  %v9552_v8 = vpop.f32.mrb[52].mxu0  ;;  %v10843_v57 = vadd.f32 %v10842_v31, %v10710_v34  ;;  %v10725_v52 = vmul.f32 %v15817_v1, %v10555_v7  ;;  %v10726_v21 = vmul.f32 %v15828_v36, %v10556_v51 }
 0x5a9   : > { %v10859_v16 = vadd.f32 %v10858_v50, %v10724_v45  ;;  %v10867_v53 = vadd.f32 %v15515_v24, %v10731_v38  ;;  %v12445_v62 = vadd.f32 %v9552_v8, %v15800_v22  ;;  %v10456_v20 = vpop.f32.mrb[52].mxu1  ;;  %v9554_v46 = vpop.f32.mrb[53].mxu0  ;;  %v10852_v58 = vadd.f32 %v10851_v35, %v10718_v18 }
 0x5aa   : > { %v12477_v3 = vadd.f32 %v10456_v20, %v15803_v30  ;;  %v12446_v60 = vadd.f32 %v9554_v46, %v15805_v23  ;;  %v10458_v37 = vpop.f32.mrb[53].mxu1  ;;  %v9556_v17 = vpop.f32.mrb[54].mxu0  ;;  %10844 = vadd.xlane.f32.xlu0 %v10843_v57  ;;  %v10733_v19 = vmul.f32 %v15817_v1, %v10563_v27  ;;  %v10734_v47 = vmul.f32 %v15828_v36, %v10564_v14 }
 0x5ab   : > { %v10868_v61 = vadd.f32 %v10867_v53, %v10732_v9  ;;  %v10569_v2 = vmax.f32 %v12445_v62, 0.0  ;;  %v12478_v28 = vadd.f32 %v10458_v37, %v15810_v33  ;;  %v12447_v6 = vadd.f32 %v9556_v17, %v15800_v22  ;;  %v10460_v24 = vpop.f32.mrb[54].mxu1  ;;  %v9558_v55 = vpop.f32.mrb[55].mxu0  ;;  %10853 = vadd.xlane.f32.xlu1 %v10852_v58 }
 0x5ac   : > { %v10570_v59 = vmax.f32 %v12446_v60, 0.0  ;;  %v12479_v29 = vadd.f32 %v10460_v24, %v15803_v30  ;;  %v12448_v39 = vadd.f32 %v9558_v55, %v15805_v23  ;;  %v10462_v15 = vpop.f32.mrb[55].mxu1  ;;  %v10571_v4 = vmax.f32 %v12477_v3, 0.0 }
 0x5ad   : > { %v10739_v25 = vmul.f32 %v15808_v43, %v10569_v2  ;;  %v10577_v41 = vmax.f32 %v12447_v6, 0.0  ;;  %v12480_v48 = vadd.f32 %v10462_v15, %v15810_v33  ;;  %v10572_v34 = vmax.f32 %v12478_v28, 0.0 }
 0x5ae   : > { %v10740_v40 = vmul.f32 %v15814_v32, %v10570_v59  ;;  %v10578_v5 = vmax.f32 %v12448_v39, 0.0  ;;  %v10579_v49 = vmax.f32 %v12479_v29, 0.0  ;;  %v10860_v0 = vadd.f32 %v10859_v16, %v10725_v52 }
 0x5af   : > { %v10876_v26 = vadd.f32 %v15542_v11, %v10739_v25  ;;  %v10747_v54 = vmul.f32 %v15808_v43, %v10577_v41  ;;  %v10869_v45 = vadd.f32 %v10868_v61, %v10733_v19  ;;  %v10580_v7 = vmax.f32 %v12480_v48, 0.0 }
 0x5b0   : > { %v10748_v42 = vmul.f32 %v15814_v32, %v10578_v5  ;;  %v9562_v18 = vpop.f32.mrb[56].mxu0  ;;  %v10861_v9 = vadd.f32 %v10860_v0, %v10726_v21  ;;  %v10741_v57 = vmul.f32 %v15817_v1, %v10571_v4  ;;  %v10742_v17 = vmul.f32 %v15828_v36, %v10572_v34 }
 0x5b1   : > { %v10877_v63 = vadd.f32 %v10876_v26, %v10740_v40  ;;  %v10885_v50 = vadd.f32 %v15571_v44, %v10747_v54  ;;  %v12449_v51 = vadd.f32 %v9562_v18, %v15800_v22  ;;  %v10466_v38 = vpop.f32.mrb[56].mxu1  ;;  %v9564_v27 = vpop.f32.mrb[57].mxu0  ;;  %v10870_v35 = vadd.f32 %v10869_v45, %v10734_v47 }
 0x5b2   : > { %v12481_v11 = vadd.f32 %v10466_v38, %v15803_v30  ;;  %v12450_v31 = vadd.f32 %v9564_v27, %v15805_v23  ;;  %v10468_v8 = vpop.f32.mrb[57].mxu1  ;;  %v9566_v53 = vpop.f32.mrb[58].mxu0  ;;  %10862 = vadd.xlane.f32.xlu0 %v10861_v9  ;;  %v10749_v6 = vmul.f32 %v15817_v1, %v10579_v49  ;;  %v10750_v24 = vmul.f32 %v15828_v36, %v10580_v7 }
 0x5b3   : > { %v10886_v14 = vadd.f32 %v10885_v50, %v10748_v42  ;;  %v10585_v16 = vmax.f32 %v12449_v51, 0.0  ;;  %v12482_v62 = vadd.f32 %v10468_v8, %v15810_v33  ;;  %v12451_v20 = vadd.f32 %v9566_v53, %v15800_v22  ;;  %v10470_v44 = vpop.f32.mrb[58].mxu1  ;;  %v9568_v46 = vpop.f32.mrb[59].mxu0  ;;  %10871 = vadd.xlane.f32.xlu1 %v10870_v35 }
 0x5b4   : > { %v10587_v3 = vmax.f32 %v12481_v11, 0.0  ;;  %v10586_v60 = vmax.f32 %v12450_v31, 0.0  ;;  %v12452_v37 = vadd.f32 %v9568_v46, %v15805_v23  ;;  %v10472_v58 = vpop.f32.mrb[59].mxu1  ;;  %v12483_v28 = vadd.f32 %v10470_v44, %v15803_v30 }
 0x5b5   : > { %v10755_v61 = vmul.f32 %v15808_v43, %v10585_v16  ;;  %v10593_v2 = vmax.f32 %v12451_v20, 0.0  ;;  %v10588_v29 = vmax.f32 %v12482_v62, 0.0  ;;  %v12484_v15 = vadd.f32 %v10472_v58, %v15810_v33 }
 0x5b6   : > { %v10756_v55 = vmul.f32 %v15814_v32, %v10586_v60  ;;  %v10594_v52 = vmax.f32 %v12452_v37, 0.0  ;;  %v10757_v21 = vmul.f32 %v15817_v1, %v10587_v3  ;;  %v10878_v41 = vadd.f32 %v10877_v63, %v10741_v57 }
 0x5b7   : > { %v10894_v59 = vadd.f32 %v15598_v56, %v10755_v61  ;;  %v10763_v39 = vmul.f32 %v15808_v43, %v10593_v2  ;;  %v10887_v19 = vadd.f32 %v10886_v14, %v10749_v6  ;;  %v10595_v5 = vmax.f32 %v12483_v28, 0.0 }
 0x5b8   : > { %v10764_v25 = vmul.f32 %v15814_v32, %v10594_v52  ;;  %v9572_v48 = vpop.f32.mrb[60].mxu0  ;;  %v10879_v34 = vadd.f32 %v10878_v41, %v10742_v17  ;;  %v10596_v38 = vmax.f32 %v12484_v15, 0.0  ;;  %v10758_v16 = vmul.f32 %v15828_v36, %v10588_v29 }
 0x5b9   : > { %v10895_v47 = vadd.f32 %v10894_v59, %v10756_v55  ;;  %v10903_v40 = vadd.f32 %v15622_v13, %v10763_v39  ;;  %v12453_v26 = vadd.f32 %v9572_v48, %v15800_v22  ;;  %v10476_v4 = vpop.f32.mrb[60].mxu1  ;;  %v9574_v56 = vpop.f32.mrb[61].mxu0  ;;  %v10888_v0 = vadd.f32 %v10887_v19, %v10750_v24 }
 0x5ba   : > { %v12485_v54 = vadd.f32 %v10476_v4, %v15803_v30  ;;  %v12454_v49 = vadd.f32 %v9574_v56, %v15805_v23  ;;  %v10478_v42 = vpop.f32.mrb[61].mxu1  ;;  %v9576_v18 = vpop.f32.mrb[62].mxu0  ;;  %10880 = vadd.xlane.f32.xlu0 %v10879_v34  ;;  %v10766_v57 = vmul.f32 %v15828_v36, %v10596_v38 }
 0x5bb   : > { %v10904_v45 = vadd.f32 %v10903_v40, %v10764_v25  ;;  %v10601_v63 = vmax.f32 %v12453_v26, 0.0  ;;  %v12486_v50 = vadd.f32 %v10478_v42, %v15810_v33  ;;  %v12455_v7 = vadd.f32 %v9576_v18, %v15800_v22  ;;  %v10480_v13 = vpop.f32.mrb[62].mxu1  ;;  %v9578_v51 = vpop.f32.mrb[63].mxu0  ;;  %10889 = vadd.xlane.f32.xlu1 %v10888_v0 }
 0x5bc   : > { %v10602_v27 = vmax.f32 %v12454_v49, 0.0  ;;  %v12487_v9 = vadd.f32 %v10480_v13, %v15803_v30  ;;  %v12456_v11 = vadd.f32 %v9578_v51, %v15805_v23  ;;  %v10482_v31 = vpop.f32.mrb[63].mxu1  ;;  %v10603_v35 = vmax.f32 %v12485_v54, 0.0 }
 0x5bd   : > { %v10771_v8 = vmul.f32 %v15808_v43, %v10601_v63  ;;  %v10609_v53 = vmax.f32 %v12455_v7, 0.0  ;;  %v12488_v14 = vadd.f32 %v10482_v31, %v15810_v33  ;;  %v10765_v22 = vmul.f32 %v15817_v1, %v10595_v5 }
 0x5be   : > { %v10772_v62 = vmul.f32 %v15814_v32, %v10602_v27  ;;  %v10610_v20 = vmax.f32 %v12456_v11, 0.0  ;;  %v10604_v46 = vmax.f32 %v12486_v50, 0.0  ;;  %v10611_v23 = vmax.f32 %v12487_v9, 0.0 }
 0x5bf   : > { %v10912_v44 = vadd.f32 %v15639_v10, %v10771_v8  ;;  %v10779_v30 = vmul.f32 %v15808_v43, %v10609_v53  ;;  %v10896_v60 = vadd.f32 %v10895_v47, %v10757_v21  ;;  %v10905_v37 = vadd.f32 %v10904_v45, %v10765_v22 }
 0x5c0   : > { %v10780_v3 = vmul.f32 %v15814_v32, %v10610_v20  ;;  %v10773_v33 = vmul.f32 %v15817_v1, %v10603_v35  ;;  %v10612_v61 = vmax.f32 %v12488_v14, 0.0  ;;  %v10774_v10 = vmul.f32 %v15828_v36, %v10604_v46 }
 0x5c1   : > { %v10913_v58 = vadd.f32 %v10912_v44, %v10772_v62  ;;  %v10921_v17 = vadd.f32 %v15651_v12, %v10779_v30  ;;  %v10897_v2 = vadd.f32 %v10896_v60, %v10758_v16  ;;  %v10906_v28 = vadd.f32 %v10905_v37, %v10766_v57 }
 0x5c2   : > { %v10781_v6 = vmul.f32 %v15817_v1, %v10611_v23  ;;  %v10782_v32 = vmul.f32 %v15828_v36, %v10612_v61  ;;  %v15961_v12 = vstv %s10927_s29 }
 0x5c3   : > { %v10922_v43 = vadd.f32 %v10921_v17, %v10780_v3  ;;  %v10914_v24 = vadd.f32 %v10913_v58, %v10773_v33  ;;  %10898 = vadd.xlane.f32.xlu0 %v10897_v2  ;;  %10907 = vadd.xlane.f32.xlu1 %v10906_v28 }
 0x5c5   : > { %v10915_v55 = vadd.f32 %v10914_v24, %v10774_v10  ;;  %v10923_v52 = vadd.f32 %v10922_v43, %v10781_v6 }
 0x5c7   : > { %v10924_v59 = vadd.f32 %v10923_v52, %v10782_v32  ;;  %10916 = vadd.xlane.f32.xlu0 %v10915_v55 }
 0x5c9   : > { %10925 = vadd.xlane.f32.xlu1 %v10924_v59 }
 0x61f   : > { %v10791_v29 = vpop.xlane.xlu0 %10790 }
 0x620   : > { %v10929_v39 = vadd.f32 %v15961_v12, %v10791_v29 }
 0x622   : > { %13517 = vtanh.f32 %v10929_v39 }
 0x623   : > { %v10800_v1 = vpop.xlane.xlu0 %10799 }
 0x624   : > { %v10930_v15 = vadd.f32 %v15961_v12, %v10800_v1 }
 0x626   : > { %13519 = vtanh.f32 %v10930_v15 }
 0x627   : > { %v10809_v21 = vpop.xlane.xlu1 %10808 }
 0x628   : > { %v10931_v36 = vadd.f32 %v15961_v12, %v10809_v21 }
 0x62a   : > { %13521 = vtanh.f32 %v10931_v36 }
 0x62b   : > { %v10818_v41 = vpop.xlane.xlu1 %10817 }
 0x62c   : > { %v13518_v25 = vpop.eup %13517  ;;  %v10932_v48 = vadd.f32 %v15961_v12, %v10818_v41 }
 0x62d   : > { %10962 = vst.msk [vmem:[%s15967_s12] sm:$0xff] %vm10961_vm0, %v13518_v25 }
 0x62e   : > { %13523 = vtanh.f32 %v10932_v48 }
 0x62f   : > { %v10827_v47 = vpop.xlane.xlu0 %10826 }
 0x630   : > { %v13520_v19 = vpop.eup %13519  ;;  %v10836_v40 = vpop.xlane.xlu1 %10835  ;;  %v10933_v5 = vadd.f32 %v15961_v12, %v10827_v47 }
 0x631   : > { %10963 = vst.msk [vmem:[%s15967_s12 + $0x8] sm:$0xff] %vm10961_vm0, %v13520_v19  ;;  %v10934_v26 = vadd.f32 %v15961_v12, %v10836_v40 }
 0x632   : > { %13525 = vtanh.f32 %v10933_v5 }
 0x633   : > { %13527 = vtanh.f32 %v10934_v26 }
 0x634   : > { %v13522_v4 = vpop.eup %13521 }
 0x635   : > { %10964 = vst.msk [vmem:[%s15967_s12 + $0x10] sm:$0xff] %vm10961_vm0, %v13522_v4 }
 0x637   : > { %v10845_v56 = vpop.xlane.xlu0 %10844 }
 0x638   : > { %v10854_v34 = vpop.xlane.xlu1 %10853  ;;  %v13524_v54 = vpop.eup %13523  ;;  %v10935_v49 = vadd.f32 %v15961_v12, %v10845_v56 }
 0x639   : > { %v10936_v42 = vadd.f32 %v15961_v12, %v10854_v34  ;;  %10965 = vst.msk [vmem:[%s15967_s12 + $0x18] sm:$0xff] %vm10961_vm0, %v13524_v54 }
 0x63a   : > { %13529 = vtanh.f32 %v10935_v49 }
 0x63b   : > { %13531 = vtanh.f32 %v10936_v42 }
 0x63c   : > { %v13526_v0 = vpop.eup %13525 }
 0x63d   : > { %v13528_v18 = vpop.eup %13527  ;;  %10966 = vst.msk [vmem:[%s15967_s12 + $0x20] sm:$0xff] %vm10961_vm0, %v13526_v0 }
 0x63e   : > { %10967 = vst.msk [vmem:[%s15967_s12 + $0x28] sm:$0xff] %vm10961_vm0, %v13528_v18 }
 0x63f   : > { %v10863_v45 = vpop.xlane.xlu0 %10862 }
 0x640   : > { %v10872_v63 = vpop.xlane.xlu1 %10871  ;;  %v10937_v50 = vadd.f32 %v15961_v12, %v10863_v45 }
 0x641   : > { %v10938_v7 = vadd.f32 %v15961_v12, %v10872_v63 }
 0x642   : > { %13533 = vtanh.f32 %v10937_v50 }
 0x643   : > { %13535 = vtanh.f32 %v10938_v7 }
 0x644   : > { %v13530_v13 = vpop.eup %13529 }
 0x645   : > { %v13532_v51 = vpop.eup %13531  ;;  %10968 = vst.msk [vmem:[%s15967_s12 + $0x30] sm:$0xff] %vm10961_vm0, %v13530_v13 }
 0x646   : > { %10969 = vst.msk [vmem:[%s15967_s12 + $0x38] sm:$0xff] %vm10961_vm0, %v13532_v51 }
 0x647   : > { %v10881_v38 = vpop.xlane.xlu0 %10880 }
 0x648   : > { %v10890_v27 = vpop.xlane.xlu1 %10889  ;;  %v10939_v9 = vadd.f32 %v15961_v12, %v10881_v38 }
 0x649   : > { %v10940_v11 = vadd.f32 %v15961_v12, %v10890_v27 }
 0x64a   : > { %13537 = vtanh.f32 %v10939_v9 }
 0x64b   : > { %13539 = vtanh.f32 %v10940_v11 }
 0x64c   : > { %v13534_v31 = vpop.eup %13533 }
 0x64d   : > { %v13536_v8 = vpop.eup %13535  ;;  %10970 = vst.msk [vmem:[%s15967_s12 + $0x40] sm:$0xff] %vm10961_vm0, %v13534_v31 }
 0x64e   : > { %10971 = vst.msk [vmem:[%s15967_s12 + $0x48] sm:$0xff] %vm10961_vm0, %v13536_v8 }
 0x650   : > { %v10899_v35 = vpop.xlane.xlu0 %10898  ;;  %v10908_v53 = vpop.xlane.xlu1 %10907 }
 0x651   : > { %v10941_v14 = vadd.f32 %v15961_v12, %v10899_v35  ;;  %v10942_v16 = vadd.f32 %v15961_v12, %v10908_v53 }
 0x653   : > { %13541 = vtanh.f32 %v10941_v14 }
 0x654   : > { %13543 = vtanh.f32 %v10942_v16  ;;  %v10917_v22 = vpop.xlane.xlu0 %10916  ;;  %v13538_v62 = vpop.eup %13537 }
 0x655   : > { %v10943_v20 = vadd.f32 %v15961_v12, %v10917_v22  ;;  %v13540_v46 = vpop.eup %13539  ;;  %10972 = vst.msk [vmem:[%s15967_s12 + $0x50] sm:$0xff] %vm10961_vm0, %v13538_v62 }
 0x656   : > { %v10926_v44 = vpop.xlane.xlu1 %10925  ;;  %10973 = vst.msk [vmem:[%s15967_s12 + $0x58] sm:$0xff] %vm10961_vm0, %v13540_v46 }
 0x657   : > { %v10944_v30 = vadd.f32 %v15961_v12, %v10926_v44  ;;  %13545 = vtanh.f32 %v10943_v20 }
 0x659   : > { %13547 = vtanh.f32 %v10944_v30 }
 0x65d   : > { %v13542_v23 = vpop.eup %13541 }
 0x65e   : > { %v13544_v57 = vpop.eup %13543  ;;  %10974 = vst.msk [vmem:[%s15967_s12 + $0x60] sm:$0xff] %vm10961_vm0, %v13542_v23  ;;  %10984 = sbr.rel (!%p16624_p8) target bundleno = 1686 (0x696), region = 60 }
 0x65f   : > { %10975 = vst.msk [vmem:[%s15967_s12 + $0x68] sm:$0xff] %vm10961_vm0, %v13544_v57 }
 0x661   : > { %v13546_v3 = vpop.eup %13545 }
 0x662   : > { %10976 = vst.msk [vmem:[%s15967_s12 + $0x70] sm:$0xff] %vm10961_vm0, %v13546_v3 }
 0x663   : > { %v13548_v60 = vpop.eup %13547 }
 0x664   : > { %10977 = vst.msk [vmem:[%s15967_s12 + $0x78] sm:$0xff] %vm10961_vm0, %v13548_v60 }
 0x665   : > { %s16635_s18 = smov (!%p10987_p5, %s10986_s18), 16 }
 0x666   : > { %s12340_s19 = sshll.u32 %s16635_s18, 7 }
 0x667   : > { %p12343_p10 = scmp.eq.s32.totalorder %s12340_s19, 0 }
 0x668   : > { %s16027_s30 = sshrl.u32 (!%p12343_p10), %s16635_s18, 4 }
 0x669   : > { %10995 = sbr.rel (%p12343_p10) target bundleno = 1686 (0x696), region = 64  ;;  %p12344_p3 = scmp.le.s32.totalorder (!%p12343_p10), %s16027_s30, 0 }
 0x670   : > { %11219 = sbr.rel (%p12344_p3) target bundleno = 1665 (0x681), region = 146  ;;  %s16625_s4 = smov (!%p12344_p3), %s16021_s26 }
 0x671   : > { %s16626_s8 = smov (!%p12344_p3), %s15967_s12  ;;  %s16036_s7 = smov (!%p12344_p3), 0  }
 0x672   : > { %s16038_s10 = smov (!%p12344_p3), 0  }
 0x677 LB: >> { %v11087_v37 = vld [vmem:[%s13745_s8] sm:$0xff]  ;;  %v11089_v33 = vld [vmem:[%s13745_s8 + $0x8] sm:$0xff]  ;;  %v11091_v58 = vld [vmem:[%s13745_s8 + $0x10] sm:$0xff]  ;;  %s11119_s9 = sadd.s32 1, %s13749_s7  ;;  %s11081_s10 = sadd.s32 1, %s13753_s10   ;;  %s13753_s10 = sphi %s16038_s10, %s11081_s10   ;;  %s13749_s7 = sphi %s16036_s7, %s16627_s7   ;;  %s13745_s8 = sphi %s16626_s8, %s11124_s8   ;;  %s13741_s4 = sphi %s16625_s4, %s11125_s4  }
 0x678   : >> { %11088 = vst [vmem:[%s13741_s4] sm:$0xff] %v11087_v37  ;;  %11090 = vst [vmem:[%s13741_s4 + $0x8] sm:$0xff] %v11089_v33  ;;  %v11093_v17 = vld [vmem:[%s13745_s8 + $0x18] sm:$0xff]  ;;  %v11095_v61 = vld [vmem:[%s13745_s8 + $0x20] sm:$0xff]  ;;  %p11120_p11 = scmp.ge.s32.totalorder %s11119_s9, %s16027_s30  ;;  %p11080_p13 = scmp.ge.s32.totalorder %s11081_s10, %s16027_s30 }
 0x679   : >> { %11092 = vst [vmem:[%s13741_s4 + $0x10] sm:$0xff] %v11091_v58  ;;  %v11097_v2 = vld [vmem:[%s13745_s8 + $0x28] sm:$0xff]  ;;  %11094 = vst [vmem:[%s13741_s4 + $0x18] sm:$0xff] %v11093_v17  ;;  %v11099_v28 = vld [vmem:[%s13745_s8 + $0x30] sm:$0xff] }
 0x67a   : >> { %11096 = vst [vmem:[%s13741_s4 + $0x20] sm:$0xff] %v11095_v61  ;;  %11098 = vst [vmem:[%s13741_s4 + $0x28] sm:$0xff] %v11097_v2  ;;  %v11101_v10 = vld [vmem:[%s13745_s8 + $0x38] sm:$0xff]  ;;  %v11103_v6 = vld [vmem:[%s13745_s8 + $0x40] sm:$0xff]  ;;  %s16637_s9 = smov (%p11120_p11, %s11119_s9), 0  ;;  %11083 = sbr.rel (!%p11080_p13) target bundleno = 1655 (0x677), region = 152 }
 0x67b   : >> { %11100 = vst [vmem:[%s13741_s4 + $0x30] sm:$0xff] %v11099_v28  ;;  %11102 = vst [vmem:[%s13741_s4 + $0x38] sm:$0xff] %v11101_v10  ;;  %v11105_v43 = vld [vmem:[%s13745_s8 + $0x48] sm:$0xff]  ;;  %v11107_v24 = vld [vmem:[%s13745_s8 + $0x50] sm:$0xff]  ;;  %s12345_s13 = sshll.u32 %s16637_s9, 7  ;;  %s16627_s7 = smov %s16637_s9 }
 0x67c   : >> { %11104 = vst [vmem:[%s13741_s4 + $0x40] sm:$0xff] %v11103_v6  ;;  %v11109_v32 = vld [vmem:[%s13745_s8 + $0x58] sm:$0xff]  ;;  %11106 = vst [vmem:[%s13741_s4 + $0x48] sm:$0xff] %v11105_v43  ;;  %v11111_v55 = vld [vmem:[%s13745_s8 + $0x60] sm:$0xff] }
 0x67d   : >> { %11108 = vst [vmem:[%s13741_s4 + $0x50] sm:$0xff] %v11107_v24  ;;  %11110 = vst [vmem:[%s13741_s4 + $0x58] sm:$0xff] %v11109_v32  ;;  %v11113_v52 = vld [vmem:[%s13745_s8 + $0x68] sm:$0xff]  ;;  %v11115_v59 = vld [vmem:[%s13745_s8 + $0x70] sm:$0xff] }
 0x67e   : >> { %11112 = vst [vmem:[%s13741_s4 + $0x60] sm:$0xff] %v11111_v55  ;;  %11114 = vst [vmem:[%s13741_s4 + $0x68] sm:$0xff] %v11113_v52  ;;  %v11117_v12 = vld [vmem:[%s13745_s8 + $0x78] sm:$0xff]  ;;  %s11124_s8 = scalar_lea.vmem %s15967_s12, %s12345_s13 [#allocation10]  }
 0x67f   : >> { %11116 = vst [vmem:[%s13741_s4 + $0x70] sm:$0xff] %v11115_v59  ;;  %11118 = vst [vmem:[%s13741_s4 + $0x78] sm:$0xff] %v11117_v12  ;;  %s11125_s4 = scalar_lea.vmem %s16021_s26, %s12345_s13  }
 0x681 PF: > { %s16096_s28 = sand.u32 15, %s16635_s18   ;;  %s12359_s15 = sshll.u32 %s16027_s30, 7 }
 0x682   : > { %s11130_s16 = scalar_lea.vmem %s15967_s12, %s12359_s15 [#allocation10]   ;;  %s11132_s20 = scalar_lea.vmem %s16021_s26, %s12359_s15  }
 0x683   : > { %p12350_p1 = scmp.le.s32.totalorder %s16096_s28, 0 }
 0x684   : > { %s13755_s25 = smov (!%p12350_p1), %s11132_s20   ;;  %s13759_s29 = smov (!%p12350_p1), %s11130_s16  }
 0x685   : > { %11233 = sbr.rel (%p12350_p1) target bundleno = 1686 (0x696), region = 157  ;;  %s13763_s6 = smov (!%p12350_p1), 0  }
 0x686   : > { %s13767_s14 = smov (!%p12350_p1), 0  }
 0x68c LB: >> { %v11142_v29 = vld [vmem:[%s13761_s29] sm:$0xff]  ;;  %s11144_s17 = sadd.s32 1, %s13765_s6  ;;  %s11136_s14 = sadd.s32 1, %s13769_s14   ;;  %s13769_s14 = sphi %s13767_s14, %s11136_s14   ;;  %s13765_s6 = sphi %s13763_s6, %s13764_s6   ;;  %s13761_s29 = sphi %s13759_s29, %s11149_s29   ;;  %s13757_s25 = sphi %s13755_s25, %s11150_s25  }
 0x68d   : >> { %11143 = vst [vmem:[%s13757_s25] sm:$0xff] %v11142_v29  ;;  %p11145_p7 = scmp.ge.s32.totalorder %s11144_s17, %s16096_s28  ;;  %p11135_p6 = scmp.ge.s32.totalorder %s11136_s14, %s16096_s28 }
 0x68f   : >> { %s16639_s17 = smov (%p11145_p7, %s11144_s17), 0  ;;  %11138 = sbr.rel (!%p11135_p6) target bundleno = 1676 (0x68c), region = 163 }
 0x690   : >> { %s12351_s12 = sshll.u32 %s16639_s17, 3  ;;  %s13764_s6 = smov %s16639_s17  }
 0x691   : >> { %s11149_s29 = scalar_lea.vmem %s11130_s16, %s12351_s12 [#allocation10]   ;;  %s11150_s25 = scalar_lea.vmem %s11132_s20, %s12351_s12  }
 0x696 PF: > { %p18_p9 = scmp.ge.s32.totalorder %s13834_s24, 4   ;;  %s16628_s20 = smov %s13729_s21 }
 0x697   : > { %s16629_s21 = smov %s13733_s22  ;;  %s16630_s22 = smov %s13844_s27 }
 0x698   : > { %s16631_s23 = smov %s13834_s24  ;;  %20 = sbr.rel (!%p18_p9) target bundleno = 7 (0x7), region = 174 }
 0x69f   :  { %11166 = vsyncpa [#allocation4], 1 }
 0x6a0   :  { %11168 = vsyncpa [#allocation4 + $0x1], 1 }
 0x6a1   :  { %11169 = vsyncpa [#allocation6], 1 }
 0x6a2   :  { %11170 = vsyncpa [#allocation9], 1 }

</bundles_post_ra>
